<compile_context>
chip_gen: v7x
topology: tpu7x:2x2x1
jax: 0.10.0
libtpu: 0.0.40
codegen_flags: <defaults>
</compile_context>

<pallas_src>
import functools

import jax
import jax.numpy as jnp
import numpy as np
from jax.experimental import pallas as pl
from jax.experimental.pallas import tpu as pltpu


# ----------------------------------------------------------------------------
# Neighbor offsets reproducing F.unfold(k=3, dil=1, pad=1) + F.unfold(k=3, dil=3,
# pad=3) with the dilation-3 center tap dropped (17 taps total, unfold order).
# ----------------------------------------------------------------------------
_OFFSETS = []
for _ky in range(3):
    for _kx in range(3):
        _OFFSETS.append((_ky - 1, _kx - 1))                  # dilation 1 (9 taps)
for _ky in range(3):
    for _kx in range(3):
        if (_ky, _kx) == (1, 1):
            continue
        _OFFSETS.append(((_ky - 1) * 3, (_kx - 1) * 3))      # dilation 3 (8 taps)
NUM_TAPS = len(_OFFSETS)  # 17


def _pick_tile(hw, w_img, max_tile=2048):
    """Pixel-tile size: a multiple of the image width (tiles are whole rows),
    divides HW, big enough to contain the +-3 row/col halo, prefers lane
    alignment (multiple of 128) and >= 2 grid steps (v7x megacore)."""
    min_tile = 6 * w_img + 8
    best = None
    t = w_img
    while t <= min(hw, max_tile):
        if hw % t == 0 and t >= min_tile:
            score = (t % 128 == 0, hw // t >= 2, t)
            if best is None or score > best[1]:
                best = (t, score)
        t += w_img
    if best is not None:
        return best[0]
    if hw >= min_tile:
        return hw  # single-tile fallback
    raise ValueError("image too small for the 17-tap halo scheme (need h >= 7)")


# ----------------------------------------------------------------------------
# Pallas kernels
# ----------------------------------------------------------------------------
def _fused_conv_kernel(x_ref, w_ref, b_ref, *out_refs, splits):
    # x: (B, C, T)  w: (Ctot, C)  b: (Ctot, 1)  outputs: (B, oc_i, T) each.
    xv = x_ref[...]
    wv = w_ref[...]
    bv = b_ref[...]
    for n in range(xv.shape[0]):
        o = jnp.dot(wv, xv[n], preferred_element_type=jnp.float32) + bv  # (Ctot, T)
        s = 0
        for ref, oc in zip(out_refs, splits):
            ref[n, :, :] = o[s:s + oc, :]
            s += oc


def _attn_out_kernel(th_a_ref, th_b_ref, g_a_ref, g_b_ref,
                     a_a_ref, a_b_ref, gr_a_ref, gr_b_ref,
                     phi_ref, b_ref, x_ref, w_ref, bias_ref, o_ref,
                     *, n_frames, ic, tile, w_img, offsets, fp):
    num_taps = len(offsets)
    nkeys = n_frames * num_taps

    # 2*tile-wide windows of the row-padded, flattened feature maps.  Every
    # neighbour tap is then a static lane-offset slice of these windows.
    th_win = jnp.concatenate([th_a_ref[...], th_b_ref[...]], axis=-1)   # (N, IC, 2T)
    g_win = jnp.concatenate([g_a_ref[...], g_b_ref[...]], axis=-1)      # (N, IC, 2T)
    a_win = jnp.concatenate([a_a_ref[...], a_b_ref[...]], axis=-1)      # (1, 2T)
    gr_win = jnp.concatenate([gr_a_ref[...], gr_b_ref[...]], axis=-1)   # (IC, 2T)

    # column index of every pixel in the tile (tiles start on a row boundary)
    col = jax.lax.broadcasted_iota(jnp.int32, (1, tile), 1) % w_img

    th_taps, g_taps, a_taps, gr_taps = [], [], [], []
    for dy, dx in offsets:
        off = fp + dy * w_img + dx                       # static lane offset
        m = ((col + dx >= 0) & (col + dx < w_img)).astype(jnp.float32)  # (1, T)
        th_taps.append(th_win[:, :, off:off + tile] * m)  # (N, IC, T)
        g_taps.append(g_win[:, :, off:off + tile] * m)    # (N, IC, T)
        gr_taps.append(gr_win[:, off:off + tile] * m)     # (IC, T)
        # 'a' needs no column mask: it only enters via products with masked g_rgb
        a_taps.append(a_win[:, off:off + tile])            # (1, T)

    # key order j = n*17 + k (matches the torch unfold/view/permute pipeline)
    th_all = jnp.stack([th_taps[k][n] for n in range(n_frames)
                        for k in range(num_taps)], axis=0)   # (J, IC, T)
    g_all = jnp.stack([g_taps[k][n] for n in range(n_frames)
                       for k in range(num_taps)], axis=0)    # (J, IC, T)
    a_all = jnp.concatenate(a_taps, axis=0)                  # (17, T)
    gr_all = jnp.stack(gr_taps, axis=0)                      # (17, IC, T)

    phi = phi_ref[...]       # (N, IC, T)
    bmap = b_ref[...]        # (N, T)
    xres = x_ref[...]        # (N, C, T)
    wcat = w_ref[...]        # (C, 2*IC)   [W_w | rgb_W_w]
    bias = bias_ref[...]     # (C, 1)
    inv_keys = 1.0 / num_taps

    for i in range(n_frames):
        # ---- focal branch: softmax attention over the N*17 neighbour keys ----
        f = th_all[:, 0, :] * phi[i, 0:1, :]
        for c in range(1, ic):
            f = f + th_all[:, c, :] * phi[i, c:c + 1, :]     # (J, T)
        f = f - jnp.max(f, axis=0, keepdims=True)
        e = jnp.exp(f)
        p = e * pl.reciprocal(jnp.sum(e, axis=0, keepdims=True), approx=True)
        y_i = jnp.concatenate(
            [jnp.sum(p * g_all[:, c, :], axis=0, keepdims=True) for c in range(ic)],
            axis=0)                                          # (IC, T)

        # ---- rgb branch: relu(b + a) / 17 attention over the 17 rgb keys ----
        f_rgb = jnp.maximum(bmap[i:i + 1, :] + a_all, 0.0) * inv_keys   # (17, T)
        yr_i = jnp.concatenate(
            [jnp.sum(f_rgb * gr_all[:, c, :], axis=0, keepdims=True) for c in range(ic)],
            axis=0)                                          # (IC, T)

        # ---- fused output projection (single stacked matmul) + residual ----
        ycat = jnp.concatenate([y_i, yr_i], axis=0)          # (2*IC, T)
        z_i = (jnp.dot(wcat, ycat, preferred_element_type=jnp.float32)
               + bias + xres[i])                             # (C, T)
        o_ref[i, :, :] = z_i


# ----------------------------------------------------------------------------
# Pallas wrappers
# ----------------------------------------------------------------------------
def fused_conv1x1(x_flat, weight, bias, splits, tile):
    """x_flat: (B, C, HW), weight: (sum(splits), C), bias: (sum(splits),).
    Returns one (B, oc, HW) f32 array per entry of `splits` (pixels last)."""
    B, C, HW = x_flat.shape
    Ctot = weight.shape[0]
    assert sum(splits) == Ctot and HW % tile == 0
    kern = functools.partial(_fused_conv_kernel, splits=tuple(splits))
    out_shapes = tuple(jax.ShapeDtypeStruct((B, oc, HW), jnp.float32) for oc in splits)
    out_specs = tuple(pl.BlockSpec((B, oc, tile), lambda i: (0, 0, i)) for oc in splits)
    return pl.pallas_call(
        kern,
        out_shape=out_shapes,
        grid=(HW // tile,),
        in_specs=[
            pl.BlockSpec((B, C, tile), lambda i: (0, 0, i)),
            pl.BlockSpec((Ctot, C), lambda i: (0, 0)),
            pl.BlockSpec((Ctot, 1), lambda i: (0, 0)),
        ],
        out_specs=out_specs,
        compiler_params=pltpu.CompilerParams(dimension_semantics=("parallel",)),
    )(x_flat, weight, bias.reshape(Ctot, 1))


def fused_attention_out(phi, theta, g, b_map, a_map, g_rgb, x_flat,
                        W_w, rgb_W_w, bias_sum, tile, w_img):
    """Fused focal attention + rgb attention + output projection + residual.

    phi/theta/g: (N, IC, HW); b_map: (N, HW); a_map: (1, HW); g_rgb: (IC, HW);
    x_flat: (N, C, HW).  Returns z: (N, C, HW).
    """
    Nf, IC, HW = phi.shape
    C = W_w.shape[0]
    assert HW % tile == 0 and tile % w_img == 0 and tile >= 6 * w_img + 8

    # Row padding of the flattened pixel axis (3 image rows + slack on each
    # side, total exactly one extra tile) so neighbour taps become static
    # shifts; column-edge zeros are applied with the in-kernel mask.
    fp = 3 * w_img + 4
    bp = tile - fp
    assert bp >= 3 * w_img + 3

    def pad_flat(t):
        return jnp.pad(t, [(0, 0)] * (t.ndim - 1) + [(fp, bp)])

    theta_pad = pad_flat(theta)          # (N, IC, HW + tile)
    g_pad = pad_flat(g)                  # (N, IC, HW + tile)
    a_pad = pad_flat(a_map)              # (1, HW + tile)
    gr_pad = pad_flat(g_rgb)             # (IC, HW + tile)

    wcat = jnp.concatenate([W_w, rgb_W_w], axis=1)           # (C, 2*IC)
    bias = bias_sum.reshape(C, 1)

    kern = functools.partial(
        _attn_out_kernel, n_frames=Nf, ic=IC, tile=tile, w_img=w_img,
        offsets=tuple(_OFFSETS), fp=fp)

    idx3_a = lambda r: (0, 0, r)
    idx3_b = lambda r: (0, 0, r + 1)
    idx2_a = lambda r: (0, r)
    idx2_b = lambda r: (0, r + 1)

    return pl.pallas_call(
        kern,
        out_shape=jax.ShapeDtypeStruct((Nf, C, HW), jnp.float32),
        grid=(HW // tile,),
        in_specs=[
            pl.BlockSpec((Nf, IC, tile), idx3_a),   # theta chunk r
            pl.BlockSpec((Nf, IC, tile), idx3_b),   # theta chunk r+1
            pl.BlockSpec((Nf, IC, tile), idx3_a),   # g     chunk r
            pl.BlockSpec((Nf, IC, tile), idx3_b),   # g     chunk r+1
            pl.BlockSpec((1, tile), idx2_a),        # a     chunk r
            pl.BlockSpec((1, tile), idx2_b),        # a     chunk r+1
            pl.BlockSpec((IC, tile), idx2_a),       # g_rgb chunk r
            pl.BlockSpec((IC, tile), idx2_b),       # g_rgb chunk r+1
            pl.BlockSpec((Nf, IC, tile), idx3_a),   # phi
            pl.BlockSpec((Nf, tile), idx2_a),       # b map
            pl.BlockSpec((Nf, C, tile), idx3_a),    # x residual
            pl.BlockSpec((C, 2 * IC), lambda r: (0, 0)),   # stacked output weight
            pl.BlockSpec((C, 1), lambda r: (0, 0)),        # summed bias
        ],
        out_specs=pl.BlockSpec((Nf, C, tile), idx3_a),
        compiler_params=pltpu.CompilerParams(dimension_semantics=("parallel",)),
    )(theta_pad, theta_pad, g_pad, g_pad, a_pad, a_pad, gr_pad, gr_pad,
      phi, b_map, x_flat, wcat, bias)


# ----------------------------------------------------------------------------
# Full forward pass (matches _NonLocalBlockND.forward with dimension=2,
# sub_sample=False, bn_layer=False)
# ----------------------------------------------------------------------------
def non_local_forward(x, rgb, p):
    Nf, C, h, w = x.shape
    IC = p["g_w"].shape[0]
    HW = h * w
    assert rgb.shape[2] == h and rgb.shape[3] == w

    tile = _pick_tile(HW, w)

    x_flat = x.reshape(Nf, C, HW)
    rgb_flat = rgb.reshape(rgb.shape[0], C, HW)

    w1 = p["concat_w"][:IC]    # concat_project weights for the theta_rgb half
    w2 = p["concat_w"][IC:]    # concat_project weights for the rgb_phi(x) half

    # fused x-branch 1x1 conv: [g | theta | phi | b], b = w2 . rgb_phi(x)
    wx = jnp.concatenate(
        [p["g_w"], p["theta_w"], p["phi_w"], (w2 @ p["rgb_phi_w"]).reshape(1, C)],
        axis=0)
    bx = jnp.concatenate(
        [p["g_b"], p["theta_b"], p["phi_b"], jnp.dot(w2, p["rgb_phi_b"]).reshape(1)],
        axis=0)
    g_x, theta_x, phi_x, b_map = fused_conv1x1(x_flat, wx, bx, (IC, IC, IC, 1), tile)

    # fused rgb-branch 1x1 conv: [g_rgb | a], a = w1 . rgb_theta(rgb)
    wr = jnp.concatenate([p["rgb_g_w"], (w1 @ p["rgb_theta_w"]).reshape(1, C)], axis=0)
    br = jnp.concatenate([p["rgb_g_b"], jnp.dot(w1, p["rgb_theta_b"]).reshape(1)], axis=0)
    g_rgb, a_map = fused_conv1x1(rgb_flat, wr, br, (IC, 1), tile)

    z_flat = fused_attention_out(
        phi_x, theta_x, g_x,
        b_map.reshape(Nf, HW), a_map.reshape(1, HW), g_rgb.reshape(IC, HW),
        x_flat, p["W_w"], p["rgb_W_w"], p["W_b"] + p["rgb_W_b"],
        tile, w)
    return z_flat.reshape(Nf, C, h, w)


# ----------------------------------------------------------------------------
# Pure-JAX reference (mirrors the torch forward math) for validation
# ----------------------------------------------------------------------------
def gather_neighbors(feat):
    """feat: (B, C, h, w) -> (h*w, B*17, C), zero-padded at the borders."""
    B, C, h, w = feat.shape
    pad = jnp.pad(feat, ((0, 0), (0, 0), (3, 3), (3, 3)))
    shifted = [pad[:, :, 3 + dy:3 + dy + h, 3 + dx:3 + dx + w] for dy, dx in _OFFSETS]
    nb = jnp.stack(shifted, axis=2)                 # (B, C, 17, h, w)
    nb = nb.reshape(B, C, NUM_TAPS, h * w)
    nb = nb.transpose(3, 0, 2, 1)                   # (HW, B, 17, C)
    return nb.reshape(h * w, B * NUM_TAPS, C)


def reference_forward(x, rgb, p):
    Nf, C, h, w = x.shape
    IC = p["g_w"].shape[0]
    HW = h * w

    def conv1x1(t, wt, b):
        return jnp.einsum("nchw,oc->nohw", t, wt) + b[None, :, None, None]

    g_x = conv1x1(x, p["g_w"], p["g_b"])
    theta_x = conv1x1(x, p["theta_w"], p["theta_b"])
    phi_x = conv1x1(x, p["phi_w"], p["phi_b"])
    g_nb = gather_neighbors(g_x)
    th_nb = gather_neighbors(theta_x)
    phi_pix = phi_x.reshape(Nf, IC, HW).transpose(2, 0, 1)
    f = jnp.einsum("pic,pjc->pij", phi_pix, th_nb)
    f = jax.nn.softmax(f, axis=-1)
    y = jnp.einsum("pij,pjc->pic", f, g_nb)

    g_rgb = conv1x1(rgb, p["rgb_g_w"], p["rgb_g_b"])
    th_rgb = conv1x1(rgb, p["rgb_theta_w"], p["rgb_theta_b"])
    phi_rgb = conv1x1(x, p["rgb_phi_w"], p["rgb_phi_b"])
    g_rgb_nb = gather_neighbors(g_rgb)
    th_rgb_nb = gather_neighbors(th_rgb)
    phi_rgb_pix = phi_rgb.reshape(Nf, IC, HW).transpose(2, 0, 1)
    w1, w2 = p["concat_w"][:IC], p["concat_w"][IC:]
    a = jnp.einsum("pkc,c->pk", th_rgb_nb, w1)
    b = jnp.einsum("pnc,c->pn", phi_rgb_pix, w2)
    f_rgb = jnp.maximum(b[:, :, None] + a[:, None, :], 0.0) / NUM_TAPS
    y_rgb = jnp.einsum("pnk,pkc->pnc", f_rgb, g_rgb_nb)

    Wy = jnp.einsum("pnc,oc->pno", y, p["W_w"]) + p["W_b"]
    Wy_rgb = jnp.einsum("pnc,oc->pno", y_rgb, p["rgb_W_w"]) + p["rgb_W_b"]
    Wy = Wy.transpose(1, 2, 0).reshape(Nf, C, h, w)
    Wy_rgb = Wy_rgb.transpose(1, 2, 0).reshape(Nf, C, h, w)
    return Wy + Wy_rgb + x


# ----------------------------------------------------------------------------
# Deterministic parameter init (shapes per _NonLocalBlockND.__init__).  The
# original zero-inits self.W; random values are used so every kernel path is
# actually exercised; the forward-pass math is reproduced exactly.
# ----------------------------------------------------------------------------
def init_params(key, C, IC):
    ks = jax.random.split(key, 17)

    def rnd(k, shape):
        return jax.random.normal(k, shape, jnp.float32) * 0.2

    return {
        "g_w": rnd(ks[0], (IC, C)), "g_b": rnd(ks[1], (IC,)),
        "theta_w": rnd(ks[2], (IC, C)), "theta_b": rnd(ks[3], (IC,)),
        "phi_w": rnd(ks[4], (IC, C)), "phi_b": rnd(ks[5], (IC,)),
        "W_w": rnd(ks[6], (C, IC)), "W_b": rnd(ks[7], (C,)),
        "rgb_g_w": rnd(ks[8], (IC, C)), "rgb_g_b": rnd(ks[9], (IC,)),
        "rgb_phi_w": rnd(ks[10], (IC, C)), "rgb_phi_b": rnd(ks[11], (IC,)),
        "rgb_theta_w": rnd(ks[12], (IC, C)), "rgb_theta_b": rnd(ks[13], (IC,)),
        "concat_w": rnd(ks[14], (2 * IC,)),          # Conv2d(2*IC -> 1, bias=False)
        "rgb_W_w": rnd(ks[15], (C, IC)), "rgb_W_b": rnd(ks[16], (C,)),
    }


if __name__ == "__main__":
    key = jax.random.PRNGKey(0)
    kx, krgb, kp = jax.random.split(key, 3)

    Nf, C, H, W = 2, 4, 16, 16          # focal stack of 2 frames, 4 channels, 16x16
    IC = C // 2
    x = jax.random.normal(kx, (Nf, C, H, W), jnp.float32)
    rgb = jax.random.normal(krgb, (1, C, H, W), jnp.float32)
    params = init_params(kp, C, IC)

    z = jax.jit(non_local_forward)(x, rgb, params)
    z = jax.block_until_ready(z)

    z_ref = reference_forward(x, rgb, params)
    np.testing.assert_allclose(np.asarray(z), np.asarray(z_ref), rtol=2e-3, atol=2e-3)
    assert z.shape == (Nf, C, H, W)
    print("KERNEL_OK")
</pallas_src>

<mosaic_0001>
module attributes {stable_mosaic.version = 11 : i64} {
  func.func @_fused_conv_kernel(%arg0: i32, %arg1: memref<1x4x128xf32, #tpu.memory_space<vmem>>, %arg2: memref<3x4xf32, #tpu.memory_space<vmem>>, %arg3: memref<3x1xf32, #tpu.memory_space<vmem>>, %arg4: memref<1x2x128xf32, #tpu.memory_space<vmem>>, %arg5: memref<1x1x128xf32, #tpu.memory_space<vmem>>) attributes {dimension_semantics = [#tpu.dimension_semantics<parallel>], iteration_bounds = array<i64: 2>, scalar_prefetch = 0 : i64, scratch_operands = 0 : i64, tpu.core_type = #tpu.core_type<tc>, window_params = [{transform_indices = @transform_0, window_bounds = array<i64: 1, 4, 128>}, {pipeline_mode = #tpu.pipeline_mode<synchronous>, transform_indices = @transform_1, window_bounds = array<i64: 3, 4>}, {pipeline_mode = #tpu.pipeline_mode<synchronous>, transform_indices = @transform_2, window_bounds = array<i64: 3, 1>}, {transform_indices = @transform_3, window_bounds = array<i64: 1, 2, 128>}, {transform_indices = @transform_4, window_bounds = array<i64: 1, 1, 128>}]} {
    %c0 = arith.constant 0 : index
    %c0_0 = arith.constant 0 : index
    %c0_1 = arith.constant 0 : index
    %0 = vector.load %arg1[%c0, %c0_0, %c0_1] : memref<1x4x128xf32, #tpu.memory_space<vmem>>, vector<1x4x128xf32>
    %c0_2 = arith.constant 0 : index
    %c0_3 = arith.constant 0 : index
    %1 = vector.load %arg2[%c0_2, %c0_3] : memref<3x4xf32, #tpu.memory_space<vmem>>, vector<3x4xf32>
    %c0_4 = arith.constant 0 : index
    %c0_5 = arith.constant 0 : index
    %2 = vector.load %arg3[%c0_4, %c0_5] : memref<3x1xf32, #tpu.memory_space<vmem>>, vector<3x1xf32>
    %3 = vector.shape_cast %0 : vector<1x4x128xf32> to vector<4x128xf32>
    %cst = arith.constant dense<0.000000e+00> : vector<3x128xf32>
    %4 = tpu.matmul %1, %3, %cst {dimension_numbers = #tpu.dot_dimension_numbers<[1], [0], [0], [1], [0, 0, 1, 1], [], []>} : vector<3x4xf32>, vector<4x128xf32>, vector<3x128xf32> -> vector<3x128xf32>
    %5 = vector.broadcast %2 : vector<3x1xf32> to vector<3x128xf32>
    %6 = arith.addf %4, %5 : vector<3x128xf32>
    %7 = vector.extract_strided_slice %6 {offsets = [0, 0], sizes = [2, 128], strides = [1, 1]} : vector<3x128xf32> to vector<2x128xf32>
    %c0_6 = arith.constant 0 : index
    %c0_7 = arith.constant 0 : index
    %c0_8 = arith.constant 0 : index
    %8 = vector.load %arg4[%c0_6, %c0_7, %c0_8] : memref<1x2x128xf32, #tpu.memory_space<vmem>>, vector<1x2x128xf32>
    %9 = vector.shape_cast %8 : vector<1x2x128xf32> to vector<2x128xf32>
    %10 = vector.shape_cast %7 : vector<2x128xf32> to vector<1x2x128xf32>
    tpu.vector_store %arg4[%c0_6, %c0_7, %c0_8], %10 {strides = array<i32>} : memref<1x2x128xf32, #tpu.memory_space<vmem>>, vector<1x2x128xf32>,
    %11 = vector.extract_strided_slice %6 {offsets = [2, 0], sizes = [1, 128], strides = [1, 1]} : vector<3x128xf32> to vector<1x128xf32>
    %c0_9 = arith.constant 0 : index
    %c0_10 = arith.constant 0 : index
    %c0_11 = arith.constant 0 : index
    %12 = vector.load %arg5[%c0_9, %c0_10, %c0_11] : memref<1x1x128xf32, #tpu.memory_space<vmem>>, vector<1x1x128xf32>
    %13 = vector.shape_cast %12 : vector<1x1x128xf32> to vector<1x128xf32>
    %14 = vector.shape_cast %11 : vector<1x128xf32> to vector<1x1x128xf32>
    tpu.vector_store %arg5[%c0_9, %c0_10, %c0_11], %14 {strides = array<i32>} : memref<1x1x128xf32, #tpu.memory_space<vmem>>, vector<1x1x128xf32>,
    return
  }
  func.func @transform_0(%arg0: i32) -> (i32, i32, i32) {
    %c0_i32 = arith.constant 0 : i32
    %c0_i32_0 = arith.constant 0 : i32
    %c0_i32_1 = arith.constant 0 : i32
    return %c0_i32, %c0_i32_0, %arg0 : i32, i32, i32
  }
  func.func @transform_1(%arg0: i32) -> (i32, i32) {
    %c0_i32 = arith.constant 0 : i32
    %c0_i32_0 = arith.constant 0 : i32
    %c0_i32_1 = arith.constant 0 : i32
    return %c0_i32, %c0_i32_0 : i32, i32
  }
  func.func @transform_2(%arg0: i32) -> (i32, i32) {
    %c0_i32 = arith.constant 0 : i32
    %c0_i32_0 = arith.constant 0 : i32
    %c0_i32_1 = arith.constant 0 : i32
    return %c0_i32, %c0_i32_0 : i32, i32
  }
  func.func @transform_3(%arg0: i32) -> (i32, i32, i32) {
    %c0_i32 = arith.constant 0 : i32
    %c0_i32_0 = arith.constant 0 : i32
    %c0_i32_1 = arith.constant 0 : i32
    return %c0_i32, %c0_i32_0, %arg0 : i32, i32, i32
  }
  func.func @transform_4(%arg0: i32) -> (i32, i32, i32) {
    %c0_i32 = arith.constant 0 : i32
    %c0_i32_0 = arith.constant 0 : i32
    %c0_i32_1 = arith.constant 0 : i32
    return %c0_i32, %c0_i32_0, %arg0 : i32, i32, i32
  }
}

module attributes {stable_mosaic.version = 11 : i64} {
  func.func @_fused_conv_kernel(%arg0: i32, %arg1: memref<2x4x128xf32, #tpu.memory_space<vmem>>, %arg2: memref<7x4xf32, #tpu.memory_space<vmem>>, %arg3: memref<7x1xf32, #tpu.memory_space<vmem>>, %arg4: memref<2x2x128xf32, #tpu.memory_space<vmem>>, %arg5: memref<2x2x128xf32, #tpu.memory_space<vmem>>, %arg6: memref<2x2x128xf32, #tpu.memory_space<vmem>>, %arg7: memref<2x1x128xf32, #tpu.memory_space<vmem>>) attributes {dimension_semantics = [#tpu.dimension_semantics<parallel>], iteration_bounds = array<i64: 2>, scalar_prefetch = 0 : i64, scratch_operands = 0 : i64, tpu.core_type = #tpu.core_type<tc>, window_params = [{transform_indices = @transform_0, window_bounds = array<i64: 2, 4, 128>}, {pipeline_mode = #tpu.pipeline_mode<synchronous>, transform_indices = @transform_1, window_bounds = array<i64: 7, 4>}, {pipeline_mode = #tpu.pipeline_mode<synchronous>, transform_indices = @transform_2, window_bounds = array<i64: 7, 1>}, {transform_indices = @transform_3, window_bounds = array<i64: 2, 2, 128>}, {transform_indices = @transform_4, window_bounds = array<i64: 2, 2, 128>}, {transform_indices = @transform_5, window_bounds = array<i64: 2, 2, 128>}, {transform_indices = @transform_6, window_bounds = array<i64: 2, 1, 128>}]} {
    %c0 = arith.constant 0 : index
    %c0_0 = arith.constant 0 : index
    %c0_1 = arith.constant 0 : index
    %0 = vector.load %arg1[%c0, %c0_0, %c0_1] : memref<2x4x128xf32, #tpu.memory_space<vmem>>, vector<2x4x128xf32>
    %c0_2 = arith.constant 0 : index
    %c0_3 = arith.constant 0 : index
    %1 = vector.load %arg2[%c0_2, %c0_3] : memref<7x4xf32, #tpu.memory_space<vmem>>, vector<7x4xf32>
    %c0_4 = arith.constant 0 : index
    %c0_5 = arith.constant 0 : index
    %2 = vector.load %arg3[%c0_4, %c0_5] : memref<7x1xf32, #tpu.memory_space<vmem>>, vector<7x1xf32>
    %3 = vector.extract_strided_slice %0 {offsets = [0, 0, 0], sizes = [1, 4, 128], strides = [1, 1, 1]} : vector<2x4x128xf32> to vector<1x4x128xf32>
    %4 = vector.shape_cast %3 : vector<1x4x128xf32> to vector<4x128xf32>
    %cst = arith.constant dense<0.000000e+00> : vector<7x128xf32>
    %5 = tpu.matmul %1, %4, %cst {dimension_numbers = #tpu.dot_dimension_numbers<[1], [0], [0], [1], [0, 0, 1, 1], [], []>} : vector<7x4xf32>, vector<4x128xf32>, vector<7x128xf32> -> vector<7x128xf32>
    %6 = vector.broadcast %2 : vector<7x1xf32> to vector<7x128xf32>
    %7 = arith.addf %5, %6 : vector<7x128xf32>
    %8 = vector.extract_strided_slice %7 {offsets = [0, 0], sizes = [2, 128], strides = [1, 1]} : vector<7x128xf32> to vector<2x128xf32>
    %c0_6 = arith.constant 0 : index
    %c0_7 = arith.constant 0 : index
    %c0_8 = arith.constant 0 : index
    %9 = vector.load %arg4[%c0_6, %c0_7, %c0_8] : memref<2x2x128xf32, #tpu.memory_space<vmem>>, vector<1x2x128xf32>
    %10 = vector.shape_cast %9 : vector<1x2x128xf32> to vector<2x128xf32>
    %11 = vector.shape_cast %8 : vector<2x128xf32> to vector<1x2x128xf32>
    tpu.vector_store %arg4[%c0_6, %c0_7, %c0_8], %11 {strides = array<i32>} : memref<2x2x128xf32, #tpu.memory_space<vmem>>, vector<1x2x128xf32>,
    %12 = vector.extract_strided_slice %7 {offsets = [2, 0], sizes = [2, 128], strides = [1, 1]} : vector<7x128xf32> to vector<2x128xf32>
    %c0_9 = arith.constant 0 : index
    %c0_10 = arith.constant 0 : index
    %c0_11 = arith.constant 0 : index
    %13 = vector.load %arg5[%c0_9, %c0_10, %c0_11] : memref<2x2x128xf32, #tpu.memory_space<vmem>>, vector<1x2x128xf32>
    %14 = vector.shape_cast %13 : vector<1x2x128xf32> to vector<2x128xf32>
    %15 = vector.shape_cast %12 : vector<2x128xf32> to vector<1x2x128xf32>
    tpu.vector_store %arg5[%c0_9, %c0_10, %c0_11], %15 {strides = array<i32>} : memref<2x2x128xf32, #tpu.memory_space<vmem>>, vector<1x2x128xf32>,
    %16 = vector.extract_strided_slice %7 {offsets = [4, 0], sizes = [2, 128], strides = [1, 1]} : vector<7x128xf32> to vector<2x128xf32>
    %c0_12 = arith.constant 0 : index
    %c0_13 = arith.constant 0 : index
    %c0_14 = arith.constant 0 : index
    %17 = vector.load %arg6[%c0_12, %c0_13, %c0_14] : memref<2x2x128xf32, #tpu.memory_space<vmem>>, vector<1x2x128xf32>
    %18 = vector.shape_cast %17 : vector<1x2x128xf32> to vector<2x128xf32>
    %19 = vector.shape_cast %16 : vector<2x128xf32> to vector<1x2x128xf32>
    tpu.vector_store %arg6[%c0_12, %c0_13, %c0_14], %19 {strides = array<i32>} : memref<2x2x128xf32, #tpu.memory_space<vmem>>, vector<1x2x128xf32>,
    %20 = vector.extract_strided_slice %7 {offsets = [6, 0], sizes = [1, 128], strides = [1, 1]} : vector<7x128xf32> to vector<1x128xf32>
    %c0_15 = arith.constant 0 : index
    %c0_16 = arith.constant 0 : index
    %c0_17 = arith.constant 0 : index
    %21 = vector.load %arg7[%c0_15, %c0_16, %c0_17] : memref<2x1x128xf32, #tpu.memory_space<vmem>>, vector<1x1x128xf32>
    %22 = vector.shape_cast %21 : vector<1x1x128xf32> to vector<1x128xf32>
    %23 = vector.shape_cast %20 : vector<1x128xf32> to vector<1x1x128xf32>
    tpu.vector_store %arg7[%c0_15, %c0_16, %c0_17], %23 {strides = array<i32>} : memref<2x1x128xf32, #tpu.memory_space<vmem>>, vector<1x1x128xf32>,
    %24 = vector.extract_strided_slice %0 {offsets = [1, 0, 0], sizes = [1, 4, 128], strides = [1, 1, 1]} : vector<2x4x128xf32> to vector<1x4x128xf32>
    %25 = vector.shape_cast %24 : vector<1x4x128xf32> to vector<4x128xf32>
    %cst_18 = arith.constant dense<0.000000e+00> : vector<7x128xf32>
    %26 = tpu.matmul %1, %25, %cst_18 {dimension_numbers = #tpu.dot_dimension_numbers<[1], [0], [0], [1], [0, 0, 1, 1], [], []>} : vector<7x4xf32>, vector<4x128xf32>, vector<7x128xf32> -> vector<7x128xf32>
    %27 = vector.broadcast %2 : vector<7x1xf32> to vector<7x128xf32>
    %28 = arith.addf %26, %27 : vector<7x128xf32>
    %29 = vector.extract_strided_slice %28 {offsets = [0, 0], sizes = [2, 128], strides = [1, 1]} : vector<7x128xf32> to vector<2x128xf32>
    %c1 = arith.constant 1 : index
    %c0_19 = arith.constant 0 : index
    %c0_20 = arith.constant 0 : index
    %30 = vector.load %arg4[%c1, %c0_19, %c0_20] : memref<2x2x128xf32, #tpu.memory_space<vmem>>, vector<1x2x128xf32>
    %31 = vector.shape_cast %30 : vector<1x2x128xf32> to vector<2x128xf32>
    %32 = vector.shape_cast %29 : vector<2x128xf32> to vector<1x2x128xf32>
    tpu.vector_store %arg4[%c1, %c0_19, %c0_20], %32 {strides = array<i32>} : memref<2x2x128xf32, #tpu.memory_space<vmem>>, vector<1x2x128xf32>,
    %33 = vector.extract_strided_slice %28 {offsets = [2, 0], sizes = [2, 128], strides = [1, 1]} : vector<7x128xf32> to vector<2x128xf32>
    %c1_21 = arith.constant 1 : index
    %c0_22 = arith.constant 0 : index
    %c0_23 = arith.constant 0 : index
    %34 = vector.load %arg5[%c1_21, %c0_22, %c0_23] : memref<2x2x128xf32, #tpu.memory_space<vmem>>, vector<1x2x128xf32>
    %35 = vector.shape_cast %34 : vector<1x2x128xf32> to vector<2x128xf32>
    %36 = vector.shape_cast %33 : vector<2x128xf32> to vector<1x2x128xf32>
    tpu.vector_store %arg5[%c1_21, %c0_22, %c0_23], %36 {strides = array<i32>} : memref<2x2x128xf32, #tpu.memory_space<vmem>>, vector<1x2x128xf32>,
    %37 = vector.extract_strided_slice %28 {offsets = [4, 0], sizes = [2, 128], strides = [1, 1]} : vector<7x128xf32> to vector<2x128xf32>
    %c1_24 = arith.constant 1 : index
    %c0_25 = arith.constant 0 : index
    %c0_26 = arith.constant 0 : index
    %38 = vector.load %arg6[%c1_24, %c0_25, %c0_26] : memref<2x2x128xf32, #tpu.memory_space<vmem>>, vector<1x2x128xf32>
    %39 = vector.shape_cast %38 : vector<1x2x128xf32> to vector<2x128xf32>
    %40 = vector.shape_cast %37 : vector<2x128xf32> to vector<1x2x128xf32>
    tpu.vector_store %arg6[%c1_24, %c0_25, %c0_26], %40 {strides = array<i32>} : memref<2x2x128xf32, #tpu.memory_space<vmem>>, vector<1x2x128xf32>,
    %41 = vector.extract_strided_slice %28 {offsets = [6, 0], sizes = [1, 128], strides = [1, 1]} : vector<7x128xf32> to vector<1x128xf32>
    %c1_27 = arith.constant 1 : index
    %c0_28 = arith.constant 0 : index
    %c0_29 = arith.constant 0 : index
    %42 = vector.load %arg7[%c1_27, %c0_28, %c0_29] : memref<2x1x128xf32, #tpu.memory_space<vmem>>, vector<1x1x128xf32>
    %43 = vector.shape_cast %42 : vector<1x1x128xf32> to vector<1x128xf32>
    %44 = vector.shape_cast %41 : vector<1x128xf32> to vector<1x1x128xf32>
    tpu.vector_store %arg7[%c1_27, %c0_28, %c0_29], %44 {strides = array<i32>} : memref<2x1x128xf32, #tpu.memory_space<vmem>>, vector<1x1x128xf32>,
    return
  }
  func.func @transform_0(%arg0: i32) -> (i32, i32, i32) {
    %c0_i32 = arith.constant 0 : i32
    %c0_i32_0 = arith.constant 0 : i32
    %c0_i32_1 = arith.constant 0 : i32
    return %c0_i32, %c0_i32_0, %arg0 : i32, i32, i32
  }
  func.func @transform_1(%arg0: i32) -> (i32, i32) {
    %c0_i32 = arith.constant 0 : i32
    %c0_i32_0 = arith.constant 0 : i32
    %c0_i32_1 = arith.constant 0 : i32
    return %c0_i32, %c0_i32_0 : i32, i32
  }
  func.func @transform_2(%arg0: i32) -> (i32, i32) {
    %c0_i32 = arith.constant 0 : i32
    %c0_i32_0 = arith.constant 0 : i32
    %c0_i32_1 = arith.constant 0 : i32
    return %c0_i32, %c0_i32_0 : i32, i32
  }
  func.func @transform_3(%arg0: i32) -> (i32, i32, i32) {
    %c0_i32 = arith.constant 0 : i32
    %c0_i32_0 = arith.constant 0 : i32
    %c0_i32_1 = arith.constant 0 : i32
    return %c0_i32, %c0_i32_0, %arg0 : i32, i32, i32
  }
  func.func @transform_4(%arg0: i32) -> (i32, i32, i32) {
    %c0_i32 = arith.constant 0 : i32
    %c0_i32_0 = arith.constant 0 : i32
    %c0_i32_1 = arith.constant 0 : i32
    return %c0_i32, %c0_i32_0, %arg0 : i32, i32, i32
  }
  func.func @transform_5(%arg0: i32) -> (i32, i32, i32) {
    %c0_i32 = arith.constant 0 : i32
    %c0_i32_0 = arith.constant 0 : i32
    %c0_i32_1 = arith.constant 0 : i32
    return %c0_i32, %c0_i32_0, %arg0 : i32, i32, i32
  }
  func.func @transform_6(%arg0: i32) -> (i32, i32, i32) {
    %c0_i32 = arith.constant 0 : i32
    %c0_i32_0 = arith.constant 0 : i32
    %c0_i32_1 = arith.constant 0 : i32
    return %c0_i32, %c0_i32_0, %arg0 : i32, i32, i32
  }
}

module attributes {stable_mosaic.version = 11 : i64} {
  func.func @_attn_out_kernel(%arg0: i32, %arg1: memref<2x2x128xf32, #tpu.memory_space<vmem>>, %arg2: memref<2x2x128xf32, #tpu.memory_space<vmem>>, %arg3: memref<2x2x128xf32, #tpu.memory_space<vmem>>, %arg4: memref<2x2x128xf32, #tpu.memory_space<vmem>>, %arg5: memref<1x128xf32, #tpu.memory_space<vmem>>, %arg6: memref<1x128xf32, #tpu.memory_space<vmem>>, %arg7: memref<2x128xf32, #tpu.memory_space<vmem>>, %arg8: memref<2x128xf32, #tpu.memory_space<vmem>>, %arg9: memref<2x2x128xf32, #tpu.memory_space<vmem>>, %arg10: memref<2x128xf32, #tpu.memory_space<vmem>>, %arg11: memref<2x4x128xf32, #tpu.memory_space<vmem>>, %arg12: memref<4x4xf32, #tpu.memory_space<vmem>>, %arg13: memref<4x1xf32, #tpu.memory_space<vmem>>, %arg14: memref<2x4x128xf32, #tpu.memory_space<vmem>>) attributes {dimension_semantics = [#tpu.dimension_semantics<parallel>], iteration_bounds = array<i64: 2>, scalar_prefetch = 0 : i64, scratch_operands = 0 : i64, tpu.core_type = #tpu.core_type<tc>, window_params = [{transform_indices = @transform_0, window_bounds = array<i64: 2, 2, 128>}, {transform_indices = @transform_1, window_bounds = array<i64: 2, 2, 128>}, {transform_indices = @transform_2, window_bounds = array<i64: 2, 2, 128>}, {transform_indices = @transform_3, window_bounds = array<i64: 2, 2, 128>}, {transform_indices = @transform_4, window_bounds = array<i64: 1, 128>}, {transform_indices = @transform_5, window_bounds = array<i64: 1, 128>}, {transform_indices = @transform_6, window_bounds = array<i64: 2, 128>}, {transform_indices = @transform_7, window_bounds = array<i64: 2, 128>}, {transform_indices = @transform_8, window_bounds = array<i64: 2, 2, 128>}, {transform_indices = @transform_9, window_bounds = array<i64: 2, 128>}, {transform_indices = @transform_10, window_bounds = array<i64: 2, 4, 128>}, {pipeline_mode = #tpu.pipeline_mode<synchronous>, transform_indices = @transform_11, window_bounds = array<i64: 4, 4>}, {pipeline_mode = #tpu.pipeline_mode<synchronous>, transform_indices = @transform_12, window_bounds = array<i64: 4, 1>}, {transform_indices = @transform_13, window_bounds = array<i64: 2, 4, 128>}]} {
    %c0 = arith.constant 0 : index
    %c0_0 = arith.constant 0 : index
    %c0_1 = arith.constant 0 : index
    %0 = vector.load %arg1[%c0, %c0_0, %c0_1] : memref<2x2x128xf32, #tpu.memory_space<vmem>>, vector<2x2x128xf32>
    %c0_2 = arith.constant 0 : index
    %c0_3 = arith.constant 0 : index
    %c0_4 = arith.constant 0 : index
    %1 = vector.load %arg2[%c0_2, %c0_3, %c0_4] : memref<2x2x128xf32, #tpu.memory_space<vmem>>, vector<2x2x128xf32>
    %2 = tpu.concatenate %0, %1 in 2 : vector<2x2x128xf32>, vector<2x2x128xf32> -> vector<2x2x256xf32>
    %c0_5 = arith.constant 0 : index
    %c0_6 = arith.constant 0 : index
    %c0_7 = arith.constant 0 : index
    %3 = vector.load %arg3[%c0_5, %c0_6, %c0_7] : memref<2x2x128xf32, #tpu.memory_space<vmem>>, vector<2x2x128xf32>
    %c0_8 = arith.constant 0 : index
    %c0_9 = arith.constant 0 : index
    %c0_10 = arith.constant 0 : index
    %4 = vector.load %arg4[%c0_8, %c0_9, %c0_10] : memref<2x2x128xf32, #tpu.memory_space<vmem>>, vector<2x2x128xf32>
    %5 = tpu.concatenate %3, %4 in 2 : vector<2x2x128xf32>, vector<2x2x128xf32> -> vector<2x2x256xf32>
    %c0_11 = arith.constant 0 : index
    %c0_12 = arith.constant 0 : index
    %6 = vector.load %arg5[%c0_11, %c0_12] : memref<1x128xf32, #tpu.memory_space<vmem>>, vector<1x128xf32>
    %c0_13 = arith.constant 0 : index
    %c0_14 = arith.constant 0 : index
    %7 = vector.load %arg6[%c0_13, %c0_14] : memref<1x128xf32, #tpu.memory_space<vmem>>, vector<1x128xf32>
    %8 = tpu.concatenate %6, %7 in 1 : vector<1x128xf32>, vector<1x128xf32> -> vector<1x256xf32>
    %c0_15 = arith.constant 0 : index
    %c0_16 = arith.constant 0 : index
    %9 = vector.load %arg7[%c0_15, %c0_16] : memref<2x128xf32, #tpu.memory_space<vmem>>, vector<2x128xf32>
    %c0_17 = arith.constant 0 : index
    %c0_18 = arith.constant 0 : index
    %10 = vector.load %arg8[%c0_17, %c0_18] : memref<2x128xf32, #tpu.memory_space<vmem>>, vector<2x128xf32>
    %11 = tpu.concatenate %9, %10 in 1 : vector<2x128xf32>, vector<2x128xf32> -> vector<2x256xf32>
    %12 = tpu.iota {dimensions = array<i32: 1>} : vector<1x128xi32>
    %c16_i32 = arith.constant 16 : i32
    %c0_i32 = arith.constant 0 : i32
    %13 = arith.cmpi eq, %c16_i32, %c0_i32 : i32
    %c1_i32 = arith.constant 1 : i32
    %14 = arith.select %13, %c1_i32, %c16_i32 : i32
    %15 = vector.broadcast %14 : i32 to vector<1x128xi32>
    %16 = arith.remsi %12, %15 : vector<1x128xi32>
    %c0_i32_19 = arith.constant 0 : i32
    %17 = vector.broadcast %c0_i32_19 : i32 to vector<1x128xi32>
    %18 = arith.cmpi ne, %16, %17 : vector<1x128xi32>
    %c0_i32_20 = arith.constant 0 : i32
    %19 = vector.broadcast %c0_i32_20 : i32 to vector<1x128xi32>
    %20 = arith.cmpi slt, %16, %19 : vector<1x128xi32>
    %c0_i32_21 = arith.constant 0 : i32
    %21 = arith.cmpi slt, %14, %c0_i32_21 : i32
    %22 = vector.broadcast %21 : i1 to vector<1x128xi1>
    %23 = vector.broadcast %22 : vector<1x128xi1> to vector<1x128xi1>
    %24 = arith.xori %20, %23 : vector<1x128xi1>
    %25 = arith.andi %24, %18 : vector<1x128xi1>
    %26 = vector.broadcast %14 : i32 to vector<1x128xi32>
    %27 = arith.addi %16, %26 : vector<1x128xi32>
    %28 = arith.select %25, %27, %16 : vector<1x128xi1>, vector<1x128xi32>
    %c-1_i32 = arith.constant -1 : i32
    %29 = vector.broadcast %c-1_i32 : i32 to vector<1x128xi32>
    %30 = arith.addi %28, %29 : vector<1x128xi32>
    %c0_i32_22 = arith.constant 0 : i32
    %31 = vector.broadcast %c0_i32_22 : i32 to vector<1x128xi32>
    %32 = arith.cmpi sge, %30, %31 : vector<1x128xi32>
    %c-1_i32_23 = arith.constant -1 : i32
    %33 = vector.broadcast %c-1_i32_23 : i32 to vector<1x128xi32>
    %34 = arith.addi %28, %33 : vector<1x128xi32>
    %c16_i32_24 = arith.constant 16 : i32
    %35 = vector.broadcast %c16_i32_24 : i32 to vector<1x128xi32>
    %36 = arith.cmpi slt, %34, %35 : vector<1x128xi32>
    %37 = arith.andi %32, %36 : vector<1x128xi1>
    %38 = arith.extui %37 : vector<1x128xi1> to vector<1x128xi32>
    %39 = arith.sitofp %38 : vector<1x128xi32> to vector<1x128xf32>
    %40 = vector.extract_strided_slice %2 {offsets = [0, 0, 35], sizes = [2, 2, 128], strides = [1, 1, 1]} : vector<2x2x256xf32> to vector<2x2x128xf32>
    %41 = vector.shape_cast %39 : vector<1x128xf32> to vector<1x1x128xf32>
    %42 = vector.broadcast %41 : vector<1x1x128xf32> to vector<2x2x128xf32>
    %43 = arith.mulf %40, %42 : vector<2x2x128xf32>
    %44 = vector.extract_strided_slice %5 {offsets = [0, 0, 35], sizes = [2, 2, 128], strides = [1, 1, 1]} : vector<2x2x256xf32> to vector<2x2x128xf32>
    %45 = vector.shape_cast %39 : vector<1x128xf32> to vector<1x1x128xf32>
    %46 = vector.broadcast %45 : vector<1x1x128xf32> to vector<2x2x128xf32>
    %47 = arith.mulf %44, %46 : vector<2x2x128xf32>
    %48 = vector.extract_strided_slice %11 {offsets = [0, 35], sizes = [2, 128], strides = [1, 1]} : vector<2x256xf32> to vector<2x128xf32>
    %49 = vector.broadcast %39 : vector<1x128xf32> to vector<2x128xf32>
    %50 = arith.mulf %48, %49 : vector<2x128xf32>
    %51 = vector.extract_strided_slice %8 {offsets = [0, 35], sizes = [1, 128], strides = [1, 1]} : vector<1x256xf32> to vector<1x128xf32>
    %c0_i32_25 = arith.constant 0 : i32
    %52 = vector.broadcast %c0_i32_25 : i32 to vector<1x128xi32>
    %53 = arith.addi %28, %52 : vector<1x128xi32>
    %c0_i32_26 = arith.constant 0 : i32
    %54 = vector.broadcast %c0_i32_26 : i32 to vector<1x128xi32>
    %55 = arith.cmpi sge, %53, %54 : vector<1x128xi32>
    %c0_i32_27 = arith.constant 0 : i32
    %56 = vector.broadcast %c0_i32_27 : i32 to vector<1x128xi32>
    %57 = arith.addi %28, %56 : vector<1x128xi32>
    %c16_i32_28 = arith.constant 16 : i32
    %58 = vector.broadcast %c16_i32_28 : i32 to vector<1x128xi32>
    %59 = arith.cmpi slt, %57, %58 : vector<1x128xi32>
    %60 = arith.andi %55, %59 : vector<1x128xi1>
    %61 = arith.extui %60 : vector<1x128xi1> to vector<1x128xi32>
    %62 = arith.sitofp %61 : vector<1x128xi32> to vector<1x128xf32>
    %63 = vector.extract_strided_slice %2 {offsets = [0, 0, 36], sizes = [2, 2, 128], strides = [1, 1, 1]} : vector<2x2x256xf32> to vector<2x2x128xf32>
    %64 = vector.shape_cast %62 : vector<1x128xf32> to vector<1x1x128xf32>
    %65 = vector.broadcast %64 : vector<1x1x128xf32> to vector<2x2x128xf32>
    %66 = arith.mulf %63, %65 : vector<2x2x128xf32>
    %67 = vector.extract_strided_slice %5 {offsets = [0, 0, 36], sizes = [2, 2, 128], strides = [1, 1, 1]} : vector<2x2x256xf32> to vector<2x2x128xf32>
    %68 = vector.shape_cast %62 : vector<1x128xf32> to vector<1x1x128xf32>
    %69 = vector.broadcast %68 : vector<1x1x128xf32> to vector<2x2x128xf32>
    %70 = arith.mulf %67, %69 : vector<2x2x128xf32>
    %71 = vector.extract_strided_slice %11 {offsets = [0, 36], sizes = [2, 128], strides = [1, 1]} : vector<2x256xf32> to vector<2x128xf32>
    %72 = vector.broadcast %62 : vector<1x128xf32> to vector<2x128xf32>
    %73 = arith.mulf %71, %72 : vector<2x128xf32>
    %74 = vector.extract_strided_slice %8 {offsets = [0, 36], sizes = [1, 128], strides = [1, 1]} : vector<1x256xf32> to vector<1x128xf32>
    %c1_i32_29 = arith.constant 1 : i32
    %75 = vector.broadcast %c1_i32_29 : i32 to vector<1x128xi32>
    %76 = arith.addi %28, %75 : vector<1x128xi32>
    %c0_i32_30 = arith.constant 0 : i32
    %77 = vector.broadcast %c0_i32_30 : i32 to vector<1x128xi32>
    %78 = arith.cmpi sge, %76, %77 : vector<1x128xi32>
    %c1_i32_31 = arith.constant 1 : i32
    %79 = vector.broadcast %c1_i32_31 : i32 to vector<1x128xi32>
    %80 = arith.addi %28, %79 : vector<1x128xi32>
    %c16_i32_32 = arith.constant 16 : i32
    %81 = vector.broadcast %c16_i32_32 : i32 to vector<1x128xi32>
    %82 = arith.cmpi slt, %80, %81 : vector<1x128xi32>
    %83 = arith.andi %78, %82 : vector<1x128xi1>
    %84 = arith.extui %83 : vector<1x128xi1> to vector<1x128xi32>
    %85 = arith.sitofp %84 : vector<1x128xi32> to vector<1x128xf32>
    %86 = vector.extract_strided_slice %2 {offsets = [0, 0, 37], sizes = [2, 2, 128], strides = [1, 1, 1]} : vector<2x2x256xf32> to vector<2x2x128xf32>
    %87 = vector.shape_cast %85 : vector<1x128xf32> to vector<1x1x128xf32>
    %88 = vector.broadcast %87 : vector<1x1x128xf32> to vector<2x2x128xf32>
    %89 = arith.mulf %86, %88 : vector<2x2x128xf32>
    %90 = vector.extract_strided_slice %5 {offsets = [0, 0, 37], sizes = [2, 2, 128], strides = [1, 1, 1]} : vector<2x2x256xf32> to vector<2x2x128xf32>
    %91 = vector.shape_cast %85 : vector<1x128xf32> to vector<1x1x128xf32>
    %92 = vector.broadcast %91 : vector<1x1x128xf32> to vector<2x2x128xf32>
    %93 = arith.mulf %90, %92 : vector<2x2x128xf32>
    %94 = vector.extract_strided_slice %11 {offsets = [0, 37], sizes = [2, 128], strides = [1, 1]} : vector<2x256xf32> to vector<2x128xf32>
    %95 = vector.broadcast %85 : vector<1x128xf32> to vector<2x128xf32>
    %96 = arith.mulf %94, %95 : vector<2x128xf32>
    %97 = vector.extract_strided_slice %8 {offsets = [0, 37], sizes = [1, 128], strides = [1, 1]} : vector<1x256xf32> to vector<1x128xf32>
    %c-1_i32_33 = arith.constant -1 : i32
    %98 = vector.broadcast %c-1_i32_33 : i32 to vector<1x128xi32>
    %99 = arith.addi %28, %98 : vector<1x128xi32>
    %c0_i32_34 = arith.constant 0 : i32
    %100 = vector.broadcast %c0_i32_34 : i32 to vector<1x128xi32>
    %101 = arith.cmpi sge, %99, %100 : vector<1x128xi32>
    %c-1_i32_35 = arith.constant -1 : i32
    %102 = vector.broadcast %c-1_i32_35 : i32 to vector<1x128xi32>
    %103 = arith.addi %28, %102 : vector<1x128xi32>
    %c16_i32_36 = arith.constant 16 : i32
    %104 = vector.broadcast %c16_i32_36 : i32 to vector<1x128xi32>
    %105 = arith.cmpi slt, %103, %104 : vector<1x128xi32>
    %106 = arith.andi %101, %105 : vector<1x128xi1>
    %107 = arith.extui %106 : vector<1x128xi1> to vector<1x128xi32>
    %108 = arith.sitofp %107 : vector<1x128xi32> to vector<1x128xf32>
    %109 = vector.extract_strided_slice %2 {offsets = [0, 0, 51], sizes = [2, 2, 128], strides = [1, 1, 1]} : vector<2x2x256xf32> to vector<2x2x128xf32>
    %110 = vector.shape_cast %108 : vector<1x128xf32> to vector<1x1x128xf32>
    %111 = vector.broadcast %110 : vector<1x1x128xf32> to vector<2x2x128xf32>
    %112 = arith.mulf %109, %111 : vector<2x2x128xf32>
    %113 = vector.extract_strided_slice %5 {offsets = [0, 0, 51], sizes = [2, 2, 128], strides = [1, 1, 1]} : vector<2x2x256xf32> to vector<2x2x128xf32>
    %114 = vector.shape_cast %108 : vector<1x128xf32> to vector<1x1x128xf32>
    %115 = vector.broadcast %114 : vector<1x1x128xf32> to vector<2x2x128xf32>
    %116 = arith.mulf %113, %115 : vector<2x2x128xf32>
    %117 = vector.extract_strided_slice %11 {offsets = [0, 51], sizes = [2, 128], strides = [1, 1]} : vector<2x256xf32> to vector<2x128xf32>
    %118 = vector.broadcast %108 : vector<1x128xf32> to vector<2x128xf32>
    %119 = arith.mulf %117, %118 : vector<2x128xf32>
    %120 = vector.extract_strided_slice %8 {offsets = [0, 51], sizes = [1, 128], strides = [1, 1]} : vector<1x256xf32> to vector<1x128xf32>
    %c0_i32_37 = arith.constant 0 : i32
    %121 = vector.broadcast %c0_i32_37 : i32 to vector<1x128xi32>
    %122 = arith.addi %28, %121 : vector<1x128xi32>
    %c0_i32_38 = arith.constant 0 : i32
    %123 = vector.broadcast %c0_i32_38 : i32 to vector<1x128xi32>
    %124 = arith.cmpi sge, %122, %123 : vector<1x128xi32>
    %c0_i32_39 = arith.constant 0 : i32
    %125 = vector.broadcast %c0_i32_39 : i32 to vector<1x128xi32>
    %126 = arith.addi %28, %125 : vector<1x128xi32>
    %c16_i32_40 = arith.constant 16 : i32
    %127 = vector.broadcast %c16_i32_40 : i32 to vector<1x128xi32>
    %128 = arith.cmpi slt, %126, %127 : vector<1x128xi32>
    %129 = arith.andi %124, %128 : vector<1x128xi1>
    %130 = arith.extui %129 : vector<1x128xi1> to vector<1x128xi32>
    %131 = arith.sitofp %130 : vector<1x128xi32> to vector<1x128xf32>
    %132 = vector.extract_strided_slice %2 {offsets = [0, 0, 52], sizes = [2, 2, 128], strides = [1, 1, 1]} : vector<2x2x256xf32> to vector<2x2x128xf32>
    %133 = vector.shape_cast %131 : vector<1x128xf32> to vector<1x1x128xf32>
    %134 = vector.broadcast %133 : vector<1x1x128xf32> to vector<2x2x128xf32>
    %135 = arith.mulf %132, %134 : vector<2x2x128xf32>
    %136 = vector.extract_strided_slice %5 {offsets = [0, 0, 52], sizes = [2, 2, 128], strides = [1, 1, 1]} : vector<2x2x256xf32> to vector<2x2x128xf32>
    %137 = vector.shape_cast %131 : vector<1x128xf32> to vector<1x1x128xf32>
    %138 = vector.broadcast %137 : vector<1x1x128xf32> to vector<2x2x128xf32>
    %139 = arith.mulf %136, %138 : vector<2x2x128xf32>
    %140 = vector.extract_strided_slice %11 {offsets = [0, 52], sizes = [2, 128], strides = [1, 1]} : vector<2x256xf32> to vector<2x128xf32>
    %141 = vector.broadcast %131 : vector<1x128xf32> to vector<2x128xf32>
    %142 = arith.mulf %140, %141 : vector<2x128xf32>
    %143 = vector.extract_strided_slice %8 {offsets = [0, 52], sizes = [1, 128], strides = [1, 1]} : vector<1x256xf32> to vector<1x128xf32>
    %c1_i32_41 = arith.constant 1 : i32
    %144 = vector.broadcast %c1_i32_41 : i32 to vector<1x128xi32>
    %145 = arith.addi %28, %144 : vector<1x128xi32>
    %c0_i32_42 = arith.constant 0 : i32
    %146 = vector.broadcast %c0_i32_42 : i32 to vector<1x128xi32>
    %147 = arith.cmpi sge, %145, %146 : vector<1x128xi32>
    %c1_i32_43 = arith.constant 1 : i32
    %148 = vector.broadcast %c1_i32_43 : i32 to vector<1x128xi32>
    %149 = arith.addi %28, %148 : vector<1x128xi32>
    %c16_i32_44 = arith.constant 16 : i32
    %150 = vector.broadcast %c16_i32_44 : i32 to vector<1x128xi32>
    %151 = arith.cmpi slt, %149, %150 : vector<1x128xi32>
    %152 = arith.andi %147, %151 : vector<1x128xi1>
    %153 = arith.extui %152 : vector<1x128xi1> to vector<1x128xi32>
    %154 = arith.sitofp %153 : vector<1x128xi32> to vector<1x128xf32>
    %155 = vector.extract_strided_slice %2 {offsets = [0, 0, 53], sizes = [2, 2, 128], strides = [1, 1, 1]} : vector<2x2x256xf32> to vector<2x2x128xf32>
    %156 = vector.shape_cast %154 : vector<1x128xf32> to vector<1x1x128xf32>
    %157 = vector.broadcast %156 : vector<1x1x128xf32> to vector<2x2x128xf32>
    %158 = arith.mulf %155, %157 : vector<2x2x128xf32>
    %159 = vector.extract_strided_slice %5 {offsets = [0, 0, 53], sizes = [2, 2, 128], strides = [1, 1, 1]} : vector<2x2x256xf32> to vector<2x2x128xf32>
    %160 = vector.shape_cast %154 : vector<1x128xf32> to vector<1x1x128xf32>
    %161 = vector.broadcast %160 : vector<1x1x128xf32> to vector<2x2x128xf32>
    %162 = arith.mulf %159, %161 : vector<2x2x128xf32>
    %163 = vector.extract_strided_slice %11 {offsets = [0, 53], sizes = [2, 128], strides = [1, 1]} : vector<2x256xf32> to vector<2x128xf32>
    %164 = vector.broadcast %154 : vector<1x128xf32> to vector<2x128xf32>
    %165 = arith.mulf %163, %164 : vector<2x128xf32>
    %166 = vector.extract_strided_slice %8 {offsets = [0, 53], sizes = [1, 128], strides = [1, 1]} : vector<1x256xf32> to vector<1x128xf32>
    %c-1_i32_45 = arith.constant -1 : i32
    %167 = vector.broadcast %c-1_i32_45 : i32 to vector<1x128xi32>
    %168 = arith.addi %28, %167 : vector<1x128xi32>
    %c0_i32_46 = arith.constant 0 : i32
    %169 = vector.broadcast %c0_i32_46 : i32 to vector<1x128xi32>
    %170 = arith.cmpi sge, %168, %169 : vector<1x128xi32>
    %c-1_i32_47 = arith.constant -1 : i32
    %171 = vector.broadcast %c-1_i32_47 : i32 to vector<1x128xi32>
    %172 = arith.addi %28, %171 : vector<1x128xi32>
    %c16_i32_48 = arith.constant 16 : i32
    %173 = vector.broadcast %c16_i32_48 : i32 to vector<1x128xi32>
    %174 = arith.cmpi slt, %172, %173 : vector<1x128xi32>
    %175 = arith.andi %170, %174 : vector<1x128xi1>
    %176 = arith.extui %175 : vector<1x128xi1> to vector<1x128xi32>
    %177 = arith.sitofp %176 : vector<1x128xi32> to vector<1x128xf32>
    %178 = vector.extract_strided_slice %2 {offsets = [0, 0, 67], sizes = [2, 2, 128], strides = [1, 1, 1]} : vector<2x2x256xf32> to vector<2x2x128xf32>
    %179 = vector.shape_cast %177 : vector<1x128xf32> to vector<1x1x128xf32>
    %180 = vector.broadcast %179 : vector<1x1x128xf32> to vector<2x2x128xf32>
    %181 = arith.mulf %178, %180 : vector<2x2x128xf32>
    %182 = vector.extract_strided_slice %5 {offsets = [0, 0, 67], sizes = [2, 2, 128], strides = [1, 1, 1]} : vector<2x2x256xf32> to vector<2x2x128xf32>
    %183 = vector.shape_cast %177 : vector<1x128xf32> to vector<1x1x128xf32>
    %184 = vector.broadcast %183 : vector<1x1x128xf32> to vector<2x2x128xf32>
    %185 = arith.mulf %182, %184 : vector<2x2x128xf32>
    %186 = vector.extract_strided_slice %11 {offsets = [0, 67], sizes = [2, 128], strides = [1, 1]} : vector<2x256xf32> to vector<2x128xf32>
    %187 = vector.broadcast %177 : vector<1x128xf32> to vector<2x128xf32>
    %188 = arith.mulf %186, %187 : vector<2x128xf32>
    %189 = vector.extract_strided_slice %8 {offsets = [0, 67], sizes = [1, 128], strides = [1, 1]} : vector<1x256xf32> to vector<1x128xf32>
    %c0_i32_49 = arith.constant 0 : i32
    %190 = vector.broadcast %c0_i32_49 : i32 to vector<1x128xi32>
    %191 = arith.addi %28, %190 : vector<1x128xi32>
    %c0_i32_50 = arith.constant 0 : i32
    %192 = vector.broadcast %c0_i32_50 : i32 to vector<1x128xi32>
    %193 = arith.cmpi sge, %191, %192 : vector<1x128xi32>
    %c0_i32_51 = arith.constant 0 : i32
    %194 = vector.broadcast %c0_i32_51 : i32 to vector<1x128xi32>
    %195 = arith.addi %28, %194 : vector<1x128xi32>
    %c16_i32_52 = arith.constant 16 : i32
    %196 = vector.broadcast %c16_i32_52 : i32 to vector<1x128xi32>
    %197 = arith.cmpi slt, %195, %196 : vector<1x128xi32>
    %198 = arith.andi %193, %197 : vector<1x128xi1>
    %199 = arith.extui %198 : vector<1x128xi1> to vector<1x128xi32>
    %200 = arith.sitofp %199 : vector<1x128xi32> to vector<1x128xf32>
    %201 = vector.extract_strided_slice %2 {offsets = [0, 0, 68], sizes = [2, 2, 128], strides = [1, 1, 1]} : vector<2x2x256xf32> to vector<2x2x128xf32>
    %202 = vector.shape_cast %200 : vector<1x128xf32> to vector<1x1x128xf32>
    %203 = vector.broadcast %202 : vector<1x1x128xf32> to vector<2x2x128xf32>
    %204 = arith.mulf %201, %203 : vector<2x2x128xf32>
    %205 = vector.extract_strided_slice %5 {offsets = [0, 0, 68], sizes = [2, 2, 128], strides = [1, 1, 1]} : vector<2x2x256xf32> to vector<2x2x128xf32>
    %206 = vector.shape_cast %200 : vector<1x128xf32> to vector<1x1x128xf32>
    %207 = vector.broadcast %206 : vector<1x1x128xf32> to vector<2x2x128xf32>
    %208 = arith.mulf %205, %207 : vector<2x2x128xf32>
    %209 = vector.extract_strided_slice %11 {offsets = [0, 68], sizes = [2, 128], strides = [1, 1]} : vector<2x256xf32> to vector<2x128xf32>
    %210 = vector.broadcast %200 : vector<1x128xf32> to vector<2x128xf32>
    %211 = arith.mulf %209, %210 : vector<2x128xf32>
    %212 = vector.extract_strided_slice %8 {offsets = [0, 68], sizes = [1, 128], strides = [1, 1]} : vector<1x256xf32> to vector<1x128xf32>
    %c1_i32_53 = arith.constant 1 : i32
    %213 = vector.broadcast %c1_i32_53 : i32 to vector<1x128xi32>
    %214 = arith.addi %28, %213 : vector<1x128xi32>
    %c0_i32_54 = arith.constant 0 : i32
    %215 = vector.broadcast %c0_i32_54 : i32 to vector<1x128xi32>
    %216 = arith.cmpi sge, %214, %215 : vector<1x128xi32>
    %c1_i32_55 = arith.constant 1 : i32
    %217 = vector.broadcast %c1_i32_55 : i32 to vector<1x128xi32>
    %218 = arith.addi %28, %217 : vector<1x128xi32>
    %c16_i32_56 = arith.constant 16 : i32
    %219 = vector.broadcast %c16_i32_56 : i32 to vector<1x128xi32>
    %220 = arith.cmpi slt, %218, %219 : vector<1x128xi32>
    %221 = arith.andi %216, %220 : vector<1x128xi1>
    %222 = arith.extui %221 : vector<1x128xi1> to vector<1x128xi32>
    %223 = arith.sitofp %222 : vector<1x128xi32> to vector<1x128xf32>
    %224 = vector.extract_strided_slice %2 {offsets = [0, 0, 69], sizes = [2, 2, 128], strides = [1, 1, 1]} : vector<2x2x256xf32> to vector<2x2x128xf32>
    %225 = vector.shape_cast %223 : vector<1x128xf32> to vector<1x1x128xf32>
    %226 = vector.broadcast %225 : vector<1x1x128xf32> to vector<2x2x128xf32>
    %227 = arith.mulf %224, %226 : vector<2x2x128xf32>
    %228 = vector.extract_strided_slice %5 {offsets = [0, 0, 69], sizes = [2, 2, 128], strides = [1, 1, 1]} : vector<2x2x256xf32> to vector<2x2x128xf32>
    %229 = vector.shape_cast %223 : vector<1x128xf32> to vector<1x1x128xf32>
    %230 = vector.broadcast %229 : vector<1x1x128xf32> to vector<2x2x128xf32>
    %231 = arith.mulf %228, %230 : vector<2x2x128xf32>
    %232 = vector.extract_strided_slice %11 {offsets = [0, 69], sizes = [2, 128], strides = [1, 1]} : vector<2x256xf32> to vector<2x128xf32>
    %233 = vector.broadcast %223 : vector<1x128xf32> to vector<2x128xf32>
    %234 = arith.mulf %232, %233 : vector<2x128xf32>
    %235 = vector.extract_strided_slice %8 {offsets = [0, 69], sizes = [1, 128], strides = [1, 1]} : vector<1x256xf32> to vector<1x128xf32>
    %c-3_i32 = arith.constant -3 : i32
    %236 = vector.broadcast %c-3_i32 : i32 to vector<1x128xi32>
    %237 = arith.addi %28, %236 : vector<1x128xi32>
    %c0_i32_57 = arith.constant 0 : i32
    %238 = vector.broadcast %c0_i32_57 : i32 to vector<1x128xi32>
    %239 = arith.cmpi sge, %237, %238 : vector<1x128xi32>
    %c-3_i32_58 = arith.constant -3 : i32
    %240 = vector.broadcast %c-3_i32_58 : i32 to vector<1x128xi32>
    %241 = arith.addi %28, %240 : vector<1x128xi32>
    %c16_i32_59 = arith.constant 16 : i32
    %242 = vector.broadcast %c16_i32_59 : i32 to vector<1x128xi32>
    %243 = arith.cmpi slt, %241, %242 : vector<1x128xi32>
    %244 = arith.andi %239, %243 : vector<1x128xi1>
    %245 = arith.extui %244 : vector<1x128xi1> to vector<1x128xi32>
    %246 = arith.sitofp %245 : vector<1x128xi32> to vector<1x128xf32>
    %247 = vector.extract_strided_slice %2 {offsets = [0, 0, 1], sizes = [2, 2, 128], strides = [1, 1, 1]} : vector<2x2x256xf32> to vector<2x2x128xf32>
    %248 = vector.shape_cast %246 : vector<1x128xf32> to vector<1x1x128xf32>
    %249 = vector.broadcast %248 : vector<1x1x128xf32> to vector<2x2x128xf32>
    %250 = arith.mulf %247, %249 : vector<2x2x128xf32>
    %251 = vector.extract_strided_slice %5 {offsets = [0, 0, 1], sizes = [2, 2, 128], strides = [1, 1, 1]} : vector<2x2x256xf32> to vector<2x2x128xf32>
    %252 = vector.shape_cast %246 : vector<1x128xf32> to vector<1x1x128xf32>
    %253 = vector.broadcast %252 : vector<1x1x128xf32> to vector<2x2x128xf32>
    %254 = arith.mulf %251, %253 : vector<2x2x128xf32>
    %255 = vector.extract_strided_slice %11 {offsets = [0, 1], sizes = [2, 128], strides = [1, 1]} : vector<2x256xf32> to vector<2x128xf32>
    %256 = vector.broadcast %246 : vector<1x128xf32> to vector<2x128xf32>
    %257 = arith.mulf %255, %256 : vector<2x128xf32>
    %258 = vector.extract_strided_slice %8 {offsets = [0, 1], sizes = [1, 128], strides = [1, 1]} : vector<1x256xf32> to vector<1x128xf32>
    %c0_i32_60 = arith.constant 0 : i32
    %259 = vector.broadcast %c0_i32_60 : i32 to vector<1x128xi32>
    %260 = arith.addi %28, %259 : vector<1x128xi32>
    %c0_i32_61 = arith.constant 0 : i32
    %261 = vector.broadcast %c0_i32_61 : i32 to vector<1x128xi32>
    %262 = arith.cmpi sge, %260, %261 : vector<1x128xi32>
    %c0_i32_62 = arith.constant 0 : i32
    %263 = vector.broadcast %c0_i32_62 : i32 to vector<1x128xi32>
    %264 = arith.addi %28, %263 : vector<1x128xi32>
    %c16_i32_63 = arith.constant 16 : i32
    %265 = vector.broadcast %c16_i32_63 : i32 to vector<1x128xi32>
    %266 = arith.cmpi slt, %264, %265 : vector<1x128xi32>
    %267 = arith.andi %262, %266 : vector<1x128xi1>
    %268 = arith.extui %267 : vector<1x128xi1> to vector<1x128xi32>
    %269 = arith.sitofp %268 : vector<1x128xi32> to vector<1x128xf32>
    %270 = vector.extract_strided_slice %2 {offsets = [0, 0, 4], sizes = [2, 2, 128], strides = [1, 1, 1]} : vector<2x2x256xf32> to vector<2x2x128xf32>
    %271 = vector.shape_cast %269 : vector<1x128xf32> to vector<1x1x128xf32>
    %272 = vector.broadcast %271 : vector<1x1x128xf32> to vector<2x2x128xf32>
    %273 = arith.mulf %270, %272 : vector<2x2x128xf32>
    %274 = vector.extract_strided_slice %5 {offsets = [0, 0, 4], sizes = [2, 2, 128], strides = [1, 1, 1]} : vector<2x2x256xf32> to vector<2x2x128xf32>
    %275 = vector.shape_cast %269 : vector<1x128xf32> to vector<1x1x128xf32>
    %276 = vector.broadcast %275 : vector<1x1x128xf32> to vector<2x2x128xf32>
    %277 = arith.mulf %274, %276 : vector<2x2x128xf32>
    %278 = vector.extract_strided_slice %11 {offsets = [0, 4], sizes = [2, 128], strides = [1, 1]} : vector<2x256xf32> to vector<2x128xf32>
    %279 = vector.broadcast %269 : vector<1x128xf32> to vector<2x128xf32>
    %280 = arith.mulf %278, %279 : vector<2x128xf32>
    %281 = vector.extract_strided_slice %8 {offsets = [0, 4], sizes = [1, 128], strides = [1, 1]} : vector<1x256xf32> to vector<1x128xf32>
    %c3_i32 = arith.constant 3 : i32
    %282 = vector.broadcast %c3_i32 : i32 to vector<1x128xi32>
    %283 = arith.addi %28, %282 : vector<1x128xi32>
    %c0_i32_64 = arith.constant 0 : i32
    %284 = vector.broadcast %c0_i32_64 : i32 to vector<1x128xi32>
    %285 = arith.cmpi sge, %283, %284 : vector<1x128xi32>
    %c3_i32_65 = arith.constant 3 : i32
    %286 = vector.broadcast %c3_i32_65 : i32 to vector<1x128xi32>
    %287 = arith.addi %28, %286 : vector<1x128xi32>
    %c16_i32_66 = arith.constant 16 : i32
    %288 = vector.broadcast %c16_i32_66 : i32 to vector<1x128xi32>
    %289 = arith.cmpi slt, %287, %288 : vector<1x128xi32>
    %290 = arith.andi %285, %289 : vector<1x128xi1>
    %291 = arith.extui %290 : vector<1x128xi1> to vector<1x128xi32>
    %292 = arith.sitofp %291 : vector<1x128xi32> to vector<1x128xf32>
    %293 = vector.extract_strided_slice %2 {offsets = [0, 0, 7], sizes = [2, 2, 128], strides = [1, 1, 1]} : vector<2x2x256xf32> to vector<2x2x128xf32>
    %294 = vector.shape_cast %292 : vector<1x128xf32> to vector<1x1x128xf32>
    %295 = vector.broadcast %294 : vector<1x1x128xf32> to vector<2x2x128xf32>
    %296 = arith.mulf %293, %295 : vector<2x2x128xf32>
    %297 = vector.extract_strided_slice %5 {offsets = [0, 0, 7], sizes = [2, 2, 128], strides = [1, 1, 1]} : vector<2x2x256xf32> to vector<2x2x128xf32>
    %298 = vector.shape_cast %292 : vector<1x128xf32> to vector<1x1x128xf32>
    %299 = vector.broadcast %298 : vector<1x1x128xf32> to vector<2x2x128xf32>
    %300 = arith.mulf %297, %299 : vector<2x2x128xf32>
    %301 = vector.extract_strided_slice %11 {offsets = [0, 7], sizes = [2, 128], strides = [1, 1]} : vector<2x256xf32> to vector<2x128xf32>
    %302 = vector.broadcast %292 : vector<1x128xf32> to vector<2x128xf32>
    %303 = arith.mulf %301, %302 : vector<2x128xf32>
    %304 = vector.extract_strided_slice %8 {offsets = [0, 7], sizes = [1, 128], strides = [1, 1]} : vector<1x256xf32> to vector<1x128xf32>
    %c-3_i32_67 = arith.constant -3 : i32
    %305 = vector.broadcast %c-3_i32_67 : i32 to vector<1x128xi32>
    %306 = arith.addi %28, %305 : vector<1x128xi32>
    %c0_i32_68 = arith.constant 0 : i32
    %307 = vector.broadcast %c0_i32_68 : i32 to vector<1x128xi32>
    %308 = arith.cmpi sge, %306, %307 : vector<1x128xi32>
    %c-3_i32_69 = arith.constant -3 : i32
    %309 = vector.broadcast %c-3_i32_69 : i32 to vector<1x128xi32>
    %310 = arith.addi %28, %309 : vector<1x128xi32>
    %c16_i32_70 = arith.constant 16 : i32
    %311 = vector.broadcast %c16_i32_70 : i32 to vector<1x128xi32>
    %312 = arith.cmpi slt, %310, %311 : vector<1x128xi32>
    %313 = arith.andi %308, %312 : vector<1x128xi1>
    %314 = arith.extui %313 : vector<1x128xi1> to vector<1x128xi32>
    %315 = arith.sitofp %314 : vector<1x128xi32> to vector<1x128xf32>
    %316 = vector.extract_strided_slice %2 {offsets = [0, 0, 49], sizes = [2, 2, 128], strides = [1, 1, 1]} : vector<2x2x256xf32> to vector<2x2x128xf32>
    %317 = vector.shape_cast %315 : vector<1x128xf32> to vector<1x1x128xf32>
    %318 = vector.broadcast %317 : vector<1x1x128xf32> to vector<2x2x128xf32>
    %319 = arith.mulf %316, %318 : vector<2x2x128xf32>
    %320 = vector.extract_strided_slice %5 {offsets = [0, 0, 49], sizes = [2, 2, 128], strides = [1, 1, 1]} : vector<2x2x256xf32> to vector<2x2x128xf32>
    %321 = vector.shape_cast %315 : vector<1x128xf32> to vector<1x1x128xf32>
    %322 = vector.broadcast %321 : vector<1x1x128xf32> to vector<2x2x128xf32>
    %323 = arith.mulf %320, %322 : vector<2x2x128xf32>
    %324 = vector.extract_strided_slice %11 {offsets = [0, 49], sizes = [2, 128], strides = [1, 1]} : vector<2x256xf32> to vector<2x128xf32>
    %325 = vector.broadcast %315 : vector<1x128xf32> to vector<2x128xf32>
    %326 = arith.mulf %324, %325 : vector<2x128xf32>
    %327 = vector.extract_strided_slice %8 {offsets = [0, 49], sizes = [1, 128], strides = [1, 1]} : vector<1x256xf32> to vector<1x128xf32>
    %c3_i32_71 = arith.constant 3 : i32
    %328 = vector.broadcast %c3_i32_71 : i32 to vector<1x128xi32>
    %329 = arith.addi %28, %328 : vector<1x128xi32>
    %c0_i32_72 = arith.constant 0 : i32
    %330 = vector.broadcast %c0_i32_72 : i32 to vector<1x128xi32>
    %331 = arith.cmpi sge, %329, %330 : vector<1x128xi32>
    %c3_i32_73 = arith.constant 3 : i32
    %332 = vector.broadcast %c3_i32_73 : i32 to vector<1x128xi32>
    %333 = arith.addi %28, %332 : vector<1x128xi32>
    %c16_i32_74 = arith.constant 16 : i32
    %334 = vector.broadcast %c16_i32_74 : i32 to vector<1x128xi32>
    %335 = arith.cmpi slt, %333, %334 : vector<1x128xi32>
    %336 = arith.andi %331, %335 : vector<1x128xi1>
    %337 = arith.extui %336 : vector<1x128xi1> to vector<1x128xi32>
    %338 = arith.sitofp %337 : vector<1x128xi32> to vector<1x128xf32>
    %339 = vector.extract_strided_slice %2 {offsets = [0, 0, 55], sizes = [2, 2, 128], strides = [1, 1, 1]} : vector<2x2x256xf32> to vector<2x2x128xf32>
    %340 = vector.shape_cast %338 : vector<1x128xf32> to vector<1x1x128xf32>
    %341 = vector.broadcast %340 : vector<1x1x128xf32> to vector<2x2x128xf32>
    %342 = arith.mulf %339, %341 : vector<2x2x128xf32>
    %343 = vector.extract_strided_slice %5 {offsets = [0, 0, 55], sizes = [2, 2, 128], strides = [1, 1, 1]} : vector<2x2x256xf32> to vector<2x2x128xf32>
    %344 = vector.shape_cast %338 : vector<1x128xf32> to vector<1x1x128xf32>
    %345 = vector.broadcast %344 : vector<1x1x128xf32> to vector<2x2x128xf32>
    %346 = arith.mulf %343, %345 : vector<2x2x128xf32>
    %347 = vector.extract_strided_slice %11 {offsets = [0, 55], sizes = [2, 128], strides = [1, 1]} : vector<2x256xf32> to vector<2x128xf32>
    %348 = vector.broadcast %338 : vector<1x128xf32> to vector<2x128xf32>
    %349 = arith.mulf %347, %348 : vector<2x128xf32>
    %350 = vector.extract_strided_slice %8 {offsets = [0, 55], sizes = [1, 128], strides = [1, 1]} : vector<1x256xf32> to vector<1x128xf32>
    %c-3_i32_75 = arith.constant -3 : i32
    %351 = vector.broadcast %c-3_i32_75 : i32 to vector<1x128xi32>
    %352 = arith.addi %28, %351 : vector<1x128xi32>
    %c0_i32_76 = arith.constant 0 : i32
    %353 = vector.broadcast %c0_i32_76 : i32 to vector<1x128xi32>
    %354 = arith.cmpi sge, %352, %353 : vector<1x128xi32>
    %c-3_i32_77 = arith.constant -3 : i32
    %355 = vector.broadcast %c-3_i32_77 : i32 to vector<1x128xi32>
    %356 = arith.addi %28, %355 : vector<1x128xi32>
    %c16_i32_78 = arith.constant 16 : i32
    %357 = vector.broadcast %c16_i32_78 : i32 to vector<1x128xi32>
    %358 = arith.cmpi slt, %356, %357 : vector<1x128xi32>
    %359 = arith.andi %354, %358 : vector<1x128xi1>
    %360 = arith.extui %359 : vector<1x128xi1> to vector<1x128xi32>
    %361 = arith.sitofp %360 : vector<1x128xi32> to vector<1x128xf32>
    %362 = vector.extract_strided_slice %2 {offsets = [0, 0, 97], sizes = [2, 2, 128], strides = [1, 1, 1]} : vector<2x2x256xf32> to vector<2x2x128xf32>
    %363 = vector.shape_cast %361 : vector<1x128xf32> to vector<1x1x128xf32>
    %364 = vector.broadcast %363 : vector<1x1x128xf32> to vector<2x2x128xf32>
    %365 = arith.mulf %362, %364 : vector<2x2x128xf32>
    %366 = vector.extract_strided_slice %5 {offsets = [0, 0, 97], sizes = [2, 2, 128], strides = [1, 1, 1]} : vector<2x2x256xf32> to vector<2x2x128xf32>
    %367 = vector.shape_cast %361 : vector<1x128xf32> to vector<1x1x128xf32>
    %368 = vector.broadcast %367 : vector<1x1x128xf32> to vector<2x2x128xf32>
    %369 = arith.mulf %366, %368 : vector<2x2x128xf32>
    %370 = vector.extract_strided_slice %11 {offsets = [0, 97], sizes = [2, 128], strides = [1, 1]} : vector<2x256xf32> to vector<2x128xf32>
    %371 = vector.broadcast %361 : vector<1x128xf32> to vector<2x128xf32>
    %372 = arith.mulf %370, %371 : vector<2x128xf32>
    %373 = vector.extract_strided_slice %8 {offsets = [0, 97], sizes = [1, 128], strides = [1, 1]} : vector<1x256xf32> to vector<1x128xf32>
    %c0_i32_79 = arith.constant 0 : i32
    %374 = vector.broadcast %c0_i32_79 : i32 to vector<1x128xi32>
    %375 = arith.addi %28, %374 : vector<1x128xi32>
    %c0_i32_80 = arith.constant 0 : i32
    %376 = vector.broadcast %c0_i32_80 : i32 to vector<1x128xi32>
    %377 = arith.cmpi sge, %375, %376 : vector<1x128xi32>
    %c0_i32_81 = arith.constant 0 : i32
    %378 = vector.broadcast %c0_i32_81 : i32 to vector<1x128xi32>
    %379 = arith.addi %28, %378 : vector<1x128xi32>
    %c16_i32_82 = arith.constant 16 : i32
    %380 = vector.broadcast %c16_i32_82 : i32 to vector<1x128xi32>
    %381 = arith.cmpi slt, %379, %380 : vector<1x128xi32>
    %382 = arith.andi %377, %381 : vector<1x128xi1>
    %383 = arith.extui %382 : vector<1x128xi1> to vector<1x128xi32>
    %384 = arith.sitofp %383 : vector<1x128xi32> to vector<1x128xf32>
    %385 = vector.extract_strided_slice %2 {offsets = [0, 0, 100], sizes = [2, 2, 128], strides = [1, 1, 1]} : vector<2x2x256xf32> to vector<2x2x128xf32>
    %386 = vector.shape_cast %384 : vector<1x128xf32> to vector<1x1x128xf32>
    %387 = vector.broadcast %386 : vector<1x1x128xf32> to vector<2x2x128xf32>
    %388 = arith.mulf %385, %387 : vector<2x2x128xf32>
    %389 = vector.extract_strided_slice %5 {offsets = [0, 0, 100], sizes = [2, 2, 128], strides = [1, 1, 1]} : vector<2x2x256xf32> to vector<2x2x128xf32>
    %390 = vector.shape_cast %384 : vector<1x128xf32> to vector<1x1x128xf32>
    %391 = vector.broadcast %390 : vector<1x1x128xf32> to vector<2x2x128xf32>
    %392 = arith.mulf %389, %391 : vector<2x2x128xf32>
    %393 = vector.extract_strided_slice %11 {offsets = [0, 100], sizes = [2, 128], strides = [1, 1]} : vector<2x256xf32> to vector<2x128xf32>
    %394 = vector.broadcast %384 : vector<1x128xf32> to vector<2x128xf32>
    %395 = arith.mulf %393, %394 : vector<2x128xf32>
    %396 = vector.extract_strided_slice %8 {offsets = [0, 100], sizes = [1, 128], strides = [1, 1]} : vector<1x256xf32> to vector<1x128xf32>
    %c3_i32_83 = arith.constant 3 : i32
    %397 = vector.broadcast %c3_i32_83 : i32 to vector<1x128xi32>
    %398 = arith.addi %28, %397 : vector<1x128xi32>
    %c0_i32_84 = arith.constant 0 : i32
    %399 = vector.broadcast %c0_i32_84 : i32 to vector<1x128xi32>
    %400 = arith.cmpi sge, %398, %399 : vector<1x128xi32>
    %c3_i32_85 = arith.constant 3 : i32
    %401 = vector.broadcast %c3_i32_85 : i32 to vector<1x128xi32>
    %402 = arith.addi %28, %401 : vector<1x128xi32>
    %c16_i32_86 = arith.constant 16 : i32
    %403 = vector.broadcast %c16_i32_86 : i32 to vector<1x128xi32>
    %404 = arith.cmpi slt, %402, %403 : vector<1x128xi32>
    %405 = arith.andi %400, %404 : vector<1x128xi1>
    %406 = arith.extui %405 : vector<1x128xi1> to vector<1x128xi32>
    %407 = arith.sitofp %406 : vector<1x128xi32> to vector<1x128xf32>
    %408 = vector.extract_strided_slice %2 {offsets = [0, 0, 103], sizes = [2, 2, 128], strides = [1, 1, 1]} : vector<2x2x256xf32> to vector<2x2x128xf32>
    %409 = vector.shape_cast %407 : vector<1x128xf32> to vector<1x1x128xf32>
    %410 = vector.broadcast %409 : vector<1x1x128xf32> to vector<2x2x128xf32>
    %411 = arith.mulf %408, %410 : vector<2x2x128xf32>
    %412 = vector.extract_strided_slice %5 {offsets = [0, 0, 103], sizes = [2, 2, 128], strides = [1, 1, 1]} : vector<2x2x256xf32> to vector<2x2x128xf32>
    %413 = vector.shape_cast %407 : vector<1x128xf32> to vector<1x1x128xf32>
    %414 = vector.broadcast %413 : vector<1x1x128xf32> to vector<2x2x128xf32>
    %415 = arith.mulf %412, %414 : vector<2x2x128xf32>
    %416 = vector.extract_strided_slice %11 {offsets = [0, 103], sizes = [2, 128], strides = [1, 1]} : vector<2x256xf32> to vector<2x128xf32>
    %417 = vector.broadcast %407 : vector<1x128xf32> to vector<2x128xf32>
    %418 = arith.mulf %416, %417 : vector<2x128xf32>
    %419 = vector.extract_strided_slice %8 {offsets = [0, 103], sizes = [1, 128], strides = [1, 1]} : vector<1x256xf32> to vector<1x128xf32>
    %420 = vector.extract_strided_slice %43 {offsets = [0, 0, 0], sizes = [1, 2, 128], strides = [1, 1, 1]} : vector<2x2x128xf32> to vector<1x2x128xf32>
    %421 = vector.shape_cast %420 : vector<1x2x128xf32> to vector<2x128xf32>
    %422 = vector.extract_strided_slice %66 {offsets = [0, 0, 0], sizes = [1, 2, 128], strides = [1, 1, 1]} : vector<2x2x128xf32> to vector<1x2x128xf32>
    %423 = vector.shape_cast %422 : vector<1x2x128xf32> to vector<2x128xf32>
    %424 = vector.extract_strided_slice %89 {offsets = [0, 0, 0], sizes = [1, 2, 128], strides = [1, 1, 1]} : vector<2x2x128xf32> to vector<1x2x128xf32>
    %425 = vector.shape_cast %424 : vector<1x2x128xf32> to vector<2x128xf32>
    %426 = vector.extract_strided_slice %112 {offsets = [0, 0, 0], sizes = [1, 2, 128], strides = [1, 1, 1]} : vector<2x2x128xf32> to vector<1x2x128xf32>
    %427 = vector.shape_cast %426 : vector<1x2x128xf32> to vector<2x128xf32>
    %428 = vector.extract_strided_slice %135 {offsets = [0, 0, 0], sizes = [1, 2, 128], strides = [1, 1, 1]} : vector<2x2x128xf32> to vector<1x2x128xf32>
    %429 = vector.shape_cast %428 : vector<1x2x128xf32> to vector<2x128xf32>
    %430 = vector.extract_strided_slice %158 {offsets = [0, 0, 0], sizes = [1, 2, 128], strides = [1, 1, 1]} : vector<2x2x128xf32> to vector<1x2x128xf32>
    %431 = vector.shape_cast %430 : vector<1x2x128xf32> to vector<2x128xf32>
    %432 = vector.extract_strided_slice %181 {offsets = [0, 0, 0], sizes = [1, 2, 128], strides = [1, 1, 1]} : vector<2x2x128xf32> to vector<1x2x128xf32>
    %433 = vector.shape_cast %432 : vector<1x2x128xf32> to vector<2x128xf32>
    %434 = vector.extract_strided_slice %204 {offsets = [0, 0, 0], sizes = [1, 2, 128], strides = [1, 1, 1]} : vector<2x2x128xf32> to vector<1x2x128xf32>
    %435 = vector.shape_cast %434 : vector<1x2x128xf32> to vector<2x128xf32>
    %436 = vector.extract_strided_slice %227 {offsets = [0, 0, 0], sizes = [1, 2, 128], strides = [1, 1, 1]} : vector<2x2x128xf32> to vector<1x2x128xf32>
    %437 = vector.shape_cast %436 : vector<1x2x128xf32> to vector<2x128xf32>
    %438 = vector.extract_strided_slice %250 {offsets = [0, 0, 0], sizes = [1, 2, 128], strides = [1, 1, 1]} : vector<2x2x128xf32> to vector<1x2x128xf32>
    %439 = vector.shape_cast %438 : vector<1x2x128xf32> to vector<2x128xf32>
    %440 = vector.extract_strided_slice %273 {offsets = [0, 0, 0], sizes = [1, 2, 128], strides = [1, 1, 1]} : vector<2x2x128xf32> to vector<1x2x128xf32>
    %441 = vector.shape_cast %440 : vector<1x2x128xf32> to vector<2x128xf32>
    %442 = vector.extract_strided_slice %296 {offsets = [0, 0, 0], sizes = [1, 2, 128], strides = [1, 1, 1]} : vector<2x2x128xf32> to vector<1x2x128xf32>
    %443 = vector.shape_cast %442 : vector<1x2x128xf32> to vector<2x128xf32>
    %444 = vector.extract_strided_slice %319 {offsets = [0, 0, 0], sizes = [1, 2, 128], strides = [1, 1, 1]} : vector<2x2x128xf32> to vector<1x2x128xf32>
    %445 = vector.shape_cast %444 : vector<1x2x128xf32> to vector<2x128xf32>
    %446 = vector.extract_strided_slice %342 {offsets = [0, 0, 0], sizes = [1, 2, 128], strides = [1, 1, 1]} : vector<2x2x128xf32> to vector<1x2x128xf32>
    %447 = vector.shape_cast %446 : vector<1x2x128xf32> to vector<2x128xf32>
    %448 = vector.extract_strided_slice %365 {offsets = [0, 0, 0], sizes = [1, 2, 128], strides = [1, 1, 1]} : vector<2x2x128xf32> to vector<1x2x128xf32>
    %449 = vector.shape_cast %448 : vector<1x2x128xf32> to vector<2x128xf32>
    %450 = vector.extract_strided_slice %388 {offsets = [0, 0, 0], sizes = [1, 2, 128], strides = [1, 1, 1]} : vector<2x2x128xf32> to vector<1x2x128xf32>
    %451 = vector.shape_cast %450 : vector<1x2x128xf32> to vector<2x128xf32>
    %452 = vector.extract_strided_slice %411 {offsets = [0, 0, 0], sizes = [1, 2, 128], strides = [1, 1, 1]} : vector<2x2x128xf32> to vector<1x2x128xf32>
    %453 = vector.shape_cast %452 : vector<1x2x128xf32> to vector<2x128xf32>
    %454 = vector.extract_strided_slice %43 {offsets = [1, 0, 0], sizes = [1, 2, 128], strides = [1, 1, 1]} : vector<2x2x128xf32> to vector<1x2x128xf32>
    %455 = vector.shape_cast %454 : vector<1x2x128xf32> to vector<2x128xf32>
    %456 = vector.extract_strided_slice %66 {offsets = [1, 0, 0], sizes = [1, 2, 128], strides = [1, 1, 1]} : vector<2x2x128xf32> to vector<1x2x128xf32>
    %457 = vector.shape_cast %456 : vector<1x2x128xf32> to vector<2x128xf32>
    %458 = vector.extract_strided_slice %89 {offsets = [1, 0, 0], sizes = [1, 2, 128], strides = [1, 1, 1]} : vector<2x2x128xf32> to vector<1x2x128xf32>
    %459 = vector.shape_cast %458 : vector<1x2x128xf32> to vector<2x128xf32>
    %460 = vector.extract_strided_slice %112 {offsets = [1, 0, 0], sizes = [1, 2, 128], strides = [1, 1, 1]} : vector<2x2x128xf32> to vector<1x2x128xf32>
    %461 = vector.shape_cast %460 : vector<1x2x128xf32> to vector<2x128xf32>
    %462 = vector.extract_strided_slice %135 {offsets = [1, 0, 0], sizes = [1, 2, 128], strides = [1, 1, 1]} : vector<2x2x128xf32> to vector<1x2x128xf32>
    %463 = vector.shape_cast %462 : vector<1x2x128xf32> to vector<2x128xf32>
    %464 = vector.extract_strided_slice %158 {offsets = [1, 0, 0], sizes = [1, 2, 128], strides = [1, 1, 1]} : vector<2x2x128xf32> to vector<1x2x128xf32>
    %465 = vector.shape_cast %464 : vector<1x2x128xf32> to vector<2x128xf32>
    %466 = vector.extract_strided_slice %181 {offsets = [1, 0, 0], sizes = [1, 2, 128], strides = [1, 1, 1]} : vector<2x2x128xf32> to vector<1x2x128xf32>
    %467 = vector.shape_cast %466 : vector<1x2x128xf32> to vector<2x128xf32>
    %468 = vector.extract_strided_slice %204 {offsets = [1, 0, 0], sizes = [1, 2, 128], strides = [1, 1, 1]} : vector<2x2x128xf32> to vector<1x2x128xf32>
    %469 = vector.shape_cast %468 : vector<1x2x128xf32> to vector<2x128xf32>
    %470 = vector.extract_strided_slice %227 {offsets = [1, 0, 0], sizes = [1, 2, 128], strides = [1, 1, 1]} : vector<2x2x128xf32> to vector<1x2x128xf32>
    %471 = vector.shape_cast %470 : vector<1x2x128xf32> to vector<2x128xf32>
    %472 = vector.extract_strided_slice %250 {offsets = [1, 0, 0], sizes = [1, 2, 128], strides = [1, 1, 1]} : vector<2x2x128xf32> to vector<1x2x128xf32>
    %473 = vector.shape_cast %472 : vector<1x2x128xf32> to vector<2x128xf32>
    %474 = vector.extract_strided_slice %273 {offsets = [1, 0, 0], sizes = [1, 2, 128], strides = [1, 1, 1]} : vector<2x2x128xf32> to vector<1x2x128xf32>
    %475 = vector.shape_cast %474 : vector<1x2x128xf32> to vector<2x128xf32>
    %476 = vector.extract_strided_slice %296 {offsets = [1, 0, 0], sizes = [1, 2, 128], strides = [1, 1, 1]} : vector<2x2x128xf32> to vector<1x2x128xf32>
    %477 = vector.shape_cast %476 : vector<1x2x128xf32> to vector<2x128xf32>
    %478 = vector.extract_strided_slice %319 {offsets = [1, 0, 0], sizes = [1, 2, 128], strides = [1, 1, 1]} : vector<2x2x128xf32> to vector<1x2x128xf32>
    %479 = vector.shape_cast %478 : vector<1x2x128xf32> to vector<2x128xf32>
    %480 = vector.extract_strided_slice %342 {offsets = [1, 0, 0], sizes = [1, 2, 128], strides = [1, 1, 1]} : vector<2x2x128xf32> to vector<1x2x128xf32>
    %481 = vector.shape_cast %480 : vector<1x2x128xf32> to vector<2x128xf32>
    %482 = vector.extract_strided_slice %365 {offsets = [1, 0, 0], sizes = [1, 2, 128], strides = [1, 1, 1]} : vector<2x2x128xf32> to vector<1x2x128xf32>
    %483 = vector.shape_cast %482 : vector<1x2x128xf32> to vector<2x128xf32>
    %484 = vector.extract_strided_slice %388 {offsets = [1, 0, 0], sizes = [1, 2, 128], strides = [1, 1, 1]} : vector<2x2x128xf32> to vector<1x2x128xf32>
    %485 = vector.shape_cast %484 : vector<1x2x128xf32> to vector<2x128xf32>
    %486 = vector.extract_strided_slice %411 {offsets = [1, 0, 0], sizes = [1, 2, 128], strides = [1, 1, 1]} : vector<2x2x128xf32> to vector<1x2x128xf32>
    %487 = vector.shape_cast %486 : vector<1x2x128xf32> to vector<2x128xf32>
    %488 = vector.shape_cast %421 : vector<2x128xf32> to vector<1x2x128xf32>
    %489 = vector.shape_cast %423 : vector<2x128xf32> to vector<1x2x128xf32>
    %490 = vector.shape_cast %425 : vector<2x128xf32> to vector<1x2x128xf32>
    %491 = vector.shape_cast %427 : vector<2x128xf32> to vector<1x2x128xf32>
    %492 = vector.shape_cast %429 : vector<2x128xf32> to vector<1x2x128xf32>
    %493 = vector.shape_cast %431 : vector<2x128xf32> to vector<1x2x128xf32>
    %494 = vector.shape_cast %433 : vector<2x128xf32> to vector<1x2x128xf32>
    %495 = vector.shape_cast %435 : vector<2x128xf32> to vector<1x2x128xf32>
    %496 = vector.shape_cast %437 : vector<2x128xf32> to vector<1x2x128xf32>
    %497 = vector.shape_cast %439 : vector<2x128xf32> to vector<1x2x128xf32>
    %498 = vector.shape_cast %441 : vector<2x128xf32> to vector<1x2x128xf32>
    %499 = vector.shape_cast %443 : vector<2x128xf32> to vector<1x2x128xf32>
    %500 = vector.shape_cast %445 : vector<2x128xf32> to vector<1x2x128xf32>
    %501 = vector.shape_cast %447 : vector<2x128xf32> to vector<1x2x128xf32>
    %502 = vector.shape_cast %449 : vector<2x128xf32> to vector<1x2x128xf32>
    %503 = vector.shape_cast %451 : vector<2x128xf32> to vector<1x2x128xf32>
    %504 = vector.shape_cast %453 : vector<2x128xf32> to vector<1x2x128xf32>
    %505 = vector.shape_cast %455 : vector<2x128xf32> to vector<1x2x128xf32>
    %506 = vector.shape_cast %457 : vector<2x128xf32> to vector<1x2x128xf32>
    %507 = vector.shape_cast %459 : vector<2x128xf32> to vector<1x2x128xf32>
    %508 = vector.shape_cast %461 : vector<2x128xf32> to vector<1x2x128xf32>
    %509 = vector.shape_cast %463 : vector<2x128xf32> to vector<1x2x128xf32>
    %510 = vector.shape_cast %465 : vector<2x128xf32> to vector<1x2x128xf32>
    %511 = vector.shape_cast %467 : vector<2x128xf32> to vector<1x2x128xf32>
    %512 = vector.shape_cast %469 : vector<2x128xf32> to vector<1x2x128xf32>
    %513 = vector.shape_cast %471 : vector<2x128xf32> to vector<1x2x128xf32>
    %514 = vector.shape_cast %473 : vector<2x128xf32> to vector<1x2x128xf32>
    %515 = vector.shape_cast %475 : vector<2x128xf32> to vector<1x2x128xf32>
    %516 = vector.shape_cast %477 : vector<2x128xf32> to vector<1x2x128xf32>
    %517 = vector.shape_cast %479 : vector<2x128xf32> to vector<1x2x128xf32>
    %518 = vector.shape_cast %481 : vector<2x128xf32> to vector<1x2x128xf32>
    %519 = vector.shape_cast %483 : vector<2x128xf32> to vector<1x2x128xf32>
    %520 = vector.shape_cast %485 : vector<2x128xf32> to vector<1x2x128xf32>
    %521 = vector.shape_cast %487 : vector<2x128xf32> to vector<1x2x128xf32>
    %522 = tpu.concatenate %488, %489, %490, %491, %492, %493, %494, %495, %496, %497, %498, %499, %500, %501, %502, %503 in 0 : vector<1x2x128xf32>, vector<1x2x128xf32>, vector<1x2x128xf32>, vector<1x2x128xf32>, vector<1x2x128xf32>, vector<1x2x128xf32>, vector<1x2x128xf32>, vector<1x2x128xf32>, vector<1x2x128xf32>, vector<1x2x128xf32>, vector<1x2x128xf32>, vector<1x2x128xf32>, vector<1x2x128xf32>, vector<1x2x128xf32>, vector<1x2x128xf32>, vector<1x2x128xf32> -> vector<16x2x128xf32>
    %523 = tpu.concatenate %504, %505, %506, %507, %508, %509, %510, %511, %512, %513, %514, %515, %516, %517, %518, %519 in 0 : vector<1x2x128xf32>, vector<1x2x128xf32>, vector<1x2x128xf32>, vector<1x2x128xf32>, vector<1x2x128xf32>, vector<1x2x128xf32>, vector<1x2x128xf32>, vector<1x2x128xf32>, vector<1x2x128xf32>, vector<1x2x128xf32>, vector<1x2x128xf32>, vector<1x2x128xf32>, vector<1x2x128xf32>, vector<1x2x128xf32>, vector<1x2x128xf32>, vector<1x2x128xf32> -> vector<16x2x128xf32>
    %524 = tpu.concatenate %520, %521 in 0 : vector<1x2x128xf32>, vector<1x2x128xf32> -> vector<2x2x128xf32>
    %525 = tpu.concatenate %522, %523, %524 in 0 : vector<16x2x128xf32>, vector<16x2x128xf32>, vector<2x2x128xf32> -> vector<34x2x128xf32>
    %526 = vector.extract_strided_slice %47 {offsets = [0, 0, 0], sizes = [1, 2, 128], strides = [1, 1, 1]} : vector<2x2x128xf32> to vector<1x2x128xf32>
    %527 = vector.shape_cast %526 : vector<1x2x128xf32> to vector<2x128xf32>
    %528 = vector.extract_strided_slice %70 {offsets = [0, 0, 0], sizes = [1, 2, 128], strides = [1, 1, 1]} : vector<2x2x128xf32> to vector<1x2x128xf32>
    %529 = vector.shape_cast %528 : vector<1x2x128xf32> to vector<2x128xf32>
    %530 = vector.extract_strided_slice %93 {offsets = [0, 0, 0], sizes = [1, 2, 128], strides = [1, 1, 1]} : vector<2x2x128xf32> to vector<1x2x128xf32>
    %531 = vector.shape_cast %530 : vector<1x2x128xf32> to vector<2x128xf32>
    %532 = vector.extract_strided_slice %116 {offsets = [0, 0, 0], sizes = [1, 2, 128], strides = [1, 1, 1]} : vector<2x2x128xf32> to vector<1x2x128xf32>
    %533 = vector.shape_cast %532 : vector<1x2x128xf32> to vector<2x128xf32>
    %534 = vector.extract_strided_slice %139 {offsets = [0, 0, 0], sizes = [1, 2, 128], strides = [1, 1, 1]} : vector<2x2x128xf32> to vector<1x2x128xf32>
    %535 = vector.shape_cast %534 : vector<1x2x128xf32> to vector<2x128xf32>
    %536 = vector.extract_strided_slice %162 {offsets = [0, 0, 0], sizes = [1, 2, 128], strides = [1, 1, 1]} : vector<2x2x128xf32> to vector<1x2x128xf32>
    %537 = vector.shape_cast %536 : vector<1x2x128xf32> to vector<2x128xf32>
    %538 = vector.extract_strided_slice %185 {offsets = [0, 0, 0], sizes = [1, 2, 128], strides = [1, 1, 1]} : vector<2x2x128xf32> to vector<1x2x128xf32>
    %539 = vector.shape_cast %538 : vector<1x2x128xf32> to vector<2x128xf32>
    %540 = vector.extract_strided_slice %208 {offsets = [0, 0, 0], sizes = [1, 2, 128], strides = [1, 1, 1]} : vector<2x2x128xf32> to vector<1x2x128xf32>
    %541 = vector.shape_cast %540 : vector<1x2x128xf32> to vector<2x128xf32>
    %542 = vector.extract_strided_slice %231 {offsets = [0, 0, 0], sizes = [1, 2, 128], strides = [1, 1, 1]} : vector<2x2x128xf32> to vector<1x2x128xf32>
    %543 = vector.shape_cast %542 : vector<1x2x128xf32> to vector<2x128xf32>
    %544 = vector.extract_strided_slice %254 {offsets = [0, 0, 0], sizes = [1, 2, 128], strides = [1, 1, 1]} : vector<2x2x128xf32> to vector<1x2x128xf32>
    %545 = vector.shape_cast %544 : vector<1x2x128xf32> to vector<2x128xf32>
    %546 = vector.extract_strided_slice %277 {offsets = [0, 0, 0], sizes = [1, 2, 128], strides = [1, 1, 1]} : vector<2x2x128xf32> to vector<1x2x128xf32>
    %547 = vector.shape_cast %546 : vector<1x2x128xf32> to vector<2x128xf32>
    %548 = vector.extract_strided_slice %300 {offsets = [0, 0, 0], sizes = [1, 2, 128], strides = [1, 1, 1]} : vector<2x2x128xf32> to vector<1x2x128xf32>
    %549 = vector.shape_cast %548 : vector<1x2x128xf32> to vector<2x128xf32>
    %550 = vector.extract_strided_slice %323 {offsets = [0, 0, 0], sizes = [1, 2, 128], strides = [1, 1, 1]} : vector<2x2x128xf32> to vector<1x2x128xf32>
    %551 = vector.shape_cast %550 : vector<1x2x128xf32> to vector<2x128xf32>
    %552 = vector.extract_strided_slice %346 {offsets = [0, 0, 0], sizes = [1, 2, 128], strides = [1, 1, 1]} : vector<2x2x128xf32> to vector<1x2x128xf32>
    %553 = vector.shape_cast %552 : vector<1x2x128xf32> to vector<2x128xf32>
    %554 = vector.extract_strided_slice %369 {offsets = [0, 0, 0], sizes = [1, 2, 128], strides = [1, 1, 1]} : vector<2x2x128xf32> to vector<1x2x128xf32>
    %555 = vector.shape_cast %554 : vector<1x2x128xf32> to vector<2x128xf32>
    %556 = vector.extract_strided_slice %392 {offsets = [0, 0, 0], sizes = [1, 2, 128], strides = [1, 1, 1]} : vector<2x2x128xf32> to vector<1x2x128xf32>
    %557 = vector.shape_cast %556 : vector<1x2x128xf32> to vector<2x128xf32>
    %558 = vector.extract_strided_slice %415 {offsets = [0, 0, 0], sizes = [1, 2, 128], strides = [1, 1, 1]} : vector<2x2x128xf32> to vector<1x2x128xf32>
    %559 = vector.shape_cast %558 : vector<1x2x128xf32> to vector<2x128xf32>
    %560 = vector.extract_strided_slice %47 {offsets = [1, 0, 0], sizes = [1, 2, 128], strides = [1, 1, 1]} : vector<2x2x128xf32> to vector<1x2x128xf32>
    %561 = vector.shape_cast %560 : vector<1x2x128xf32> to vector<2x128xf32>
    %562 = vector.extract_strided_slice %70 {offsets = [1, 0, 0], sizes = [1, 2, 128], strides = [1, 1, 1]} : vector<2x2x128xf32> to vector<1x2x128xf32>
    %563 = vector.shape_cast %562 : vector<1x2x128xf32> to vector<2x128xf32>
    %564 = vector.extract_strided_slice %93 {offsets = [1, 0, 0], sizes = [1, 2, 128], strides = [1, 1, 1]} : vector<2x2x128xf32> to vector<1x2x128xf32>
    %565 = vector.shape_cast %564 : vector<1x2x128xf32> to vector<2x128xf32>
    %566 = vector.extract_strided_slice %116 {offsets = [1, 0, 0], sizes = [1, 2, 128], strides = [1, 1, 1]} : vector<2x2x128xf32> to vector<1x2x128xf32>
    %567 = vector.shape_cast %566 : vector<1x2x128xf32> to vector<2x128xf32>
    %568 = vector.extract_strided_slice %139 {offsets = [1, 0, 0], sizes = [1, 2, 128], strides = [1, 1, 1]} : vector<2x2x128xf32> to vector<1x2x128xf32>
    %569 = vector.shape_cast %568 : vector<1x2x128xf32> to vector<2x128xf32>
    %570 = vector.extract_strided_slice %162 {offsets = [1, 0, 0], sizes = [1, 2, 128], strides = [1, 1, 1]} : vector<2x2x128xf32> to vector<1x2x128xf32>
    %571 = vector.shape_cast %570 : vector<1x2x128xf32> to vector<2x128xf32>
    %572 = vector.extract_strided_slice %185 {offsets = [1, 0, 0], sizes = [1, 2, 128], strides = [1, 1, 1]} : vector<2x2x128xf32> to vector<1x2x128xf32>
    %573 = vector.shape_cast %572 : vector<1x2x128xf32> to vector<2x128xf32>
    %574 = vector.extract_strided_slice %208 {offsets = [1, 0, 0], sizes = [1, 2, 128], strides = [1, 1, 1]} : vector<2x2x128xf32> to vector<1x2x128xf32>
    %575 = vector.shape_cast %574 : vector<1x2x128xf32> to vector<2x128xf32>
    %576 = vector.extract_strided_slice %231 {offsets = [1, 0, 0], sizes = [1, 2, 128], strides = [1, 1, 1]} : vector<2x2x128xf32> to vector<1x2x128xf32>
    %577 = vector.shape_cast %576 : vector<1x2x128xf32> to vector<2x128xf32>
    %578 = vector.extract_strided_slice %254 {offsets = [1, 0, 0], sizes = [1, 2, 128], strides = [1, 1, 1]} : vector<2x2x128xf32> to vector<1x2x128xf32>
    %579 = vector.shape_cast %578 : vector<1x2x128xf32> to vector<2x128xf32>
    %580 = vector.extract_strided_slice %277 {offsets = [1, 0, 0], sizes = [1, 2, 128], strides = [1, 1, 1]} : vector<2x2x128xf32> to vector<1x2x128xf32>
    %581 = vector.shape_cast %580 : vector<1x2x128xf32> to vector<2x128xf32>
    %582 = vector.extract_strided_slice %300 {offsets = [1, 0, 0], sizes = [1, 2, 128], strides = [1, 1, 1]} : vector<2x2x128xf32> to vector<1x2x128xf32>
    %583 = vector.shape_cast %582 : vector<1x2x128xf32> to vector<2x128xf32>
    %584 = vector.extract_strided_slice %323 {offsets = [1, 0, 0], sizes = [1, 2, 128], strides = [1, 1, 1]} : vector<2x2x128xf32> to vector<1x2x128xf32>
    %585 = vector.shape_cast %584 : vector<1x2x128xf32> to vector<2x128xf32>
    %586 = vector.extract_strided_slice %346 {offsets = [1, 0, 0], sizes = [1, 2, 128], strides = [1, 1, 1]} : vector<2x2x128xf32> to vector<1x2x128xf32>
    %587 = vector.shape_cast %586 : vector<1x2x128xf32> to vector<2x128xf32>
    %588 = vector.extract_strided_slice %369 {offsets = [1, 0, 0], sizes = [1, 2, 128], strides = [1, 1, 1]} : vector<2x2x128xf32> to vector<1x2x128xf32>
    %589 = vector.shape_cast %588 : vector<1x2x128xf32> to vector<2x128xf32>
    %590 = vector.extract_strided_slice %392 {offsets = [1, 0, 0], sizes = [1, 2, 128], strides = [1, 1, 1]} : vector<2x2x128xf32> to vector<1x2x128xf32>
    %591 = vector.shape_cast %590 : vector<1x2x128xf32> to vector<2x128xf32>
    %592 = vector.extract_strided_slice %415 {offsets = [1, 0, 0], sizes = [1, 2, 128], strides = [1, 1, 1]} : vector<2x2x128xf32> to vector<1x2x128xf32>
    %593 = vector.shape_cast %592 : vector<1x2x128xf32> to vector<2x128xf32>
    %594 = vector.shape_cast %527 : vector<2x128xf32> to vector<1x2x128xf32>
    %595 = vector.shape_cast %529 : vector<2x128xf32> to vector<1x2x128xf32>
    %596 = vector.shape_cast %531 : vector<2x128xf32> to vector<1x2x128xf32>
    %597 = vector.shape_cast %533 : vector<2x128xf32> to vector<1x2x128xf32>
    %598 = vector.shape_cast %535 : vector<2x128xf32> to vector<1x2x128xf32>
    %599 = vector.shape_cast %537 : vector<2x128xf32> to vector<1x2x128xf32>
    %600 = vector.shape_cast %539 : vector<2x128xf32> to vector<1x2x128xf32>
    %601 = vector.shape_cast %541 : vector<2x128xf32> to vector<1x2x128xf32>
    %602 = vector.shape_cast %543 : vector<2x128xf32> to vector<1x2x128xf32>
    %603 = vector.shape_cast %545 : vector<2x128xf32> to vector<1x2x128xf32>
    %604 = vector.shape_cast %547 : vector<2x128xf32> to vector<1x2x128xf32>
    %605 = vector.shape_cast %549 : vector<2x128xf32> to vector<1x2x128xf32>
    %606 = vector.shape_cast %551 : vector<2x128xf32> to vector<1x2x128xf32>
    %607 = vector.shape_cast %553 : vector<2x128xf32> to vector<1x2x128xf32>
    %608 = vector.shape_cast %555 : vector<2x128xf32> to vector<1x2x128xf32>
    %609 = vector.shape_cast %557 : vector<2x128xf32> to vector<1x2x128xf32>
    %610 = vector.shape_cast %559 : vector<2x128xf32> to vector<1x2x128xf32>
    %611 = vector.shape_cast %561 : vector<2x128xf32> to vector<1x2x128xf32>
    %612 = vector.shape_cast %563 : vector<2x128xf32> to vector<1x2x128xf32>
    %613 = vector.shape_cast %565 : vector<2x128xf32> to vector<1x2x128xf32>
    %614 = vector.shape_cast %567 : vector<2x128xf32> to vector<1x2x128xf32>
    %615 = vector.shape_cast %569 : vector<2x128xf32> to vector<1x2x128xf32>
    %616 = vector.shape_cast %571 : vector<2x128xf32> to vector<1x2x128xf32>
    %617 = vector.shape_cast %573 : vector<2x128xf32> to vector<1x2x128xf32>
    %618 = vector.shape_cast %575 : vector<2x128xf32> to vector<1x2x128xf32>
    %619 = vector.shape_cast %577 : vector<2x128xf32> to vector<1x2x128xf32>
    %620 = vector.shape_cast %579 : vector<2x128xf32> to vector<1x2x128xf32>
    %621 = vector.shape_cast %581 : vector<2x128xf32> to vector<1x2x128xf32>
    %622 = vector.shape_cast %583 : vector<2x128xf32> to vector<1x2x128xf32>
    %623 = vector.shape_cast %585 : vector<2x128xf32> to vector<1x2x128xf32>
    %624 = vector.shape_cast %587 : vector<2x128xf32> to vector<1x2x128xf32>
    %625 = vector.shape_cast %589 : vector<2x128xf32> to vector<1x2x128xf32>
    %626 = vector.shape_cast %591 : vector<2x128xf32> to vector<1x2x128xf32>
    %627 = vector.shape_cast %593 : vector<2x128xf32> to vector<1x2x128xf32>
    %628 = tpu.concatenate %594, %595, %596, %597, %598, %599, %600, %601, %602, %603, %604, %605, %606, %607, %608, %609 in 0 : vector<1x2x128xf32>, vector<1x2x128xf32>, vector<1x2x128xf32>, vector<1x2x128xf32>, vector<1x2x128xf32>, vector<1x2x128xf32>, vector<1x2x128xf32>, vector<1x2x128xf32>, vector<1x2x128xf32>, vector<1x2x128xf32>, vector<1x2x128xf32>, vector<1x2x128xf32>, vector<1x2x128xf32>, vector<1x2x128xf32>, vector<1x2x128xf32>, vector<1x2x128xf32> -> vector<16x2x128xf32>
    %629 = tpu.concatenate %610, %611, %612, %613, %614, %615, %616, %617, %618, %619, %620, %621, %622, %623, %624, %625 in 0 : vector<1x2x128xf32>, vector<1x2x128xf32>, vector<1x2x128xf32>, vector<1x2x128xf32>, vector<1x2x128xf32>, vector<1x2x128xf32>, vector<1x2x128xf32>, vector<1x2x128xf32>, vector<1x2x128xf32>, vector<1x2x128xf32>, vector<1x2x128xf32>, vector<1x2x128xf32>, vector<1x2x128xf32>, vector<1x2x128xf32>, vector<1x2x128xf32>, vector<1x2x128xf32> -> vector<16x2x128xf32>
    %630 = tpu.concatenate %626, %627 in 0 : vector<1x2x128xf32>, vector<1x2x128xf32> -> vector<2x2x128xf32>
    %631 = tpu.concatenate %628, %629, %630 in 0 : vector<16x2x128xf32>, vector<16x2x128xf32>, vector<2x2x128xf32> -> vector<34x2x128xf32>
    %632 = tpu.concatenate %51, %74, %97, %120, %143, %166, %189, %212, %235, %258, %281, %304, %327, %350, %373, %396 in 0 : vector<1x128xf32>, vector<1x128xf32>, vector<1x128xf32>, vector<1x128xf32>, vector<1x128xf32>, vector<1x128xf32>, vector<1x128xf32>, vector<1x128xf32>, vector<1x128xf32>, vector<1x128xf32>, vector<1x128xf32>, vector<1x128xf32>, vector<1x128xf32>, vector<1x128xf32>, vector<1x128xf32>, vector<1x128xf32> -> vector<16x128xf32>
    %633 = tpu.concatenate %632, %419 in 0 : vector<16x128xf32>, vector<1x128xf32> -> vector<17x128xf32>
    %634 = vector.shape_cast %50 : vector<2x128xf32> to vector<1x2x128xf32>
    %635 = vector.shape_cast %73 : vector<2x128xf32> to vector<1x2x128xf32>
    %636 = vector.shape_cast %96 : vector<2x128xf32> to vector<1x2x128xf32>
    %637 = vector.shape_cast %119 : vector<2x128xf32> to vector<1x2x128xf32>
    %638 = vector.shape_cast %142 : vector<2x128xf32> to vector<1x2x128xf32>
    %639 = vector.shape_cast %165 : vector<2x128xf32> to vector<1x2x128xf32>
    %640 = vector.shape_cast %188 : vector<2x128xf32> to vector<1x2x128xf32>
    %641 = vector.shape_cast %211 : vector<2x128xf32> to vector<1x2x128xf32>
    %642 = vector.shape_cast %234 : vector<2x128xf32> to vector<1x2x128xf32>
    %643 = vector.shape_cast %257 : vector<2x128xf32> to vector<1x2x128xf32>
    %644 = vector.shape_cast %280 : vector<2x128xf32> to vector<1x2x128xf32>
    %645 = vector.shape_cast %303 : vector<2x128xf32> to vector<1x2x128xf32>
    %646 = vector.shape_cast %326 : vector<2x128xf32> to vector<1x2x128xf32>
    %647 = vector.shape_cast %349 : vector<2x128xf32> to vector<1x2x128xf32>
    %648 = vector.shape_cast %372 : vector<2x128xf32> to vector<1x2x128xf32>
    %649 = vector.shape_cast %395 : vector<2x128xf32> to vector<1x2x128xf32>
    %650 = vector.shape_cast %418 : vector<2x128xf32> to vector<1x2x128xf32>
    %651 = tpu.concatenate %634, %635, %636, %637, %638, %639, %640, %641, %642, %643, %644, %645, %646, %647, %648, %649 in 0 : vector<1x2x128xf32>, vector<1x2x128xf32>, vector<1x2x128xf32>, vector<1x2x128xf32>, vector<1x2x128xf32>, vector<1x2x128xf32>, vector<1x2x128xf32>, vector<1x2x128xf32>, vector<1x2x128xf32>, vector<1x2x128xf32>, vector<1x2x128xf32>, vector<1x2x128xf32>, vector<1x2x128xf32>, vector<1x2x128xf32>, vector<1x2x128xf32>, vector<1x2x128xf32> -> vector<16x2x128xf32>
    %652 = tpu.concatenate %651, %650 in 0 : vector<16x2x128xf32>, vector<1x2x128xf32> -> vector<17x2x128xf32>
    %c0_87 = arith.constant 0 : index
    %c0_88 = arith.constant 0 : index
    %c0_89 = arith.constant 0 : index
    %653 = vector.load %arg9[%c0_87, %c0_88, %c0_89] : memref<2x2x128xf32, #tpu.memory_space<vmem>>, vector<2x2x128xf32>
    %c0_90 = arith.constant 0 : index
    %c0_91 = arith.constant 0 : index
    %654 = vector.load %arg10[%c0_90, %c0_91] : memref<2x128xf32, #tpu.memory_space<vmem>>, vector<2x128xf32>
    %c0_92 = arith.constant 0 : index
    %c0_93 = arith.constant 0 : index
    %c0_94 = arith.constant 0 : index
    %655 = vector.load %arg11[%c0_92, %c0_93, %c0_94] : memref<2x4x128xf32, #tpu.memory_space<vmem>>, vector<2x4x128xf32>
    %c0_95 = arith.constant 0 : index
    %c0_96 = arith.constant 0 : index
    %656 = vector.load %arg12[%c0_95, %c0_96] : memref<4x4xf32, #tpu.memory_space<vmem>>, vector<4x4xf32>
    %c0_97 = arith.constant 0 : index
    %c0_98 = arith.constant 0 : index
    %657 = vector.load %arg13[%c0_97, %c0_98] : memref<4x1xf32, #tpu.memory_space<vmem>>, vector<4x1xf32>
    %658 = vector.extract_strided_slice %525 {offsets = [0, 0, 0], sizes = [34, 1, 128], strides = [1, 1, 1]} : vector<34x2x128xf32> to vector<34x1x128xf32>
    %659 = vector.shape_cast %658 : vector<34x1x128xf32> to vector<34x128xf32>
    %660 = vector.extract_strided_slice %653 {offsets = [0, 0, 0], sizes = [1, 1, 128], strides = [1, 1, 1]} : vector<2x2x128xf32> to vector<1x1x128xf32>
    %661 = vector.shape_cast %660 : vector<1x1x128xf32> to vector<1x128xf32>
    %662 = vector.broadcast %661 : vector<1x128xf32> to vector<34x128xf32>
    %663 = arith.mulf %659, %662 : vector<34x128xf32>
    %664 = vector.extract_strided_slice %525 {offsets = [0, 1, 0], sizes = [34, 1, 128], strides = [1, 1, 1]} : vector<34x2x128xf32> to vector<34x1x128xf32>
    %665 = vector.shape_cast %664 : vector<34x1x128xf32> to vector<34x128xf32>
    %666 = vector.extract_strided_slice %653 {offsets = [0, 1, 0], sizes = [1, 1, 128], strides = [1, 1, 1]} : vector<2x2x128xf32> to vector<1x1x128xf32>
    %667 = vector.shape_cast %666 : vector<1x1x128xf32> to vector<1x128xf32>
    %668 = vector.broadcast %667 : vector<1x128xf32> to vector<34x128xf32>
    %669 = arith.mulf %665, %668 : vector<34x128xf32>
    %670 = arith.addf %663, %669 : vector<34x128xf32>
    %cst = arith.constant dense<0xFF800000> : vector<128xf32>
    %671 = vector.multi_reduction <maximumf>, %670, %cst [0] : vector<34x128xf32> to vector<128xf32>
    %672 = vector.shape_cast %671 : vector<128xf32> to vector<1x128xf32>
    %673 = vector.broadcast %672 : vector<1x128xf32> to vector<34x128xf32>
    %674 = arith.subf %670, %673 : vector<34x128xf32>
    %675 = math.exp %674 : vector<34x128xf32>
    %cst_99 = arith.constant dense<0.000000e+00> : vector<128xf32>
    %676 = vector.multi_reduction <add>, %675, %cst_99 [0] : vector<34x128xf32> to vector<128xf32>
    %677 = vector.shape_cast %676 : vector<128xf32> to vector<1x128xf32>
    %678 = tpu.reciprocal %677 {approx = true} : vector<1x128xf32> -> vector<1x128xf32>
    %679 = vector.broadcast %678 : vector<1x128xf32> to vector<34x128xf32>
    %680 = arith.mulf %675, %679 : vector<34x128xf32>
    %681 = vector.extract_strided_slice %631 {offsets = [0, 0, 0], sizes = [34, 1, 128], strides = [1, 1, 1]} : vector<34x2x128xf32> to vector<34x1x128xf32>
    %682 = vector.shape_cast %681 : vector<34x1x128xf32> to vector<34x128xf32>
    %683 = arith.mulf %680, %682 : vector<34x128xf32>
    %cst_100 = arith.constant dense<0.000000e+00> : vector<128xf32>
    %684 = vector.multi_reduction <add>, %683, %cst_100 [0] : vector<34x128xf32> to vector<128xf32>
    %685 = vector.shape_cast %684 : vector<128xf32> to vector<1x128xf32>
    %686 = vector.extract_strided_slice %631 {offsets = [0, 1, 0], sizes = [34, 1, 128], strides = [1, 1, 1]} : vector<34x2x128xf32> to vector<34x1x128xf32>
    %687 = vector.shape_cast %686 : vector<34x1x128xf32> to vector<34x128xf32>
    %688 = arith.mulf %680, %687 : vector<34x128xf32>
    %cst_101 = arith.constant dense<0.000000e+00> : vector<128xf32>
    %689 = vector.multi_reduction <add>, %688, %cst_101 [0] : vector<34x128xf32> to vector<128xf32>
    %690 = vector.shape_cast %689 : vector<128xf32> to vector<1x128xf32>
    %691 = tpu.concatenate %685, %690 in 0 : vector<1x128xf32>, vector<1x128xf32> -> vector<2x128xf32>
    %692 = vector.extract_strided_slice %654 {offsets = [0, 0], sizes = [1, 128], strides = [1, 1]} : vector<2x128xf32> to vector<1x128xf32>
    %693 = vector.broadcast %692 : vector<1x128xf32> to vector<17x128xf32>
    %694 = arith.addf %693, %633 : vector<17x128xf32>
    %cst_102 = arith.constant 0.000000e+00 : f32
    %695 = vector.broadcast %cst_102 : f32 to vector<17x128xf32>
    %696 = arith.maximumf %694, %695 : vector<17x128xf32>
    %cst_103 = arith.constant 0.0588235296 : f32
    %697 = vector.broadcast %cst_103 : f32 to vector<17x128xf32>
    %698 = arith.mulf %696, %697 : vector<17x128xf32>
    %699 = vector.extract_strided_slice %652 {offsets = [0, 0, 0], sizes = [17, 1, 128], strides = [1, 1, 1]} : vector<17x2x128xf32> to vector<17x1x128xf32>
    %700 = vector.shape_cast %699 : vector<17x1x128xf32> to vector<17x128xf32>
    %701 = arith.mulf %698, %700 : vector<17x128xf32>
    %cst_104 = arith.constant dense<0.000000e+00> : vector<128xf32>
    %702 = vector.multi_reduction <add>, %701, %cst_104 [0] : vector<17x128xf32> to vector<128xf32>
    %703 = vector.shape_cast %702 : vector<128xf32> to vector<1x128xf32>
    %704 = vector.extract_strided_slice %652 {offsets = [0, 1, 0], sizes = [17, 1, 128], strides = [1, 1, 1]} : vector<17x2x128xf32> to vector<17x1x128xf32>
    %705 = vector.shape_cast %704 : vector<17x1x128xf32> to vector<17x128xf32>
    %706 = arith.mulf %698, %705 : vector<17x128xf32>
    %cst_105 = arith.constant dense<0.000000e+00> : vector<128xf32>
    %707 = vector.multi_reduction <add>, %706, %cst_105 [0] : vector<17x128xf32> to vector<128xf32>
    %708 = vector.shape_cast %707 : vector<128xf32> to vector<1x128xf32>
    %709 = tpu.concatenate %703, %708 in 0 : vector<1x128xf32>, vector<1x128xf32> -> vector<2x128xf32>
    %710 = tpu.concatenate %691, %709 in 0 : vector<2x128xf32>, vector<2x128xf32> -> vector<4x128xf32>
    %cst_106 = arith.constant dense<0.000000e+00> : vector<4x128xf32>
    %711 = tpu.matmul %656, %710, %cst_106 {dimension_numbers = #tpu.dot_dimension_numbers<[1], [0], [0], [1], [0, 0, 1, 1], [], []>} : vector<4x4xf32>, vector<4x128xf32>, vector<4x128xf32> -> vector<4x128xf32>
    %712 = vector.broadcast %657 : vector<4x1xf32> to vector<4x128xf32>
    %713 = arith.addf %711, %712 : vector<4x128xf32>
    %714 = vector.extract_strided_slice %655 {offsets = [0, 0, 0], sizes = [1, 4, 128], strides = [1, 1, 1]} : vector<2x4x128xf32> to vector<1x4x128xf32>
    %715 = vector.shape_cast %714 : vector<1x4x128xf32> to vector<4x128xf32>
    %716 = arith.addf %713, %715 : vector<4x128xf32>
    %c0_107 = arith.constant 0 : index
    %c0_108 = arith.constant 0 : index
    %c0_109 = arith.constant 0 : index
    %717 = vector.load %arg14[%c0_107, %c0_108, %c0_109] : memref<2x4x128xf32, #tpu.memory_space<vmem>>, vector<1x4x128xf32>
    %718 = vector.shape_cast %717 : vector<1x4x128xf32> to vector<4x128xf32>
    %719 = vector.shape_cast %716 : vector<4x128xf32> to vector<1x4x128xf32>
    tpu.vector_store %arg14[%c0_107, %c0_108, %c0_109], %719 {strides = array<i32>} : memref<2x4x128xf32, #tpu.memory_space<vmem>>, vector<1x4x128xf32>,
    %720 = vector.extract_strided_slice %525 {offsets = [0, 0, 0], sizes = [34, 1, 128], strides = [1, 1, 1]} : vector<34x2x128xf32> to vector<34x1x128xf32>
    %721 = vector.shape_cast %720 : vector<34x1x128xf32> to vector<34x128xf32>
    %722 = vector.extract_strided_slice %653 {offsets = [1, 0, 0], sizes = [1, 1, 128], strides = [1, 1, 1]} : vector<2x2x128xf32> to vector<1x1x128xf32>
    %723 = vector.shape_cast %722 : vector<1x1x128xf32> to vector<1x128xf32>
    %724 = vector.broadcast %723 : vector<1x128xf32> to vector<34x128xf32>
    %725 = arith.mulf %721, %724 : vector<34x128xf32>
    %726 = vector.extract_strided_slice %525 {offsets = [0, 1, 0], sizes = [34, 1, 128], strides = [1, 1, 1]} : vector<34x2x128xf32> to vector<34x1x128xf32>
    %727 = vector.shape_cast %726 : vector<34x1x128xf32> to vector<34x128xf32>
    %728 = vector.extract_strided_slice %653 {offsets = [1, 1, 0], sizes = [1, 1, 128], strides = [1, 1, 1]} : vector<2x2x128xf32> to vector<1x1x128xf32>
    %729 = vector.shape_cast %728 : vector<1x1x128xf32> to vector<1x128xf32>
    %730 = vector.broadcast %729 : vector<1x128xf32> to vector<34x128xf32>
    %731 = arith.mulf %727, %730 : vector<34x128xf32>
    %732 = arith.addf %725, %731 : vector<34x128xf32>
    %cst_110 = arith.constant dense<0xFF800000> : vector<128xf32>
    %733 = vector.multi_reduction <maximumf>, %732, %cst_110 [0] : vector<34x128xf32> to vector<128xf32>
    %734 = vector.shape_cast %733 : vector<128xf32> to vector<1x128xf32>
    %735 = vector.broadcast %734 : vector<1x128xf32> to vector<34x128xf32>
    %736 = arith.subf %732, %735 : vector<34x128xf32>
    %737 = math.exp %736 : vector<34x128xf32>
    %cst_111 = arith.constant dense<0.000000e+00> : vector<128xf32>
    %738 = vector.multi_reduction <add>, %737, %cst_111 [0] : vector<34x128xf32> to vector<128xf32>
    %739 = vector.shape_cast %738 : vector<128xf32> to vector<1x128xf32>
    %740 = tpu.reciprocal %739 {approx = true} : vector<1x128xf32> -> vector<1x128xf32>
    %741 = vector.broadcast %740 : vector<1x128xf32> to vector<34x128xf32>
    %742 = arith.mulf %737, %741 : vector<34x128xf32>
    %743 = vector.extract_strided_slice %631 {offsets = [0, 0, 0], sizes = [34, 1, 128], strides = [1, 1, 1]} : vector<34x2x128xf32> to vector<34x1x128xf32>
    %744 = vector.shape_cast %743 : vector<34x1x128xf32> to vector<34x128xf32>
    %745 = arith.mulf %742, %744 : vector<34x128xf32>
    %cst_112 = arith.constant dense<0.000000e+00> : vector<128xf32>
    %746 = vector.multi_reduction <add>, %745, %cst_112 [0] : vector<34x128xf32> to vector<128xf32>
    %747 = vector.shape_cast %746 : vector<128xf32> to vector<1x128xf32>
    %748 = vector.extract_strided_slice %631 {offsets = [0, 1, 0], sizes = [34, 1, 128], strides = [1, 1, 1]} : vector<34x2x128xf32> to vector<34x1x128xf32>
    %749 = vector.shape_cast %748 : vector<34x1x128xf32> to vector<34x128xf32>
    %750 = arith.mulf %742, %749 : vector<34x128xf32>
    %cst_113 = arith.constant dense<0.000000e+00> : vector<128xf32>
    %751 = vector.multi_reduction <add>, %750, %cst_113 [0] : vector<34x128xf32> to vector<128xf32>
    %752 = vector.shape_cast %751 : vector<128xf32> to vector<1x128xf32>
    %753 = tpu.concatenate %747, %752 in 0 : vector<1x128xf32>, vector<1x128xf32> -> vector<2x128xf32>
    %754 = vector.extract_strided_slice %654 {offsets = [1, 0], sizes = [1, 128], strides = [1, 1]} : vector<2x128xf32> to vector<1x128xf32>
    %755 = vector.broadcast %754 : vector<1x128xf32> to vector<17x128xf32>
    %756 = arith.addf %755, %633 : vector<17x128xf32>
    %cst_114 = arith.constant 0.000000e+00 : f32
    %757 = vector.broadcast %cst_114 : f32 to vector<17x128xf32>
    %758 = arith.maximumf %756, %757 : vector<17x128xf32>
    %cst_115 = arith.constant 0.0588235296 : f32
    %759 = vector.broadcast %cst_115 : f32 to vector<17x128xf32>
    %760 = arith.mulf %758, %759 : vector<17x128xf32>
    %761 = vector.extract_strided_slice %652 {offsets = [0, 0, 0], sizes = [17, 1, 128], strides = [1, 1, 1]} : vector<17x2x128xf32> to vector<17x1x128xf32>
    %762 = vector.shape_cast %761 : vector<17x1x128xf32> to vector<17x128xf32>
    %763 = arith.mulf %760, %762 : vector<17x128xf32>
    %cst_116 = arith.constant dense<0.000000e+00> : vector<128xf32>
    %764 = vector.multi_reduction <add>, %763, %cst_116 [0] : vector<17x128xf32> to vector<128xf32>
    %765 = vector.shape_cast %764 : vector<128xf32> to vector<1x128xf32>
    %766 = vector.extract_strided_slice %652 {offsets = [0, 1, 0], sizes = [17, 1, 128], strides = [1, 1, 1]} : vector<17x2x128xf32> to vector<17x1x128xf32>
    %767 = vector.shape_cast %766 : vector<17x1x128xf32> to vector<17x128xf32>
    %768 = arith.mulf %760, %767 : vector<17x128xf32>
    %cst_117 = arith.constant dense<0.000000e+00> : vector<128xf32>
    %769 = vector.multi_reduction <add>, %768, %cst_117 [0] : vector<17x128xf32> to vector<128xf32>
    %770 = vector.shape_cast %769 : vector<128xf32> to vector<1x128xf32>
    %771 = tpu.concatenate %765, %770 in 0 : vector<1x128xf32>, vector<1x128xf32> -> vector<2x128xf32>
    %772 = tpu.concatenate %753, %771 in 0 : vector<2x128xf32>, vector<2x128xf32> -> vector<4x128xf32>
    %cst_118 = arith.constant dense<0.000000e+00> : vector<4x128xf32>
    %773 = tpu.matmul %656, %772, %cst_118 {dimension_numbers = #tpu.dot_dimension_numbers<[1], [0], [0], [1], [0, 0, 1, 1], [], []>} : vector<4x4xf32>, vector<4x128xf32>, vector<4x128xf32> -> vector<4x128xf32>
    %774 = vector.broadcast %657 : vector<4x1xf32> to vector<4x128xf32>
    %775 = arith.addf %773, %774 : vector<4x128xf32>
    %776 = vector.extract_strided_slice %655 {offsets = [1, 0, 0], sizes = [1, 4, 128], strides = [1, 1, 1]} : vector<2x4x128xf32> to vector<1x4x128xf32>
    %777 = vector.shape_cast %776 : vector<1x4x128xf32> to vector<4x128xf32>
    %778 = arith.addf %775, %777 : vector<4x128xf32>
    %c1 = arith.constant 1 : index
    %c0_119 = arith.constant 0 : index
    %c0_120 = arith.constant 0 : index
    %779 = vector.load %arg14[%c1, %c0_119, %c0_120] : memref<2x4x128xf32, #tpu.memory_space<vmem>>, vector<1x4x128xf32>
    %780 = vector.shape_cast %779 : vector<1x4x128xf32> to vector<4x128xf32>
    %781 = vector.shape_cast %778 : vector<4x128xf32> to vector<1x4x128xf32>
    tpu.vector_store %arg14[%c1, %c0_119, %c0_120], %781 {strides = array<i32>} : memref<2x4x128xf32, #tpu.memory_space<vmem>>, vector<1x4x128xf32>,
    return
  }
  func.func @transform_0(%arg0: i32) -> (i32, i32, i32) {
    %c0_i32 = arith.constant 0 : i32
    %c0_i32_0 = arith.constant 0 : i32
    %c0_i32_1 = arith.constant 0 : i32
    return %c0_i32, %c0_i32_0, %arg0 : i32, i32, i32
  }
  func.func @transform_1(%arg0: i32) -> (i32, i32, i32) {
    %c1_i32 = arith.constant 1 : i32
    %0 = arith.addi %arg0, %c1_i32 : i32
    %c0_i32 = arith.constant 0 : i32
    %c0_i32_0 = arith.constant 0 : i32
    %c0_i32_1 = arith.constant 0 : i32
    return %c0_i32, %c0_i32_0, %0 : i32, i32, i32
  }
  func.func @transform_2(%arg0: i32) -> (i32, i32, i32) {
    %c0_i32 = arith.constant 0 : i32
    %c0_i32_0 = arith.constant 0 : i32
    %c0_i32_1 = arith.constant 0 : i32
    return %c0_i32, %c0_i32_0, %arg0 : i32, i32, i32
  }
  func.func @transform_3(%arg0: i32) -> (i32, i32, i32) {
    %c1_i32 = arith.constant 1 : i32
    %0 = arith.addi %arg0, %c1_i32 : i32
    %c0_i32 = arith.constant 0 : i32
    %c0_i32_0 = arith.constant 0 : i32
    %c0_i32_1 = arith.constant 0 : i32
    return %c0_i32, %c0_i32_0, %0 : i32, i32, i32
  }
  func.func @transform_4(%arg0: i32) -> (i32, i32) {
    %c0_i32 = arith.constant 0 : i32
    %c0_i32_0 = arith.constant 0 : i32
    return %c0_i32, %arg0 : i32, i32
  }
  func.func @transform_5(%arg0: i32) -> (i32, i32) {
    %c1_i32 = arith.constant 1 : i32
    %0 = arith.addi %arg0, %c1_i32 : i32
    %c0_i32 = arith.constant 0 : i32
    %c0_i32_0 = arith.constant 0 : i32
    return %c0_i32, %0 : i32, i32
  }
  func.func @transform_6(%arg0: i32) -> (i32, i32) {
    %c0_i32 = arith.constant 0 : i32
    %c0_i32_0 = arith.constant 0 : i32
    return %c0_i32, %arg0 : i32, i32
  }
  func.func @transform_7(%arg0: i32) -> (i32, i32) {
    %c1_i32 = arith.constant 1 : i32
    %0 = arith.addi %arg0, %c1_i32 : i32
    %c0_i32 = arith.constant 0 : i32
    %c0_i32_0 = arith.constant 0 : i32
    return %c0_i32, %0 : i32, i32
  }
  func.func @transform_8(%arg0: i32) -> (i32, i32, i32) {
    %c0_i32 = arith.constant 0 : i32
    %c0_i32_0 = arith.constant 0 : i32
    %c0_i32_1 = arith.constant 0 : i32
    return %c0_i32, %c0_i32_0, %arg0 : i32, i32, i32
  }
  func.func @transform_9(%arg0: i32) -> (i32, i32) {
    %c0_i32 = arith.constant 0 : i32
    %c0_i32_0 = arith.constant 0 : i32
    return %c0_i32, %arg0 : i32, i32
  }
  func.func @transform_10(%arg0: i32) -> (i32, i32, i32) {
    %c0_i32 = arith.constant 0 : i32
    %c0_i32_0 = arith.constant 0 : i32
    %c0_i32_1 = arith.constant 0 : i32
    return %c0_i32, %c0_i32_0, %arg0 : i32, i32, i32
  }
  func.func @transform_11(%arg0: i32) -> (i32, i32) {
    %c0_i32 = arith.constant 0 : i32
    %c0_i32_0 = arith.constant 0 : i32
    %c0_i32_1 = arith.constant 0 : i32
    return %c0_i32, %c0_i32_0 : i32, i32
  }
  func.func @transform_12(%arg0: i32) -> (i32, i32) {
    %c0_i32 = arith.constant 0 : i32
    %c0_i32_0 = arith.constant 0 : i32
    %c0_i32_1 = arith.constant 0 : i32
    return %c0_i32, %c0_i32_0 : i32, i32
  }
  func.func @transform_13(%arg0: i32) -> (i32, i32, i32) {
    %c0_i32 = arith.constant 0 : i32
    %c0_i32_0 = arith.constant 0 : i32
    %c0_i32_1 = arith.constant 0 : i32
    return %c0_i32, %c0_i32_0, %arg0 : i32, i32, i32
  }
}

</mosaic_0001>

<bundles_post_ra>
// kernel: non_local_forward.4
= control target key start
LH: loop header
LB: loop body
LE: loop exit
PB: predicated region body
PF: predicated region fallthrough
CT: control target
= control target key end

     0   :  { %s434_s15 = smov 0   ;;  %s460_s0 = inlined_call_operand.vmem [shape: f32[1,4,256], index: 0, kind: input, shape index: {}]   ;;  %s461_s1 = inlined_call_operand.vmem [shape: f32[3,4], index: 1, kind: input, shape index: {}]   ;;  %s462_s2 = inlined_call_operand.vmem [shape: f32[3,1], index: 2, kind: input, shape index: {}]   ;;  %s463_s3 = inlined_call_operand.vmem [shape: f32[1,2,256], index: 3, kind: output, shape index: {0}]   ;;  %s464_s4 = inlined_call_operand.vmem [shape: f32[1,1,256], index: 4, kind: output, shape index: {1}]  }
   0x1 LB: > { %s368_s16 = sadd.s32 4294967295, %s404_s15   ;;  %p372_p0 = scmp.ge.s32.totalorder %s404_s15, 1  ;;  %s404_s15 = sphi %s434_s15, %s15_s15  }
   0x2   : > { %p164_p1 = scmp.lt.s32.totalorder %s404_s15, 3 }
   0x4   : > { %p165_p2 = pnand %p372_p0, %p164_p1 }
   0x5   : > { %p191_p3 = scmp.lt.s32.totalorder (!%p165_p2), %s368_s16, 1  ;;  %v406_v0 = vmov (!%p165_p2), 0.0   ;;  %vm407_vm0 = vmmov (!%p165_p2), 0   ;;  %v204_v1 = vld [vmem:[%s462_s2] sm:$0x7] (!%p165_p2)  ;;  %v408_v2 = vmov (!%p165_p2), 0  }
   0x6   : > { %168 = sbr.rel (%p165_p2) target bundleno = 233 (0xe9), region = 32  ;;  %381 = vmatprep.subr.mxu0 (!%p165_p2), %v406_v0  ;;  %383 = vmatprep.mubr.msk.f32.mxu0 (!%p165_p2), %vm407_vm0, %v406_v0  ;;  %vm214_vm1 = vcmask (!%p165_p2), 1043456   ;;  %v203_v3 = vld [vmem:[%s461_s1] sm:$0x7] (!%p165_p2)  ;;  %vm210_vm2 = vcmask (!%p165_p2), 31744  }
   0x7   : > { %397 = vset.pattern.permute.xlu0 (!%p165_p2), %v408_v2 }
   0x8   : > { %207 = vperm.xlu0 (!%p165_p2), %397, %v204_v1  }
   0xd   : > { %s466_s16 = smov (!%p191_p3, %s368_s16), 1 }
   0xe   : > { %s373_s19 = sshll.u32 %s466_s16, 2  ;;  %s374_s25 = sshll.u32 %s466_s16, 1 }
   0xf   : > { %s194_s22 = scalar_lea.vmem %s460_s0, %s373_s19  ;;  %s198_s28 = scalar_lea.vmem %s463_s3, %s374_s25 }
  0x10   : > { %v202_v4 = vld [vmem:[%s194_s22] sm:$0xf]  ;;  %s201_s5 = scalar_lea.vmem %s464_s4, %s466_s16 }
  0x11   : > { %382 = vmatpush3.msk.msra.mxu0 %vm214_vm1, %v202_v4 }
  0x12   : > { %384 = vmatmul.mubr.msk.f32.vlgmr.msra.gmra.mrb[0].mxu0 %vm210_vm2, %v203_v3 }
  0x87   : > { %v208_v5 = vpop.permute.xlu0 %207 }
  0xe5   : > { %v284_v6 = vpop.f32.mrb[0].mxu0 }
  0xe6   : > { %v285_v7 = vadd.f32 %v284_v6, %v208_v5  ;;  %v385_v8 = vpop.f32.mrb[1].mxu0 }
  0xe8   : > { %288 = vst [vmem:[%s198_s28] sm:$0x3] %v285_v7  ;;  %289 = vst [vmem:[%s201_s5 - $0x2] sm:$0x4] %v285_v7 }
  0xe9 PF: > { %s15_s15 = sadd.s32 1, %s404_s15  }
  0xea   : > { %p12_p4 = scmp.ge.s32.totalorder %s15_s15, 4  }
  0xec   :  { %14 = sbr.rel (!%p12_p4) target bundleno = 1 (0x1), region = 74 }

// kernel: non_local_forward.3
= control target key start
LH: loop header
LB: loop body
LE: loop exit
PB: predicated region body
PF: predicated region fallthrough
CT: control target
= control target key end

     0   :  { %s929_s21 = smov 0   ;;  %s931_s22 = smov 0   ;;  %s1014_s0 = inlined_call_operand.vmem [shape: f32[2,4,256], index: 0, kind: input, shape index: {}]   ;;  %s1015_s1 = inlined_call_operand.vmem [shape: f32[7,4], index: 1, kind: input, shape index: {}]   ;;  %s1016_s2 = inlined_call_operand.vmem [shape: f32[7,1], index: 2, kind: input, shape index: {}]   ;;  %s1017_s3 = inlined_call_operand.vmem [shape: f32[2,2,256], index: 3, kind: output, shape index: {0}]   ;;  %s1018_s4 = inlined_call_operand.vmem [shape: f32[2,2,256], index: 4, kind: output, shape index: {1}]   ;;  %s1019_s5 = inlined_call_operand.vmem [shape: f32[2,2,256], index: 5, kind: output, shape index: {2}]   ;;  %s1020_s6 = inlined_call_operand.vmem [shape: f32[2,1,256], index: 6, kind: output, shape index: {3}]  }
   0x1   :  { %s933_s23 = smov 0  }
   0x2 LB: > { %s942_s24 = sadd.s32 4294967295, %s889_s23   ;;  %s944_s25 = sadd.s32 1, %s889_s23   ;;  %s889_s23 = sphi %s933_s23, %s1024_s23   ;;  %s885_s22 = sphi %s931_s22, %s1023_s22   ;;  %s881_s21 = sphi %s929_s21, %s1022_s21  }
   0x3   : > { %s21_s26 = ssub.s32 %s889_s23, %s944_s25  ;;  %s24_s27 = sadd.s32 1, %s885_s22 }
   0x4   : > { %p22_p0 = scmp.eq.s32.totalorder %s21_s26, 0  ;;  %p31_p1 = scmp.ne.s32.totalorder %s885_s22, %s881_s21 }
   0x5   : > { %p32_p2 = scmp.eq.s32.totalorder %s889_s23, 0  ;;  %p103_p3 = scmp.eq.s32.totalorder %s942_s24, 1 }
   0x6   : > { %s952_s28 = scalar_select %p22_p0, %s885_s22, %s24_s27  }
   0x7   : > { %p33_p4 = por %p32_p2, %p31_p1  ;;  %p954_p5 = por %p103_p3, %p31_p1 }
   0x8   : > { %p799_p6 = scmp.ge.s32.totalorder %s889_s23, 2 }
   0xa   : > { %209 = sbr.rel (%p799_p6) target bundleno = 24 (0x18), region = 24 }
  0x11   : > { %212 = sbr.rel (!%p33_p4) target bundleno = 24 (0x18), region = 28  ;;  %s214_s30 = sand.u32 (%p33_p4), 1, %s885_s22  }
  0x12   : > { %s801_s7 = sshll.u32 (%p33_p4), %s889_s23, 2  ;;  %s800_s8 = sshll.u32 (%p33_p4), %s214_s30, 3 }
  0x13   : > { %s218_s11 = scalar_lea.vmem (%p33_p4), %s1014_s0, %s801_s7  ;;  %s216_s12 = scalar_lea.vmem (%p33_p4), [#allocation2], %s800_s8 }
  0x14   : > { %v234_v0 = vld [vmem:[%s218_s11] sm:$0xf] (%p33_p4)  ;;  %v236_v1 = vld [vmem:[%s218_s11 + $0x8] sm:$0xf] (%p33_p4) }
  0x15   : > { %235 = vst [vmem:[%s216_s12] sm:$0xf] (%p33_p4), %v234_v0  ;;  %237 = vst [vmem:[%s216_s12 + $0x4] sm:$0xf] (%p33_p4), %v236_v1 }
  0x18 PF: > { %p802_p7 = scmp.ge.s32.totalorder %s889_s23, 1  ;;  %p263_p8 = scmp.lt.s32.totalorder %s889_s23, 3 }
  0x1a   : > { %p264_p9 = pnand %p802_p7, %p263_p8 }
  0x1b   : > { %s963_s13 = sand.u32 (!%p264_p9), 1, %s881_s21   ;;  %v891_v2 = vmov (!%p264_p9), 0.0   ;;  %vm323_vm0 = vcmask (!%p264_p9), 1043456   ;;  %vm892_vm1 = vmmov (!%p264_p9), 0   ;;  %v312_v3 = vld [vmem:[%s1015_s1] sm:$0x7f] (!%p264_p9) }
  0x1c   : > { %267 = sbr.rel (%p264_p9) target bundleno = 278 (0x116), region = 69  ;;  %829 = vmatprep.subr.mxu0 (!%p264_p9), %v891_v2  ;;  %834 = vmatprep.subr.mxu1 (!%p264_p9), %v891_v2  ;;  %s803_s14 = sshll.u32 (!%p264_p9), %s963_s13, 3  ;;  %vm319_vm2 = vcmask (!%p264_p9), 31744   ;;  %v893_v6 = vmov (!%p264_p9), 0   ;;  %v313_v7 = vld [vmem:[%s1016_s2] sm:$0x7f] (!%p264_p9) }
  0x1d   : > { %831 = vmatprep.mubr.msk.f32.mxu0 (!%p264_p9), %vm892_vm1, %v891_v2  ;;  %836 = vmatprep.mubr.msk.f32.mxu1 (!%p264_p9), %vm892_vm1, %v891_v2  ;;  %s272_s17 = scalar_lea.vmem (!%p264_p9), [#allocation2], %s803_s14  ;;  %s804_s20 = sshll.u32 (!%p264_p9), %s963_s13, 2 }
  0x1e   : > { %v310_v4 = vld [vmem:[%s272_s17] sm:$0xf] (!%p264_p9)  ;;  %v311_v5 = vld [vmem:[%s272_s17 + $0x4] sm:$0xf] (!%p264_p9)  ;;  %866 = vset.pattern.permute.xlu0 (!%p264_p9), %v893_v6  ;;  %s807_s21 = sshll.u32 (!%p264_p9), %s963_s13, 1  ;;  %s291_s23 = scalar_lea.vmem (!%p264_p9), [#allocation3], %s804_s20 }
  0x1f   : > { %830 = vmatpush3.msk.msra.mxu0 (!%p264_p9), %vm323_vm0, %v310_v4  ;;  %835 = vmatpush3.msk.msra.mxu1 (!%p264_p9), %vm323_vm0, %v311_v5  ;;  %s297_s26 = scalar_lea.vmem (!%p264_p9), [#allocation4], %s804_s20  ;;  %s303_s27 = scalar_lea.vmem (!%p264_p9), [#allocation5], %s804_s20 }
  0x20   : > { %832 = vmatmul.mubr.msk.f32.vlgmr.msra.gmra.mrb[0].mxu0 (!%p264_p9), %vm319_vm2, %v312_v3  ;;  %837 = vmatmul.mubr.msk.f32.vlgmr.msra.gmra.mrb[0].mxu1 (!%p264_p9), %vm319_vm2, %v312_v3  ;;  %s974_s30 = scalar_lea.vmem (!%p264_p9), [#allocation6], %s807_s21 }
  0x21   : > { %316 = vperm.xlu0 (!%p264_p9), %866, %v313_v7  }
  0x23   : > { %s820_s7 = sshll.u32 (%p954_p5), %s942_s24, 1 }
  0x24   : > { %s502_s10 = scalar_lea.vmem (%p954_p5), %s1017_s3, %s820_s7 }
  0xa0   : > { %v317_v8 = vpop.permute.xlu0 %316 }
  0xf3   : > { %v393_v9 = vpop.f32.mrb[0].mxu0  ;;  %v470_v10 = vpop.f32.mrb[0].mxu1  ;;  %500 = sbr.rel (!%p954_p5) target bundleno = 257 (0x101), region = 77 }
  0xf4   : > { %v394_v11 = vadd.f32 %v393_v9, %v317_v8  ;;  %v471_v12 = vadd.f32 %v470_v10, %v317_v8  ;;  %v833_v13 = vpop.f32.mrb[1].mxu0  ;;  %v838_v14 = vpop.f32.mrb[1].mxu1 }
  0xf6   : > { %397 = vst [vmem:[%s291_s23] sm:$0x3] %v394_v11  ;;  %398 = vst [vmem:[%s297_s26 - $0x2] sm:$0xc] %v394_v11 }
  0xf7   : > { %399 = vst [vmem:[%s303_s27 - $0x4] sm:$0x30] %v394_v11  ;;  %400 = vst [vmem:[%s974_s30 - $0x6] sm:$0x40] %v394_v11 }
  0xf8   : > { %812 = vst [vmem:[%s291_s23 + $0x2] sm:$0x3] %v471_v12  ;;  %813 = vst [vmem:[%s297_s26] sm:$0xc] %v471_v12 }
  0xf9   : > { %814 = vst [vmem:[%s303_s27 - $0x2] sm:$0x30] %v471_v12  ;;  %815 = vst [vmem:[%s974_s30 - $0x5] sm:$0x40] %v471_v12 }
  0xfd   : > { %v518_v15 = vld [vmem:[%s291_s23] sm:$0x3] }
  0xfe   : > { %519 = vst [vmem:[%s502_s10] sm:$0x3] %v518_v15 }
  0xff   : > { %v520_v16 = vld [vmem:[%s291_s23 + $0x2] sm:$0x3] }
 0x100   : > { %521 = vst [vmem:[%s502_s10 + $0x4] sm:$0x3] %v520_v16 }
 0x101 PF: > { %540 = sbr.rel (!%p954_p5) target bundleno = 264 (0x108), region = 111  ;;  %s821_s11 = sshll.u32 (%p954_p5), %s942_s24, 1 }
 0x102   : > { %s542_s14 = scalar_lea.vmem (%p954_p5), %s1018_s4, %s821_s11 }
 0x104   : > { %v558_v17 = vld [vmem:[%s297_s26] sm:$0x3] (%p954_p5) }
 0x105   : > { %559 = vst [vmem:[%s542_s14] sm:$0x3] (%p954_p5), %v558_v17 }
 0x106   : > { %v560_v18 = vld [vmem:[%s297_s26 + $0x2] sm:$0x3] (%p954_p5) }
 0x107   : > { %561 = vst [vmem:[%s542_s14 + $0x4] sm:$0x3] (%p954_p5), %v560_v18 }
 0x108 PF: > { %580 = sbr.rel (!%p954_p5) target bundleno = 271 (0x10f), region = 145  ;;  %s822_s15 = sshll.u32 (%p954_p5), %s942_s24, 1  ;;  %v598_v19 = vld [vmem:[%s303_s27] sm:$0x3] (%p954_p5)  ;;  %v600_v20 = vld [vmem:[%s303_s27 + $0x2] sm:$0x3] (%p954_p5) }
 0x109   : > { %s582_s18 = scalar_lea.vmem (%p954_p5), %s1019_s5, %s822_s15 }
 0x10a   : > { %599 = vst [vmem:[%s582_s18] sm:$0x3] (%p954_p5), %v598_v19  ;;  %601 = vst [vmem:[%s582_s18 + $0x4] sm:$0x3] (%p954_p5), %v600_v20 }
 0x10f PF: > { %620 = sbr.rel (!%p954_p5) target bundleno = 278 (0x116), region = 179  ;;  %s621_s21 = scalar_lea.vmem (%p954_p5), %s1020_s6, %s942_s24  ;;  %v637_v21 = vld [vmem:[%s974_s30] sm:$0x1] (%p954_p5)  ;;  %v639_v22 = vld [vmem:[%s974_s30 + $0x1] sm:$0x1] (%p954_p5) }
 0x110   : > { %638 = vst [vmem:[%s621_s21] sm:$0x1] (%p954_p5), %v637_v21  ;;  %640 = vst [vmem:[%s621_s21 + $0x2] sm:$0x1] (%p954_p5), %v639_v22 }
 0x116 PF: > { %p14_p10 = scmp.ge.s32.totalorder %s944_s25, 4   ;;  %s1022_s21 = smov %s885_s22 }
 0x117   : > { %s1023_s22 = smov %s952_s28  ;;  %s1024_s23 = smov %s944_s25 }
 0x118   :  { %16 = sbr.rel (!%p14_p10) target bundleno = 2 (0x2), region = 284 }

// kernel: non_local_forward.5
= control target key start
LH: loop header
LB: loop body
LE: loop exit
PB: predicated region body
PF: predicated region fallthrough
CT: control target
= control target key end

     0   :  { %s12971_s0 = inlined_call_operand.vmem [shape: f32[2,2,384], index: 0, kind: input, shape index: {}, may-alias: {0,1}]   ;;  %s12972_s1 = inlined_call_operand.vmem [shape: f32[2,2,384], index: 1, kind: input, shape index: {}, may-alias: {0,1}]   ;;  %s12973_s2 = inlined_call_operand.vmem [shape: f32[2,2,384], index: 2, kind: input, shape index: {}, may-alias: {2,3}]   ;;  %s12974_s3 = inlined_call_operand.vmem [shape: f32[2,2,384], index: 3, kind: input, shape index: {}, may-alias: {2,3}]   ;;  %s12975_s4 = inlined_call_operand.vmem [shape: f32[1,384], index: 4, kind: input, shape index: {}, may-alias: {4,5}]   ;;  %s12976_s5 = inlined_call_operand.vmem [shape: f32[1,384], index: 5, kind: input, shape index: {}, may-alias: {4,5}]   ;;  %s12977_s6 = inlined_call_operand.vmem [shape: f32[2,384], index: 6, kind: input, shape index: {}, may-alias: {6,7}]   ;;  %s12978_s7 = inlined_call_operand.vmem [shape: f32[2,384], index: 7, kind: input, shape index: {}, may-alias: {6,7}]   ;;  %s12979_s8 = inlined_call_operand.vmem [shape: f32[2,2,256], index: 8, kind: input, shape index: {}]   ;;  %s12980_s9 = inlined_call_operand.vmem [shape: f32[2,256], index: 9, kind: input, shape index: {}]   ;;  %s12981_s10 = inlined_call_operand.vmem [shape: f32[2,4,256], index: 10, kind: input, shape index: {}]   ;;  %s12982_s11 = inlined_call_operand.vmem [shape: f32[4,4], index: 11, kind: input, shape index: {}]   ;;  %s12983_s12 = inlined_call_operand.vmem [shape: f32[4,1], index: 12, kind: input, shape index: {}]   ;;  %s12984_s13 = inlined_call_operand.vmem [shape: f32[2,4,256], index: 13, kind: output, shape index: {}]  }
   0x1   :  { %13438 = sst [smem:[#allocation159_spill]] %s12971_s0 }
   0x2   :  { %13439 = sst [smem:[#allocation160_spill]] %s12972_s1 }
   0x3   :  { %13440 = sst [smem:[#allocation161_spill]] %s12973_s2 }
   0x4   :  { %13441 = sst [smem:[#allocation162_spill]] %s12974_s3 }
   0x5   :  { %13442 = sst [smem:[#allocation163_spill]] %s12975_s4 }
   0x6   :  { %13443 = sst [smem:[#allocation164_spill]] %s12976_s5 }
   0x7   :  { %13444 = sst [smem:[#allocation165_spill]] %s12982_s11 }
   0x8   :  { %13445 = sst [smem:[#allocation166_spill]] %s12983_s12 }
   0x9   :  { %13446 = sst [smem:[#allocation167_spill]] %s12984_s13 }
   0xa   :  { %s6959_s25 = smov 0   ;;  %s6961_s26 = smov 0  }
   0xb   :  { %s6963_s27 = smov 0   ;;  %s6965_s28 = smov 0  }
   0xc   :  { %s6967_s29 = smov 0  }
   0xd LB: > { %s6985_s30 = sadd.s32 4294967295, %s6842_s29   ;;  %s6988_s14 = sadd.s32 1, %s6842_s29   ;;  %s6842_s29 = sphi %s6967_s29, %s14621_s29   ;;  %s6838_s28 = sphi %s6965_s28, %s14627_s28   ;;  %s6834_s27 = sphi %s6963_s27, %s14626_s27   ;;  %s6830_s26 = sphi %s6961_s26, %s14625_s26   ;;  %s6826_s25 = sphi %s6959_s25, %s14624_s25  }
   0xe   : > { %13447 = sst [smem:[#allocation9_spill]] %s6988_s14  ;;  %s27_s15 = ssub.s32 %s6842_s29, %s6988_s14 }
   0xf   : > { %s30_s16 = sadd.s32 1, %s6838_s28  ;;  %p28_p0 = scmp.eq.s32.totalorder %s27_s15, 0 }
  0x10   : > { %p37_p1 = scmp.ne.s32.totalorder %s6838_s28, %s6834_s27  ;;  %p38_p2 = scmp.eq.s32.totalorder %s6842_s29, 0 }
  0x11   : > { %s54_s17 = sadd.s32 1, %s6988_s14  ;;  %s58_s21 = sadd.s32 1, %s6830_s26 }
  0x12   : > { %s6998_s18 = scalar_select %p28_p0, %s6838_s28, %s30_s16  }
  0x13   : > { %p7000_p3 = por %p38_p2, %p37_p1  ;;  %s55_s20 = ssub.s32 %s6988_s14, %s54_s17 }
  0x14   : > { %13448 = sst [smem:[#allocation10_spill]] %s6998_s18  ;;  %p56_p4 = scmp.eq.s32.totalorder %s55_s20, 0 }
  0x15   : > { %p65_p5 = scmp.ne.s32.totalorder %s6830_s26, %s6826_s25  ;;  %p377_p6 = scmp.eq.s32.totalorder %s6985_s30, 1 }
  0x16   : > { %s7010_s22 = scalar_select %p56_p4, %s6830_s26, %s58_s21  }
  0x17   : > { %p7012_p7 = por %p65_p5, %p38_p2  ;;  %p7016_p8 = por %p377_p6, %p37_p1 }
  0x18   : > { %13450 = sst [smem:[#allocation11_spill]] %s7010_s22  ;;  %p6382_p9 = scmp.ge.s32.totalorder %s6842_s29, 2 }
  0x19   : > { %s13452_s24 = scalar_select %p7016_p8, 1, 0 }
  0x1a   : > { %405 = sbr.rel (%p6382_p9) target bundleno = 91 (0x5b), region = 24 }
  0x1b   : > { %13453 = sst [smem:[#allocation12_spill]] %s13452_s24 }
  0x21   : > { %408 = sbr.rel (!%p7000_p3) target bundleno = 44 (0x2c), region = 28  ;;  %s410_s15 = sand.u32 (%p7000_p3), 1, %s6838_s28  }
  0x22   : > { %s6384_s16 = sshll.u32 (%p7000_p3), %s6842_s29, 1  ;;  %s6383_s17 = sshll.u32 (%p7000_p3), %s410_s15, 2 }
  0x23   : > { %s13454_s0 = sld [smem:[#allocation159_spill]] (%p7000_p3)  ;;  %s412_s22 = scalar_lea.vmem (%p7000_p3), [#allocation2], %s6383_s17 }
  0x29   : > { %s414_s18 = scalar_lea.vmem %s13454_s0, %s6384_s16 }
  0x2a   : > { %v430_v0 = vld [vmem:[%s414_s18] sm:$0x3]  ;;  %v432_v1 = vld [vmem:[%s414_s18 + $0x6] sm:$0x3] }
  0x2b   : > { %431 = vst [vmem:[%s412_s22] sm:$0x3] %v430_v0  ;;  %433 = vst [vmem:[%s412_s22 + $0x2] sm:$0x3] %v432_v1 }
  0x2c PF: > { %452 = sbr.rel (!%p7012_p7) target bundleno = 55 (0x37), region = 62  ;;  %s454_s14 = sand.u32 (%p7012_p7), 1, %s6830_s26  }
  0x2d   : > { %s6386_s13 = sshll.u32 (%p7012_p7), %s6842_s29, 1  ;;  %s6385_s24 = sshll.u32 (%p7012_p7), %s454_s14, 2 }
  0x2e   : > { %s13455_s1 = sld [smem:[#allocation160_spill]] (%p7012_p7)  ;;  %s456_s16 = scalar_lea.vmem (%p7012_p7), [#allocation3], %s6385_s24 }
  0x34   : > { %s6196_s12 = scalar_lea.vmem %s13455_s1, %s6386_s13 }
  0x35   : > { %v6387_v2 = vld [vmem:[%s6196_s12 + $0x2] sm:$0x3]  ;;  %v6388_v3 = vld [vmem:[%s6196_s12 + $0x8] sm:$0x3] }
  0x36   : > { %476 = vst [vmem:[%s456_s16] sm:$0x3] %v6387_v2  ;;  %478 = vst [vmem:[%s456_s16 + $0x2] sm:$0x3] %v6388_v3 }
  0x37 PF: > { %497 = sbr.rel (!%p7000_p3) target bundleno = 66 (0x42), region = 96  ;;  %s499_s18 = sand.u32 (%p7000_p3), 1, %s6838_s28  }
  0x38   : > { %s6390_s22 = sshll.u32 (%p7000_p3), %s6842_s29, 1  ;;  %s6389_s17 = sshll.u32 (%p7000_p3), %s499_s18, 2 }
  0x39   : > { %s13456_s2 = sld [smem:[#allocation161_spill]] (%p7000_p3)  ;;  %s501_s11 = scalar_lea.vmem (%p7000_p3), [#allocation4], %s6389_s17 }
  0x3f   : > { %s503_s21 = scalar_lea.vmem %s13456_s2, %s6390_s22 }
  0x40   : > { %v519_v4 = vld [vmem:[%s503_s21] sm:$0x3]  ;;  %v521_v5 = vld [vmem:[%s503_s21 + $0x6] sm:$0x3] }
  0x41   : > { %520 = vst [vmem:[%s501_s11] sm:$0x3] %v519_v4  ;;  %522 = vst [vmem:[%s501_s11 + $0x2] sm:$0x3] %v521_v5 }
  0x42 PF: > { %541 = sbr.rel (!%p7012_p7) target bundleno = 77 (0x4d), region = 130  ;;  %s543_s12 = sand.u32 (%p7012_p7), 1, %s6830_s26  }
  0x43   : > { %s6392_s13 = sshll.u32 (%p7012_p7), %s6842_s29, 1  ;;  %s6391_s24 = sshll.u32 (%p7012_p7), %s543_s12, 2 }
  0x44   : > { %s13457_s3 = sld [smem:[#allocation162_spill]] (%p7012_p7)  ;;  %s545_s22 = scalar_lea.vmem (%p7012_p7), [#allocation5], %s6391_s24 }
  0x4a   : > { %s6205_s18 = scalar_lea.vmem %s13457_s3, %s6392_s13 }
  0x4b   : > { %v6393_v6 = vld [vmem:[%s6205_s18 + $0x2] sm:$0x3]  ;;  %v6394_v7 = vld [vmem:[%s6205_s18 + $0x8] sm:$0x3] }
  0x4c   : > { %565 = vst [vmem:[%s545_s22] sm:$0x3] %v6393_v6  ;;  %567 = vst [vmem:[%s545_s22 + $0x2] sm:$0x3] %v6394_v7 }
  0x4d PF: > { %616 = sbr.rel (!%p7000_p3) target bundleno = 84 (0x54), region = 180  ;;  %s618_s23 = sand.u32 (%p7000_p3), 1, %s6838_s28  }
  0x4e   : > { %s6396_s17 = sshll.u32 (%p7000_p3), %s6842_s29, 1  ;;  %s6395_s20 = sshll.u32 (%p7000_p3), %s618_s23, 2 }
  0x4f   : > { %s622_s11 = scalar_lea.vmem (%p7000_p3), %s12979_s8, %s6396_s17  ;;  %s620_s12 = scalar_lea.vmem (%p7000_p3), [#allocation6], %s6395_s20 }
  0x50   : > { %v638_v8 = vld [vmem:[%s622_s11] sm:$0x3] (%p7000_p3)  ;;  %v640_v9 = vld [vmem:[%s622_s11 + $0x4] sm:$0x3] (%p7000_p3) }
  0x51   : > { %639 = vst [vmem:[%s620_s12] sm:$0x3] (%p7000_p3), %v638_v8  ;;  %641 = vst [vmem:[%s620_s12 + $0x2] sm:$0x3] (%p7000_p3), %v640_v9 }
  0x54 PF: > { %667 = sbr.rel (!%p7000_p3) target bundleno = 91 (0x5b), region = 218  ;;  %s669_s13 = sand.u32 (%p7000_p3), 1, %s6838_s28  }
  0x55   : > { %s6398_s24 = sshll.u32 (%p7000_p3), %s6842_s29, 2  ;;  %s6397_s15 = sshll.u32 (%p7000_p3), %s669_s13, 3 }
  0x56   : > { %s673_s22 = scalar_lea.vmem (%p7000_p3), %s12981_s10, %s6398_s24  ;;  %s671_s23 = scalar_lea.vmem (%p7000_p3), [#allocation7], %s6397_s15 }
  0x57   : > { %v689_v10 = vld [vmem:[%s673_s22] sm:$0xf] (%p7000_p3)  ;;  %v691_v11 = vld [vmem:[%s673_s22 + $0x8] sm:$0xf] (%p7000_p3) }
  0x58   : > { %690 = vst [vmem:[%s671_s23] sm:$0xf] (%p7000_p3), %v689_v10  ;;  %692 = vst [vmem:[%s671_s23 + $0x4] sm:$0xf] (%p7000_p3), %v691_v11 }
  0x5b PF: > { %p6399_p10 = scmp.ge.s32.totalorder %s6842_s29, 1  ;;  %p718_p11 = scmp.lt.s32.totalorder %s6842_s29, 3 }
  0x5d   : > { %p719_p12 = pnand %p6399_p10, %p718_p11 }
  0x5f   : > { %722 = sbr.rel (%p719_p12) target bundleno = 1682 (0x692), region = 259 }
  0x66   : > { %v13047_v12 = vlaneseq  ;;  %v6844_v13 = vmov 1.0   ;;  %s12988_s19 = smov 36   ;;  %v13045_v14 = vmov 0.0   ;;  %s13009_s17 = smov 52   ;;  %vm13084_vm4 = vcmask 556032  }
  0x67   : > { %918 = vrot.lane.b32.xlu0 %v6844_v13, %s12988_s19  ;;  %6427 = vmatprep.subr.mxu0 %v13045_v14  ;;  %s6848_s29 = smov 37   ;;  %s12995_s20 = smov 35   ;;  %vm13083_vm5 = vcmask 547840   ;;  %vm13086_vm6 = vcmask 539648   ;;  %vm13082_vm7 = vcmask 424960   ;;  %vm13103_vm8 = vcmask 900096  }
  0x68   : > { %v879_v15 = vand.u32 127, %v13047_v12  ;;  %6432 = vmatprep.subr.mxu1 %v13045_v14  ;;  %s12991_s14 = smov 51   ;;  %s12993_s21 = smov 67   ;;  %vm13080_vm9 = vcmask 416768   ;;  %vm13114_vm10 = vcmask 883712   ;;  %vm13077_vm11 = vcmask 408576  }
  0x69   : > { %s6852_s11 = smov 53   ;;  %s6853_s12 = smov 69   ;;  %vm13085_vm12 = vcmask 1041409   ;;  %vm13110_vm13 = vcmask 1039360   ;;  %vm13076_vm14 = vcmask 293888   ;;  %vm13079_vm15 = vcmask 285696  }
  0x6a   : > { %v884_v16 = vand.u32 15, %v879_v15  ;;  %s13003_s13 = smov 68   ;;  %s6855_s24 = smov 4  }
  0x6b   : > { %964 = vrot.lane.b32.xlu0 %v6844_v13, %s13009_s17  ;;  %s6856_s15 = smov 1   ;;  %s6857_s16 = smov 49  }
  0x6c   : > { %v931_v17 = vadd.s32 1, %v884_v16  ;;  %v892_v18 = vadd.s32 4294967295, %v884_v16  ;;  %v1029_v21 = vadd.s32 4294967293, %v884_v16  ;;  %v1062_v22 = vadd.s32 3, %v884_v16  ;;  %s6858_s18 = smov 7   ;;  %s6859_s22 = smov 97  }
  0x6d   : > { %s6860_s23 = smov 55   ;;  %p844_p0 = scmp.lt.s32.totalorder %s6985_s30, 2 }
  0x6e   : > { %vm933_vm0 = vcmp.lt.s32.totalorder %v931_v17, 16  ;;  %vm893_vm1 = vcmp.ge.s32.totalorder %v892_v18, 0  ;;  %vm1030_vm2 = vcmp.ge.s32.totalorder %v1029_v21, 0  ;;  %vm1064_vm3 = vcmp.lt.s32.totalorder %v1062_v22, 16  ;;  %s13463_s5 = sld [smem:[#allocation164_spill]]  ;;  %s13464_s4 = sld [smem:[#allocation163_spill]] }
  0x6f   : > { %v6411_v19 = vsel %vm933_vm0, 1.0, %v13045_v14  ;;  %v6410_v20 = vsel %vm893_vm1, 1.0, %v13045_v14  ;;  %v6412_v23 = vsel %vm1030_vm2, 1.0, %v13045_v14  ;;  %v6413_v24 = vsel %vm1064_vm3, 1.0, %v13045_v14  ;;  %s13489_s3 = smov 108   ;;  %s13492_s0 = smov 127  }
  0x70   : > { %938 = vrot.lane.b32.xlu1 %v6411_v19, %s6848_s29  ;;  %899 = vrot.lane.b32.xlu0 %v6410_v20, %s12995_s20  ;;  %s6861_s29 = smov 103   ;;  %s13495_s1 = smov 94   ;;  %vm1233_vm0 = vcmask 277504   ;;  %vm13081_vm1 = vcmask 834560   ;;  %vm13078_vm2 = vcmask 809984   ;;  %vm13091_vm3 = vcmask 908288  }
  0x71   : > { %p862_p1 = scmp.lt.s32.totalorder %s6985_s30, 1 }
  0x74   : > { %951 = vrot.lane.b32.xlu1 %v6410_v20, %s12991_s14  ;;  %990 = vrot.lane.b32.xlu0 %v6410_v20, %s12993_s21 }
  0x78   : > { %977 = vrot.lane.b32.xlu1 %v6411_v19, %s6852_s11  ;;  %1016 = vrot.lane.b32.xlu0 %v6411_v19, %s6853_s12  ;;  %s6862_s11 = smov 100   ;;  %s732_s12 = sand.u32 1, %s6826_s25  }
  0x79   : > { %s7080_s19 = sshll.u32 %s732_s12, 2  ;;  %s13043_s25 = smov 127  }
  0x7a   : > { %s13037_s12 = smov 126  }
  0x7c   : > { %1003 = vrot.lane.b32.xlu1 %v6844_v13, %s13003_s13  ;;  %1049 = vrot.lane.b32.xlu0 %v6844_v13, %s6855_s24  ;;  %s12990_s24 = sand.u32 1, %s6834_s27  }
  0x80   : > { %1036 = vrot.lane.b32.xlu1 %v6412_v23, %s6856_s15  ;;  %1082 = vrot.lane.b32.xlu0 %v6412_v23, %s6857_s16  ;;  %s7084_s15 = sshll.u32 %s12990_s24, 2  ;;  %s734_s16 = scalar_lea.vmem [#allocation3], %s7080_s19 }
  0x81   : > { %v7091_v26 = vld [vmem:[%s734_s16] sm:$0x3]  ;;  %v7156_v51 = vld [vmem:[%s734_s16 + $0x2] sm:$0x3]  ;;  %s13027_s16 = smov 112   ;;  %s13015_s24 = smov 96  }
  0x84   : > { %1069 = vrot.lane.b32.xlu1 %v6413_v24, %s6858_s18  ;;  %1108 = vrot.lane.b32.xlu0 %v6412_v23, %s6859_s22  ;;  %s727_s18 = scalar_lea.vmem [#allocation2], %s7084_s15  ;;  %s13023_s22 = smov 111  }
  0x85   : > { %v7096_v27 = vld [vmem:[%s727_s18] sm:$0x3]  ;;  %v7160_v52 = vld [vmem:[%s727_s18 + $0x2] sm:$0x3]  ;;  %s13001_s18 = smov 110  }
  0x88   : > { %1095 = vrot.lane.b32.xlu1 %v6413_v24, %s6860_s23  ;;  %1134 = vrot.lane.b32.xlu0 %v6413_v24, %s6861_s29  ;;  %s12999_s23 = smov 95   ;;  %s13031_s29 = smov 31  }
  0x8c   : > { %1121 = vrot.lane.b32.xlu1 %v6844_v13, %s6862_s11  ;;  %s12997_s11 = smov 63  }
  0xd9   : > { %v7086_v25 = vpop.permute.xlu0 %918 }
  0xda   : > { %v922_v28 = vmul.f32 %v7086_v25, %v7091_v26  ;;  %v921_v29 = vmul.f32 %v7086_v25, %v7096_v27  ;;  %v924_v53 = vmul.f32 %v7086_v25, %v7156_v51  ;;  %v923_v54 = vmul.f32 %v7086_v25, %v7160_v52 }
  0xdc   : > { %1151 = vrot.lane.b32.xlu0 %v922_v28, %s13043_s25  ;;  %1149 = vrot.lane.b32.xlu1 %v921_v29, %s13043_s25 }
  0xdd   : > { %v7104_v30 = vpop.permute.xlu0 %964 }
  0xde   : > { %v968_v31 = vmul.f32 %v7104_v30, %v7091_v26  ;;  %v967_v32 = vmul.f32 %v7104_v30, %v7096_v27  ;;  %v970_v55 = vmul.f32 %v7104_v30, %v7156_v51  ;;  %v969_v56 = vmul.f32 %v7104_v30, %v7160_v52 }
  0xe0   : > { %1181 = vrot.lane.b32.xlu0 %v968_v31, %s13023_s22  ;;  %1179 = vrot.lane.b32.xlu1 %v967_v32, %s13023_s22 }
  0xe2   : > { %v7112_v33 = vpop.permute.xlu1 %938  ;;  %v7114_v34 = vpop.permute.xlu0 %899 }
  0xe3   : > { %v942_v59 = vmul.f32 %v7112_v33, %v7091_v26  ;;  %v941_v60 = vmul.f32 %v7112_v33, %v7096_v27  ;;  %v905_v19 = vmul.f32 %v7114_v34, %v7156_v51  ;;  %v904_v20 = vmul.f32 %v7114_v34, %v7160_v52 }
  0xe4   : > { %v944_v21 = vmul.f32 %v7112_v33, %v7156_v51  ;;  %v943_v22 = vmul.f32 %v7112_v33, %v7160_v52 }
  0xe6   : > { %v7116_v35 = vpop.permute.xlu1 %951  ;;  %v7118_v36 = vpop.permute.xlu0 %990 }
  0xe7   : > { %v955_v61 = vmul.f32 %v7116_v35, %v7091_v26  ;;  %v954_v62 = vmul.f32 %v7116_v35, %v7096_v27  ;;  %v994_v1 = vmul.f32 %v7118_v36, %v7091_v26  ;;  %v993_v2 = vmul.f32 %v7118_v36, %v7096_v27 }
  0xe8   : > { %v957_v23 = vmul.f32 %v7116_v35, %v7156_v51  ;;  %v956_v24 = vmul.f32 %v7116_v35, %v7160_v52  ;;  %v996_v31 = vmul.f32 %v7118_v36, %v7156_v51  ;;  %v995_v32 = vmul.f32 %v7118_v36, %v7160_v52 }
  0xea   : > { %v7120_v37 = vpop.permute.xlu1 %977  ;;  %v7122_v38 = vpop.permute.xlu0 %1016 }
  0xeb   : > { %v981_v63 = vmul.f32 %v7120_v37, %v7091_v26  ;;  %v980_v0 = vmul.f32 %v7120_v37, %v7096_v27  ;;  %v1020_v3 = vmul.f32 %v7122_v38, %v7091_v26  ;;  %v1019_v4 = vmul.f32 %v7122_v38, %v7096_v27 }
  0xec   : > { %v983_v28 = vmul.f32 %v7120_v37, %v7156_v51  ;;  %v982_v29 = vmul.f32 %v7120_v37, %v7160_v52 }
  0xee   : > { %v7124_v39 = vpop.permute.xlu1 %1003  ;;  %v7126_v40 = vpop.permute.xlu0 %1049 }
  0xef   : > { %v1007_v41 = vmul.f32 %v7124_v39, %v7091_v26  ;;  %v1006_v42 = vmul.f32 %v7124_v39, %v7096_v27  ;;  %v1053_v43 = vmul.f32 %v7126_v40, %v7091_v26  ;;  %v1052_v44 = vmul.f32 %v7126_v40, %v7096_v27 }
  0xf0   : > { %v1009_v57 = vmul.f32 %v7124_v39, %v7156_v51  ;;  %v1008_v58 = vmul.f32 %v7124_v39, %v7160_v52 }
  0xf1   : > { %1211 = vrot.lane.b32.xlu0 %v1007_v41, %s12999_s23  ;;  %1209 = vrot.lane.b32.xlu1 %v1006_v42, %s12999_s23  ;;  %s13017_s23 = smov 108   ;;  %v1022_v41 = vmul.f32 %v7122_v38, %v7156_v51  ;;  %v1021_v42 = vmul.f32 %v7122_v38, %v7160_v52 }
  0xf2   : > { %v7138_v45 = vpop.permute.xlu1 %1036  ;;  %v7216_v7 = vpop.permute.xlu0 %1082 }
  0xf3   : > { %v1040_v5 = vmul.f32 %v7138_v45, %v7091_v26  ;;  %v1039_v6 = vmul.f32 %v7138_v45, %v7096_v27  ;;  %v1086_v10 = vmul.f32 %v7216_v7, %v7091_v26  ;;  %v1085_v11 = vmul.f32 %v7216_v7, %v7096_v27 }
  0xf5   : > { %1241 = vrot.lane.b32.xlu0 %v1053_v43, %s13031_s29  ;;  %1239 = vrot.lane.b32.xlu1 %v1052_v44, %s13031_s29  ;;  %v1042_v43 = vmul.f32 %v7138_v45, %v7156_v51  ;;  %v1041_v44 = vmul.f32 %v7138_v45, %v7160_v52  ;;  %s13035_s29 = smov 6  }
  0xf6   : > { %v7142_v46 = vpop.permute.xlu1 %1069  ;;  %v7230_v13 = vpop.permute.xlu0 %1108 }
  0xf7   : > { %v1073_v8 = vmul.f32 %v7142_v46, %v7091_v26  ;;  %v1072_v9 = vmul.f32 %v7142_v46, %v7096_v27  ;;  %v1112_v17 = vmul.f32 %v7230_v13, %v7091_v26  ;;  %v1111_v18 = vmul.f32 %v7230_v13, %v7096_v27 }
  0xfa   : > { %v7144_v47 = vpop.permute.xlu1 %1095 }
  0xfb   : > { %v1099_v15 = vmul.f32 %v7144_v47, %v7091_v26  ;;  %v1098_v16 = vmul.f32 %v7144_v47, %v7096_v27 }
  0xfe   : > { %v7146_v48 = vpop.permute.xlu1 %1121 }
  0xff   : > { %v1125_v49 = vmul.f32 %v7146_v48, %v7091_v26  ;;  %v1124_v50 = vmul.f32 %v7146_v48, %v7096_v27 }
 0x101   : > { %1291 = vrot.lane.b32.xlu0 %v1125_v49, %s12997_s11  ;;  %1289 = vrot.lane.b32.xlu1 %v1124_v50, %s12997_s11  ;;  %s13021_s11 = smov 114   ;;  %v1055_v49 = vmul.f32 %v7126_v40, %v7156_v51  ;;  %v1054_v50 = vmul.f32 %v7126_v40, %v7160_v52 }
 0x105   : > { %1309 = vrot.lane.b32.xlu0 %v924_v53, %s12993_s21  ;;  %1307 = vrot.lane.b32.xlu1 %v923_v54, %s12993_s21  ;;  %s13039_s21 = smov 34   ;;  %v7292_v53 = vpop.permute.xlu0 %1134  ;;  %v1075_v54 = vmul.f32 %v7142_v46, %v7156_v51 }
 0x109   : > { %1332 = vrot.lane.b32.xlu0 %v970_v55, %s12991_s14  ;;  %1330 = vrot.lane.b32.xlu1 %v969_v56, %s12991_s14  ;;  %s13041_s14 = smov 94   ;;  %v1074_v55 = vmul.f32 %v7142_v46, %v7160_v52  ;;  %v1088_v56 = vmul.f32 %v7216_v7, %v7156_v51 }
 0x10d   : > { %1356 = vrot.lane.b32.xlu0 %v1009_v57, %s12995_s20  ;;  %1354 = vrot.lane.b32.xlu1 %v1008_v58, %s12995_s20  ;;  %s13025_s20 = smov 28   ;;  %v1087_v57 = vmul.f32 %v7216_v7, %v7160_v52 }
 0x111   : > { %1161 = vrot.lane.b32.xlu0 %v942_v59, %s13037_s12  ;;  %1159 = vrot.lane.b32.xlu1 %v941_v60, %s13037_s12  ;;  %v1101_v60 = vmul.f32 %v7144_v47, %v7156_v51 }
 0x115   : > { %1171 = vrot.lane.b32.xlu0 %v955_v61, %s13027_s16  ;;  %1169 = vrot.lane.b32.xlu1 %v954_v62, %s13027_s16  ;;  %v1100_v61 = vmul.f32 %v7144_v47, %v7160_v52  ;;  %s13483_s16 = smov 114  }
 0x119   : > { %1191 = vrot.lane.b32.xlu0 %v981_v63, %s13001_s18  ;;  %1189 = vrot.lane.b32.xlu1 %v980_v0, %s13001_s18  ;;  %s13005_s18 = smov 66   ;;  %v1114_v0 = vmul.f32 %v7230_v13, %v7156_v51 }
 0x11d   : > { %1201 = vrot.lane.b32.xlu0 %v994_v1, %s13015_s24  ;;  %1199 = vrot.lane.b32.xlu1 %v993_v2, %s13015_s24  ;;  %v1113_v1 = vmul.f32 %v7230_v13, %v7160_v52 }
 0x121   : > { %1221 = vrot.lane.b32.xlu0 %v1020_v3, %s13041_s14  ;;  %1219 = vrot.lane.b32.xlu1 %v1019_v4, %s13041_s14  ;;  %v1140_v4 = vmul.f32 %v7292_v53, %v7156_v51 }
 0x125   : > { %1231 = vrot.lane.b32.xlu0 %v1040_v5, %s13039_s21  ;;  %1229 = vrot.lane.b32.xlu1 %v1039_v6, %s13039_s21  ;;  %v1139_v5 = vmul.f32 %v7292_v53, %v7160_v52 }
 0x129   : > { %1251 = vrot.lane.b32.xlu0 %v1073_v8, %s13025_s20  ;;  %1249 = vrot.lane.b32.xlu1 %v1072_v9, %s13025_s20  ;;  %s13473_s20 = smov 31  }
 0x12d   : > { %1261 = vrot.lane.b32.xlu0 %v1086_v10, %s13021_s11  ;;  %1259 = vrot.lane.b32.xlu1 %v1085_v11, %s13021_s11  ;;  %s13480_s11 = smov 111  }
 0x131   : > { %1271 = vrot.lane.b32.xlu0 %v1099_v15, %s13017_s23  ;;  %1269 = vrot.lane.b32.xlu1 %v1098_v16, %s13017_s23  ;;  %s7321_s23 = scalar_select %p844_p0, %s6985_s30, 2 }
 0x135   : > { %1281 = vrot.lane.b32.xlu0 %v1112_v17, %s13005_s18  ;;  %1279 = vrot.lane.b32.xlu1 %v1111_v18, %s13005_s18 }
 0x139   : > { %1301 = vrot.lane.b32.xlu0 %v905_v19, %s13003_s13  ;;  %1299 = vrot.lane.b32.xlu1 %v904_v20, %s13003_s13  ;;  %s13007_s13 = smov 50  }
 0x13d   : > { %1317 = vrot.lane.b32.xlu0 %v944_v21, %s13005_s18  ;;  %1315 = vrot.lane.b32.xlu1 %v943_v22, %s13005_s18  ;;  %s13458_s18 = smov 36  }
 0x141   : > { %1324 = vrot.lane.b32.xlu0 %v957_v23, %s13009_s17  ;;  %1322 = vrot.lane.b32.xlu1 %v956_v24, %s13009_s17  ;;  %s13013_s17 = smov 99  }
 0x145   : > { %1340 = vrot.lane.b32.xlu0 %v983_v28, %s13007_s13  ;;  %1338 = vrot.lane.b32.xlu1 %v982_v29, %s13007_s13  ;;  %s13011_s13 = smov 102  }
 0x149   : > { %1348 = vrot.lane.b32.xlu0 %v996_v31, %s13458_s18  ;;  %1346 = vrot.lane.b32.xlu1 %v995_v32, %s13458_s18 }
 0x14d   : > { %1364 = vrot.lane.b32.xlu0 %v1022_v41, %s13039_s21  ;;  %1362 = vrot.lane.b32.xlu1 %v1021_v42, %s13039_s21 }
 0x14e   : > { %v7305_v58 = vpop.permute.xlu0 %1151  ;;  %v7307_v59 = vpop.permute.xlu1 %1149 }
 0x14f   : > { %13459 = vst [vmem:[#allocation13_spill] sm:$0xff] %v7305_v58  ;;  %13460 = vst [vmem:[#allocation14_spill] sm:$0xff] %v7307_v59 }
 0x151   : > { %1371 = vrot.lane.b32.xlu0 %v1042_v43, %s13011_s13  ;;  %1369 = vrot.lane.b32.xlu1 %v1041_v44, %s13011_s13  ;;  %s847_s13 = sadd.s32 1, %s6985_s30 }
 0x152   : > { %p848_p13 = scmp.lt.s32.totalorder %s847_s13, 2  ;;  %v7323_v62 = vpop.permute.xlu0 %1181  ;;  %v7325_v63 = vpop.permute.xlu1 %1179 }
 0x153   : > { %13461 = vst [vmem:[#allocation15_spill] sm:$0xff] %v7323_v62  ;;  %13462 = vst [vmem:[#allocation16_spill] sm:$0xff] %v7325_v63 }
 0x154   : > { %s14629_s13 = smov (!%p848_p13, %s847_s13), 2 }
 0x155   : > { %1379 = vrot.lane.b32.xlu0 %v1055_v49, %s13013_s17  ;;  %1377 = vrot.lane.b32.xlu1 %v1054_v50, %s13013_s17  ;;  %s13019_s17 = smov 54   ;;  %s850_s22 = scalar_lea.vmem %s13463_s5, %s14629_s13 }
 0x156   : > { %v7341_v2 = vld [vmem:[%s850_s22] sm:$0x1]  ;;  %s13477_s22 = smov 28   ;;  %s741_s5 = scalar_lea.vmem [#allocation4], %s7084_s15 }
 0x157   : > { %13465 = vst [vmem:[#allocation17_spill] sm:$0xff] %v7341_v2  ;;  %v1933_v9 = vrot.slane %v7341_v2, 7  ;;  %v1942_v18 = vrot.slane %v7341_v2, 6  ;;  %v1951_v24 = vrot.slane %v7341_v2, 5  ;;  %v1960_v42 = vrot.slane %v7341_v2, 4 }
 0x159   : > { %1387 = vrot.lane.b32.xlu0 %v1075_v54, %s13015_s24  ;;  %1385 = vrot.lane.b32.xlu1 %v1074_v55, %s13015_s24  ;;  %s13029_s24 = smov 48   ;;  %v1969_v55 = vrot.slane %v7341_v2, 3 }
 0x15d   : > { %1394 = vrot.lane.b32.xlu0 %v1088_v56, %s13019_s17  ;;  %1392 = vrot.lane.b32.xlu1 %v1087_v57, %s13019_s17  ;;  %s13033_s17 = smov 125  }
 0x161   : > { %1402 = vrot.lane.b32.xlu0 %v1101_v60, %s13029_s24  ;;  %1400 = vrot.lane.b32.xlu1 %v1100_v61, %s13029_s24  ;;  %s846_s24 = scalar_lea.vmem %s13464_s4, %s7321_s23  ;;  %s748_s4 = scalar_lea.vmem [#allocation5], %s7080_s19 }
 0x162   : > { %v7343_v3 = vld [vmem:[%s846_s24] sm:$0x1]  ;;  %s13474_s24 = smov 112   ;;  %s13677_s19 = smov 52  }
 0x163   : > { %13466 = vst [vmem:[#allocation18_spill] sm:$0xff] %v7343_v3  ;;  %v7349_v6 = vpop.permute.xlu0 %1211  ;;  %v7351_v8 = vpop.permute.xlu1 %1209  ;;  %v1932_v10 = vrot.slane %v7343_v3, 7  ;;  %v1941_v19 = vrot.slane %v7343_v3, 6  ;;  %v1950_v28 = vrot.slane %v7343_v3, 5  ;;  %v1959_v43 = vrot.slane %v7343_v3, 4 }
 0x164   : > { %13467 = vst [vmem:[#allocation19_spill] sm:$0xff] %v7349_v6  ;;  %13468 = vst [vmem:[#allocation20_spill] sm:$0xff] %v7351_v8  ;;  %v1968_v56 = vrot.slane %v7343_v3, 3 }
 0x165   : > { %1410 = vrot.lane.b32.xlu0 %v1114_v0, %s13035_s29  ;;  %1408 = vrot.lane.b32.xlu1 %v1113_v1, %s13035_s29  ;;  %s6407_s29 = sshll.u32 %s7321_s23, 1  ;;  %s13507_s23 = smov 63  }
 0x166   : > { %s855_s2 = scalar_lea.vmem %s12977_s6, %s6407_s29  ;;  %s6885_s29 = smov 60  }
 0x167   : > { %v7359_v11 = vpop.permute.xlu0 %1241  ;;  %v7361_v15 = vpop.permute.xlu1 %1239 }
 0x168   : > { %13469 = vst [vmem:[#allocation21_spill] sm:$0xff] %v7359_v11  ;;  %13470 = vst [vmem:[#allocation22_spill] sm:$0xff] %v7361_v15 }
 0x169   : > { %1418 = vrot.lane.b32.xlu0 %v1140_v4, %s13033_s17  ;;  %1416 = vrot.lane.b32.xlu1 %v1139_v5, %s13033_s17  ;;  %s6408_s17 = sshll.u32 %s14629_s13, 1  ;;  %v7439_v4 = vld [vmem:[%s855_s2] sm:$0x3]  ;;  %s13498_s2 = smov 34  }
 0x16a   : > { %s13505_s13 = smov 126   ;;  %v1145_v63 = vmul.f32 %v7292_v53, %v7439_v4 }
 0x16d   : > { %1936 = vrot.lane.b32.xlu0 %v1933_v9, %s13043_s25  ;;  %1934 = vrot.lane.b32.xlu1 %v1932_v10, %s13043_s25  ;;  %s860_s25 = scalar_lea.vmem %s12978_s7, %s6408_s17  ;;  %s755_s17 = scalar_lea.vmem [#allocation6], %s7084_s15 }
 0x16e   : > { %v7437_v1 = vld [vmem:[%s860_s25] sm:$0x3]  ;;  %s13506_s25 = smov 95   ;;  %s13681_s15 = smov 102  }
 0x171   : > { %1997 = vrot.lane.b32.xlu0 %v7341_v2, %s13041_s14  ;;  %1995 = vrot.lane.b32.xlu1 %v7343_v3, %s13041_s14  ;;  %s13501_s14 = smov 96  }
 0x173   : > { %v7367_v16 = vpop.permute.xlu0 %1291  ;;  %v7369_v17 = vpop.permute.xlu1 %1289 }
 0x174   : > { %13471 = vst [vmem:[#allocation23_spill] sm:$0xff] %v7367_v16  ;;  %13472 = vst [vmem:[#allocation24_spill] sm:$0xff] %v7369_v17  ;;  %v1106_v17 = vmul.f32 %v7144_v47, %v7439_v4 }
 0x175   : > { %2004 = vrot.lane.b32.xlu0 %v1933_v9, %s13039_s21  ;;  %2002 = vrot.lane.b32.xlu1 %v1932_v10, %s13039_s21  ;;  %v930_v10 = vmul.f32 %v7086_v25, %v7437_v1  ;;  %s13504_s21 = smov 66  }
 0x177   : > { %v7375_v20 = vpop.permute.xlu0 %1309  ;;  %v7377_v21 = vpop.permute.xlu1 %1307 }
 0x179   : > { %1945 = vrot.lane.b32.xlu0 %v1942_v18, %s13037_s12  ;;  %1943 = vrot.lane.b32.xlu1 %v1941_v19, %s13037_s12  ;;  %s13486_s12 = smov 110  }
 0x17b   : > { %v7381_v22 = vpop.permute.xlu0 %1332  ;;  %v7383_v23 = vpop.permute.xlu1 %1330 }
 0x17d   : > { %2011 = vrot.lane.b32.xlu0 %v1942_v18, %s13473_s20  ;;  %2009 = vrot.lane.b32.xlu1 %v1941_v19, %s13473_s20  ;;  %v929_v18 = vmul.f32 %v7086_v25, %v7439_v4 }
 0x17f   : > { %v7389_v29 = vpop.permute.xlu0 %1356  ;;  %v7391_v31 = vpop.permute.xlu1 %1354 }
 0x181   : > { %1954 = vrot.lane.b32.xlu0 %v1951_v24, %s13474_s24  ;;  %1952 = vrot.lane.b32.xlu1 %v1950_v28, %s13474_s24 }
 0x183   : > { %v7395_v32 = vpop.permute.xlu0 %1161  ;;  %v7397_v41 = vpop.permute.xlu1 %1159 }
 0x184   : > { %13475 = vst [vmem:[#allocation25_spill] sm:$0xff] %v7395_v32  ;;  %13476 = vst [vmem:[#allocation26_spill] sm:$0xff] %v7397_v41 }
 0x185   : > { %2018 = vrot.lane.b32.xlu0 %v1951_v24, %s13477_s22  ;;  %2016 = vrot.lane.b32.xlu1 %v1950_v28, %s13477_s22  ;;  %v1028_v28 = vmul.f32 %v7122_v38, %v7437_v1 }
 0x187   : > { %v7403_v44 = vpop.permute.xlu0 %1171  ;;  %v7405_v49 = vpop.permute.xlu1 %1169 }
 0x188   : > { %13478 = vst [vmem:[#allocation27_spill] sm:$0xff] %v7403_v44  ;;  %13479 = vst [vmem:[#allocation28_spill] sm:$0xff] %v7405_v49 }
 0x189   : > { %1963 = vrot.lane.b32.xlu0 %v1960_v42, %s13480_s11  ;;  %1961 = vrot.lane.b32.xlu1 %v1959_v43, %s13480_s11 }
 0x18b   : > { %v7409_v50 = vpop.permute.xlu0 %1191  ;;  %v7411_v54 = vpop.permute.xlu1 %1189 }
 0x18c   : > { %13481 = vst [vmem:[#allocation29_spill] sm:$0xff] %v7409_v50  ;;  %13482 = vst [vmem:[#allocation30_spill] sm:$0xff] %v7411_v54 }
 0x18d   : > { %2025 = vrot.lane.b32.xlu0 %v1960_v42, %s13483_s16  ;;  %2023 = vrot.lane.b32.xlu1 %v1959_v43, %s13483_s16  ;;  %v1027_v42 = vmul.f32 %v7122_v38, %v7439_v4 }
 0x18f   : > { %v7417_v57 = vpop.permute.xlu0 %1201  ;;  %v7419_v60 = vpop.permute.xlu1 %1199 }
 0x190   : > { %13484 = vst [vmem:[#allocation31_spill] sm:$0xff] %v7417_v57  ;;  %13485 = vst [vmem:[#allocation32_spill] sm:$0xff] %v7419_v60 }
 0x191   : > { %1972 = vrot.lane.b32.xlu0 %v1969_v55, %s13486_s12  ;;  %1970 = vrot.lane.b32.xlu1 %v1968_v56, %s13486_s12 }
 0x193   : > { %v7431_v61 = vpop.permute.xlu0 %1221  ;;  %v7433_v0 = vpop.permute.xlu1 %1219 }
 0x194   : > { %13487 = vst [vmem:[#allocation33_spill] sm:$0xff] %v7431_v61  ;;  %13488 = vst [vmem:[#allocation34_spill] sm:$0xff] %v7433_v0  ;;  %v962_v0 = vmul.f32 %v7116_v35, %v7439_v4 }
 0x195   : > { %2032 = vrot.lane.b32.xlu0 %v1969_v55, %s13489_s3  ;;  %2030 = vrot.lane.b32.xlu1 %v1968_v56, %s13489_s3  ;;  %v1048_v56 = vmul.f32 %v7138_v45, %v7437_v1 }
 0x197   : > { %v7441_v5 = vpop.permute.xlu0 %1231  ;;  %v7443_v9 = vpop.permute.xlu1 %1229 }
 0x198   : > { %13490 = vst [vmem:[#allocation35_spill] sm:$0xff] %v7441_v5  ;;  %13491 = vst [vmem:[#allocation36_spill] sm:$0xff] %v7443_v9  ;;  %v963_v5 = vmul.f32 %v7116_v35, %v7437_v1 }
 0x199   : > { %2095 = vrot.lane.b32.xlu0 %v930_v10, %s13492_s0  ;;  %2093 = vrot.lane.b32.xlu1 %v929_v18, %s13492_s0  ;;  %v1047_v10 = vmul.f32 %v7138_v45, %v7439_v4  ;;  %v1978_v18 = vrot.slane %v7341_v2, 2 }
 0x19b   : > { %v7451_v19 = vpop.permute.xlu0 %1251  ;;  %v7453_v24 = vpop.permute.xlu1 %1249 }
 0x19c   : > { %13493 = vst [vmem:[#allocation37_spill] sm:$0xff] %v7451_v19  ;;  %13494 = vst [vmem:[#allocation38_spill] sm:$0xff] %v7453_v24  ;;  %v950_v19 = vmul.f32 %v7112_v33, %v7437_v1 }
 0x19d   : > { %2144 = vrot.lane.b32.xlu0 %v1028_v28, %s13495_s1  ;;  %2142 = vrot.lane.b32.xlu1 %v1027_v42, %s13495_s1  ;;  %v1977_v28 = vrot.slane %v7343_v3, 2 }
 0x19f   : > { %v7461_v43 = vpop.permute.xlu0 %1261  ;;  %v7463_v55 = vpop.permute.xlu1 %1259 }
 0x1a0   : > { %13496 = vst [vmem:[#allocation39_spill] sm:$0xff] %v7461_v43  ;;  %13497 = vst [vmem:[#allocation40_spill] sm:$0xff] %v7463_v55 }
 0x1a1   : > { %2151 = vrot.lane.b32.xlu0 %v1048_v56, %s13498_s2  ;;  %2149 = vrot.lane.b32.xlu1 %v1047_v10, %s13498_s2 }
 0x1a3   : > { %v7473_v14 = vpop.permute.xlu0 %1271  ;;  %v7475_v42 = vpop.permute.xlu1 %1269 }
 0x1a4   : > { %13499 = vst [vmem:[#allocation41_spill] sm:$0xff] %v7473_v14  ;;  %13500 = vst [vmem:[#allocation42_spill] sm:$0xff] %v7475_v42  ;;  %v949_v42 = vmul.f32 %v7112_v33, %v7439_v4  ;;  %v1987_v14 = vrot.slane %v7341_v2, 1 }
 0x1a5   : > { %1981 = vrot.lane.b32.xlu0 %v1978_v18, %s13501_s14  ;;  %1979 = vrot.lane.b32.xlu1 %v1977_v28, %s13501_s14 }
 0x1a7   : > { %v7479_v12 = vpop.permute.xlu0 %1281  ;;  %v7481_v24 = vpop.permute.xlu1 %1279 }
 0x1a8   : > { %13502 = vst [vmem:[#allocation43_spill] sm:$0xff] %v7479_v12  ;;  %13503 = vst [vmem:[#allocation44_spill] sm:$0xff] %v7481_v24 }
 0x1a9   : > { %2039 = vrot.lane.b32.xlu0 %v1978_v18, %s13504_s21  ;;  %2037 = vrot.lane.b32.xlu1 %v1977_v28, %s13504_s21  ;;  %v1061_v18 = vmul.f32 %v7126_v40, %v7437_v1  ;;  %v1060_v28 = vmul.f32 %v7126_v40, %v7439_v4 }
 0x1ab   : > { %v7485_v56 = vpop.permute.xlu0 %1301  ;;  %v7487_v10 = vpop.permute.xlu1 %1299 }
 0x1ad   : > { %2102 = vrot.lane.b32.xlu0 %v950_v19, %s13505_s13  ;;  %2100 = vrot.lane.b32.xlu1 %v949_v42, %s13505_s13  ;;  %v1986_v19 = vrot.slane %v7343_v3, 1 }
 0x1af   : > { %v7495_v12 = vpop.permute.xlu0 %1317  ;;  %v7497_v24 = vpop.permute.xlu1 %1315 }
 0x1b1   : > { %2158 = vrot.lane.b32.xlu0 %v1061_v18, %s13473_s20  ;;  %2156 = vrot.lane.b32.xlu1 %v1060_v28, %s13473_s20 }
 0x1b3   : > { %v7507_v55 = vpop.permute.xlu0 %1324  ;;  %v7509_v42 = vpop.permute.xlu1 %1322 }
 0x1b5   : > { %1990 = vrot.lane.b32.xlu0 %v1987_v14, %s13506_s25  ;;  %1988 = vrot.lane.b32.xlu1 %v1986_v19, %s13506_s25 }
 0x1b7   : > { %v7513_v43 = vpop.permute.xlu0 %1340  ;;  %v7515_v9 = vpop.permute.xlu1 %1338 }
 0x1b9   : > { %2046 = vrot.lane.b32.xlu0 %v1987_v14, %s13507_s23  ;;  %2044 = vrot.lane.b32.xlu1 %v1986_v19, %s13507_s23  ;;  %v1081_v14 = vmul.f32 %v7142_v46, %v7437_v1  ;;  %v1080_v19 = vmul.f32 %v7142_v46, %v7439_v4 }
 0x1bb   : > { %v7519_v18 = vpop.permute.xlu0 %1348  ;;  %v7521_v28 = vpop.permute.xlu1 %1346 }
 0x1bd   : > { %2109 = vrot.lane.b32.xlu0 %v963_v5, %s13474_s24  ;;  %2107 = vrot.lane.b32.xlu1 %v962_v0, %s13474_s24  ;;  %v976_v0 = vmul.f32 %v7104_v30, %v7437_v1  ;;  %v975_v5 = vmul.f32 %v7104_v30, %v7439_v4 }
 0x1bf   : > { %v7529_v61 = vpop.permute.xlu0 %1364  ;;  %v7531_v60 = vpop.permute.xlu1 %1362 }
 0x1c1   : > { %2165 = vrot.lane.b32.xlu0 %v1081_v14, %s13477_s22  ;;  %2163 = vrot.lane.b32.xlu1 %v1080_v19, %s13477_s22  ;;  %v1094_v14 = vmul.f32 %v7216_v7, %v7437_v1  ;;  %v1093_v19 = vmul.f32 %v7216_v7, %v7439_v4 }
 0x1c3   : > { %v7539_v57 = vpop.permute.xlu0 %1371  ;;  %v7541_v54 = vpop.permute.xlu1 %1369 }
 0x1c5   : > { %2116 = vrot.lane.b32.xlu0 %v976_v0, %s13480_s11  ;;  %2114 = vrot.lane.b32.xlu1 %v975_v5, %s13480_s11 }
 0x1c7   : > { %v7549_v50 = vpop.permute.xlu0 %1379  ;;  %v7551_v49 = vpop.permute.xlu1 %1377 }
 0x1c9   : > { %2172 = vrot.lane.b32.xlu0 %v1094_v14, %s13483_s16  ;;  %2170 = vrot.lane.b32.xlu1 %v1093_v19, %s13483_s16  ;;  %v989_v14 = vmul.f32 %v7120_v37, %v7437_v1  ;;  %v988_v19 = vmul.f32 %v7120_v37, %v7439_v4 }
 0x1cb   : > { %v7559_v44 = vpop.permute.xlu0 %1387  ;;  %v7561_v41 = vpop.permute.xlu1 %1385 }
 0x1cd   : > { %2088 = vrot.lane.b32.xlu0 %v7341_v2, %s6885_s29  ;;  %2086 = vrot.lane.b32.xlu1 %v7343_v3, %s6885_s29  ;;  %v1107_v3 = vmul.f32 %v7144_v47, %v7437_v1 }
 0x1cf   : > { %v7567_v0 = vpop.permute.xlu0 %1394  ;;  %v7569_v5 = vpop.permute.xlu1 %1392 }
 0x1d1   : > { %2123 = vrot.lane.b32.xlu0 %v989_v14, %s13486_s12  ;;  %2121 = vrot.lane.b32.xlu1 %v988_v19, %s13486_s12  ;;  %v1002_v14 = vmul.f32 %v7118_v36, %v7437_v1  ;;  %v1001_v19 = vmul.f32 %v7118_v36, %v7439_v4 }
 0x1d3   : > { %v7577_v32 = vpop.permute.xlu0 %1402  ;;  %v7579_v2 = vpop.permute.xlu1 %1400 }
 0x1d5   : > { %2179 = vrot.lane.b32.xlu0 %v1107_v3, %s13489_s3  ;;  %2177 = vrot.lane.b32.xlu1 %v1106_v17, %s13489_s3  ;;  %v1120_v3 = vmul.f32 %v7230_v13, %v7437_v1  ;;  %v1119_v17 = vmul.f32 %v7230_v13, %v7439_v4 }
 0x1d7   : > { %v7587_v16 = vpop.permute.xlu0 %1410  ;;  %v7589_v15 = vpop.permute.xlu1 %1408 }
 0x1d8   : > { %13508 = vst [vmem:[#allocation45_spill] sm:$0xff] %v7587_v16  ;;  %13509 = vst [vmem:[#allocation46_spill] sm:$0xff] %v7589_v15 }
 0x1d9   : > { %2130 = vrot.lane.b32.xlu0 %v1002_v14, %s13501_s14  ;;  %2128 = vrot.lane.b32.xlu1 %v1001_v19, %s13501_s14  ;;  %v1015_v19 = vmul.f32 %v7124_v39, %v7437_v1 }
 0x1db   : > { %v7597_v11 = vpop.permute.xlu0 %1418  ;;  %v7599_v8 = vpop.permute.xlu1 %1416 }
 0x1dc   : > { %13510 = vst [vmem:[#allocation47_spill] sm:$0xff] %v7597_v11  ;;  %13511 = vst [vmem:[#allocation48_spill] sm:$0xff] %v7599_v8  ;;  %v1014_v8 = vmul.f32 %v7124_v39, %v7439_v4  ;;  %v13514_v11 = vlaneseq }
 0x1dd   : > { %2186 = vrot.lane.b32.xlu0 %v1120_v3, %s13504_s21  ;;  %2184 = vrot.lane.b32.xlu1 %v1119_v17, %s13504_s21  ;;  %v1133_v17 = vmul.f32 %v7146_v48, %v7437_v1 }
 0x1de   : > { %v2211_v16 = vshrl.u32 %v13514_v11, 7 }
 0x1df   : > { %v7607_v15 = vpop.permute.xlu0 %1936  ;;  %v7609_v14 = vpop.permute.xlu1 %1934 }
 0x1e0   : > { %13512 = vst [vmem:[#allocation49_spill] sm:$0xff] %v7607_v15  ;;  %13513 = vst [vmem:[#allocation50_spill] sm:$0xff] %v7609_v14  ;;  %v1132_v14 = vmul.f32 %v7146_v48, %v7439_v4  ;;  %v7628_v15 = vsub.s32 1, %v2211_v16 }
 0x1e1   : > { %2137 = vrot.lane.b32.xlu0 %v1015_v19, %s13506_s25  ;;  %2135 = vrot.lane.b32.xlu1 %v1014_v8, %s13506_s25  ;;  %v2204_v8 = vld [vmem:[%s755_s17 + $0x2] sm:$0x3]  ;;  %v2203_v19 = vld [vmem:[%s755_s17] sm:$0x3]  ;;  %s13521_s17 = smov 35  }
 0x1e2   : > { %13517 = vst [vmem:[#allocation53_spill] sm:$0xff] %v7628_v15  ;;  %v2289_v62 = vrot.slane %v2203_v19, %v7628_v15 }
 0x1e3   : > { %v7618_v3 = vpop.permute.xlu0 %1997  ;;  %v7620_v6 = vpop.permute.xlu1 %1995 }
 0x1e4   : > { %13515 = vst [vmem:[#allocation51_spill] sm:$0xff] %v7618_v3  ;;  %13516 = vst [vmem:[#allocation52_spill] sm:$0xff] %v7620_v6  ;;  %v1146_v6 = vmul.f32 %v7292_v53, %v7437_v1 }
 0x1e5   : > { %2193 = vrot.lane.b32.xlu0 %v1133_v17, %s13507_s23  ;;  %2191 = vrot.lane.b32.xlu1 %v1132_v14, %s13507_s23  ;;  %v7641_v14 = vsub.s32 0, %v2211_v16  ;;  %v4413_v17 = vrot.slane %v2204_v8, %v7628_v15 }
 0x1e7   : > { %v7631_v11 = vpop.permute.xlu0 %2004  ;;  %v7633_v3 = vpop.permute.xlu1 %2002  ;;  %13520 = vst [vmem:[#allocation56_spill] sm:$0xff] %v7641_v14 }
 0x1e8   : > { %13518 = vst [vmem:[#allocation54_spill] sm:$0xff] %v7631_v11  ;;  %13519 = vst [vmem:[#allocation55_spill] sm:$0xff] %v7633_v3  ;;  %v4337_v3 = vrot.slane %v2204_v8, %v7641_v14 }
 0x1e9   : > { %2200 = vrot.lane.b32.xlu0 %v1146_v6, %s6885_s29  ;;  %2198 = vrot.lane.b32.xlu1 %v1145_v63, %s6885_s29  ;;  %v2213_v6 = vrot.slane %v2203_v19, %v7641_v14  ;;  %v1304_v19 = vsel %vm13084_vm4, %v7487_v10, %v7485_v56  ;;  %vm13115_vm4 = vcmask 932864  }
 0x1eb   : > { %v7645_v59 = vpop.permute.xlu0 %1945  ;;  %v7647_v11 = vpop.permute.xlu1 %1943 }
 0x1ed   : > { %4415 = vrot.lane.b32.xlu0 %v4413_v17, %s13521_s17  ;;  %2291 = vrot.lane.b32.xlu1 %v2289_v62, %s13521_s17  ;;  %v1138_v17 = vmul.f32 %v7292_v53, %v7091_v26  ;;  %v1137_v62 = vmul.f32 %v7292_v53, %v7096_v27 }
 0x1ef   : > { %v7653_v58 = vpop.permute.xlu0 %2011  ;;  %v7655_v63 = vpop.permute.xlu1 %2009 }
 0x1f1   : > { %4339 = vrot.lane.b32.xlu0 %v4337_v3, %s13521_s17  ;;  %2215 = vrot.lane.b32.xlu1 %v2213_v6, %s13521_s17 }
 0x1f3   : > { %v7659_v16 = vpop.permute.xlu0 %1954  ;;  %v7661_v15 = vpop.permute.xlu1 %1952 }
 0x1f5   : > { %1426 = vrot.lane.b32.xlu0 %v1138_v17, %s6885_s29  ;;  %1424 = vrot.lane.b32.xlu1 %v1137_v62, %s6885_s29  ;;  %v1312_v62 = vsel %vm13083_vm5, %v7377_v21, %v7375_v20  ;;  %vm1223_vm5 = vcmask 769024  }
 0x1f7   : > { %v7669_v8 = vpop.permute.xlu0 %2018  ;;  %v7671_v3 = vpop.permute.xlu1 %2016 }
 0x1f9   : > { %1430 = vrot.lane.b32.xlu0 %v1304_v19, %s6885_s29  ;;  %1428 = vrot.lane.b32.xlu1 %v7487_v10, %s6885_s29  ;;  %v1319_v10 = vsel %vm13086_vm6, %v7497_v24, %v7495_v12  ;;  %vm13090_vm6 = vcmask 392192  }
 0x1fb   : > { %v7679_v6 = vpop.permute.xlu0 %1963  ;;  %v7681_v17 = vpop.permute.xlu1 %1961 }
 0x1fd   : > { %1434 = vrot.lane.b32.xlu0 %v1312_v62, %s6885_s29  ;;  %1432 = vrot.lane.b32.xlu1 %v7377_v21, %s6885_s29  ;;  %v1327_v21 = vsel %vm13082_vm7, %v7509_v42, %v7507_v55  ;;  %vm1173_vm7 = vcmask 916480  }
 0x1ff   : > { %v7689_v56 = vpop.permute.xlu0 %2025  ;;  %v7691_v19 = vpop.permute.xlu1 %2023 }
 0x201   : > { %1438 = vrot.lane.b32.xlu0 %v1319_v10, %s6885_s29  ;;  %1436 = vrot.lane.b32.xlu1 %v7497_v24, %s6885_s29  ;;  %v910_v10 = vmul.f32 %v7114_v34, %v7439_v4 }
 0x203   : > { %v7699_v20 = vpop.permute.xlu0 %1972  ;;  %v1971_v62 = vpop.permute.xlu1 %1970 }
 0x204   : > { %v7706_v14 = vsel %vm13103_vm8, %v1971_v62, %v7699_v20  ;;  %v1335_v62 = vsel %vm13080_vm9, %v7383_v23, %v7381_v22  ;;  %vm13104_vm9 = vcmask 515072  }
 0x205   : > { %1442 = vrot.lane.b32.xlu0 %v1327_v21, %s6885_s29  ;;  %1440 = vrot.lane.b32.xlu1 %v7509_v42, %s6885_s29  ;;  %v4148_v21 = vrot.slane %v910_v10, 1 }
 0x207   : > { %v7711_v12 = vpop.permute.xlu0 %2032  ;;  %v2031_v24 = vpop.permute.xlu1 %2030 }
 0x208   : > { %13522 = vst [vmem:[#allocation57_spill] sm:$0xff] %v7711_v12  ;;  %v7717_v55 = vsel %vm13114_vm10, %v2031_v24, %v7711_v12 }
 0x209   : > { %13523 = vst [vmem:[#allocation58_spill] sm:$0xff] %v7717_v55  ;;  %1446 = vrot.lane.b32.xlu0 %v1335_v62, %s6885_s29  ;;  %1444 = vrot.lane.b32.xlu1 %v7383_v23, %s6885_s29  ;;  %v1343_v55 = vsel %vm13077_vm11, %v7515_v9, %v7513_v43  ;;  %v1351_v43 = vsel %vm13076_vm14, %v7521_v28, %v7519_v18  ;;  %vm13381_vm14 = vcmask 785408   ;;  %vm13106_vm11 = vcmask 777216  }
 0x20b   : > { %v7725_v42 = vpop.permute.xlu0 %2095  ;;  %v2094_v4 = vpop.permute.xlu1 %2093 }
 0x20c   : > { %v2097_v24 = vsel %vm13110_vm13, %v2094_v4, %v7725_v42 }
 0x20d   : > { %v4062_v22 = vrot.slane %v2097_v24, 7  ;;  %v7733_v62 = vsel %vm13085_vm12, %v2097_v24, %v4148_v21  ;;  %1450 = vrot.lane.b32.xlu0 %v1343_v55, %s6885_s29  ;;  %1448 = vrot.lane.b32.xlu1 %v7515_v9, %s6885_s29  ;;  %v1359_v55 = vsel %vm13079_vm15, %v7391_v31, %v7389_v29  ;;  %v7772_v29 = vld [vmem:[%s748_s4 + $0x2] sm:$0x3]  ;;  %vm13087_vm15 = vcmask 441344  }
 0x20e   : > { %13524 = vst [vmem:[#allocation59_spill] sm:$0xff] %v7733_v62  ;;  %v7800_v62 = vld [vmem:[%s748_s4] sm:$0x3]  ;;  %s13655_s4 = smov 68  }
 0x20f   : > { %v7739_v23 = vsel %vm13085_vm12, %v4062_v22, %v910_v10  ;;  %v7741_v12 = vpop.permute.xlu0 %2144  ;;  %v7743_v4 = vpop.permute.xlu1 %2142  ;;  %v7779_v22 = vld [vmem:[%s741_s5 + $0x2] sm:$0x3]  ;;  %vm2057_vm12 = vcmask 1042432  }
 0x210   : > { %13525 = vst [vmem:[#allocation60_spill] sm:$0xff] %v7739_v23  ;;  %v7802_v23 = vld [vmem:[%s741_s5] sm:$0x3]  ;;  %s13663_s5 = smov 67  }
 0x211   : > { %1454 = vrot.lane.b32.xlu0 %v1351_v43, %s6885_s29  ;;  %1452 = vrot.lane.b32.xlu1 %v7521_v28, %s6885_s29  ;;  %v1366_v28 = vsel %vm1233_vm0, %v7531_v60, %v7529_v61  ;;  %v7783_v43 = vmul.f32 %v7086_v25, %v7772_v29  ;;  %v1374_v61 = vsel %vm13081_vm1, %v7541_v54, %v7539_v57  ;;  %vm1163_vm1 = vcmask 1031168  }
 0x212   : > { %v7813_v57 = vmul.f32 %v7086_v25, %v7800_v62 }
 0x213   : > { %v7751_v9 = vpop.permute.xlu0 %2151  ;;  %v7753_v10 = vpop.permute.xlu1 %2149  ;;  %13526 = vst [vmem:[#allocation61_spill] sm:$0xff] %v7783_v43  ;;  %v7806_v43 = vmul.f32 %v7114_v34, %v7437_v1  ;;  %v7825_v1 = vmul.f32 %v7114_v34, %v7091_v26  ;;  %v7845_v26 = vmul.f32 %v7112_v33, %v7779_v22 }
 0x214   : > { %13530 = vst [vmem:[#allocation65_spill] sm:$0xff] %v7813_v57 }
 0x215   : > { %1458 = vrot.lane.b32.xlu0 %v1359_v55, %s6885_s29  ;;  %1456 = vrot.lane.b32.xlu1 %v7391_v31, %s6885_s29  ;;  %v7794_v55 = vmul.f32 %v7104_v30, %v7772_v29  ;;  %13533 = vst [vmem:[#allocation68_spill] sm:$0xff] %v7825_v1  ;;  %13535 = vst [vmem:[#allocation70_spill] sm:$0xff] %v7845_v26  ;;  %v1382_v1 = vsel %vm13078_vm2, %v7551_v49, %v7549_v50  ;;  %vm1243_vm2 = vcmask 252928  }
 0x216   : > { %v7868_v26 = vmul.f32 %v7124_v39, %v7772_v29  ;;  %v7876_v50 = vmul.f32 %v7138_v45, %v7772_v29 }
 0x217   : > { %v7761_v18 = vpop.permute.xlu0 %1981  ;;  %v7763_v21 = vpop.permute.xlu1 %1979  ;;  %13528 = vst [vmem:[#allocation63_spill] sm:$0xff] %v7794_v55  ;;  %v7821_v55 = vmul.f32 %v7114_v34, %v7096_v27  ;;  %v7841_v27 = vmul.f32 %v7112_v33, %v7772_v29 }
 0x218   : > { %13539 = vst [vmem:[#allocation74_spill] sm:$0xff] %v7868_v26  ;;  %13540 = vst [vmem:[#allocation75_spill] sm:$0xff] %v7876_v50  ;;  %v7900_v26 = vmul.f32 %v7120_v37, %v7779_v22  ;;  %v7923_v50 = vmul.f32 %v7142_v46, %v7779_v22 }
 0x219   : > { %1462 = vrot.lane.b32.xlu0 %v1366_v28, %s6885_s29  ;;  %1460 = vrot.lane.b32.xlu1 %v7531_v60, %s6885_s29  ;;  %v7790_v60 = vmul.f32 %v7086_v25, %v7779_v22  ;;  %v7798_v28 = vmul.f32 %v7104_v30, %v7779_v22  ;;  %13532 = vst [vmem:[#allocation67_spill] sm:$0xff] %v7821_v55  ;;  %13534 = vst [vmem:[#allocation69_spill] sm:$0xff] %v7841_v27 }
 0x21a   : > { %v7853_v55 = vmul.f32 %v7116_v35, %v7772_v29  ;;  %v7864_v27 = vmul.f32 %v7116_v35, %v7779_v22  ;;  %13546 = vst [vmem:[#allocation81_spill] sm:$0xff] %v7900_v26  ;;  %v1389_v26 = vsel %vm13381_vm14, %v7561_v41, %v7559_v44  ;;  %13548 = vst [vmem:[#allocation83_spill] sm:$0xff] %v7923_v50 }
 0x21b   : > { %v7774_v24 = vpop.permute.xlu0 %2039  ;;  %v7776_v31 = vpop.permute.xlu1 %2037  ;;  %13527 = vst [vmem:[#allocation62_spill] sm:$0xff] %v7790_v60  ;;  %13529 = vst [vmem:[#allocation64_spill] sm:$0xff] %v7798_v28  ;;  %v7817_v28 = vmul.f32 %v7086_v25, %v7802_v23  ;;  %v7860_v60 = vmul.f32 %v7122_v38, %v7779_v22  ;;  %v7938_v44 = vmul.f32 %v7144_v47, %v7772_v29 }
 0x21c   : > { %13537 = vst [vmem:[#allocation72_spill] sm:$0xff] %v7853_v55  ;;  %13538 = vst [vmem:[#allocation73_spill] sm:$0xff] %v7864_v27  ;;  %v7880_v55 = vmul.f32 %v7138_v45, %v7779_v22  ;;  %v7884_v27 = vmul.f32 %v7124_v39, %v7779_v22  ;;  %v7942_v50 = vmul.f32 %v7144_v47, %v7779_v22 }
 0x21d   : > { %1466 = vrot.lane.b32.xlu0 %v1374_v61, %s6885_s29  ;;  %1464 = vrot.lane.b32.xlu1 %v7541_v54, %s6885_s29  ;;  %13531 = vst [vmem:[#allocation66_spill] sm:$0xff] %v7817_v28  ;;  %v7829_v54 = vmul.f32 %v7114_v34, %v7772_v29  ;;  %v7833_v61 = vmul.f32 %v7114_v34, %v7779_v22  ;;  %13551 = vst [vmem:[#allocation86_spill] sm:$0xff] %v7938_v44 }
 0x21e   : > { %v7849_v28 = vmul.f32 %v7122_v38, %v7772_v29  ;;  %13541 = vst [vmem:[#allocation76_spill] sm:$0xff] %v7880_v55  ;;  %13542 = vst [vmem:[#allocation77_spill] sm:$0xff] %v7884_v27  ;;  %v7958_v44 = vmul.f32 %v7112_v33, %v7800_v62 }
 0x21f   : > { %v7835_v57 = vpop.permute.xlu0 %2102  ;;  %v7837_v25 = vpop.permute.xlu1 %2100  ;;  %13552 = vst [vmem:[#allocation87_spill] sm:$0xff] %v7942_v50  ;;  %v7962_v50 = vmul.f32 %v7112_v33, %v7802_v23  ;;  %v7982_v33 = vmul.f32 %v7114_v34, %v7800_v62 }
 0x220   : > { %13536 = vst [vmem:[#allocation71_spill] sm:$0xff] %v7849_v28  ;;  %v7888_v28 = vmul.f32 %v7126_v40, %v7772_v29  ;;  %13556 = vst [vmem:[#allocation91_spill] sm:$0xff] %v7958_v44  ;;  %v7978_v44 = vmul.f32 %v7230_v13, %v7779_v22 }
 0x221   : > { %1470 = vrot.lane.b32.xlu0 %v1382_v1, %s6885_s29  ;;  %1468 = vrot.lane.b32.xlu1 %v7551_v49, %s6885_s29  ;;  %v7892_v1 = vmul.f32 %v7126_v40, %v7779_v22  ;;  %v7896_v49 = vmul.f32 %v7120_v37, %v7772_v29  ;;  %13557 = vst [vmem:[#allocation92_spill] sm:$0xff] %v7962_v50  ;;  %13561 = vst [vmem:[#allocation96_spill] sm:$0xff] %v7982_v33  ;;  %v13581_v33 = vld [vmem:[#allocation14_spill] sm:$0xff] }
 0x222   : > { %13543 = vst [vmem:[#allocation78_spill] sm:$0xff] %v7888_v28  ;;  %v7908_v28 = vmul.f32 %v7146_v48, %v7156_v51  ;;  %v7927_v51 = vmul.f32 %v7118_v36, %v7772_v29  ;;  %13560 = vst [vmem:[#allocation95_spill] sm:$0xff] %v7978_v44  ;;  %v1397_v50 = vsel %vm13087_vm15, %v7569_v5, %v7567_v0  ;;  %vm13095_vm15 = vcmask 48128  }
 0x223   : > { %13544 = vst [vmem:[#allocation79_spill] sm:$0xff] %v7892_v1  ;;  %13545 = vst [vmem:[#allocation80_spill] sm:$0xff] %v7896_v49  ;;  %v7902_v55 = vpop.permute.xlu0 %2158  ;;  %v7904_v27 = vpop.permute.xlu1 %2156  ;;  %v7912_v1 = vmul.f32 %v7146_v48, %v7160_v52  ;;  %v7916_v49 = vmul.f32 %v7142_v46, %v7772_v29  ;;  %v7931_v52 = vmul.f32 %v7118_v36, %v7779_v22 }
 0x224   : > { %13549 = vst [vmem:[#allocation84_spill] sm:$0xff] %v7927_v51  ;;  %v7946_v51 = vmul.f32 %v7138_v45, %v7800_v62  ;;  %v8000_v44 = vmul.f32 %v7116_v35, %v7800_v62  ;;  %v8004_v0 = vmul.f32 %v7116_v35, %v7802_v23  ;;  %v8024_v35 = vmul.f32 %v7124_v39, %v7800_v62 }
 0x225   : > { %13547 = vst [vmem:[#allocation82_spill] sm:$0xff] %v7916_v49  ;;  %13550 = vst [vmem:[#allocation85_spill] sm:$0xff] %v7931_v52  ;;  %1474 = vrot.lane.b32.xlu0 %v1389_v26, %s6885_s29  ;;  %1472 = vrot.lane.b32.xlu1 %v7561_v41, %s6885_s29  ;;  %v7950_v26 = vmul.f32 %v7216_v7, %v7772_v29  ;;  %v7954_v41 = vmul.f32 %v7138_v45, %v7802_v23 }
 0x226   : > { %13553 = vst [vmem:[#allocation88_spill] sm:$0xff] %v7946_v51  ;;  %v7974_v45 = vmul.f32 %v7230_v13, %v7772_v29  ;;  %13564 = vst [vmem:[#allocation99_spill] sm:$0xff] %v8000_v44 }
 0x227   : > { %13554 = vst [vmem:[#allocation89_spill] sm:$0xff] %v7950_v26  ;;  %13555 = vst [vmem:[#allocation90_spill] sm:$0xff] %v7954_v41  ;;  %v7964_v52 = vpop.permute.xlu0 %1990  ;;  %v7966_v51 = vpop.permute.xlu1 %1988  ;;  %v7970_v26 = vmul.f32 %v7216_v7, %v7779_v22  ;;  %v7989_v41 = vmul.f32 %v7126_v40, %v7800_v62 }
 0x228   : > { %13559 = vst [vmem:[#allocation94_spill] sm:$0xff] %v7974_v45  ;;  %v7993_v45 = vmul.f32 %v7126_v40, %v7802_v23  ;;  %13565 = vst [vmem:[#allocation100_spill] sm:$0xff] %v8004_v0  ;;  %v8008_v40 = vmul.f32 %v7104_v30, %v7800_v62 }
 0x229   : > { %13558 = vst [vmem:[#allocation93_spill] sm:$0xff] %v7970_v26  ;;  %13562 = vst [vmem:[#allocation97_spill] sm:$0xff] %v7989_v41  ;;  %1478 = vrot.lane.b32.xlu0 %v1397_v50, %s6885_s29  ;;  %1476 = vrot.lane.b32.xlu1 %v7569_v5, %s6885_s29  ;;  %v8016_v5 = vmul.f32 %v7120_v37, %v7800_v62  ;;  %v8020_v50 = vmul.f32 %v7120_v37, %v7802_v23 }
 0x22a   : > { %13563 = vst [vmem:[#allocation98_spill] sm:$0xff] %v7993_v45  ;;  %13566 = vst [vmem:[#allocation101_spill] sm:$0xff] %v8008_v40  ;;  %v8012_v45 = vmul.f32 %v7104_v30, %v7802_v23  ;;  %v8032_v30 = vmul.f32 %v7292_v53, %v7772_v29  ;;  %v8036_v40 = vmul.f32 %v7292_v53, %v7779_v22 }
 0x22b   : > { %13568 = vst [vmem:[#allocation103_spill] sm:$0xff] %v8016_v5  ;;  %13569 = vst [vmem:[#allocation104_spill] sm:$0xff] %v8020_v50  ;;  %v8026_v0 = vpop.permute.xlu0 %2046  ;;  %v8028_v44 = vpop.permute.xlu1 %2044  ;;  %v8040_v37 = vmul.f32 %v7124_v39, %v7802_v23  ;;  %v8048_v50 = vmul.f32 %v7122_v38, %v7800_v62  ;;  %v8056_v41 = vmul.f32 %v7118_v36, %v7802_v23 }
 0x22c   : > { %13567 = vst [vmem:[#allocation102_spill] sm:$0xff] %v8012_v45  ;;  %13570 = vst [vmem:[#allocation105_spill] sm:$0xff] %v8024_v35  ;;  %v1405_v35 = vsel %vm13090_vm6, %v7579_v2, %v7577_v32  ;;  %v8052_v45 = vmul.f32 %v7118_v36, %v7800_v62  ;;  %v8063_v39 = vmul.f32 %v7122_v38, %v7802_v23  ;;  %v13580_v36 = vld [vmem:[#allocation13_spill] sm:$0xff]  ;;  %vm13111_vm6 = vcmask 1022976  }
 0x22d   : > { %13571 = vst [vmem:[#allocation106_spill] sm:$0xff] %v8032_v30  ;;  %13572 = vst [vmem:[#allocation107_spill] sm:$0xff] %v8036_v40  ;;  %1482 = vrot.lane.b32.xlu0 %v1405_v35, %s6885_s29  ;;  %1480 = vrot.lane.b32.xlu1 %v7579_v2, %s6885_s29  ;;  %v8067_v32 = vmul.f32 %v7142_v46, %v7800_v62  ;;  %v8071_v5 = vmul.f32 %v7142_v46, %v7802_v23  ;;  %v13584_v2 = vld [vmem:[#allocation16_spill] sm:$0xff] }
 0x22e   : > { %13573 = vst [vmem:[#allocation108_spill] sm:$0xff] %v8040_v37  ;;  %13574 = vst [vmem:[#allocation109_spill] sm:$0xff] %v8048_v50  ;;  %v8076_v35 = vsel %vm13110_vm13, %v13581_v33, %v13580_v36  ;;  %v8085_v38 = vmul.f32 %v7144_v47, %v7800_v62  ;;  %v8097_v33 = vmul.f32 %v7146_v48, %v7800_v62  ;;  %v13597_v36 = vld [vmem:[#allocation46_spill] sm:$0xff]  ;;  %v13599_v30 = vld [vmem:[#allocation24_spill] sm:$0xff] }
 0x22f   : > { %13575 = vst [vmem:[#allocation110_spill] sm:$0xff] %v8052_v45  ;;  %13576 = vst [vmem:[#allocation111_spill] sm:$0xff] %v8056_v41  ;;  %v13583_v45 = vld [vmem:[#allocation15_spill] sm:$0xff]  ;;  %v8089_v41 = vmul.f32 %v7144_v47, %v7802_v23  ;;  %v8091_v46 = vpop.permute.xlu0 %2109  ;;  %v13593_v47 = vld [vmem:[#allocation21_spill] sm:$0xff] }
 0x230   : > { %13577 = vst [vmem:[#allocation112_spill] sm:$0xff] %v8063_v39  ;;  %13578 = vst [vmem:[#allocation113_spill] sm:$0xff] %v8067_v32  ;;  %v8081_v37 = vsel %vm13091_vm3, %v13584_v2, %v13583_v45  ;;  %v8101_v2 = vmul.f32 %v7146_v48, %v7802_v23  ;;  %v13590_v32 = vld [vmem:[#allocation19_spill] sm:$0xff]  ;;  %vm13113_vm3 = vcmask 1041408  }
 0x231   : > { %13579 = vst [vmem:[#allocation114_spill] sm:$0xff] %v8071_v5  ;;  %13582 = vst [vmem:[#allocation14_spill] sm:$0xff] %v8076_v35  ;;  %v8093_v5 = vpop.permute.xlu1 %2107  ;;  %v13596_v35 = vld [vmem:[#allocation45_spill] sm:$0xff]  ;;  %1484 = vrot.lane.b32.xlu1 %v13597_v36, %s6885_s29 }
 0x232   : > { %13585 = vst [vmem:[#allocation15_spill] sm:$0xff] %v8081_v37  ;;  %13586 = vst [vmem:[#allocation16_spill] sm:$0xff] %v8085_v38  ;;  %v13591_v38 = vld [vmem:[#allocation20_spill] sm:$0xff]  ;;  %v1413_v40 = vsel %vm13095_vm15, %v13597_v36, %v13596_v35  ;;  %v13603_v35 = vld [vmem:[#allocation25_spill] sm:$0xff]  ;;  %vm13112_vm15 = vcmask 1043456   ;;  %v8147_v36 = vmul.f32 %v7230_v13, %v7802_v23 }
 0x233   : > { %13587 = vst [vmem:[#allocation115_spill] sm:$0xff] %v8089_v41  ;;  %13588 = vst [vmem:[#allocation116_spill] sm:$0xff] %v8097_v33  ;;  %v8106_v39 = vsel %vm13106_vm11, %v13591_v38, %v13590_v32  ;;  %v13594_v41 = vld [vmem:[#allocation22_spill] sm:$0xff]  ;;  %v13598_v33 = vld [vmem:[#allocation23_spill] sm:$0xff]  ;;  %1486 = vrot.lane.b32.xlu0 %v1413_v40, %s6885_s29  ;;  %v8126_v38 = vmul.f32 %v7216_v7, %v7800_v62  ;;  %v8139_v40 = vmul.f32 %v7216_v7, %v7802_v23  ;;  %vm2063_vm11 = vcmask 1044480  }
 0x234   : > { %13589 = vst [vmem:[#allocation117_spill] sm:$0xff] %v8101_v2  ;;  %13592 = vst [vmem:[#allocation20_spill] sm:$0xff] %v8106_v39  ;;  %v8111_v50 = vsel %vm1243_vm2, %v13594_v41, %v13593_v47  ;;  %v8119_v37 = vsel %vm13104_vm9, %v13599_v30, %v13598_v33  ;;  %v8130_v47 = vmul.f32 %v7114_v34, %v7802_v23  ;;  %v13604_v2 = vld [vmem:[#allocation26_spill] sm:$0xff]  ;;  %v13609_v34 = vld [vmem:[#allocation27_spill] sm:$0xff]  ;;  %vm13635_vm9 = vcmask 539648  }
 0x235   : > { %13595 = vst [vmem:[#allocation21_spill] sm:$0xff] %v8111_v50  ;;  %13600 = vst [vmem:[#allocation45_spill] sm:$0xff] %v8119_v37  ;;  %v8135_v39 = vsel %vm1163_vm1, %v13604_v2, %v13603_v35  ;;  %v8143_v30 = vmul.f32 %v7230_v13, %v7800_v62  ;;  %v13612_v2 = vld [vmem:[#allocation29_spill] sm:$0xff]  ;;  %v13613_v33 = vld [vmem:[#allocation30_spill] sm:$0xff]  ;;  %v8171_v26 = vpop.permute.xlu1 %2163  ;;  %1539 = vrot.lane.b32.xlu1 %v7912_v1, %s13507_s23 }
 0x236   : > { %13601 = vst [vmem:[#allocation46_spill] sm:$0xff] %v8126_v38  ;;  %13602 = vst [vmem:[#allocation24_spill] sm:$0xff] %v8130_v47  ;;  %v13610_v38 = vld [vmem:[#allocation28_spill] sm:$0xff]  ;;  %v8157_v32 = vsel %vm13103_vm8, %v13613_v33, %v13612_v2  ;;  %v13615_v7 = vld [vmem:[#allocation31_spill] sm:$0xff]  ;;  %vm13631_vm8 = vcmask 228352  }
 0x237   : > { %13605 = vst [vmem:[#allocation25_spill] sm:$0xff] %v8135_v39  ;;  %13606 = vst [vmem:[#allocation26_spill] sm:$0xff] %v8139_v40  ;;  %v8152_v37 = vsel %vm1173_vm7, %v13610_v38, %v13609_v34  ;;  %v13616_v40 = vld [vmem:[#allocation32_spill] sm:$0xff]  ;;  %v13619_v39 = vld [vmem:[#allocation34_spill] sm:$0xff]  ;;  %1541 = vrot.lane.b32.xlu0 %v7908_v28, %s13507_s23  ;;  %v8222_v28 = vmul.f32 %v7146_v48, %v7779_v22 }
 0x238   : > { %13607 = vst [vmem:[#allocation118_spill] sm:$0xff] %v8143_v30  ;;  %13608 = vst [vmem:[#allocation119_spill] sm:$0xff] %v8147_v36  ;;  %v8162_v41 = vsel %vm13381_vm14, %v13616_v40, %v13615_v7  ;;  %v13618_v30 = vld [vmem:[#allocation33_spill] sm:$0xff]  ;;  %v8169_v36 = vpop.permute.xlu0 %2165  ;;  %v13621_v38 = vld [vmem:[#allocation35_spill] sm:$0xff] }
 0x239   : > { %13611 = vst [vmem:[#allocation28_spill] sm:$0xff] %v8152_v37  ;;  %13614 = vst [vmem:[#allocation30_spill] sm:$0xff] %v8157_v32  ;;  %v8167_v13 = vsel %vm1223_vm5, %v13619_v39, %v13618_v30  ;;  %v13622_v37 = vld [vmem:[#allocation36_spill] sm:$0xff]  ;;  %v13624_v33 = vld [vmem:[#allocation39_spill] sm:$0xff] }
 0x23a   : > { %13617 = vst [vmem:[#allocation32_spill] sm:$0xff] %v8162_v41  ;;  %13620 = vst [vmem:[#allocation34_spill] sm:$0xff] %v8167_v13  ;;  %v8176_v34 = vsel %vm1233_vm0, %v13622_v37, %v13621_v38  ;;  %v13625_v32 = vld [vmem:[#allocation40_spill] sm:$0xff]  ;;  %v13626_v40 = vld [vmem:[#allocation41_spill] sm:$0xff] }
 0x23b   : > { %13623 = vst [vmem:[#allocation35_spill] sm:$0xff] %v8176_v34  ;;  %v8181_v2 = vsel %vm13115_vm4, %v13625_v32, %v13624_v33  ;;  %v13627_v41 = vld [vmem:[#allocation42_spill] sm:$0xff]  ;;  %v13629_v39 = vld [vmem:[#allocation37_spill] sm:$0xff]  ;;  %v13633_v30 = vld [vmem:[#allocation43_spill] sm:$0xff] }
 0x23c   : > { %v8186_v50 = vsel %vm13114_vm10, %v13627_v41, %v13626_v40  ;;  %v13630_v13 = vld [vmem:[#allocation38_spill] sm:$0xff]  ;;  %v13634_v7 = vld [vmem:[#allocation44_spill] sm:$0xff]  ;;  %v13637_v37 = vld [vmem:[#allocation49_spill] sm:$0xff]  ;;  %v8207_v41 = vmul.f32 %v7292_v53, %v7800_v62 }
 0x23d   : > { %13628 = vst [vmem:[#allocation39_spill] sm:$0xff] %v8186_v50  ;;  %v8191_v49 = vsel %vm13631_vm8, %v13630_v13, %v13629_v39  ;;  %v8196_v38 = vsel %vm13635_vm9, %v13634_v7, %v13633_v30  ;;  %v13638_v34 = vld [vmem:[#allocation50_spill] sm:$0xff]  ;;  %v13641_v50 = vld [vmem:[#allocation55_spill] sm:$0xff]  ;;  %v8214_v13 = vmul.f32 %v7292_v53, %v7802_v23  ;;  %13643 = vst [vmem:[#allocation44_spill] sm:$0xff] %v8222_v28  ;;  %vm13647_vm8 = vcmask 1040384  }
 0x23e   : > { %13632 = vst [vmem:[#allocation40_spill] sm:$0xff] %v8191_v49  ;;  %13636 = vst [vmem:[#allocation42_spill] sm:$0xff] %v8196_v38  ;;  %v1938_v32 = vsel %vm13110_vm13, %v13638_v34, %v13637_v37  ;;  %v13640_v39 = vld [vmem:[#allocation54_spill] sm:$0xff]  ;;  %v8218_v34 = vmul.f32 %v7146_v48, %v7772_v29  ;;  %v13644_v1 = vld [vmem:[#allocation47_spill] sm:$0xff]  ;;  %v1947_v23 = vsel %vm1163_vm1, %v7647_v11, %v7645_v59  ;;  %v8236_v29 = vpop.permute.xlu0 %2116  ;;  %v8238_v48 = vpop.permute.xlu1 %2114 }
 0x23f   : > { %13639 = vst [vmem:[#allocation37_spill] sm:$0xff] %v8207_v41  ;;  %v2006_v7 = vsel %vm1233_vm0, %v13641_v50, %v13640_v39  ;;  %v13645_v40 = vld [vmem:[#allocation48_spill] sm:$0xff]  ;;  %v13646_v41 = vld [vmem:[#allocation17_spill] sm:$0xff]  ;;  %v13648_v49 = vld [vmem:[#allocation51_spill] sm:$0xff]  ;;  %1545 = vrot.lane.b32.xlu0 %v13644_v1, %s13507_s23 }
 0x240   : > { %13642 = vst [vmem:[#allocation43_spill] sm:$0xff] %v8218_v34  ;;  %v1421_v62 = vsel %vm13111_vm6, %v13645_v40, %v13644_v1  ;;  %v2053_v39 = vsel %vm13647_vm8, %v13646_v41, %v13637_v37  ;;  %v13649_v38 = vld [vmem:[#allocation52_spill] sm:$0xff]  ;;  %v13650_v22 = vld [vmem:[#allocation18_spill] sm:$0xff]  ;;  %vm13651_vm9 = vmmov %vm13647_vm8  ;;  %v2013_v37 = vsel %vm1243_vm2, %v7655_v63, %v7653_v58  ;;  %v2073_v11 = vsel %vm13647_vm8, %v13648_v49, %v2006_v7 }
 0x241   : > { %v1999_v53 = vsel %vm1223_vm5, %v13649_v38, %v13648_v49  ;;  %v2052_v34 = vsel %vm13651_vm9, %v13650_v22, %v1938_v32  ;;  %vm13652_vm13 = vmmov %vm13647_vm8  ;;  %v1956_v38 = vsel %vm1173_vm7, %v7661_v15, %v7659_v16  ;;  %v2056_v41 = vsel %vm13113_vm3, %v2053_v39, %v7645_v59  ;;  %1543 = vrot.lane.b32.xlu1 %v1421_v62, %s13507_s23  ;;  %v13656_v22 = vld [vmem:[#allocation57_spill] sm:$0xff] }
 0x242   : > { %v2072_v40 = vsel %vm13652_vm13, %v1999_v53, %v13641_v50  ;;  %vm13653_vm9 = vcmask 228352   ;;  %vm2066_vm6 = vcmask 1045504   ;;  %v2055_v58 = vsel %vm13113_vm3, %v2052_v34, %v1947_v23  ;;  %v8278_v1 = vpop.permute.xlu1 %2170 }
 0x243   : > { %v2020_v32 = vsel %vm13653_vm9, %v7671_v3, %v7669_v8  ;;  %v2074_v15 = vsel %vm13113_vm3, %v2072_v40, %v7655_v63  ;;  %vm13654_vm13 = vcmask 908288   ;;  %v2146_v59 = vsel %vm1223_vm5, %v7743_v4, %v7741_v12  ;;  %v8276_v63 = vpop.permute.xlu0 %2172  ;;  %1692 = vrot.lane.b32.xlu0 %v7829_v54, %s13655_s4 }
 0x244   : > { %v1965_v49 = vsel %vm13654_vm13, %v7681_v17, %v7679_v6  ;;  %v2075_v8 = vsel %vm13113_vm3, %v2073_v11, %v2013_v37  ;;  %v2059_v50 = vsel %vm2057_vm12, %v2056_v41, %v7659_v16  ;;  %v2058_v7 = vsel %vm2057_vm12, %v2055_v58, %v1956_v38  ;;  %v13657_v11 = vld [vmem:[#allocation58_spill] sm:$0xff] }
 0x245   : > { %v2027_v34 = vsel %vm13115_vm4, %v7691_v19, %v7689_v56  ;;  %vm3054_vm8 = vcmask 1042434   ;;  %v2076_v17 = vsel %vm2057_vm12, %v2074_v15, %v7671_v3  ;;  %v2077_v4 = vsel %vm2057_vm12, %v2075_v8, %v2020_v32  ;;  %1690 = vrot.lane.b32.xlu1 %v7833_v61, %s13655_s4  ;;  %s13684_s4 = smov 51  }
 0x246   : > { %v4076_v62 = vrot.slane %v7725_v42, 7  ;;  %v2153_v16 = vsel %vm1233_vm0, %v7753_v10, %v7751_v9  ;;  %v2062_v39 = vsel %vm13112_vm15, %v2059_v50, %v7679_v6  ;;  %v2061_v19 = vsel %vm13112_vm15, %v2058_v7, %v1965_v49  ;;  %v8309_v61 = vpop.permute.xlu1 %2086 }
 0x247   : > { %v2079_v53 = vsel %vm13112_vm15, %v2077_v4, %v7689_v56  ;;  %v4176_v23 = vrot.slane %v2146_v59, 1  ;;  %v2078_v3 = vsel %vm13112_vm15, %v2076_v17, %v2027_v34  ;;  %v2065_v9 = vsel %vm2063_vm11, %v2062_v39, %v7699_v20  ;;  %v8307_v38 = vpop.permute.xlu0 %2088 }
 0x248   : > { %v2064_v6 = vsel %vm2063_vm11, %v2061_v19, %v7706_v14  ;;  %v2081_v40 = vsel %vm2063_vm11, %v2079_v53, %v13656_v22  ;;  %v4090_v56 = vrot.slane %v7753_v10, 7  ;;  %v4104_v37 = vrot.slane %v2153_v16, 7 }
 0x249   : > { %v2104_v54 = vsel %vm1163_vm1, %v7837_v25, %v7835_v57  ;;  %vm2069_vm12 = vcmask 1046528   ;;  %v2080_v20 = vsel %vm2063_vm11, %v2078_v3, %v13657_v11  ;;  %vm13658_vm9 = vcmask 1041409   ;;  %v13668_v3 = vld [vmem:[#allocation69_spill] sm:$0xff] }
 0x24a   : > { %v4077_v14 = vsel %vm13658_vm9, %v4076_v62, %v7806_v43  ;;  %v13659_v41 = vrot.slane %v7806_v43, 1  ;;  %vm13660_vm13 = vmmov %vm13658_vm9  ;;  %v4190_v58 = vrot.slane %v7741_v12, 1  ;;  %v1983_v15 = vsel %vm13381_vm14, %v7763_v21, %v7761_v18  ;;  %v13664_v43 = vld [vmem:[#allocation61_spill] sm:$0xff]  ;;  %v2122_v39 = vpop.permute.xlu1 %2121 }
 0x24b   : > { %vm13661_vm15 = vmmov %vm13658_vm9  ;;  %vm13662_vm11 = vcmask 539648   ;;  %v4078_v8 = vrot.slane %v7835_v57, 6  ;;  %vm3057_vm9 = vcmask 1043459   ;;  %1699 = vrot.lane.b32.xlu0 %v13664_v43, %s13663_s5  ;;  %v4164_v50 = vrot.slane %v7835_v57, 7  ;;  %v8342_v62 = vpop.permute.xlu0 %2123 }
 0x24c   : > { %v4163_v32 = vsel %vm13660_vm13, %v7725_v42, %v13659_v41  ;;  %v4177_v25 = vsel %vm13661_vm15, %v7753_v10, %v4176_v23  ;;  %v2041_v49 = vsel %vm13662_vm11, %v7776_v31, %v7774_v24  ;;  %v13665_v42 = vld [vmem:[#allocation62_spill] sm:$0xff]  ;;  %v4064_v10 = vrot.slane %v2104_v54, 6  ;;  %vm13666_vm15 = vmmov %vm13660_vm13 }
 0x24d   : > { %1697 = vrot.lane.b32.xlu1 %v13665_v42, %s13663_s5  ;;  %v4150_v7 = vrot.slane %v2104_v54, 7  ;;  %v2160_v21 = vsel %vm1243_vm2, %v7904_v27, %v7902_v55  ;;  %v4091_v34 = vsel %vm13666_vm15, %v4090_v56, %v2146_v59  ;;  %v4105_v31 = vsel %vm13660_vm13, %v4104_v37, %v7741_v12  ;;  %vm13667_vm11 = vmmov %vm13660_vm13  ;;  %s13692_s5 = smov 99  }
 0x24e   : > { %v4191_v17 = vsel %vm13667_vm11, %v2153_v16, %v4190_v58  ;;  %v4092_v4 = vrot.slane %v7904_v27, 6  ;;  %v2068_v57 = vsel %vm2066_vm6, %v2065_v9, %v7761_v18  ;;  %v2067_v19 = vsel %vm2066_vm6, %v2064_v6, %v1983_v15  ;;  %v13669_v18 = vld [vmem:[#allocation70_spill] sm:$0xff]  ;;  %v13670_v6 = vld [vmem:[#allocation60_spill] sm:$0xff] }
 0x24f   : > { %v2083_v55 = vsel %vm2066_vm6, %v2081_v40, %v7774_v24  ;;  %v2082_v59 = vsel %vm2066_vm6, %v2080_v20, %v2041_v49  ;;  %v4106_v53 = vrot.slane %v2160_v21, 6  ;;  %v4178_v12 = vrot.slane %v7904_v27, 7  ;;  %1706 = vrot.lane.b32.xlu0 %v13668_v3, %s13504_s21  ;;  %v13671_v40 = vld [vmem:[#allocation59_spill] sm:$0xff]  ;;  %v8372_v11 = vpop.permute.xlu0 %2179  ;;  %v2178_v20 = vpop.permute.xlu1 %2177 }
 0x250   : > { %v4192_v23 = vrot.slane %v2160_v21, 7  ;;  %v2111_v16 = vsel %vm1173_vm7, %v8093_v5, %v8091_v46  ;;  %v4079_v9 = vsel %vm3054_vm8, %v4078_v8, %v4077_v14  ;;  %v4165_v24 = vsel %vm3054_vm8, %v4164_v50, %v4163_v32  ;;  %v13675_v8 = vld [vmem:[#allocation71_spill] sm:$0xff] }
 0x251   : > { %1704 = vrot.lane.b32.xlu1 %v13669_v18, %s13504_s21  ;;  %v4065_v22 = vsel %vm3054_vm8, %v4064_v10, %v13670_v6  ;;  %v4151_v27 = vsel %vm3054_vm8, %v4150_v7, %v13671_v40  ;;  %vm3060_vm6 = vcmask 1044484   ;;  %v4093_v56 = vsel %vm3054_vm8, %v4092_v4, %v4091_v34 }
 0x252   : > { %vm13672_vm15 = vcmask 777216   ;;  %vm13673_vm13 = vcmask 515072   ;;  %v4080_v54 = vrot.slane %v8091_v46, 5  ;;  %v4166_v14 = vrot.slane %v8091_v46, 6 }
 0x253   : > { %v1992_v5 = vsel %vm13672_vm15, %v7966_v51, %v7964_v52  ;;  %v2048_v37 = vsel %vm13673_vm13, %v8028_v44, %v8026_v0  ;;  %v4066_v41 = vrot.slane %v2111_v16, 5  ;;  %v4152_v32 = vrot.slane %v2111_v16, 6  ;;  %1748 = vrot.lane.b32.xlu0 %v13675_v8, %s13498_s2 }
 0x254   : > { %vm13674_vm11 = vcmask 228352   ;;  %v4107_v15 = vsel %vm3054_vm8, %v4106_v53, %v4105_v31  ;;  %v4179_v51 = vsel %vm3054_vm8, %v4178_v12, %v4177_v25  ;;  %v4193_v49 = vsel %vm3054_vm8, %v4192_v23, %v4191_v17 }
 0x255   : > { %v2167_v58 = vsel %vm13674_vm11, %v8171_v26, %v8169_v36  ;;  %v4094_v44 = vrot.slane %v8171_v26, 5  ;;  %vm13304_vm15 = vcmask 490496   ;;  %vm3063_vm13 = vcmask 1045509   ;;  %1746 = vrot.lane.b32.xlu1 %v7860_v60, %s13498_s2  ;;  %v8401_v60 = vpop.permute.xlu0 %2130 }
 0x256   : > { %v4180_v46 = vrot.slane %v8171_v26, 6  ;;  %v8389_v36 = vsel %vm2069_vm12, %v2068_v57, %v7964_v52  ;;  %v8392_v25 = vsel %vm2069_vm12, %v2067_v19, %v1992_v5  ;;  %v8396_v43 = vsel %vm2069_vm12, %v2083_v55, %v8026_v0  ;;  %v2129_v26 = vpop.permute.xlu1 %2128  ;;  %v13678_v57 = vld [vmem:[#allocation72_spill] sm:$0xff]  ;;  %v13679_v19 = vld [vmem:[#allocation73_spill] sm:$0xff] }
 0x257   : > { %v4108_v42 = vrot.slane %v2167_v58, 5  ;;  %v4194_v50 = vrot.slane %v2167_v58, 6  ;;  %vm13676_vm11 = vcmask 908288   ;;  %v8404_v7 = vsel %vm2069_vm12, %v2082_v59, %v2048_v37  ;;  %1713 = vrot.lane.b32.xlu0 %v13678_v57, %s13677_s19 }
 0x258   : > { %v2118_v10 = vsel %vm13676_vm11, %v8238_v48, %v8236_v29  ;;  %v4081_v52 = vsel %vm3057_vm9, %v4080_v54, %v4079_v9  ;;  %v4167_v21 = vsel %vm3057_vm9, %v4166_v14, %v4165_v24  ;;  %v4067_v34 = vsel %vm3057_vm9, %v4066_v41, %v4065_v22 }
 0x259   : > { %v4153_v0 = vsel %vm3057_vm9, %v4152_v32, %v4151_v27  ;;  %v4082_v31 = vrot.slane %v8236_v29, 4  ;;  %v4168_v17 = vrot.slane %v8236_v29, 5  ;;  %v4095_v48 = vsel %vm3057_vm9, %v4094_v44, %v4093_v56  ;;  %1711 = vrot.lane.b32.xlu1 %v13679_v19, %s13677_s19  ;;  %v8427_v3 = vpop.permute.xlu0 %2186  ;;  %v13682_v27 = vld [vmem:[#allocation75_spill] sm:$0xff]  ;;  %v13683_v56 = vld [vmem:[#allocation76_spill] sm:$0xff]  ;;  %s13697_s19 = smov 50  }
 0x25a   : > { %v2174_v4 = vsel %vm13115_vm4, %v8278_v1, %v8276_v63  ;;  %v4068_v55 = vrot.slane %v2118_v10, 4  ;;  %v4154_v59 = vrot.slane %v2118_v10, 5  ;;  %v4181_v53 = vsel %vm3057_vm9, %v4180_v46, %v4179_v51  ;;  %v2185_v18 = vpop.permute.xlu1 %2184  ;;  %v13685_v10 = vld [vmem:[#allocation63_spill] sm:$0xff] }
 0x25b   : > { %vm13680_vm12 = vcmask 900096   ;;  %v4109_v29 = vsel %vm3057_vm9, %v4108_v42, %v4107_v15  ;;  %v4195_v23 = vsel %vm3057_vm9, %v4194_v50, %v4193_v49  ;;  %v4110_v16 = vrot.slane %v8276_v63, 4  ;;  %1755 = vrot.lane.b32.xlu0 %v13682_v27, %s13681_s15 }
 0x25c   : > { %v2125_v12 = vsel %vm13680_vm12, %v2122_v39, %v8342_v62  ;;  %v4196_v1 = vrot.slane %v8276_v63, 5  ;;  %vm3066_vm11 = vcmask 1046534   ;;  %v4096_v9 = vrot.slane %v2174_v4, 4 }
 0x25d   : > { %v4182_v24 = vrot.slane %v2174_v4, 5  ;;  %v4084_v6 = vrot.slane %v8342_v62, 3  ;;  %v2181_v22 = vsel %vm13114_vm10, %v2178_v20, %v8372_v11  ;;  %v4170_v39 = vrot.slane %v8342_v62, 4  ;;  %1753 = vrot.lane.b32.xlu1 %v13683_v56, %s13681_s15  ;;  %v2138_v32 = vpop.permute.xlu0 %2137  ;;  %s13720_s15 = smov 48  }
 0x25e   : > { %v4070_v40 = vrot.slane %v2125_v12, 3  ;;  %v4083_v63 = vsel %vm3060_vm6, %v4082_v31, %v4081_v52  ;;  %v4169_v5 = vsel %vm3060_vm6, %v4168_v17, %v4167_v21  ;;  %v4069_v37 = vsel %vm3060_vm6, %v4068_v55, %v4067_v34  ;;  %v2136_v58 = vpop.permute.xlu1 %2135  ;;  %v13686_v52 = vld [vmem:[#allocation64_spill] sm:$0xff] }
 0x25f   : > { %v4155_v54 = vsel %vm3060_vm6, %v4154_v59, %v4153_v0  ;;  %v4156_v14 = vrot.slane %v2125_v12, 4  ;;  %v4112_v20 = vrot.slane %v8372_v11, 3  ;;  %v4198_v62 = vrot.slane %v8372_v11, 4  ;;  %1720 = vrot.lane.b32.xlu0 %v13685_v10, %s13684_s4 }
 0x260   : > { %v4098_v41 = vrot.slane %v2181_v22, 3  ;;  %vm3069_vm12 = vcmask 1047559   ;;  %v4111_v15 = vsel %vm3060_vm6, %v4110_v16, %v4109_v29  ;;  %v4197_v51 = vsel %vm3060_vm6, %v4196_v1, %v4195_v23 }
 0x261   : > { %v4097_v49 = vsel %vm3060_vm6, %v4096_v9, %v4095_v48  ;;  %v4183_v44 = vsel %vm3060_vm6, %v4182_v24, %v4181_v53  ;;  %v8450_v8 = vsel %vm13304_vm15, %v8309_v61, %v8307_v38  ;;  %v4085_v46 = vsel %vm3063_vm13, %v4084_v6, %v4083_v63  ;;  %1718 = vrot.lane.b32.xlu1 %v13686_v52, %s13684_s4  ;;  %v2194_v4 = vpop.permute.xlu0 %2193  ;;  %s13728_s4 = smov 6  }
 0x262   : > { %v4071_v11 = vsel %vm3063_vm13, %v4070_v40, %v4069_v37  ;;  %v4184_v42 = vrot.slane %v2181_v22, 4  ;;  %v2132_v50 = vsel %vm13381_vm14, %v2129_v26, %v8401_v60  ;;  %v4171_v21 = vsel %vm3063_vm13, %v4170_v39, %v4169_v5  ;;  %v2192_v57 = vpop.permute.xlu1 %2191 }
 0x263   : > { %v4157_v34 = vsel %vm3063_vm13, %v4156_v14, %v4155_v54  ;;  %v4086_v61 = vrot.slane %v8401_v60, 2  ;;  %vm13687_vm3 = vcmask 539648   ;;  %v4113_v31 = vsel %vm3063_vm13, %v4112_v20, %v4111_v15  ;;  %v13693_v20 = vld [vmem:[#allocation78_spill] sm:$0xff] }
 0x264   : > { %v2188_v0 = vsel %vm13687_vm3, %v2185_v18, %v8427_v3  ;;  %v4099_v17 = vsel %vm3063_vm13, %v4098_v41, %v4097_v49  ;;  %v4172_v26 = vrot.slane %v8401_v60, 3  ;;  %vm13688_vm10 = vcmask 777216   ;;  %v13690_v60 = vld [vmem:[#allocation74_spill] sm:$0xff]  ;;  %v13691_v18 = vld [vmem:[#allocation77_spill] sm:$0xff] }
 0x265   : > { %v2139_v48 = vsel %vm13688_vm10, %v2136_v58, %v2138_v32  ;;  %v4199_v19 = vsel %vm3063_vm13, %v4198_v62, %v4197_v51  ;;  %v4072_v55 = vrot.slane %v2132_v50, 2  ;;  %v4158_v59 = vrot.slane %v2132_v50, 3  ;;  %1741 = vrot.lane.b32.xlu0 %v13690_v60, %s13521_s17  ;;  %1739 = vrot.lane.b32.xlu1 %v13691_v18, %s13521_s17  ;;  %v8479_v63 = vpop.permute.xlu0 %2200  ;;  %v13694_v62 = vld [vmem:[#allocation79_spill] sm:$0xff] }
 0x266   : > { %v4114_v53 = vrot.slane %v8427_v3, 2  ;;  %vm13689_vm4 = vcmask 515072   ;;  %v4185_v29 = vsel %vm3063_vm13, %v4184_v42, %v4183_v44  ;;  %v4200_v23 = vrot.slane %v8427_v3, 3  ;;  %v8481_v3 = vpop.permute.xlu1 %2198 }
 0x267   : > { %v2195_v12 = vsel %vm13689_vm4, %v2192_v57, %v2194_v4  ;;  %v4100_v16 = vrot.slane %v2188_v0, 2  ;;  %v4186_v1 = vrot.slane %v2188_v0, 3  ;;  %v4088_v9 = vrot.slane %v2138_v32, 1  ;;  %v13700_v57 = vld [vmem:[#allocation33_spill] sm:$0xff] }
 0x268   : > { %v4174_v24 = vrot.slane %v2138_v32, 2  ;;  %v4074_v6 = vrot.slane %v2139_v48, 1  ;;  %v4087_v22 = vsel %vm3066_vm11, %v4086_v61, %v4085_v46  ;;  %v4160_v39 = vrot.slane %v2139_v48, 2  ;;  %v13698_v48 = vld [vmem:[#allocation80_spill] sm:$0xff] }
 0x269   : > { %v4116_v40 = vrot.slane %v2194_v4, 1  ;;  %v4202_v27 = vrot.slane %v2194_v4, 2  ;;  %v4102_v56 = vrot.slane %v2195_v12, 1  ;;  %v4073_v5 = vsel %vm3066_vm11, %v4072_v55, %v4071_v11  ;;  %1762 = vrot.lane.b32.xlu0 %v13693_v20, %s13692_s5  ;;  %1760 = vrot.lane.b32.xlu1 %v13694_v62, %s13692_s5  ;;  %v8504_v11 = vpop.permute.xlu0 %4415  ;;  %v13699_v4 = vld [vmem:[#allocation81_spill] sm:$0xff]  ;;  %s6886_s5 = smov 93  }
 0x26a   : > { %v4115_v37 = vsel %vm3066_vm11, %v4114_v53, %v4113_v31  ;;  %v4173_v54 = vsel %vm3066_vm11, %v4172_v26, %v4171_v21  ;;  %v4159_v14 = vsel %vm3066_vm11, %v4158_v59, %v4157_v34  ;;  %v4101_v41 = vsel %vm3066_vm11, %v4100_v16, %v4099_v17  ;;  %v8506_v42 = vpop.permute.xlu1 %2291  ;;  %v13695_v34 = vld [vmem:[#allocation68_spill] sm:$0xff]  ;;  %v13696_v17 = vld [vmem:[#allocation31_spill] sm:$0xff] }
 0x26b   : > { %v4201_v32 = vsel %vm3066_vm11, %v4200_v23, %v4199_v19  ;;  %v4187_v58 = vsel %vm3066_vm11, %v4186_v1, %v4185_v29  ;;  %v4188_v51 = vrot.slane %v2195_v12, 2  ;;  %v8496_v49 = vsel %vm3069_vm12, %v4088_v9, %v4087_v22 }
 0x26c   : > { %v8499_v44 = vsel %vm3069_vm12, %v4074_v6, %v4073_v5  ;;  %v8502_v46 = vsel %vm3069_vm12, %v4174_v24, %v4173_v54  ;;  %v8509_v50 = vsel %vm3069_vm12, %v4116_v40, %v4115_v37  ;;  %v8512_v10 = vsel %vm3069_vm12, %v4102_v56, %v4101_v41  ;;  %v13702_v56 = vld [vmem:[#allocation83_spill] sm:$0xff] }
 0x26d   : > { %v8515_v52 = vsel %vm3069_vm12, %v4160_v39, %v4159_v14  ;;  %v8518_v21 = vsel %vm3069_vm12, %v4202_v27, %v4201_v32  ;;  %v4419_v61 = vmul.f32 %v8504_v11, %v13695_v34  ;;  %v4423_v0 = vmul.f32 %v8504_v11, %v13603_v35  ;;  %1727 = vrot.lane.b32.xlu0 %v13698_v48, %s13697_s19  ;;  %v8541_v16 = vpop.permute.xlu0 %4339  ;;  %v13701_v27 = vld [vmem:[#allocation82_spill] sm:$0xff] }
 0x26e   : > { %v4427_v31 = vmul.f32 %v8504_v11, %v13583_v45  ;;  %v4431_v26 = vmul.f32 %v8504_v11, %v13696_v17  ;;  %1725 = vrot.lane.b32.xlu1 %v13699_v4, %s13697_s19  ;;  %vm2702_vm4 = vcmask 278528   ;;  %v4435_v19 = vmul.f32 %v8504_v11, %v13700_v57  ;;  %v8553_v40 = vpop.permute.xlu1 %2215  ;;  %s13744_s19 = smov 125  }
 0x26f   : > { %v4443_v55 = vmul.f32 %v8504_v11, %v13624_v33  ;;  %v4447_v59 = vmul.f32 %v8504_v11, %v13633_v30  ;;  %v4555_v53 = vrot.slane %v4419_v61, 1  ;;  %v4559_v12 = vrot.slane %v4423_v0, 1 }
 0x270   : > { %v4563_v29 = vrot.slane %v4427_v31, 1  ;;  %v8539_v23 = vsel %vm3069_vm12, %v4188_v51, %v4187_v58  ;;  %v4567_v1 = vrot.slane %v4431_v26, 1  ;;  %v4571_v60 = vrot.slane %v4435_v19, 1 }
 0x271   : > { %v4579_v18 = vrot.slane %v4443_v55, 1  ;;  %v2295_v9 = vmul.f32 %v8506_v42, %v13695_v34  ;;  %v4343_v24 = vmul.f32 %v8541_v16, %v13695_v34  ;;  %v4347_v6 = vmul.f32 %v8541_v16, %v13603_v35  ;;  %1769 = vrot.lane.b32.xlu0 %v13701_v27, %s13501_s14 }
 0x272   : > { %v4351_v22 = vmul.f32 %v8541_v16, %v13583_v45  ;;  %v4355_v39 = vmul.f32 %v8541_v16, %v13696_v17  ;;  %1767 = vrot.lane.b32.xlu1 %v13702_v56, %s13501_s14  ;;  %v4359_v5 = vmul.f32 %v8541_v16, %v13700_v57  ;;  %v4367_v37 = vmul.f32 %v8541_v16, %v13624_v33 }
 0x273   : > { %v4371_v54 = vmul.f32 %v8541_v16, %v13633_v30  ;;  %v4583_v14 = vrot.slane %v4447_v59, 1  ;;  %v8565_v20 = vadd.f32 %v4555_v53, %v4343_v24  ;;  %v8567_v62 = vadd.f32 %v4559_v12, %v4347_v6  ;;  %v13710_v12 = vld [vmem:[#allocation84_spill] sm:$0xff]  ;;  %v8604_v24 = vpop.permute.xlu0 %1426 }
 0x274   : > { %v8569_v41 = vadd.f32 %v4563_v29, %v4351_v22  ;;  %v8571_v32 = vadd.f32 %v4567_v1, %v4355_v39  ;;  %v8574_v51 = vadd.f32 %v4571_v60, %v4359_v5  ;;  %v8576_v61 = vadd.f32 %v4579_v18, %v4367_v37  ;;  %v13711_v29 = vld [vmem:[#allocation85_spill] sm:$0xff] }
 0x275   : > { %13703 = vst [vmem:[#allocation49_spill] sm:$0xff] %v8565_v20  ;;  %13704 = vst [vmem:[#allocation50_spill] sm:$0xff] %v8567_v62  ;;  %v2431_v0 = vrot.slane %v2295_v9, 1  ;;  %v8578_v31 = vadd.f32 %v4583_v14, %v4371_v54  ;;  %v4825_v26 = vsel %vm2702_vm4, %v8565_v20, -inf  ;;  %v4827_v48 = vsel %vm2702_vm4, %v8567_v62, -inf  ;;  %1734 = vrot.lane.b32.xlu0 %v13710_v12, %s13458_s18  ;;  %v13712_v22 = vld [vmem:[#allocation21_spill] sm:$0xff] }
 0x276   : > { %13705 = vst [vmem:[#allocation54_spill] sm:$0xff] %v8569_v41  ;;  %13706 = vst [vmem:[#allocation55_spill] sm:$0xff] %v8571_v32  ;;  %v2219_v4 = vmul.f32 %v8553_v40, %v13695_v34  ;;  %v4828_v19 = vmax.f32 %v4825_v26, %v4827_v48  ;;  %v4831_v55 = vsel %vm2702_vm4, %v8569_v41, -inf  ;;  %v4835_v59 = vsel %vm2702_vm4, %v8571_v32, -inf  ;;  %1732 = vrot.lane.b32.xlu1 %v13711_v29, %s13458_s18  ;;  %s13713_s18 = smov 54   ;;  %v13715_v12 = vld [vmem:[#allocation93_spill] sm:$0xff] }
 0x277   : > { %13707 = vst [vmem:[#allocation47_spill] sm:$0xff] %v8574_v51  ;;  %13708 = vst [vmem:[#allocation48_spill] sm:$0xff] %v8576_v61  ;;  %v4839_v53 = vsel %vm2702_vm4, %v8574_v51, -inf  ;;  %v4847_v1 = vsel %vm2702_vm4, %v8576_v61, -inf  ;;  %v2223_v34 = vmul.f32 %v8553_v40, %v13603_v35  ;;  %v2227_v60 = vmul.f32 %v8553_v40, %v13583_v45 }
 0x278   : > { %13709 = vst [vmem:[#allocation17_spill] sm:$0xff] %v8578_v31  ;;  %v2231_v18 = vmul.f32 %v8553_v40, %v13696_v17  ;;  %v4832_v9 = vmax.f32 %v4828_v19, %v4831_v55  ;;  %v2235_v6 = vmul.f32 %v8553_v40, %v13700_v57  ;;  %v2239_v39 = vmul.f32 %v8553_v40, %v13712_v22  ;;  %v13714_v55 = vld [vmem:[#allocation89_spill] sm:$0xff] }
 0x279   : > { %v2243_v27 = vmul.f32 %v8553_v40, %v13624_v33  ;;  %v2247_v56 = vmul.f32 %v8553_v40, %v13633_v30  ;;  %v2299_v5 = vmul.f32 %v8506_v42, %v13603_v35  ;;  %v2303_v37 = vmul.f32 %v8506_v42, %v13583_v45  ;;  %1776 = vrot.lane.b32.xlu0 %v13714_v55, %s13713_s18 }
 0x27a   : > { %v2307_v54 = vmul.f32 %v8506_v42, %v13696_v17  ;;  %v4836_v14 = vmax.f32 %v4832_v9, %v4835_v59  ;;  %v2311_v26 = vmul.f32 %v8506_v42, %v13700_v57  ;;  %v2315_v48 = vmul.f32 %v8506_v42, %v13712_v22  ;;  %1774 = vrot.lane.b32.xlu1 %v13715_v12, %s13713_s18 }
 0x27b   : > { %v2319_v19 = vmul.f32 %v8506_v42, %v13624_v33  ;;  %v2323_v35 = vmul.f32 %v8506_v42, %v13633_v30  ;;  %v2327_v45 = vmul.f32 %v8506_v42, %v8604_v24  ;;  %v2435_v17 = vrot.slane %v2299_v5, 1  ;;  %v13721_v5 = vld [vmem:[#allocation86_spill] sm:$0xff] }
 0x27c   : > { %v2439_v59 = vrot.slane %v2303_v37, 1  ;;  %v4840_v57 = vmax.f32 %v4836_v14, %v4839_v53  ;;  %v2443_v29 = vrot.slane %v2307_v54, 1  ;;  %v2447_v9 = vrot.slane %v2311_v26, 1 }
 0x27d   : > { %v2451_v15 = vrot.slane %v2315_v48, 1  ;;  %v2455_v58 = vrot.slane %v2319_v19, 1  ;;  %v2459_v33 = vrot.slane %v2323_v35, 1  ;;  %v2463_v47 = vrot.slane %v2327_v45, 1  ;;  %1783 = vrot.lane.b32.xlu0 %v13721_v5, %s13720_s15  ;;  %v13729_v48 = vld [vmem:[#allocation94_spill] sm:$0xff]  ;;  %v13730_v45 = vld [vmem:[#allocation95_spill] sm:$0xff] }
 0x27e   : > { %v8634_v61 = vadd.f32 %v2431_v0, %v2219_v4  ;;  %v4844_v55 = vmax.f32 %v4840_v57, %v4847_v1  ;;  %v8636_v51 = vadd.f32 %v2435_v17, %v2223_v34  ;;  %v8638_v30 = vadd.f32 %v2439_v59, %v2227_v60  ;;  %v13725_v0 = vld [vmem:[#allocation87_spill] sm:$0xff]  ;;  %v13731_v57 = vld [vmem:[#allocation25_spill] sm:$0xff]  ;;  %v13733_v5 = vld [vmem:[#allocation32_spill] sm:$0xff] }
 0x27f   : > { %v8640_v32 = vadd.f32 %v2443_v29, %v2231_v18  ;;  %v2251_v53 = vmul.f32 %v8553_v40, %v8604_v24  ;;  %v8646_v37 = vadd.f32 %v2447_v9, %v2235_v6  ;;  %v8648_v54 = vadd.f32 %v2451_v15, %v2239_v39  ;;  %1781 = vrot.lane.b32.xlu1 %v13725_v0, %s13720_s15  ;;  %s14620_s15 = sld [smem:[#allocation167_spill]] (%p7016_p8) }
 0x280   : > { %13716 = vst [vmem:[#allocation51_spill] sm:$0xff] %v8634_v61  ;;  %13717 = vst [vmem:[#allocation52_spill] sm:$0xff] %v8636_v51  ;;  %v8650_v14 = vadd.f32 %v2455_v58, %v2243_v27  ;;  %v4851_v4 = vsel %vm2702_vm4, %v8578_v31, -inf  ;;  %v8656_v1 = vadd.f32 %v2459_v33, %v2247_v56  ;;  %v2703_v34 = vsel %vm2702_vm4, %v8634_v61, -inf }
 0x281   : > { %13718 = vst [vmem:[#allocation18_spill] sm:$0xff] %v8638_v30  ;;  %13719 = vst [vmem:[#allocation57_spill] sm:$0xff] %v8640_v32  ;;  %v2705_v60 = vsel %vm2702_vm4, %v8636_v51, -inf  ;;  %v8665_v15 = vsel %vm13304_vm15, %v8481_v3, %v8479_v63  ;;  %v4848_v58 = vmax.f32 %v4844_v55, %v4851_v4  ;;  %v8667_v18 = vadd.f32 %v2463_v47, %v2251_v53  ;;  %v13732_v55 = vld [vmem:[#allocation15_spill] sm:$0xff]  ;;  %v13734_v4 = vld [vmem:[#allocation34_spill] sm:$0xff] }
 0x282   : > { %13722 = vst [vmem:[#allocation58_spill] sm:$0xff] %v8646_v37  ;;  %13723 = vst [vmem:[#allocation61_spill] sm:$0xff] %v8648_v54  ;;  %v2706_v6 = vmax.f32 %v2703_v34, %v2705_v60  ;;  %v2709_v39 = vsel %vm2702_vm4, %v8638_v30, -inf  ;;  %v2713_v27 = vsel %vm2702_vm4, %v8640_v32, -inf  ;;  %v2717_v56 = vsel %vm2702_vm4, %v8646_v37, -inf  ;;  %1790 = vrot.lane.b32.xlu0 %v13729_v48, %s13728_s4  ;;  %v13735_v60 = vld [vmem:[#allocation22_spill] sm:$0xff] }
 0x283   : > { %13724 = vst [vmem:[#allocation62_spill] sm:$0xff] %v8650_v14  ;;  %13726 = vst [vmem:[#allocation69_spill] sm:$0xff] %v8656_v1  ;;  %v2721_v26 = vsel %vm2702_vm4, %v8648_v54, -inf  ;;  %v2725_v47 = vsel %vm2702_vm4, %v8650_v14, -inf  ;;  %v4363_v19 = vmul.f32 %v8541_v16, %v13712_v22  ;;  %v4439_v35 = vmul.f32 %v8504_v11, %v13712_v22  ;;  %1788 = vrot.lane.b32.xlu1 %v13730_v45, %s13728_s4 }
 0x284   : > { %13727 = vst [vmem:[#allocation70_spill] sm:$0xff] %v8667_v18  ;;  %v2710_v3 = vmax.f32 %v2706_v6, %v2709_v39  ;;  %v2729_v17 = vsel %vm2702_vm4, %v8656_v1, -inf  ;;  %v4375_v59 = vmul.f32 %v8541_v16, %v8604_v24  ;;  %v4451_v12 = vmul.f32 %v8504_v11, %v8604_v24  ;;  %v13738_v1 = vld [vmem:[#allocation42_spill] sm:$0xff] }
 0x285   : > { %v2222_v29 = vmul.f32 %v8553_v40, %v13731_v57  ;;  %vm2634_vm10 = vcmask 1040664   ;;  %v4575_v33 = vrot.slane %v4439_v35, 1  ;;  %v2226_v22 = vmul.f32 %v8553_v40, %v13732_v55 }
 0x286   : > { %v2714_v9 = vmax.f32 %v2710_v3, %v2713_v27  ;;  %v2230_v53 = vmul.f32 %v8553_v40, %v13733_v5  ;;  %v4587_v0 = vrot.slane %v4451_v12, 1  ;;  %v2234_v34 = vmul.f32 %v8553_v40, %v13734_v4  ;;  %4034 = vrot.lane.b32.xlu0 %v8389_v36, %s6886_s5 }
 0x287   : > { %v2238_v6 = vmul.f32 %v8553_v40, %v13735_v60  ;;  %v2298_v39 = vmul.f32 %v8506_v42, %v13731_v57  ;;  %v8707_v48 = vadd.f32 %v4575_v33, %v4363_v19  ;;  %v2302_v3 = vmul.f32 %v8506_v42, %v13732_v55  ;;  %4032 = vrot.lane.b32.xlu1 %v8392_v25, %s6886_s5 }
 0x288   : > { %v2718_v27 = vmax.f32 %v2714_v9, %v2717_v56  ;;  %v2306_v35 = vmul.f32 %v8506_v42, %v13733_v5  ;;  %v8715_v45 = vadd.f32 %v4587_v0, %v4375_v59  ;;  %v2310_v12 = vmul.f32 %v8506_v42, %v13734_v4 }
 0x289   : > { %13736 = vst [vmem:[#allocation60_spill] sm:$0xff] %v8707_v48  ;;  %v2314_v36 = vmul.f32 %v8506_v42, %v13735_v60  ;;  %v2318_v56 = vmul.f32 %v8506_v42, %v8181_v2  ;;  %v4843_v9 = vsel %vm2702_vm4, %v8707_v48, -inf  ;;  %v2242_v33 = vmul.f32 %v8553_v40, %v8181_v2 }
 0x28a   : > { %13737 = vst [vmem:[#allocation59_spill] sm:$0xff] %v8715_v45  ;;  %v2722_v19 = vmax.f32 %v2718_v27, %v2721_v26  ;;  %v2322_v25 = vmul.f32 %v8506_v42, %v13738_v1  ;;  %v4852_v59 = vmax.f32 %v4848_v58, %v4843_v9  ;;  %v2246_v0 = vmul.f32 %v8553_v40, %v13738_v1 }
 0x28b   : > { %v2434_v14 = vrot.slane %v2298_v39, 1  ;;  %v2438_v54 = vrot.slane %v2302_v3, 1  ;;  %4038 = vrot.lane.b32.xlu0 %v8396_v43, %s6886_s5  ;;  %v4855_v26 = vsel %vm2702_vm4, %v8715_v45, -inf  ;;  %v2442_v27 = vrot.slane %v2306_v35, 1  ;;  %4036 = vrot.lane.b32.xlu1 %v8404_v7, %s6886_s5 }
 0x28c   : > { %v2726_v37 = vmax.f32 %v2722_v19, %v2725_v47  ;;  %v2446_v32 = vrot.slane %v2310_v12, 1  ;;  %v2450_v30 = vrot.slane %v2314_v36, 1  ;;  %v2454_v51 = vrot.slane %v2318_v56, 1 }
 0x28d   : > { %v8737_v58 = vadd.f32 %v2434_v14, %v2222_v29  ;;  %v8739_v9 = vadd.f32 %v2438_v54, %v2226_v22  ;;  %v2458_v3 = vrot.slane %v2322_v25, 1  ;;  %v8741_v61 = vadd.f32 %v2442_v27, %v2230_v53  ;;  %v13745_v14 = vld [vmem:[#allocation106_spill] sm:$0xff]  ;;  %v13748_v29 = vld [vmem:[#allocation107_spill] sm:$0xff] }
 0x28e   : > { %v2730_v39 = vmax.f32 %v2726_v37, %v2729_v17  ;;  %v8743_v43 = vadd.f32 %v2446_v32, %v2234_v34  ;;  %v2733_v35 = vsel %vm2702_vm4, %v8667_v18, -inf  ;;  %v8748_v12 = vmax.f32 %v4852_v59, %v4855_v26 }
 0x28f   : > { %13739 = vst [vmem:[#allocation71_spill] sm:$0xff] %v8737_v58  ;;  %13740 = vst [vmem:[#allocation72_spill] sm:$0xff] %v8739_v9  ;;  %v8750_v7 = vadd.f32 %v2450_v30, %v2238_v6  ;;  %1797 = vrot.lane.b32.xlu0 %v13745_v14, %s13744_s19  ;;  %v8754_v54 = vadd.f32 %v2454_v51, %v2242_v33  ;;  %v8756_v37 = vadd.f32 %v2458_v3, %v2246_v0  ;;  %v1425_v0 = vpop.permute.xlu1 %1424  ;;  %vm13882_vm3 = vcmask 515072  }
 0x290   : > { %13741 = vst [vmem:[#allocation73_spill] sm:$0xff] %v8741_v61  ;;  %13742 = vst [vmem:[#allocation75_spill] sm:$0xff] %v8743_v43  ;;  %v8760_v32 = vsel %vm2634_vm10, %v8737_v58, -inf  ;;  %v8764_v17 = vsel %vm2634_vm10, %v8739_v9, -inf  ;;  %1795 = vrot.lane.b32.xlu1 %v13748_v29, %s13744_s19  ;;  %v8768_v30 = vmax.f32 %v2730_v39, %v2733_v35  ;;  %v8772_v22 = vsel %vm2634_vm10, %v8741_v61, -inf }
 0x291   : > { %13743 = vst [vmem:[#allocation76_spill] sm:$0xff] %v8750_v7  ;;  %13746 = vst [vmem:[#allocation63_spill] sm:$0xff] %v8754_v54  ;;  %v8776_v51 = vsel %vm2634_vm10, %v8743_v43, -inf  ;;  %v4346_v53 = vmul.f32 %v8541_v16, %v13731_v57  ;;  %v4350_v34 = vmul.f32 %v8541_v16, %v13732_v55  ;;  %v4354_v6 = vmul.f32 %v8541_v16, %v13733_v5 }
 0x292   : > { %13747 = vst [vmem:[#allocation64_spill] sm:$0xff] %v8756_v37  ;;  %v4358_v36 = vmul.f32 %v8541_v16, %v13734_v4  ;;  %v4362_v56 = vmul.f32 %v8541_v16, %v13735_v60  ;;  %v4366_v19 = vmul.f32 %v8541_v16, %v8181_v2  ;;  %v4422_v33 = vmul.f32 %v8504_v11, %v13731_v57 }
 0x293   : > { %v4426_v25 = vmul.f32 %v8504_v11, %v13732_v55  ;;  %v4430_v59 = vmul.f32 %v8504_v11, %v13733_v5  ;;  %4042 = vrot.lane.b32.xlu0 %v8307_v38, %s6886_s5  ;;  %v4434_v26 = vmul.f32 %v8504_v11, %v13734_v4  ;;  %v4438_v27 = vmul.f32 %v8504_v11, %v13735_v60 }
 0x294   : > { %v4442_v39 = vmul.f32 %v8504_v11, %v8181_v2  ;;  %v4446_v57 = vmul.f32 %v8504_v11, %v13738_v1  ;;  %4040 = vrot.lane.b32.xlu1 %v8450_v8, %s6886_s5  ;;  %v4370_v55 = vmul.f32 %v8541_v16, %v13738_v1  ;;  %v4558_v5 = vrot.slane %v4422_v33, 1 }
 0x295   : > { %v4562_v38 = vrot.slane %v4426_v25, 1  ;;  %v4566_v3 = vrot.slane %v4430_v59, 1  ;;  %v4570_v35 = vrot.slane %v4434_v26, 1  ;;  %v4574_v4 = vrot.slane %v4438_v27, 1 }
 0x296   : > { %v4578_v14 = vrot.slane %v4442_v39, 1  ;;  %v1489_v60 = vsel %vm13304_vm15, %v1425_v0, %v8604_v24  ;;  %v4582_v29 = vrot.slane %v4446_v57, 1  ;;  %v8812_v2 = vadd.f32 %v4558_v5, %v4346_v53 }
 0x297   : > { %v8814_v47 = vadd.f32 %v4562_v38, %v4350_v34  ;;  %v8816_v43 = vadd.f32 %v4566_v3, %v4354_v6  ;;  %4120 = vrot.lane.b32.xlu0 %v8496_v49, %s6886_s5  ;;  %v8822_v8 = vsel %vm2634_vm10, %v8750_v7, -inf  ;;  %v8824_v1 = vadd.f32 %v4570_v35, %v4358_v36  ;;  %v13756_v34 = vld [vmem:[#allocation67_spill] sm:$0xff] }
 0x298   : > { %13749 = vst [vmem:[#allocation74_spill] sm:$0xff] %v8812_v2  ;;  %v8826_v33 = vadd.f32 %v4574_v4, %v4362_v56  ;;  %v8828_v25 = vadd.f32 %v4578_v14, %v4366_v19  ;;  %4118 = vrot.lane.b32.xlu1 %v8499_v44, %s6886_s5  ;;  %v8834_v24 = vsel %vm2634_vm10, %v8754_v54, -inf  ;;  %v8838_v49 = vsel %vm2634_vm10, %v8756_v37, -inf }
 0x299   : > { %13750 = vst [vmem:[#allocation77_spill] sm:$0xff] %v8814_v47  ;;  %13751 = vst [vmem:[#allocation78_spill] sm:$0xff] %v8816_v43  ;;  %v8840_v53 = vadd.f32 %v4582_v29, %v4370_v55  ;;  %v2218_v6 = vmul.f32 %v8553_v40, %v13756_v34  ;;  %v4760_v36 = vsel %vm2634_vm10, %v8812_v2, -inf  ;;  %v4764_v56 = vsel %vm2634_vm10, %v8814_v47, -inf  ;;  %v13758_v29 = vld [vmem:[#allocation27_spill] sm:$0xff] }
 0x29a   : > { %13752 = vst [vmem:[#allocation79_spill] sm:$0xff] %v8824_v1  ;;  %13753 = vst [vmem:[#allocation68_spill] sm:$0xff] %v8826_v33  ;;  %v8850_v44 = vsel %vm2634_vm10, %v8816_v43, -inf  ;;  %v2250_v19 = vmul.f32 %v8553_v40, %v1489_v60  ;;  %v8855_v59 = vsel %vm2634_vm10, %v8824_v1, -inf  ;;  %v8859_v0 = vsel %vm2634_vm10, %v8826_v33, -inf  ;;  %v13759_v33 = vld [vmem:[#allocation29_spill] sm:$0xff] }
 0x29b   : > { %13754 = vst [vmem:[#allocation31_spill] sm:$0xff] %v8828_v25  ;;  %13755 = vst [vmem:[#allocation80_spill] sm:$0xff] %v8840_v53  ;;  %v2294_v26 = vmul.f32 %v8506_v42, %v13756_v34  ;;  %v2326_v27 = vmul.f32 %v8506_v42, %v1489_v60  ;;  %4124 = vrot.lane.b32.xlu0 %v8509_v50, %s6886_s5  ;;  %v8868_v39 = vsel %vm2634_vm10, %v8828_v25, -inf  ;;  %v13757_v50 = vld [vmem:[#allocation13_spill] sm:$0xff] }
 0x29c   : > { %v4342_v57 = vmul.f32 %v8541_v16, %v13756_v34  ;;  %v4418_v55 = vmul.f32 %v8504_v11, %v13756_v34  ;;  %v4450_v5 = vmul.f32 %v8504_v11, %v1489_v60  ;;  %4122 = vrot.lane.b32.xlu1 %v8512_v10, %s6886_s5  ;;  %v4374_v35 = vmul.f32 %v8541_v16, %v1489_v60  ;;  %v13760_v34 = vld [vmem:[#allocation19_spill] sm:$0xff]  ;;  %v13763_v60 = vld [vmem:[#allocation40_spill] sm:$0xff] }
 0x29d   : > { %v2430_v38 = vrot.slane %v2294_v26, 1  ;;  %v2462_v3 = vrot.slane %v2326_v27, 1  ;;  %v4345_v4 = vmul.f32 %v8541_v16, %v13757_v50  ;;  %v4349_v25 = vmul.f32 %v8541_v16, %v13758_v29  ;;  %v13762_v26 = vld [vmem:[#allocation35_spill] sm:$0xff] }
 0x29e   : > { %v4554_v14 = vrot.slane %v4418_v55, 1  ;;  %v4353_v1 = vmul.f32 %v8541_v16, %v13759_v33  ;;  %v4357_v43 = vmul.f32 %v8541_v16, %v13760_v34  ;;  %v4586_v10 = vrot.slane %v4450_v5, 1 }
 0x29f   : > { %v8886_v47 = vadd.f32 %v2430_v38, %v2218_v6  ;;  %v4361_v27 = vmul.f32 %v8541_v16, %v13762_v26  ;;  %v4365_v2 = vmul.f32 %v8541_v16, %v13763_v60  ;;  %4208 = vrot.lane.b32.xlu0 %v8502_v46, %s6886_s5  ;;  %v8894_v55 = vadd.f32 %v2462_v3, %v2250_v19  ;;  %v13766_v38 = vld [vmem:[#allocation41_spill] sm:$0xff] }
 0x2a0   : > { %v8896_v54 = vadd.f32 %v4554_v14, %v4342_v57  ;;  %v4421_v7 = vmul.f32 %v8504_v11, %v13757_v50  ;;  %v4425_v6 = vmul.f32 %v8504_v11, %v13758_v29  ;;  %4206 = vrot.lane.b32.xlu1 %v8515_v52, %s6886_s5  ;;  %v4369_v61 = vmul.f32 %v8541_v16, %v13766_v38  ;;  %v13767_v14 = vld [vmem:[#allocation23_spill] sm:$0xff] }
 0x2a1   : > { %13761 = vst [vmem:[#allocation81_spill] sm:$0xff] %v8886_v47  ;;  %13764 = vst [vmem:[#allocation33_spill] sm:$0xff] %v8894_v55  ;;  %v2635_v5 = vsel %vm2634_vm10, %v8886_v47, -inf  ;;  %v4429_v46 = vmul.f32 %v8504_v11, %v13759_v33  ;;  %v4433_v19 = vmul.f32 %v8504_v11, %v13760_v34  ;;  %v4373_v52 = vmul.f32 %v8541_v16, %v13767_v14 }
 0x2a2   : > { %13765 = vst [vmem:[#allocation82_spill] sm:$0xff] %v8896_v54  ;;  %v2638_v57 = vmax.f32 %v2635_v5, %v8760_v32  ;;  %v4758_v3 = vsel %vm2634_vm10, %v8896_v54, -inf  ;;  %v4437_v9 = vmul.f32 %v8504_v11, %v13762_v26  ;;  %v4441_v47 = vmul.f32 %v8504_v11, %v13763_v60 }
 0x2a3   : > { %v4761_v58 = vmax.f32 %v4758_v3, %v4760_v36  ;;  %v4445_v31 = vmul.f32 %v8504_v11, %v13766_v38  ;;  %v4449_v48 = vmul.f32 %v8504_v11, %v13767_v14  ;;  %4212 = vrot.lane.b32.xlu0 %v8518_v21, %s6886_s5  ;;  %v8928_v5 = vadd.f32 %v4586_v10, %v4374_v35 }
 0x2a4   : > { %v2642_v32 = vmax.f32 %v2638_v57, %v8764_v17  ;;  %v4557_v54 = vrot.slane %v4421_v7, 1  ;;  %v4561_v41 = vrot.slane %v4425_v6, 1  ;;  %4210 = vrot.lane.b32.xlu1 %v8539_v23, %s6886_s5  ;;  %v4565_v3 = vrot.slane %v4429_v46, 1 }
 0x2a5   : > { %13768 = vst [vmem:[#allocation83_spill] sm:$0xff] %v8928_v5  ;;  %v4765_v36 = vmax.f32 %v4761_v58, %v4764_v56  ;;  %v4569_v62 = vrot.slane %v4433_v19, 1  ;;  %v4573_v20 = vrot.slane %v4437_v9, 1  ;;  %v4577_v37 = vrot.slane %v4441_v47, 1 }
 0x2a6   : > { %v2646_v28 = vmax.f32 %v2642_v32, %v8772_v22  ;;  %v4581_v45 = vrot.slane %v4445_v31, 1  ;;  %v8933_v18 = vadd.f32 %v4557_v54, %v4345_v4  ;;  %v4585_v17 = vrot.slane %v4449_v48, 1 }
 0x2a7   : > { %v4769_v21 = vmax.f32 %v4765_v36, %v8850_v44  ;;  %v8936_v35 = vadd.f32 %v4561_v41, %v4349_v25  ;;  %v8938_v7 = vadd.f32 %v4565_v3, %v4353_v1  ;;  %4128 = vrot.lane.b32.xlu0 %v8479_v63, %s6886_s5  ;;  %v8943_v58 = vadd.f32 %v4569_v62, %v4357_v43 }
 0x2a8   : > { %13769 = vst [vmem:[#allocation84_spill] sm:$0xff] %v8933_v18  ;;  %v2650_v23 = vmax.f32 %v2646_v28, %v8776_v51  ;;  %v8945_v9 = vadd.f32 %v4573_v20, %v4361_v27  ;;  %v8947_v47 = vadd.f32 %v4577_v37, %v4365_v2  ;;  %4126 = vrot.lane.b32.xlu1 %v8665_v15, %s6886_s5  ;;  %v4826_v48 = vsel %vm2702_vm4, %v8933_v18, -inf  ;;  %v8976_v51 = vpop.permute.xlu0 %1430  ;;  %v8978_v2 = vpop.permute.xlu1 %1428 }
 0x2a9   : > { %13770 = vst [vmem:[#allocation85_spill] sm:$0xff] %v8936_v35  ;;  %13771 = vst [vmem:[#allocation21_spill] sm:$0xff] %v8938_v7  ;;  %v4773_v31 = vmax.f32 %v4769_v21, %v8855_v59  ;;  %v8952_v41 = vadd.f32 %v4581_v45, %v4369_v61  ;;  %v4829_v54 = vsel %vm2702_vm4, %v8936_v35, -inf  ;;  %v8960_v28 = vsel %vm2634_vm10, %v8840_v53, -inf  ;;  %v13780_v21 = vld [vmem:[#allocation66_spill] sm:$0xff] }
 0x2aa   : > { %13772 = vst [vmem:[#allocation89_spill] sm:$0xff] %v8943_v58  ;;  %13773 = vst [vmem:[#allocation93_spill] sm:$0xff] %v8945_v9  ;;  %v2654_v20 = vmax.f32 %v2650_v23, %v8822_v8  ;;  %v8965_v62 = vsel %vm2634_vm10, %v8894_v55, -inf  ;;  %v4830_v43 = vmax.f32 %v4826_v48, %v4829_v54  ;;  %v8970_v45 = vsel %vm2634_vm10, %v8928_v5, -inf }
 0x2ab   : > { %13774 = vst [vmem:[#allocation86_spill] sm:$0xff] %v8947_v47  ;;  %13775 = vst [vmem:[#allocation87_spill] sm:$0xff] %v8952_v41  ;;  %v4777_v61 = vmax.f32 %v4773_v31, %v8859_v0  ;;  %v8972_v37 = vadd.f32 %v4585_v17, %v4373_v52  ;;  %v4833_v22 = vsel %vm2702_vm4, %v8938_v7, -inf  ;;  %v13777_v8 = vrot.slane %v8479_v63, 1  ;;  %v13779_v52 = vld [vmem:[#allocation65_spill] sm:$0xff] }
 0x2ac   : > { %v2658_v1 = vmax.f32 %v2654_v20, %v8834_v24  ;;  %v4834_v25 = vmax.f32 %v4830_v43, %v4833_v22  ;;  %v4837_v56 = vsel %vm2702_vm4, %v8943_v58, -inf  ;;  %v4841_v44 = vsel %vm2702_vm4, %v8945_v9, -inf  ;;  %v9028_v54 = vpop.permute.xlu0 %1434  ;;  %v13781_v22 = vld [vmem:[#allocation88_spill] sm:$0xff] }
 0x2ad   : > { %13776 = vst [vmem:[#allocation94_spill] sm:$0xff] %v8972_v37  ;;  %4216 = vrot.lane.b32.xlu0 %v13777_v8, %s6886_s5  ;;  %v13778_v59 = vrot.slane %v8665_v15, 1  ;;  %v4781_v0 = vmax.f32 %v4777_v61, %v8868_v39  ;;  %v4845_v4 = vsel %vm2702_vm4, %v8947_v47, -inf  ;;  %v4849_v63 = vsel %vm2702_vm4, %v8952_v41, -inf }
 0x2ae   : > { %v2221_v24 = vmul.f32 %v8553_v40, %v13757_v50  ;;  %v4838_v10 = vmax.f32 %v4834_v25, %v4837_v56  ;;  %v2225_v27 = vmul.f32 %v8553_v40, %v13758_v29  ;;  %v2229_v6 = vmul.f32 %v8553_v40, %v13759_v33  ;;  %v13782_v56 = vld [vmem:[#allocation90_spill] sm:$0xff] }
 0x2af   : > { %4214 = vrot.lane.b32.xlu1 %v13778_v59, %s6886_s5  ;;  %v2233_v15 = vmul.f32 %v8553_v40, %v13760_v34  ;;  %v2662_v39 = vmax.f32 %v2658_v1, %v8838_v49  ;;  %v4785_v46 = vmax.f32 %v4781_v0, %v8960_v28  ;;  %v2237_v19 = vmul.f32 %v8553_v40, %v13762_v26 }
 0x2b0   : > { %v2241_v57 = vmul.f32 %v8553_v40, %v13763_v60  ;;  %v4842_v32 = vmax.f32 %v4838_v10, %v4841_v44  ;;  %v2245_v36 = vmul.f32 %v8553_v40, %v13766_v38  ;;  %v2297_v3 = vmul.f32 %v8506_v42, %v13757_v50  ;;  %v9030_v50 = vpop.permute.xlu1 %1432 }
 0x2b1   : > { %1557 = vrot.lane.b32.xlu0 %v13779_v52, %s13492_s0  ;;  %v2301_v49 = vmul.f32 %v8506_v42, %v13758_v29  ;;  %v2249_v17 = vmul.f32 %v8553_v40, %v13767_v14  ;;  %v2305_v23 = vmul.f32 %v8506_v42, %v13759_v33  ;;  %v2309_v31 = vmul.f32 %v8506_v42, %v13760_v34 }
 0x2b2   : > { %v2313_v48 = vmul.f32 %v8506_v42, %v13762_v26  ;;  %v4846_v29 = vmax.f32 %v4842_v32, %v4845_v4  ;;  %v2317_v28 = vmul.f32 %v8506_v42, %v13763_v60  ;;  %v2321_v20 = vmul.f32 %v8506_v42, %v13766_v38 }
 0x2b3   : > { %1555 = vrot.lane.b32.xlu1 %v13780_v21, %s13492_s0  ;;  %v2325_v33 = vmul.f32 %v8506_v42, %v13767_v14  ;;  %v2329_v34 = vmul.f32 %v8506_v42, %v8976_v51  ;;  %v2433_v43 = vrot.slane %v2297_v3, 1  ;;  %v2437_v61 = vrot.slane %v2301_v49, 1  ;;  %v9064_v21 = vpop.permute.xlu0 %1438 }
 0x2b4   : > { %v2441_v26 = vrot.slane %v2305_v23, 1  ;;  %v9042_v8 = vmax.f32 %v4846_v29, %v4849_v63  ;;  %v2445_v1 = vrot.slane %v2309_v31, 1  ;;  %v2449_v25 = vrot.slane %v2313_v48, 1  ;;  %v13791_v23 = vld [vmem:[#allocation91_spill] sm:$0xff] }
 0x2b5   : > { %1629 = vrot.lane.b32.xlu0 %v13781_v22, %s13498_s2  ;;  %v2453_v60 = vrot.slane %v2317_v28, 1  ;;  %v2457_v38 = vrot.slane %v2321_v20, 1  ;;  %v2461_v44 = vrot.slane %v2325_v33, 1  ;;  %v2465_v14 = vrot.slane %v2329_v34, 1  ;;  %v13793_v34 = vld [vmem:[#allocation97_spill] sm:$0xff]  ;;  %v13795_v22 = vld [vmem:[#allocation28_spill] sm:$0xff] }
 0x2b6   : > { %v9046_v59 = vadd.f32 %v2433_v43, %v2221_v24  ;;  %v2253_v0 = vmul.f32 %v8553_v40, %v8976_v51  ;;  %v9050_v4 = vadd.f32 %v2437_v61, %v2225_v27  ;;  %v9052_v10 = vadd.f32 %v2441_v26, %v2229_v6  ;;  %v9066_v24 = vpop.permute.xlu1 %1436  ;;  %v13794_v61 = vld [vmem:[#allocation14_spill] sm:$0xff] }
 0x2b7   : > { %1627 = vrot.lane.b32.xlu1 %v13782_v56, %s13498_s2  ;;  %v9054_v63 = vadd.f32 %v2445_v1, %v2233_v15  ;;  %v9056_v52 = vadd.f32 %v2449_v25, %v2237_v19  ;;  %v9058_v32 = vadd.f32 %v2453_v60, %v2241_v57  ;;  %v9060_v3 = vadd.f32 %v2457_v38, %v2245_v36  ;;  %v13792_v57 = vld [vmem:[#allocation92_spill] sm:$0xff]  ;;  %v13796_v1 = vld [vmem:[#allocation30_spill] sm:$0xff] }
 0x2b8   : > { %13783 = vst [vmem:[#allocation95_spill] sm:$0xff] %v9046_v59  ;;  %13784 = vst [vmem:[#allocation25_spill] sm:$0xff] %v9050_v4  ;;  %v9062_v49 = vadd.f32 %v2461_v44, %v2249_v17  ;;  %v9071_v27 = vmax.f32 %v2662_v39, %v8965_v62  ;;  %v9075_v6 = vsel %vm2702_vm4, %v8972_v37, -inf  ;;  %v2704_v15 = vsel %vm2702_vm4, %v9046_v59, -inf  ;;  %v13797_v60 = vld [vmem:[#allocation98_spill] sm:$0xff]  ;;  %v13798_v44 = vld [vmem:[#allocation20_spill] sm:$0xff] }
 0x2b9   : > { %13785 = vst [vmem:[#allocation15_spill] sm:$0xff] %v9052_v10  ;;  %13786 = vst [vmem:[#allocation32_spill] sm:$0xff] %v9054_v63  ;;  %1566 = vrot.lane.b32.xlu0 %v13791_v23, %s13505_s13  ;;  %v2707_v19 = vsel %vm2702_vm4, %v9050_v4, -inf  ;;  %v9084_v36 = vmax.f32 %v4785_v46, %v8970_v45  ;;  %v4854_v62 = vmax.f32 %v9042_v8, %v9075_v6  ;;  %v2711_v31 = vsel %vm2702_vm4, %v9052_v10, -inf  ;;  %v9122_v6 = vpop.permute.xlu0 %1442  ;;  %v13805_v10 = vld [vmem:[#allocation100_spill] sm:$0xff] }
 0x2ba   : > { %13787 = vst [vmem:[#allocation34_spill] sm:$0xff] %v9056_v52  ;;  %13788 = vst [vmem:[#allocation22_spill] sm:$0xff] %v9058_v32  ;;  %v9088_v39 = vadd.f32 %v2465_v14, %v2253_v0  ;;  %v2708_v17 = vmax.f32 %v2704_v15, %v2707_v19  ;;  %v2715_v48 = vsel %vm2702_vm4, %v9054_v63, -inf  ;;  %v2719_v29 = vsel %vm2702_vm4, %v9056_v52, -inf  ;;  %v13799_v0 = vld [vmem:[#allocation36_spill] sm:$0xff]  ;;  %v9124_v15 = vpop.permute.xlu1 %1440  ;;  %v13804_v63 = vld [vmem:[#allocation45_spill] sm:$0xff] }
 0x2bb   : > { %13789 = vst [vmem:[#allocation42_spill] sm:$0xff] %v9060_v3  ;;  %13790 = vst [vmem:[#allocation106_spill] sm:$0xff] %v9062_v49  ;;  %1564 = vrot.lane.b32.xlu1 %v13792_v57, %s13505_s13  ;;  %v2723_v28 = vsel %vm2702_vm4, %v9058_v32, -inf  ;;  %v2727_v46 = vsel %vm2702_vm4, %v9060_v3, -inf  ;;  %v9102_v20 = vsel %vm2702_vm4, %v9062_v49, -inf  ;;  %v4453_v33 = vmul.f32 %v8504_v11, %v8976_v51  ;;  %v13801_v49 = vld [vmem:[#allocation99_spill] sm:$0xff] }
 0x2bc   : > { %v2712_v45 = vmax.f32 %v2708_v17, %v2711_v31  ;;  %v4377_v43 = vmul.f32 %v8541_v16, %v8976_v51  ;;  %v2220_v26 = vmul.f32 %v8553_v40, %v13794_v61  ;;  %v2224_v8 = vmul.f32 %v8553_v40, %v13795_v22  ;;  %v13803_v32 = vld [vmem:[#allocation39_spill] sm:$0xff] }
 0x2bd   : > { %1638 = vrot.lane.b32.xlu0 %v13793_v34, %s13473_s20  ;;  %v2228_v25 = vmul.f32 %v8553_v40, %v13796_v1  ;;  %v4589_v38 = vrot.slane %v4453_v33, 1  ;;  %v2232_v14 = vmul.f32 %v8553_v40, %v13798_v44  ;;  %v2236_v23 = vmul.f32 %v8553_v40, %v13799_v0  ;;  %v9160_v18 = vpop.permute.xlu0 %1446 }
 0x2be   : > { %v2716_v56 = vmax.f32 %v2712_v45, %v2715_v48  ;;  %v2296_v19 = vmul.f32 %v8506_v42, %v13794_v61  ;;  %v2300_v57 = vmul.f32 %v8506_v42, %v13795_v22  ;;  %v2304_v17 = vmul.f32 %v8506_v42, %v13796_v1  ;;  %v13800_v45 = vld [vmem:[#allocation38_spill] sm:$0xff] }
 0x2bf   : > { %1636 = vrot.lane.b32.xlu1 %v13797_v60, %s13473_s20  ;;  %v2308_v31 = vmul.f32 %v8506_v42, %v13798_v44  ;;  %v2240_v33 = vmul.f32 %v8553_v40, %v13800_v45  ;;  %v2312_v34 = vmul.f32 %v8506_v42, %v13799_v0  ;;  %v2316_v60 = vmul.f32 %v8506_v42, %v13800_v45  ;;  %s9978_s20 = scalar_select %p862_p1, %s6985_s30, 1 }
 0x2c0   : > { %v2720_v48 = vmax.f32 %v2716_v56, %v2719_v29  ;;  %v9142_v3 = vadd.f32 %v4589_v38, %v4377_v43  ;;  %v2244_v52 = vmul.f32 %v8553_v40, %v13803_v32  ;;  %v2248_v29 = vmul.f32 %v8553_v40, %v13804_v63 }
 0x2c1   : > { %1575 = vrot.lane.b32.xlu0 %v13801_v49, %s13474_s24  ;;  %v2320_v56 = vmul.f32 %v8506_v42, %v13803_v32  ;;  %v2324_v59 = vmul.f32 %v8506_v42, %v13804_v63  ;;  %v2432_v37 = vrot.slane %v2296_v19, 1  ;;  %v2436_v49 = vrot.slane %v2300_v57, 1 }
 0x2c2   : > { %13802 = vst [vmem:[#allocation107_spill] sm:$0xff] %v9142_v3  ;;  %v2724_v4 = vmax.f32 %v2720_v48, %v2723_v28  ;;  %v2440_v43 = vrot.slane %v2304_v17, 1  ;;  %v2444_v38 = vrot.slane %v2308_v31, 1  ;;  %v2448_v41 = vrot.slane %v2312_v34, 1  ;;  %v13808_v28 = vld [vmem:[#allocation109_spill] sm:$0xff] }
 0x2c3   : > { %1573 = vrot.lane.b32.xlu1 %v13805_v10, %s13474_s24  ;;  %v2452_v47 = vrot.slane %v2316_v60, 1  ;;  %v2456_v58 = vrot.slane %v2320_v56, 1  ;;  %v9156_v7 = vadd.f32 %v2432_v37, %v2220_v26  ;;  %v9158_v35 = vadd.f32 %v2436_v49, %v2224_v8  ;;  %v9162_v10 = vpop.permute.xlu1 %1444  ;;  %v13812_v37 = vld [vmem:[#allocation112_spill] sm:$0xff]  ;;  %s6409_s24 = sshll.u32 %s9978_s20, 1 }
 0x2c4   : > { %v9154_v9 = vmax.f32 %v2724_v4, %v2727_v46  ;;  %v9168_v19 = vsel %vm2702_vm4, %v9088_v39, -inf  ;;  %v9170_v57 = vadd.f32 %v2440_v43, %v2228_v25  ;;  %v9172_v4 = vadd.f32 %v2444_v38, %v2232_v14  ;;  %v9216_v43 = vpop.permute.xlu0 %1450 }
 0x2c5   : > { %13806 = vst [vmem:[#allocation67_spill] sm:$0xff] %v9156_v7  ;;  %13807 = vst [vmem:[#allocation13_spill] sm:$0xff] %v9158_v35  ;;  %1620 = vrot.lane.b32.xlu0 %v13808_v28, %s13495_s1  ;;  %v9174_v46 = vadd.f32 %v2448_v41, %v2236_v23  ;;  %v4857_v26 = vsel %vm2702_vm4, %v9142_v3, -inf  ;;  %v2460_v8 = vrot.slane %v2324_v59, 1  ;;  %v9180_v17 = vadd.f32 %v2452_v47, %v2240_v33  ;;  %v13816_v59 = vld [vmem:[#allocation113_spill] sm:$0xff]  ;;  %v13817_v33 = vld [vmem:[#allocation114_spill] sm:$0xff] }
 0x2c6   : > { %13809 = vst [vmem:[#allocation27_spill] sm:$0xff] %v9170_v57  ;;  %13810 = vst [vmem:[#allocation29_spill] sm:$0xff] %v9172_v4  ;;  %v9182_v31 = vadd.f32 %v2456_v58, %v2244_v52  ;;  %v2732_v48 = vmax.f32 %v9154_v9, %v9102_v20  ;;  %v9186_v25 = vmax.f32 %v4854_v62, %v4857_v26  ;;  %v2636_v41 = vsel %vm2634_vm10, %v9156_v7, -inf }
 0x2c7   : > { %13811 = vst [vmem:[#allocation19_spill] sm:$0xff] %v9174_v46  ;;  %1618 = vrot.lane.b32.xlu1 %v13812_v37, %s13495_s1  ;;  %13813 = vst [vmem:[#allocation35_spill] sm:$0xff] %v9180_v17  ;;  %v2639_v14 = vsel %vm2634_vm10, %v9158_v35, -inf  ;;  %v9192_v23 = vadd.f32 %v2460_v8, %v2248_v29  ;;  %v2643_v47 = vsel %vm2634_vm10, %v9170_v57, -inf  ;;  %v2647_v58 = vsel %vm2634_vm10, %v9172_v4, -inf  ;;  %v9218_v38 = vpop.permute.xlu1 %1448  ;;  %s865_s1 = scalar_lea.vmem %s12980_s9, %s6409_s24 }
 0x2c8   : > { %13814 = vst [vmem:[#allocation40_spill] sm:$0xff] %v9182_v31  ;;  %v2640_v34 = vmax.f32 %v2636_v41, %v2639_v14  ;;  %v2651_v9 = vsel %vm2634_vm10, %v9174_v46, -inf  ;;  %v2655_v52 = vsel %vm2634_vm10, %v9180_v17, -inf  ;;  %v2659_v62 = vsel %vm2634_vm10, %v9182_v31, -inf }
 0x2c9   : > { %13815 = vst [vmem:[#allocation41_spill] sm:$0xff] %v9192_v23  ;;  %1647 = vrot.lane.b32.xlu0 %v13816_v59, %s13477_s22  ;;  %v4344_v20 = vmul.f32 %v8541_v16, %v13794_v61  ;;  %v4348_v29 = vmul.f32 %v8541_v16, %v13795_v22  ;;  %v4352_v56 = vmul.f32 %v8541_v16, %v13796_v1 }
 0x2ca   : > { %v2644_v60 = vmax.f32 %v2640_v34, %v2643_v47  ;;  %v4356_v49 = vmul.f32 %v8541_v16, %v13798_v44  ;;  %v4360_v28 = vmul.f32 %v8541_v16, %v13799_v0  ;;  %v4364_v37 = vmul.f32 %v8541_v16, %v13800_v45 }
 0x2cb   : > { %1645 = vrot.lane.b32.xlu1 %v13817_v33, %s13477_s22  ;;  %v4368_v26 = vmul.f32 %v8541_v16, %v13803_v32  ;;  %v4420_v8 = vmul.f32 %v8504_v11, %v13794_v61  ;;  %v4424_v14 = vmul.f32 %v8504_v11, %v13795_v22  ;;  %v4428_v34 = vmul.f32 %v8504_v11, %v13796_v1  ;;  %v9250_v7 = vpop.permute.xlu1 %1452 }
 0x2cc   : > { %v2648_v41 = vmax.f32 %v2644_v60, %v2647_v58  ;;  %v4432_v47 = vmul.f32 %v8504_v11, %v13798_v44  ;;  %v4436_v59 = vmul.f32 %v8504_v11, %v13799_v0  ;;  %v4440_v33 = vmul.f32 %v8504_v11, %v13800_v45 }
 0x2cd   : > { %v4444_v31 = vmul.f32 %v8504_v11, %v13803_v32  ;;  %v4448_v61 = vmul.f32 %v8504_v11, %v13804_v63  ;;  %v4372_v22 = vmul.f32 %v8541_v16, %v13804_v63  ;;  %v4556_v1 = vrot.slane %v4420_v8, 1  ;;  %v9248_v32 = vpop.permute.xlu0 %1454 }
 0x2ce   : > { %v2652_v58 = vmax.f32 %v2648_v41, %v2651_v9  ;;  %v4560_v60 = vrot.slane %v4424_v14, 1  ;;  %v4564_v17 = vrot.slane %v4428_v34, 1  ;;  %v4568_v44 = vrot.slane %v4432_v47, 1 }
 0x2cf   : > { %v4572_v46 = vrot.slane %v4436_v59, 1  ;;  %v4576_v4 = vrot.slane %v4440_v33, 1  ;;  %v4580_v57 = vrot.slane %v4444_v31, 1  ;;  %v9244_v35 = vadd.f32 %v4556_v1, %v4344_v20  ;;  %v9293_v59 = vpop.permute.xlu1 %1456 }
 0x2d0   : > { %v2656_v0 = vmax.f32 %v2652_v58, %v2655_v52  ;;  %v9246_v45 = vadd.f32 %v4560_v60, %v4348_v29  ;;  %v4584_v9 = vrot.slane %v4448_v61, 1  ;;  %v9252_v41 = vadd.f32 %v4564_v17, %v4352_v56 }
 0x2d1   : > { %13818 = vst [vmem:[#allocation23_spill] sm:$0xff] %v9244_v35  ;;  %v9254_v63 = vadd.f32 %v4568_v44, %v4356_v49  ;;  %v9256_v8 = vadd.f32 %v4572_v46, %v4360_v28  ;;  %v9258_v34 = vadd.f32 %v4576_v4, %v4364_v37  ;;  %v9260_v52 = vadd.f32 %v4580_v57, %v4368_v26  ;;  %v9291_v47 = vpop.permute.xlu0 %1458 }
 0x2d2   : > { %13819 = vst [vmem:[#allocation65_spill] sm:$0xff] %v9246_v45  ;;  %13820 = vst [vmem:[#allocation66_spill] sm:$0xff] %v9252_v41  ;;  %v2660_v14 = vmax.f32 %v2656_v0, %v2659_v62  ;;  %v4759_v31 = vsel %vm2634_vm10, %v9244_v35, -inf  ;;  %v9265_v20 = vmax.f32 %v2732_v48, %v9168_v19  ;;  %v4860_v29 = vmax.f32 %v8748_v12, %v9186_v25 }
 0x2d3   : > { %13821 = vst [vmem:[#allocation88_spill] sm:$0xff] %v9254_v63  ;;  %13822 = vst [vmem:[#allocation90_spill] sm:$0xff] %v9256_v8  ;;  %v2663_v17 = vsel %vm2634_vm10, %v9192_v23, -inf  ;;  %v4762_v46 = vsel %vm2634_vm10, %v9246_v45, -inf  ;;  %v9273_v62 = vadd.f32 %v4584_v9, %v4372_v22  ;;  %v4766_v57 = vsel %vm2634_vm10, %v9252_v41, -inf }
 0x2d4   : > { %13823 = vst [vmem:[#allocation91_spill] sm:$0xff] %v9258_v34  ;;  %13824 = vst [vmem:[#allocation92_spill] sm:$0xff] %v9260_v52  ;;  %v4763_v4 = vmax.f32 %v4759_v31, %v4762_v46  ;;  %v4770_v56 = vsel %vm2634_vm10, %v9254_v63, -inf  ;;  %v2664_v19 = vmax.f32 %v2660_v14, %v2663_v17  ;;  %v4774_v48 = vsel %vm2634_vm10, %v9256_v8, -inf }
 0x2d5   : > { %13825 = vst [vmem:[#allocation97_spill] sm:$0xff] %v9273_v62  ;;  %v1490_v12 = vsel %vm13304_vm15, %v8978_v2, %v8976_v51  ;;  %v2331_v25 = vmul.f32 %v8506_v42, %v9028_v54  ;;  %v4778_v28 = vsel %vm2634_vm10, %v9258_v34, -inf  ;;  %v4782_v37 = vsel %vm2634_vm10, %v9260_v52, -inf }
 0x2d6   : > { %v4767_v49 = vmax.f32 %v4763_v4, %v4766_v57  ;;  %v2328_v26 = vmul.f32 %v8506_v42, %v1490_v12  ;;  %v4452_v33 = vmul.f32 %v8504_v11, %v1490_v12  ;;  %v2255_v51 = vmul.f32 %v8553_v40, %v9028_v54 }
 0x2d7   : > { %v2467_v2 = vrot.slane %v2331_v25, 1  ;;  %v4455_v61 = vmul.f32 %v8504_v11, %v9028_v54  ;;  %v2252_v22 = vmul.f32 %v8553_v40, %v1490_v12  ;;  %v1491_v60 = vsel %vm13304_vm15, %v9030_v50, %v9028_v54 }
 0x2d8   : > { %v4771_v58 = vmax.f32 %v4767_v49, %v4770_v56  ;;  %v2464_v1 = vrot.slane %v2328_v26, 1  ;;  %v4786_v44 = vsel %vm2634_vm10, %v9273_v62, -inf  ;;  %v4588_v0 = vrot.slane %v4452_v33, 1 }
 0x2d9   : > { %v9306_v9 = vadd.f32 %v2467_v2, %v2255_v51  ;;  %v4591_v14 = vrot.slane %v4455_v61, 1  ;;  %v4379_v46 = vmul.f32 %v8541_v16, %v9028_v54  ;;  %v2330_v4 = vmul.f32 %v8506_v42, %v1491_v60  ;;  %v9321_v51 = vpop.permute.xlu0 %1462  ;;  %v9323_v54 = vpop.permute.xlu1 %1460 }
 0x2da   : > { %v4775_v31 = vmax.f32 %v4771_v58, %v4774_v48  ;;  %v9308_v17 = vadd.f32 %v2464_v1, %v2252_v22  ;;  %v4376_v57 = vmul.f32 %v8541_v16, %v1490_v12  ;;  %v2254_v56 = vmul.f32 %v8553_v40, %v1491_v60 }
 0x2db   : > { %v4454_v50 = vmul.f32 %v8504_v11, %v1491_v60  ;;  %v2257_v25 = vmul.f32 %v8553_v40, %v9064_v21  ;;  %v9318_v26 = vadd.f32 %v4591_v14, %v4379_v46  ;;  %v2466_v48 = vrot.slane %v2330_v4, 1 }
 0x2dc   : > { %13826 = vst [vmem:[#allocation14_spill] sm:$0xff] %v9308_v17  ;;  %v4779_v49 = vmax.f32 %v4775_v31, %v4778_v28  ;;  %v4378_v33 = vmul.f32 %v8541_v16, %v1491_v60  ;;  %v2667_v12 = vsel %vm2634_vm10, %v9308_v17, -inf  ;;  %v9327_v2 = vadd.f32 %v4588_v0, %v4376_v57 }
 0x2dd   : > { %13827 = vst [vmem:[#allocation28_spill] sm:$0xff] %v9318_v26  ;;  %v9331_v61 = vsel %vm2702_vm4, %v9306_v9, -inf  ;;  %v4590_v58 = vrot.slane %v4454_v50, 1  ;;  %v9335_v1 = vadd.f32 %v2466_v48, %v2254_v56  ;;  %v2333_v60 = vmul.f32 %v8506_v42, %v9064_v21 }
 0x2de   : > { %13828 = vst [vmem:[#allocation30_spill] sm:$0xff] %v9327_v2  ;;  %v4783_v28 = vmax.f32 %v4779_v49, %v4782_v37  ;;  %v9339_v14 = vmax.f32 %v2664_v19, %v2667_v12  ;;  %v4457_v0 = vmul.f32 %v8504_v11, %v9064_v21  ;;  %v1492_v46 = vsel %vm13304_vm15, %v9066_v24, %v9064_v21 }
 0x2df   : > { %13829 = vst [vmem:[#allocation98_spill] sm:$0xff] %v9335_v1  ;;  %v9341_v31 = vadd.f32 %v4590_v58, %v4378_v33  ;;  %v4859_v4 = vsel %vm2702_vm4, %v9318_v26, -inf  ;;  %v9352_v57 = vsel %vm2634_vm10, %v9335_v1, -inf  ;;  %v2469_v56 = vrot.slane %v2333_v60, 1  ;;  %v9364_v58 = vpop.permute.xlu0 %1466 }
 0x2e0   : > { %v4787_v37 = vmax.f32 %v4783_v28, %v4786_v44  ;;  %v4790_v19 = vsel %vm2634_vm10, %v9327_v2, -inf  ;;  %v4862_v50 = vmax.f32 %v4859_v4, %v4860_v29  ;;  %v4593_v49 = vrot.slane %v4457_v0, 1  ;;  %v9366_v28 = vpop.permute.xlu1 %1464 }
 0x2e1   : > { %13830 = vst [vmem:[#allocation20_spill] sm:$0xff] %v9341_v31  ;;  %v2332_v48 = vmul.f32 %v8506_v42, %v1492_v46  ;;  %v9359_v24 = vadd.f32 %v2469_v56, %v2257_v25  ;;  %v4381_v44 = vmul.f32 %v8541_v16, %v9064_v21  ;;  %v2256_v12 = vmul.f32 %v8553_v40, %v1492_v46 }
 0x2e2   : > { %v9368_v60 = vmax.f32 %v4787_v37, %v4790_v19  ;;  %v9372_v29 = vsel %vm2634_vm10, %v9341_v31, -inf  ;;  %v4456_v4 = vmul.f32 %v8504_v11, %v1492_v46  ;;  %v4380_v56 = vmul.f32 %v8541_v16, %v1492_v46 }
 0x2e3   : > { %v2468_v0 = vrot.slane %v2332_v48, 1  ;;  %v9375_v25 = vadd.f32 %v4593_v49, %v4381_v44  ;;  %v2335_v21 = vmul.f32 %v8506_v42, %v9122_v6  ;;  %v4459_v33 = vmul.f32 %v8504_v11, %v9122_v6 }
 0x2e4   : > { %v9384_v37 = vsel %vm2702_vm4, %v9359_v24, -inf  ;;  %v4592_v22 = vrot.slane %v4456_v4, 1  ;;  %v2259_v48 = vmul.f32 %v8553_v40, %v9122_v6  ;;  %v4383_v46 = vmul.f32 %v8541_v16, %v9122_v6 }
 0x2e5   : > { %13831 = vst [vmem:[#allocation36_spill] sm:$0xff] %v9375_v25  ;;  %v9386_v19 = vadd.f32 %v2468_v0, %v2256_v12  ;;  %v2471_v49 = vrot.slane %v2335_v21, 1  ;;  %v4595_v44 = vrot.slane %v4459_v33, 1  ;;  %v1493_v52 = vsel %vm13304_vm15, %v9124_v15, %v9122_v6  ;;  %v9412_v15 = vpop.permute.xlu0 %1470 }
 0x2e6   : > { %v4793_v34 = vmax.f32 %v9084_v36, %v9372_v29  ;;  %v9401_v0 = vadd.f32 %v4592_v22, %v4380_v56  ;;  %v2334_v4 = vmul.f32 %v8506_v42, %v1493_v52  ;;  %v2740_v21 = vmax.f32 %v9265_v20, %v9384_v37  ;;  %v9414_v36 = vpop.permute.xlu1 %1468 }
 0x2e7   : > { %13832 = vst [vmem:[#allocation38_spill] sm:$0xff] %v9386_v19  ;;  %v9399_v12 = vsel %vm2634_vm10, %v9386_v19, -inf  ;;  %v4861_v33 = vsel %vm2702_vm4, %v9375_v25, -inf  ;;  %v9408_v8 = vadd.f32 %v2471_v49, %v2259_v48  ;;  %v9410_v6 = vadd.f32 %v4595_v44, %v4383_v46 }
 0x2e8   : > { %13833 = vst [vmem:[#allocation99_spill] sm:$0xff] %v9401_v0  ;;  %v4864_v29 = vmax.f32 %v4861_v33, %v4862_v50  ;;  %v2258_v22 = vmul.f32 %v8553_v40, %v1493_v52  ;;  %v2470_v56 = vrot.slane %v2334_v4, 1  ;;  %v4458_v63 = vmul.f32 %v8504_v11, %v1493_v52 }
 0x2e9   : > { %13834 = vst [vmem:[#allocation39_spill] sm:$0xff] %v9410_v6  ;;  %v2672_v20 = vmax.f32 %v9339_v14, %v9399_v12  ;;  %v9422_v37 = vsel %vm2634_vm10, %v9401_v0, -inf  ;;  %v2741_v48 = vsel %vm2702_vm4, %v9408_v8, -inf  ;;  %v2337_v49 = vmul.f32 %v8506_v42, %v9160_v18 }
 0x2ea   : > { %v4863_v50 = vsel %vm2702_vm4, %v9410_v6, -inf  ;;  %v9430_v46 = vadd.f32 %v2470_v56, %v2258_v22  ;;  %v4382_v44 = vmul.f32 %v8541_v16, %v1493_v52  ;;  %v4594_v4 = vrot.slane %v4458_v63, 1  ;;  %v9456_v2 = vpop.permute.xlu1 %1472 }
 0x2eb   : > { %v2261_v14 = vmul.f32 %v8553_v40, %v9160_v18  ;;  %v2473_v12 = vrot.slane %v2337_v49, 1  ;;  %v4461_v33 = vmul.f32 %v8504_v11, %v9160_v18  ;;  %v1494_v41 = vsel %vm13304_vm15, %v9162_v10, %v9160_v18  ;;  %v9454_v10 = vpop.permute.xlu0 %1474 }
 0x2ec   : > { %13835 = vst [vmem:[#allocation45_spill] sm:$0xff] %v9430_v46  ;;  %v4795_v45 = vmax.f32 %v9368_v60, %v9422_v37  ;;  %v13836_v22 = vmax.f32 %v8768_v30, %v9331_v61  ;;  %v9447_v63 = vadd.f32 %v4594_v4, %v4382_v44  ;;  %v2336_v52 = vmul.f32 %v8506_v42, %v1494_v41 }
 0x2ed   : > { %v4866_v49 = vmax.f32 %v4863_v50, %v4864_v29  ;;  %v9450_v35 = vadd.f32 %v2473_v12, %v2261_v14  ;;  %v4385_v0 = vmul.f32 %v8541_v16, %v9160_v18  ;;  %v4597_v31 = vrot.slane %v4461_v33, 1 }
 0x2ee   : > { %v9445_v56 = vmax.f32 %v13836_v22, %v2741_v48  ;;  %13837 = vst [vmem:[#allocation100_spill] sm:$0xff] %v9447_v63  ;;  %v2673_v30 = vsel %vm2634_vm10, %v9430_v46, -inf  ;;  %v2260_v61 = vmul.f32 %v8553_v40, %v1494_v41  ;;  %v2472_v60 = vrot.slane %v2336_v52, 1 }
 0x2ef   : > { %v4460_v37 = vmul.f32 %v8504_v11, %v1494_v41  ;;  %v4796_v29 = vsel %vm2634_vm10, %v9447_v63, -inf  ;;  %v9464_v48 = vadd.f32 %v4597_v31, %v4385_v0  ;;  %v4384_v18 = vmul.f32 %v8541_v16, %v1494_v41  ;;  %v9498_v62 = vpop.permute.xlu0 %1478 }
 0x2f0   : > { %v2339_v50 = vmul.f32 %v8506_v42, %v9216_v43  ;;  %v2743_v44 = vsel %vm2702_vm4, %v9450_v35, -inf  ;;  %v9471_v4 = vadd.f32 %v2472_v60, %v2260_v61  ;;  %v2263_v12 = vmul.f32 %v8553_v40, %v9216_v43 }
 0x2f1   : > { %13838 = vst [vmem:[#allocation109_spill] sm:$0xff] %v9464_v48  ;;  %v4596_v14 = vrot.slane %v4460_v37, 1  ;;  %v4865_v33 = vsel %vm2702_vm4, %v9464_v48, -inf  ;;  %v4463_v31 = vmul.f32 %v8504_v11, %v9216_v43  ;;  %v1495_v41 = vsel %vm13304_vm15, %v9218_v38, %v9216_v43 }
 0x2f2   : > { %13839 = vst [vmem:[#allocation112_spill] sm:$0xff] %v9471_v4  ;;  %v2475_v22 = vrot.slane %v2339_v50, 1  ;;  %v13840_v0 = vmax.f32 %v9071_v27, %v9352_v57  ;;  %v9487_v61 = vmax.f32 %v4793_v34, %v4796_v29  ;;  %v2675_v60 = vsel %vm2634_vm10, %v9471_v4, -inf  ;;  %v9500_v27 = vpop.permute.xlu1 %1476 }
 0x2f3   : > { %v9491_v37 = vadd.f32 %v4596_v14, %v4384_v18  ;;  %v4387_v63 = vmul.f32 %v8541_v16, %v9216_v43  ;;  %v4599_v5 = vrot.slane %v4463_v31, 1  ;;  %v2338_v38 = vmul.f32 %v8506_v42, %v1495_v41 }
 0x2f4   : > { %v9485_v52 = vmax.f32 %v13840_v0, %v2673_v30  ;;  %v9493_v50 = vadd.f32 %v2475_v22, %v2263_v12  ;;  %v9502_v57 = vmax.f32 %v2740_v21, %v2743_v44  ;;  %v4868_v34 = vmax.f32 %v4865_v33, %v4866_v49 }
 0x2f5   : > { %13841 = vst [vmem:[#allocation113_spill] sm:$0xff] %v9491_v37  ;;  %v2262_v30 = vmul.f32 %v8553_v40, %v1495_v41  ;;  %v4462_v29 = vmul.f32 %v8504_v11, %v1495_v41  ;;  %v9506_v18 = vmax.f32 %v2672_v20, %v2675_v60  ;;  %v4798_v14 = vsel %vm2634_vm10, %v9491_v37, -inf  ;;  %v9539_v37 = vpop.permute.xlu0 %1482 }
 0x2f6   : > { %v9510_v43 = vadd.f32 %v4599_v5, %v4387_v63  ;;  %v2474_v12 = vrot.slane %v2338_v38, 1  ;;  %v4386_v22 = vmul.f32 %v8541_v16, %v1495_v41  ;;  %v2265_v21 = vmul.f32 %v8553_v40, %v9248_v32 }
 0x2f7   : > { %v4598_v31 = vrot.slane %v4462_v29, 1  ;;  %v2341_v49 = vmul.f32 %v8506_v42, %v9248_v32  ;;  %v2745_v44 = vsel %vm2702_vm4, %v9493_v50, -inf  ;;  %v4465_v5 = vmul.f32 %v8504_v11, %v9248_v32 }
 0x2f8   : > { %13842 = vst [vmem:[#allocation114_spill] sm:$0xff] %v9510_v43  ;;  %v4867_v20 = vsel %vm2702_vm4, %v9510_v43, -inf  ;;  %v9521_v33 = vadd.f32 %v2474_v12, %v2262_v30  ;;  %v9525_v63 = vmax.f32 %v4795_v45, %v4798_v14  ;;  %v1496_v60 = vsel %vm13304_vm15, %v9250_v7, %v9248_v32  ;;  %v9541_v45 = vpop.permute.xlu1 %1480  ;;  %v13863_v43 = vld [vmem:[#allocation26_spill] sm:$0xff] }
 0x2f9   : > { %v9527_v41 = vadd.f32 %v4598_v31, %v4386_v22  ;;  %v2477_v0 = vrot.slane %v2341_v49, 1  ;;  %v4389_v30 = vmul.f32 %v8541_v16, %v9248_v32  ;;  %v4601_v29 = vrot.slane %v4465_v5, 1 }
 0x2fa   : > { %13843 = vst [vmem:[#allocation120_spill] sm:$0xff] %v9521_v33  ;;  %v9534_v38 = vsel %vm2634_vm10, %v9521_v33, -inf  ;;  %v2340_v12 = vmul.f32 %v8506_v42, %v1496_v60  ;;  %v2746_v14 = vmax.f32 %v9445_v56, %v2745_v44  ;;  %v4870_v22 = vmax.f32 %v4867_v20, %v4868_v34 }
 0x2fb   : > { %13844 = vst [vmem:[#allocation121_spill] sm:$0xff] %v9527_v41  ;;  %v9546_v7 = vsel %vm2634_vm10, %v9527_v41, -inf  ;;  %v9548_v31 = vadd.f32 %v2477_v0, %v2265_v21  ;;  %v9550_v49 = vadd.f32 %v4601_v29, %v4389_v30  ;;  %v2264_v32 = vmul.f32 %v8553_v40, %v1496_v60 }
 0x2fc   : > { %v2476_v5 = vrot.slane %v2340_v12, 1  ;;  %v4464_v53 = vmul.f32 %v8504_v11, %v1496_v60  ;;  %v2678_v33 = vmax.f32 %v9485_v52, %v9534_v38  ;;  %v4388_v34 = vmul.f32 %v8541_v16, %v1496_v60 }
 0x2fd   : > { %13845 = vst [vmem:[#allocation122_spill] sm:$0xff] %v9550_v49  ;;  %v2343_v44 = vmul.f32 %v8506_v42, %v9291_v47  ;;  %v2747_v21 = vsel %vm2702_vm4, %v9548_v31, -inf  ;;  %v4869_v20 = vsel %vm2702_vm4, %v9550_v49, -inf  ;;  %v2267_v52 = vmul.f32 %v8553_v40, %v9291_v47 }
 0x2fe   : > { %v9565_v0 = vadd.f32 %v2476_v5, %v2264_v32  ;;  %v4600_v30 = vrot.slane %v4464_v53, 1  ;;  %v4467_v29 = vmul.f32 %v8504_v11, %v9291_v47  ;;  %v1497_v60 = vsel %vm13304_vm15, %v9293_v59, %v9291_v47  ;;  %v9583_v5 = vpop.permute.xlu0 %1486 }
 0x2ff   : > { %v2479_v38 = vrot.slane %v2343_v44, 1  ;;  %v4391_v53 = vmul.f32 %v8541_v16, %v9291_v47  ;;  %v2342_v32 = vmul.f32 %v8506_v42, %v1497_v60  ;;  %v9585_v44 = vpop.permute.xlu1 %1484  ;;  %v2748_v41 = vmax.f32 %v9502_v57, %v2747_v21 }
 0x300   : > { %13846 = vst [vmem:[#allocation123_spill] sm:$0xff] %v9565_v0  ;;  %v9576_v12 = vsel %vm2634_vm10, %v9565_v0, -inf  ;;  %v9578_v56 = vadd.f32 %v4600_v30, %v4388_v34  ;;  %v4872_v4 = vmax.f32 %v4869_v20, %v4870_v22  ;;  %v4603_v59 = vrot.slane %v4467_v29, 1 }
 0x301   : > { %v9588_v46 = vadd.f32 %v2479_v38, %v2267_v52  ;;  %v2680_v0 = vmax.f32 %v9506_v18, %v9576_v12  ;;  %v2266_v34 = vmul.f32 %v8553_v40, %v1497_v60  ;;  %v2478_v30 = vrot.slane %v2342_v32, 1 }
 0x302   : > { %13847 = vst [vmem:[#allocation124_spill] sm:$0xff] %v9578_v56  ;;  %v4466_v47 = vmul.f32 %v8504_v11, %v1497_v60  ;;  %v4802_v19 = vsel %vm2634_vm10, %v9578_v56, -inf  ;;  %v9598_v17 = vadd.f32 %v4603_v59, %v4391_v53  ;;  %v2345_v57 = vmul.f32 %v8506_v42, %v9321_v51 }
 0x303   : > { %v2749_v1 = vsel %vm2702_vm4, %v9588_v46, -inf  ;;  %v9602_v22 = vadd.f32 %v2478_v30, %v2266_v34  ;;  %v4390_v18 = vmul.f32 %v8541_v16, %v1497_v60  ;;  %v2269_v20 = vmul.f32 %v8553_v40, %v9321_v51  ;;  %v9621_v34 = vpop.permute.xlu0 %1541  ;;  %v9623_v30 = vpop.permute.xlu1 %1539 }
 0x304   : > { %13848 = vst [vmem:[#allocation125_spill] sm:$0xff] %v9598_v17  ;;  %v4602_v21 = vrot.slane %v4466_v47, 1  ;;  %v4871_v52 = vsel %vm2702_vm4, %v9598_v17, -inf  ;;  %v2481_v38 = vrot.slane %v2345_v57, 1  ;;  %v4469_v29 = vmul.f32 %v8504_v11, %v9321_v51 }
 0x305   : > { %13849 = vst [vmem:[#allocation126_spill] sm:$0xff] %v9602_v22  ;;  %v1498_v12 = vsel %vm13304_vm15, %v9323_v54, %v9321_v51  ;;  %v4803_v53 = vmax.f32 %v9525_v63, %v4802_v19  ;;  %v9615_v32 = vmax.f32 %v2746_v14, %v2749_v1  ;;  %v2681_v60 = vsel %vm2634_vm10, %v9602_v22, -inf }
 0x306   : > { %v9619_v59 = vadd.f32 %v4602_v21, %v4390_v18  ;;  %v9625_v47 = vadd.f32 %v2481_v38, %v2269_v20  ;;  %v4393_v57 = vmul.f32 %v8541_v16, %v9321_v51  ;;  %v4605_v56 = vrot.slane %v4469_v29, 1 }
 0x307   : > { %v2344_v54 = vmul.f32 %v8506_v42, %v1498_v12  ;;  %v4874_v19 = vmax.f32 %v4871_v52, %v4872_v4  ;;  %v9630_v1 = vmax.f32 %v2678_v33, %v2681_v60  ;;  %v2268_v63 = vmul.f32 %v8553_v40, %v1498_v12  ;;  %v9663_v55 = vpop.permute.xlu0 %1545 }
 0x308   : > { %13850 = vst [vmem:[#allocation127_spill] sm:$0xff] %v9619_v59  ;;  %v4468_v14 = vmul.f32 %v8504_v11, %v1498_v12  ;;  %v4804_v18 = vsel %vm2634_vm10, %v9619_v59, -inf  ;;  %v2751_v21 = vsel %vm2702_vm4, %v9625_v47, -inf  ;;  %v9638_v20 = vadd.f32 %v4605_v56, %v4393_v57 }
 0x309   : > { %v2480_v38 = vrot.slane %v2344_v54, 1  ;;  %v4392_v51 = vmul.f32 %v8541_v16, %v1498_v12  ;;  %v2271_v4 = vmul.f32 %v8553_v40, %v9364_v58  ;;  %v2347_v33 = vmul.f32 %v8506_v42, %v9364_v58 }
 0x30a   : > { %13851 = vst [vmem:[#allocation128_spill] sm:$0xff] %v9638_v20  ;;  %v4604_v29 = vrot.slane %v4468_v14, 1  ;;  %v4873_v52 = vsel %vm2702_vm4, %v9638_v20, -inf  ;;  %v4471_v59 = vmul.f32 %v8504_v11, %v9364_v58  ;;  %v1499_v56 = vsel %vm13304_vm15, %v9366_v28, %v9364_v58 }
 0x30b   : > { %v9647_v60 = vadd.f32 %v2480_v38, %v2268_v63  ;;  %v13853_v12 = vmax.f32 %v9487_v61, %v9546_v7  ;;  %v9659_v54 = vmax.f32 %v2748_v41, %v2751_v21  ;;  %v2483_v22 = vrot.slane %v2347_v33, 1  ;;  %v9665_v63 = vpop.permute.xlu1 %1543 }
 0x30c   : > { %v9661_v14 = vadd.f32 %v4604_v29, %v4392_v51  ;;  %v4395_v28 = vmul.f32 %v8541_v16, %v9364_v58  ;;  %v4607_v23 = vrot.slane %v4471_v59, 1  ;;  %v2346_v61 = vmul.f32 %v8506_v42, %v1499_v56 }
 0x30d   : > { %13852 = vst [vmem:[#allocation129_spill] sm:$0xff] %v9647_v60  ;;  %v9657_v57 = vmax.f32 %v13853_v12, %v4804_v18  ;;  %v2683_v38 = vsel %vm2634_vm10, %v9647_v60, -inf  ;;  %v4876_v7 = vmax.f32 %v4873_v52, %v4874_v19  ;;  %v9674_v18 = vadd.f32 %v2483_v22, %v2271_v4 }
 0x30e   : > { %13854 = vst [vmem:[#allocation130_spill] sm:$0xff] %v9661_v14  ;;  %v4806_v41 = vsel %vm2634_vm10, %v9661_v14, -inf  ;;  %v4470_v21 = vmul.f32 %v8504_v11, %v1499_v56  ;;  %v9677_v51 = vadd.f32 %v4607_v23, %v4395_v28  ;;  %v2270_v29 = vmul.f32 %v8553_v40, %v1499_v56  ;;  %v9704_v28 = vpop.permute.xlu0 %1692 }
 0x30f   : > { %v2482_v33 = vrot.slane %v2346_v61, 1  ;;  %v4394_v12 = vmul.f32 %v8541_v16, %v1499_v56  ;;  %v9681_v60 = vmax.f32 %v2680_v0, %v2683_v38  ;;  %v9683_v58 = vmax.f32 %v4803_v53, %v4806_v41  ;;  %v9706_v61 = vpop.permute.xlu1 %1690 }
 0x310   : > { %13855 = vst [vmem:[#allocation131_spill] sm:$0xff] %v9677_v51  ;;  %v4606_v59 = vrot.slane %v4470_v21, 1  ;;  %v2349_v19 = vmul.f32 %v8506_v42, %v9412_v15  ;;  %v9689_v22 = vsel %vm2702_vm4, %v9674_v18, -inf  ;;  %v4875_v23 = vsel %vm2702_vm4, %v9677_v51, -inf  ;;  %1806 = vrot.lane.b32.xlu1 %v9706_v61, %s6885_s29 }
 0x311   : > { %v9693_v4 = vadd.f32 %v2482_v33, %v2270_v29  ;;  %v4473_v52 = vmul.f32 %v8504_v11, %v9412_v15  ;;  %v2273_v53 = vmul.f32 %v8553_v40, %v9412_v15  ;;  %v1500_v38 = vsel %vm13304_vm15, %v9414_v36, %v9412_v15 }
 0x312   : > { %v9697_v0 = vadd.f32 %v4606_v59, %v4394_v12  ;;  %v2485_v56 = vrot.slane %v2349_v19, 1  ;;  %v4397_v21 = vmul.f32 %v8541_v16, %v9412_v15  ;;  %v2348_v33 = vmul.f32 %v8506_v42, %v1500_v38 }
 0x313   : > { %13856 = vst [vmem:[#allocation132_spill] sm:$0xff] %v9693_v4  ;;  %v9710_v41 = vsel %vm2634_vm10, %v9693_v4, -inf  ;;  %v4609_v29 = vrot.slane %v4473_v52, 1  ;;  %v2754_v36 = vmax.f32 %v9615_v32, %v9689_v22  ;;  %v4878_v12 = vmax.f32 %v4875_v23, %v4876_v7  ;;  %v9736_v23 = vpop.permute.xlu0 %1699 }
 0x314   : > { %13857 = vst [vmem:[#allocation133_spill] sm:$0xff] %v9697_v0  ;;  %v9721_v59 = vsel %vm2634_vm10, %v9697_v0, -inf  ;;  %v9723_v19 = vadd.f32 %v2485_v56, %v2273_v53  ;;  %v2272_v15 = vmul.f32 %v8553_v40, %v1500_v38  ;;  %v2484_v52 = vrot.slane %v2348_v33, 1  ;;  %v9738_v53 = vpop.permute.xlu1 %1697 }
 0x315   : > { %v9725_v14 = vadd.f32 %v4609_v29, %v4397_v21  ;;  %v4472_v4 = vmul.f32 %v8504_v11, %v1500_v38  ;;  %v2686_v51 = vmax.f32 %v9630_v1, %v9710_v41  ;;  %v4396_v7 = vmul.f32 %v8541_v16, %v1500_v38  ;;  %v13860_v29 = vld [vmem:[#allocation102_spill] sm:$0xff] }
 0x316   : > { %v2351_v22 = vmul.f32 %v8506_v42, %v9454_v10  ;;  %v9742_v56 = vsel %vm2702_vm4, %v9723_v19, -inf  ;;  %v9746_v1 = vadd.f32 %v2484_v52, %v2272_v15  ;;  %1582 = vrot.lane.b32.xlu1 %v13860_v29, %s13480_s11  ;;  %v2275_v38 = vmul.f32 %v8553_v40, %v9454_v10 }
 0x317   : > { %13858 = vst [vmem:[#allocation134_spill] sm:$0xff] %v9725_v14  ;;  %v4877_v21 = vsel %vm2702_vm4, %v9725_v14, -inf  ;;  %v4608_v41 = vrot.slane %v4472_v4, 1  ;;  %v4475_v32 = vmul.f32 %v8504_v11, %v9454_v10  ;;  %v1501_v0 = vsel %vm13304_vm15, %v9456_v2, %v9454_v10  ;;  %v9770_v49 = vpop.permute.xlu0 %1706 }
 0x318   : > { %13859 = vst [vmem:[#allocation135_spill] sm:$0xff] %v9746_v1  ;;  %v2487_v33 = vrot.slane %v2351_v22, 1  ;;  %v9759_v14 = vsel %vm2634_vm10, %v9746_v1, -inf  ;;  %v4399_v4 = vmul.f32 %v8541_v16, %v9454_v10  ;;  %v2350_v52 = vmul.f32 %v8506_v42, %v1501_v0  ;;  %v9772_v2 = vpop.permute.xlu1 %1704 }
 0x319   : > { %v9761_v15 = vadd.f32 %v4608_v41, %v4396_v7  ;;  %v2756_v22 = vmax.f32 %v9659_v54, %v9742_v56  ;;  %v4880_v29 = vmax.f32 %v4877_v21, %v4878_v12  ;;  %v4611_v17 = vrot.slane %v4475_v32, 1 }
 0x31a   : > { %v9768_v20 = vadd.f32 %v2487_v33, %v2275_v38  ;;  %v2274_v41 = vmul.f32 %v8553_v40, %v1501_v0  ;;  %v2486_v1 = vrot.slane %v2350_v52, 1  ;;  %v4474_v10 = vmul.f32 %v8504_v11, %v1501_v0  ;;  %1654 = vrot.lane.b32.xlu1 %v13863_v43, %s13483_s16 }
 0x31b   : > { %13861 = vst [vmem:[#allocation102_spill] sm:$0xff] %v9761_v15  ;;  %v9782_v54 = vsel %vm2634_vm10, %v9761_v15, -inf  ;;  %v9786_v32 = vadd.f32 %v4611_v17, %v4399_v4  ;;  %v2353_v56 = vmul.f32 %v8506_v42, %v9498_v62  ;;  %v4398_v38 = vmul.f32 %v8541_v16, %v1501_v0  ;;  %v9802_v4 = vpop.permute.xlu0 %1748 }
 0x31c   : > { %13862 = vst [vmem:[#allocation136_spill] sm:$0xff] %v9768_v20  ;;  %v2757_v12 = vsel %vm2702_vm4, %v9768_v20, -inf  ;;  %v9790_v21 = vadd.f32 %v2486_v1, %v2274_v41  ;;  %v4610_v33 = vrot.slane %v4474_v10, 1  ;;  %v2277_v43 = vmul.f32 %v8553_v40, %v9498_v62  ;;  %v9804_v1 = vpop.permute.xlu1 %1746 }
 0x31d   : > { %13864 = vst [vmem:[#allocation26_spill] sm:$0xff] %v9786_v32  ;;  %v4879_v52 = vsel %vm2702_vm4, %v9786_v32, -inf  ;;  %v2489_v7 = vrot.slane %v2353_v56, 1  ;;  %v4477_v15 = vmul.f32 %v8504_v11, %v9498_v62  ;;  %v1502_v17 = vsel %vm13304_vm15, %v9500_v27, %v9498_v62 }
 0x31e   : > { %13865 = vst [vmem:[#allocation137_spill] sm:$0xff] %v9790_v21  ;;  %v4811_v0 = vmax.f32 %v9683_v58, %v9782_v54  ;;  %v9808_v41 = vmax.f32 %v2754_v36, %v2757_v12  ;;  %v2689_v10 = vsel %vm2634_vm10, %v9790_v21, -inf  ;;  %v9812_v56 = vadd.f32 %v4610_v33, %v4398_v38  ;;  %1810 = vrot.lane.b32.xlu1 %v9738_v53, %s6885_s29 }
 0x31f   : > { %v9816_v32 = vadd.f32 %v2489_v7, %v2277_v43  ;;  %v4401_v27 = vmul.f32 %v8541_v16, %v9498_v62  ;;  %v4613_v48 = vrot.slane %v4477_v15, 1  ;;  %v2352_v6 = vmul.f32 %v8506_v42, %v1502_v17  ;;  %v9831_v62 = vpop.permute.xlu0 %1713 }
 0x320   : > { %13866 = vst [vmem:[#allocation138_spill] sm:$0xff] %v9812_v56  ;;  %v4882_v25 = vmax.f32 %v4879_v52, %v4880_v29  ;;  %v9821_v58 = vmax.f32 %v2686_v51, %v2689_v10  ;;  %v2276_v36 = vmul.f32 %v8553_v40, %v1502_v17  ;;  %v4476_v54 = vmul.f32 %v8504_v11, %v1502_v17  ;;  %v9833_v15 = vpop.permute.xlu1 %1711  ;;  %v13869_v10 = vld [vmem:[#allocation104_spill] sm:$0xff] }
 0x321   : > { %13867 = vst [vmem:[#allocation139_spill] sm:$0xff] %v9816_v32  ;;  %v4812_v12 = vsel %vm2634_vm10, %v9812_v56, -inf  ;;  %v2759_v7 = vsel %vm2702_vm4, %v9816_v32, -inf  ;;  %v9829_v38 = vadd.f32 %v4613_v48, %v4401_v27  ;;  %v2488_v33 = vrot.slane %v2352_v6, 1 }
 0x322   : > { %v4400_v51 = vmul.f32 %v8541_v16, %v1502_v17  ;;  %v4612_v29 = vrot.slane %v4476_v54, 1  ;;  %v2279_v43 = vmul.f32 %v8553_v40, %v9539_v37  ;;  %v2355_v52 = vmul.f32 %v8506_v42, %v9539_v37  ;;  %1591 = vrot.lane.b32.xlu1 %v13869_v10, %s13486_s12 }
 0x323   : > { %13868 = vst [vmem:[#allocation140_spill] sm:$0xff] %v9829_v38  ;;  %v4881_v48 = vsel %vm2702_vm4, %v9829_v38, -inf  ;;  %v9844_v6 = vadd.f32 %v2488_v33, %v2276_v36  ;;  %v4479_v27 = vmul.f32 %v8504_v11, %v9539_v37  ;;  %v1503_v17 = vsel %vm13304_vm15, %v9541_v45, %v9539_v37  ;;  %v9865_v45 = vpop.permute.xlu0 %1755 }
 0x324   : > { %v13871_v54 = vmax.f32 %v9657_v57, %v9721_v59  ;;  %v9856_v21 = vmax.f32 %v2756_v22, %v2759_v7  ;;  %v9858_v10 = vadd.f32 %v4612_v29, %v4400_v51  ;;  %v2491_v26 = vrot.slane %v2355_v52, 1  ;;  %v9867_v32 = vpop.permute.xlu1 %1753  ;;  %v13874_v7 = vld [vmem:[#allocation115_spill] sm:$0xff] }
 0x325   : > { %13870 = vst [vmem:[#allocation104_spill] sm:$0xff] %v9844_v6  ;;  %v2691_v36 = vsel %vm2634_vm10, %v9844_v6, -inf  ;;  %v4403_v33 = vmul.f32 %v8541_v16, %v9539_v37  ;;  %v4615_v38 = vrot.slane %v4479_v27, 1  ;;  %v2354_v3 = vmul.f32 %v8506_v42, %v1503_v17 }
 0x326   : > { %v9854_v56 = vmax.f32 %v13871_v54, %v4812_v12  ;;  %13872 = vst [vmem:[#allocation141_spill] sm:$0xff] %v9858_v10  ;;  %v4884_v57 = vmax.f32 %v4881_v48, %v4882_v25  ;;  %v4814_v59 = vsel %vm2634_vm10, %v9858_v10, -inf  ;;  %v9871_v22 = vadd.f32 %v2491_v26, %v2279_v43  ;;  %1663 = vrot.lane.b32.xlu1 %v13874_v7, %s13489_s3 }
 0x327   : > { %v4478_v12 = vmul.f32 %v8504_v11, %v1503_v17  ;;  %v9876_v51 = vadd.f32 %v4615_v38, %v4403_v33  ;;  %v2278_v37 = vmul.f32 %v8553_v40, %v1503_v17  ;;  %v2490_v29 = vrot.slane %v2354_v3, 1 }
 0x328   : > { %13873 = vst [vmem:[#allocation142_spill] sm:$0xff] %v9871_v22  ;;  %v4402_v52 = vmul.f32 %v8541_v16, %v1503_v17  ;;  %v13876_v25 = vmax.f32 %v9681_v60, %v9759_v14  ;;  %v9885_v27 = vmax.f32 %v4811_v0, %v4814_v59  ;;  %v2357_v43 = vmul.f32 %v8506_v42, %v9583_v5  ;;  %v9899_v14 = vpop.permute.xlu0 %1720  ;;  %v9901_v0 = vpop.permute.xlu1 %1718 }
 0x329   : > { %13875 = vst [vmem:[#allocation115_spill] sm:$0xff] %v9876_v51  ;;  %v4614_v26 = vrot.slane %v4478_v12, 1  ;;  %v9891_v38 = vsel %vm2702_vm4, %v9871_v22, -inf  ;;  %v4883_v3 = vsel %vm2702_vm4, %v9876_v51, -inf  ;;  %v9895_v54 = vadd.f32 %v2490_v29, %v2278_v37 }
 0x32a   : > { %v9883_v48 = vmax.f32 %v13876_v25, %v2691_v36  ;;  %v4481_v60 = vmul.f32 %v8504_v11, %v9583_v5  ;;  %v2281_v36 = vmul.f32 %v8553_v40, %v9583_v5  ;;  %v2493_v33 = vrot.slane %v2357_v43, 1  ;;  %1802 = vrot.lane.b32.xlu1 %v8214_v13, %s6885_s29 }
 0x32b   : > { %13877 = vst [vmem:[#allocation143_spill] sm:$0xff] %v9895_v54  ;;  %v9903_v17 = vadd.f32 %v4614_v26, %v4402_v52  ;;  %v1504_v59 = vsel %vm13304_vm15, %v9585_v44, %v9583_v5  ;;  %v9914_v12 = vsel %vm2634_vm10, %v9895_v54, -inf  ;;  %v4405_v7 = vmul.f32 %v8541_v16, %v9583_v5 }
 0x32c   : > { %v4617_v37 = vrot.slane %v4481_v60, 1  ;;  %v2356_v29 = vmul.f32 %v8506_v42, %v1504_v59  ;;  %v2762_v52 = vmax.f32 %v9808_v41, %v9891_v38  ;;  %v9921_v25 = vmax.f32 %v4883_v3, %v4884_v57  ;;  %v9933_v10 = vpop.permute.xlu0 %1741  ;;  %v9935_v54 = vpop.permute.xlu1 %1739 }
 0x32d   : > { %13878 = vst [vmem:[#allocation144_spill] sm:$0xff] %v9903_v17  ;;  %v9925_v44 = vsel %vm2634_vm10, %v9903_v17, -inf  ;;  %v9927_v13 = vadd.f32 %v2493_v33, %v2281_v36  ;;  %v2280_v43 = vmul.f32 %v8553_v40, %v1504_v59  ;;  %v4480_v60 = vmul.f32 %v8504_v11, %v1504_v59 }
 0x32e   : > { %v9929_v26 = vadd.f32 %v4617_v37, %v4405_v7  ;;  %v2492_v5 = vrot.slane %v2356_v29, 1  ;;  %v4404_v38 = vmul.f32 %v8541_v16, %v1504_v59  ;;  %v2359_v3 = vmul.f32 %v8506_v42, %v9621_v34  ;;  %1814 = vrot.lane.b32.xlu1 %v9772_v2, %s6885_s29 }
 0x32f   : > { %13879 = vst [vmem:[#allocation145_spill] sm:$0xff] %v9927_v13  ;;  %v9949_v36 = vsel %vm2702_vm4, %v9927_v13, -inf  ;;  %v4616_v37 = vrot.slane %v4480_v60, 1  ;;  %v2283_v59 = vmul.f32 %v8553_v40, %v9621_v34  ;;  %v4483_v57 = vmul.f32 %v8504_v11, %v9621_v34 }
 0x330   : > { %13880 = vst [vmem:[#allocation146_spill] sm:$0xff] %v9929_v26  ;;  %v4885_v33 = vsel %vm2702_vm4, %v9929_v26, -inf  ;;  %v9953_v7 = vadd.f32 %v2492_v5, %v2280_v43  ;;  %v2495_v29 = vrot.slane %v2359_v3, 1  ;;  %v1547_v41 = vsel %vm13882_vm3, %v9623_v30, %v9621_v34  ;;  %v9971_v60 = vpop.permute.xlu0 %1762  ;;  %v9973_v3 = vpop.permute.xlu1 %1760 }
 0x331   : > { %v9966_v6 = vadd.f32 %v4616_v37, %v4404_v38  ;;  %v4407_v43 = vmul.f32 %v8541_v16, %v9621_v34  ;;  %v2358_v5 = vmul.f32 %v8506_v42, %v1547_v41  ;;  %v2764_v30 = vmax.f32 %v9856_v21, %v9949_v36 }
 0x332   : > { %13881 = vst [vmem:[#allocation147_spill] sm:$0xff] %v9953_v7  ;;  %v9964_v17 = vsel %vm2634_vm10, %v9953_v7, -inf  ;;  %v4888_v7 = vmax.f32 %v4885_v33, %v9921_v25  ;;  %v9983_v26 = vadd.f32 %v2495_v29, %v2283_v59  ;;  %v4619_v38 = vrot.slane %v4483_v57, 1  ;;  %1838 = vrot.lane.b32.xlu1 %v9804_v1, %s6885_s29 }
 0x333   : > { %13883 = vst [vmem:[#allocation148_spill] sm:$0xff] %v9966_v6  ;;  %v2282_v37 = vmul.f32 %v8553_v40, %v1547_v41  ;;  %v2494_v51 = vrot.slane %v2358_v5, 1  ;;  %v4482_v13 = vmul.f32 %v8504_v11, %v1547_v41  ;;  %v9993_v21 = vsel %vm2634_vm10, %v9966_v6, -inf }
 0x334   : > { %13884 = vst [vmem:[#allocation149_spill] sm:$0xff] %v9983_v26  ;;  %v2765_v25 = vsel %vm2702_vm4, %v9983_v26, -inf  ;;  %v9997_v57 = vadd.f32 %v4619_v38, %v4407_v43  ;;  %v2361_v36 = vmul.f32 %v8506_v42, %v9663_v55  ;;  %v4406_v59 = vmul.f32 %v8541_v16, %v1547_v41  ;;  %v10006_v34 = vpop.permute.xlu0 %1727  ;;  %v10008_v6 = vpop.permute.xlu1 %1725 }
 0x335   : > { %v10001_v33 = vadd.f32 %v2494_v51, %v2282_v37  ;;  %v4618_v29 = vrot.slane %v4482_v13, 1  ;;  %v2285_v5 = vmul.f32 %v8553_v40, %v9663_v55  ;;  %13886 = vst [vmem:[#allocation151_spill] sm:$0xff] %v10006_v34  ;;  %13887 = vst [vmem:[#allocation152_spill] sm:$0xff] %v10008_v6  ;;  %v4485_v26 = vmul.f32 %v8504_v11, %v9663_v55  ;;  %v13888_v13 = vld [vmem:[#allocation111_spill] sm:$0xff] }
 0x336   : > { %13885 = vst [vmem:[#allocation150_spill] sm:$0xff] %v9997_v57  ;;  %v4887_v43 = vsel %vm2702_vm4, %v9997_v57, -inf  ;;  %v2497_v38 = vrot.slane %v2361_v36, 1  ;;  %v1548_v51 = vsel %vm13882_vm3, %v9665_v63, %v9663_v55  ;;  %1600 = vrot.lane.b32.xlu1 %v13888_v13, %s13501_s14  ;;  %v4819_v41 = vmax.f32 %v9885_v27, %v9993_v21 }
 0x337   : > { %v2766_v37 = vmax.f32 %v2762_v52, %v2765_v25  ;;  %v10022_v34 = vadd.f32 %v4618_v29, %v4406_v59  ;;  %v4409_v6 = vmul.f32 %v8541_v16, %v9663_v55  ;;  %v2697_v36 = vsel %vm2634_vm10, %v10001_v33, -inf }
 0x338   : > { %v2633_v57 = vadd.f32 %v2497_v38, %v2285_v5  ;;  %v4621_v22 = vrot.slane %v4485_v26, 1  ;;  %v2360_v20 = vmul.f32 %v8506_v42, %v1548_v51  ;;  %v4890_v63 = vmax.f32 %v4887_v43, %v4888_v7  ;;  %v10038_v21 = vpop.permute.xlu0 %1769  ;;  %v10040_v25 = vpop.permute.xlu1 %1767  ;;  %v13891_v7 = vld [vmem:[#allocation119_spill] sm:$0xff]  ;;  %v2205_v38 = vld [vmem:[%s865_s1] sm:$0x3] }
 0x339   : > { %v4820_v27 = vsel %vm2634_vm10, %v10022_v34, -inf  ;;  %v4484_v52 = vmul.f32 %v8504_v11, %v1548_v51  ;;  %vm13889_vm3 = vcmask 556032   ;;  %13890 = vst [vmem:[#allocation111_spill] sm:$0xff] %v10038_v21  ;;  %v2284_v59 = vmul.f32 %v8553_v40, %v1548_v51  ;;  %v13942_v21 = vld [vmem:[#allocation117_spill] sm:$0xff] }
 0x33a   : > { %v1694_v55 = vsel %vm13889_vm3, %v9706_v61, %v9704_v28  ;;  %v2767_v42 = vsel %vm2702_vm4, %v2633_v57, -inf  ;;  %v4757_v26 = vadd.f32 %v4621_v22, %v4409_v6  ;;  %v2496_v29 = vrot.slane %v2360_v20, 1  ;;  %1672 = vrot.lane.b32.xlu1 %v13891_v7, %s13504_s21 }
 0x33b   : > { %1808 = vrot.lane.b32.xlu0 %v1694_v55, %s6885_s29  ;;  %v13892_v11 = vmax.f32 %v9821_v58, %v9914_v12  ;;  %v2768_v28 = vmax.f32 %v2764_v30, %v2767_v42  ;;  %v4408_v61 = vmul.f32 %v8541_v16, %v1548_v51  ;;  %v4620_v43 = vrot.slane %v4484_v52, 1 }
 0x33c   : > { %v13893_v6 = vmax.f32 %v9854_v56, %v9925_v44  ;;  %v4889_v20 = vsel %vm2702_vm4, %v4757_v26, -inf  ;;  %v10059_v22 = vadd.f32 %v2496_v29, %v2284_v59  ;;  %vm13894_vm3 = vcmask 547840   ;;  %v13896_v44 = vld [vmem:[#allocation101_spill] sm:$0xff] }
 0x33d   : > { %v10050_v5 = vmax.f32 %v13892_v11, %v2697_v36  ;;  %v1701_v58 = vsel %vm13894_vm3, %v9738_v53, %v9736_v23  ;;  %v2769_v12 = vmax.f32 %v2766_v37, %v2768_v28  ;;  %v4891_v13 = vmax.f32 %v4889_v20, %v4890_v63  ;;  %v10100_v36 = vpop.permute.xlu1 %1732  ;;  %v13921_v20 = vld [vmem:[#allocation145_spill] sm:$0xff] }
 0x33e   : > { %v10056_v40 = vmax.f32 %v13893_v6, %v4820_v27  ;;  %v10064_v30 = vadd.f32 %v4620_v43, %v4408_v61  ;;  %vm13895_vm15 = vcmask 539648   ;;  %v2699_v56 = vsel %vm2634_vm10, %v10059_v22, -inf  ;;  %1818 = vrot.lane.b32.xlu1 %v9833_v15, %s6885_s29  ;;  %v13937_v6 = vld [vmem:[#allocation140_spill] sm:$0xff]  ;;  %v13939_v43 = vld [vmem:[#allocation103_spill] sm:$0xff] }
 0x33f   : > { %v10069_v16 = vsel %vm13895_vm15, %v9772_v2, %v9770_v49  ;;  %1584 = vrot.lane.b32.xlu0 %v13896_v44, %s13480_s11  ;;  %v10078_v51 = vsel %vm1233_vm0, %v9804_v1, %v9802_v4  ;;  %vm13897_vm4 = vcmask 424960   ;;  %v13898_v49 = vld [vmem:[#allocation56_spill] sm:$0xff]  ;;  %v10098_v1 = vpop.permute.xlu0 %1734  ;;  %vm13906_vm15 = vcmask 834560   ;;  %v13923_v44 = vld [vmem:[#allocation59_spill] sm:$0xff]  ;;  %s14612_s11 = sld [smem:[#allocation166_spill]] }
 0x340   : > { %v10083_v23 = vsel %vm13897_vm4, %v9833_v15, %v9831_v62  ;;  %v10088_v53 = vrot.slane %v2205_v38, %v13898_v49  ;;  %v10091_v2 = vrot.slane %v2769_v12, %v13898_v49  ;;  %v10094_v37 = vrot.slane %v4891_v13, %v13898_v49  ;;  %13902 = vst [vmem:[#allocation154_spill] sm:$0xff] %v10098_v1  ;;  %v13903_v62 = vld [vmem:[#allocation53_spill] sm:$0xff]  ;;  %v13936_v12 = vld [vmem:[#allocation26_spill] sm:$0xff] }
 0x341   : > { %v4822_v4 = vsel %vm2634_vm10, %v10064_v30, -inf  ;;  %v10103_v63 = vrot.slane %v2205_v38, %v13903_v62  ;;  %v13905_v15 = vmax.f32 %v9883_v48, %v9964_v17  ;;  %v10115_v55 = vsel %vm13906_vm15, %v9867_v32, %v9865_v45  ;;  %v13914_v45 = vld [vmem:[#allocation70_spill] sm:$0xff]  ;;  %v10166_v38 = vpop.permute.xlu1 %1774  ;;  %v13922_v13 = vld [vmem:[#allocation149_spill] sm:$0xff]  ;;  %v13924_v62 = vld [vmem:[#allocation107_spill] sm:$0xff] }
 0x342   : > { %13899 = vst [vmem:[#allocation119_spill] sm:$0xff] %v10088_v53  ;;  %13900 = vst [vmem:[#allocation101_spill] sm:$0xff] %v10091_v2  ;;  %v10110_v52 = vmax.f32 %v4819_v41, %v4822_v4  ;;  %vm13908_vm10 = vcmask 416768   ;;  %v2845_v59 = vsub.f32 %v2633_v57, %v10091_v2  ;;  %v4967_v29 = vsub.f32 %v4757_v26, %v10094_v37  ;;  %1842 = vrot.lane.b32.xlu1 %v9867_v32, %s6885_s29  ;;  %v13916_v32 = vld [vmem:[#allocation136_spill] sm:$0xff]  ;;  %v13930_v4 = vld [vmem:[#allocation114_spill] sm:$0xff] }
 0x343   : > { %13901 = vst [vmem:[#allocation153_spill] sm:$0xff] %v10094_v37  ;;  %13904 = vst [vmem:[#allocation53_spill] sm:$0xff] %v10103_v63  ;;  %v10108_v27 = vmax.f32 %v13905_v15, %v2699_v56  ;;  %v10120_v42 = vsel %vm13908_vm10, %v9901_v0, %v9899_v14  ;;  %vm13910_vm3 = vcmask 285696   ;;  %vm13912_vm4 = vcmask 809984   ;;  %v13929_v56 = vld [vmem:[#allocation109_spill] sm:$0xff]  ;;  %v13931_v15 = vld [vmem:[#allocation122_spill] sm:$0xff] }
 0x344   : > { %13907 = vst [vmem:[#allocation155_spill] sm:$0xff] %v10115_v55  ;;  %13909 = vst [vmem:[#allocation156_spill] sm:$0xff] %v10120_v42  ;;  %v10127_v48 = vsel %vm13910_vm3, %v9935_v54, %v9933_v10  ;;  %v10132_v17 = vsel %vm13912_vm4, %v9973_v3, %v9971_v60  ;;  %v2811_v41 = vsub.f32 %v13914_v45, %v10091_v2  ;;  %v13915_v10 = vld [vmem:[#allocation46_spill] sm:$0xff]  ;;  %v2980_v7 = vmul.f32 1.442695, %v2845_v59  ;;  %v13925_v59 = vld [vmem:[#allocation28_spill] sm:$0xff] }
 0x345   : > { %13911 = vst [vmem:[#allocation157_spill] sm:$0xff] %v10127_v48  ;;  %13913 = vst [vmem:[#allocation158_spill] sm:$0xff] %v10132_v17  ;;  %v2813_v14 = vsub.f32 %v9088_v39, %v10091_v2  ;;  %v2815_v57 = vsub.f32 %v9306_v9, %v10091_v2  ;;  %v2817_v26 = vsub.f32 %v9359_v24, %v10091_v2  ;;  %1656 = vrot.lane.b32.xlu0 %v13915_v10, %s13483_s16  ;;  %v13926_v45 = vld [vmem:[#allocation108_spill] sm:$0xff]  ;;  %v10217_v63 = vpop.permute.xlu1 %1781  ;;  %v13943_v17 = vld [vmem:[#allocation150_spill] sm:$0xff]  ;;  %vm13947_vm15 = vcmask 392192  }
 0x346   : > { %v5102_v11 = vmul.f32 1.442695, %v4967_v29  ;;  %v2819_v60 = vsub.f32 %v9408_v8, %v10091_v2  ;;  %v2821_v28 = vsub.f32 %v9450_v35, %v10091_v2  ;;  %v2823_v39 = vsub.f32 %v9493_v50, %v10091_v2  ;;  %v10164_v50 = vpop.permute.xlu0 %1776  ;;  %13918 = vst [vmem:[#allocation46_spill] sm:$0xff] %v10166_v38  ;;  %1609 = vrot.lane.b32.xlu1 %v13926_v45, %s13506_s25  ;;  %v13927_v10 = vld [vmem:[#allocation36_spill] sm:$0xff]  ;;  %v13932_v29 = vld [vmem:[#allocation125_spill] sm:$0xff]  ;;  %v13940_v35 = vld [vmem:[#allocation146_spill] sm:$0xff] }
 0x347   : > { %v2825_v9 = vsub.f32 %v9548_v31, %v10091_v2  ;;  %v2827_v24 = vsub.f32 %v9588_v46, %v10091_v2  ;;  %v2829_v61 = vsub.f32 %v9625_v47, %v10091_v2  ;;  %6524 = vpow2.f32 %v2980_v7  ;;  %13917 = vst [vmem:[#allocation70_spill] sm:$0xff] %v10164_v50  ;;  %v13919_v46 = vld [vmem:[#allocation139_spill] sm:$0xff]  ;;  %v13920_v47 = vld [vmem:[#allocation142_spill] sm:$0xff]  ;;  %v13933_v45 = vld [vmem:[#allocation128_spill] sm:$0xff] }
 0x348   : > { %6526 = vpow2.f32 %v5102_v11  ;;  %v13934_v7 = vld [vmem:[#allocation131_spill] sm:$0xff]  ;;  %v13935_v11 = vld [vmem:[#allocation134_spill] sm:$0xff]  ;;  %v2701_v8 = vmax.f32 %v10050_v5, %v10108_v27  ;;  %v4824_v50 = vmax.f32 %v10056_v40, %v10110_v52  ;;  %v2912_v42 = vmul.f32 1.442695, %v2811_v41  ;;  %13941 = vst [vmem:[#allocation136_spill] sm:$0xff] %v10217_v63 }
 0x349   : > { %1812 = vrot.lane.b32.xlu0 %v1701_v58, %s6885_s29  ;;  %v13928_v58 = vld [vmem:[#allocation39_spill] sm:$0xff]  ;;  %v10225_v55 = vmul.f32 1.442695, %v2815_v57  ;;  %v10227_v48 = vmul.f32 1.442695, %v2817_v26  ;;  %v13946_v57 = vld [vmem:[#allocation16_spill] sm:$0xff] }
 0x34a   : > { %v13938_v31 = vld [vmem:[#allocation115_spill] sm:$0xff]  ;;  %v1784_v1 = vpop.permute.xlu0 %1783  ;;  %1681 = vrot.lane.b32.xlu1 %v13942_v21, %s13507_s23  ;;  %v10230_v5 = vrot.slane %v2701_v8, %v13898_v49  ;;  %v10233_v40 = vrot.slane %v4824_v50, %v13898_v49  ;;  %v10235_v27 = vmul.f32 1.442695, %v2819_v60  ;;  %v10237_v52 = vmul.f32 1.442695, %v2821_v28  ;;  %v13959_v49 = vld [vmem:[#allocation45_spill] sm:$0xff] }
 0x34b   : > { %v10239_v21 = vmul.f32 1.442695, %v2823_v39  ;;  %v10241_v41 = vmul.f32 1.442695, %v2825_v9  ;;  %v10249_v26 = vsel %vm13947_vm15, %v10217_v63, %v1784_v1  ;;  %6528 = vpow2.f32 %v2912_v42  ;;  %v13955_v1 = vld [vmem:[#allocation14_spill] sm:$0xff] }
 0x34c   : > { %13944 = vst [vmem:[#allocation139_spill] sm:$0xff] %v10230_v5  ;;  %13945 = vst [vmem:[#allocation142_spill] sm:$0xff] %v10233_v40  ;;  %v2842_v60 = vsub.f32 %v10001_v33, %v10230_v5  ;;  %v2844_v28 = vsub.f32 %v10059_v22, %v10230_v5  ;;  %v4964_v39 = vsub.f32 %v10022_v34, %v10233_v40  ;;  %v10268_v33 = vmul.f32 1.442695, %v2829_v61  ;;  %v13957_v42 = vld [vmem:[#allocation98_spill] sm:$0xff]  ;;  %v13964_v34 = vld [vmem:[#allocation129_spill] sm:$0xff] }
 0x34d   : > { %1593 = vrot.lane.b32.xlu0 %v13939_v43, %s13486_s12  ;;  %v10223_v43 = vmul.f32 1.442695, %v2813_v14  ;;  %v10243_v14 = vmul.f32 1.442695, %v2827_v24  ;;  %13948 = vst [vmem:[#allocation145_spill] sm:$0xff] %v10249_v26  ;;  %v4966_v9 = vsub.f32 %v10064_v30, %v10233_v40  ;;  %v13954_v30 = vld [vmem:[#allocation33_spill] sm:$0xff]  ;;  %v13977_v50 = vsub.f32 %v13919_v46, %v10091_v2 }
 0x34e   : > { %1822 = vrot.lane.b32.xlu1 %v9901_v0, %s6885_s29  ;;  %13952 = vst [vmem:[#allocation107_spill] sm:$0xff] %v10268_v33  ;;  %v2974_v22 = vmul.f32 1.442695, %v2842_v60  ;;  %v2978_v53 = vmul.f32 1.442695, %v2844_v28  ;;  %v13958_v60 = vld [vmem:[#allocation38_spill] sm:$0xff]  ;;  %v10309_v28 = vpop.permute.xlu1 %1788  ;;  %v14008_v46 = vsub.f32 %v13924_v62, %v10094_v37  ;;  %v14014_v62 = vsub.f32 %v13928_v58, %v10094_v37 }
 0x34f   : > { %v5096_v63 = vmul.f32 1.442695, %v4964_v39  ;;  %v5100_v38 = vmul.f32 1.442695, %v4966_v9  ;;  %v13960_v39 = vld [vmem:[#allocation112_spill] sm:$0xff]  ;;  %v13963_v61 = vld [vmem:[#allocation126_spill] sm:$0xff]  ;;  %v13973_v9 = vsub.f32 %v9674_v18, %v10091_v2  ;;  %v13979_v18 = vsub.f32 %v13920_v47, %v10091_v2 }
 0x350   : > { %6530 = vpow2.f32 %v2974_v22  ;;  %v13961_v0 = vld [vmem:[#allocation120_spill] sm:$0xff]  ;;  %v13962_v22 = vld [vmem:[#allocation123_spill] sm:$0xff]  ;;  %13970 = vst [vmem:[#allocation108_spill] sm:$0xff] %v10309_v28  ;;  %vm14023_vm10 = vcmask 1041409   ;;  %vm13354_vm4 = vcmask 760832  }
 0x351   : > { %1665 = vrot.lane.b32.xlu0 %v13946_v57, %s13489_s3  ;;  %v10251_v8 = vpop.eup %6524  ;;  %v13956_v57 = vld [vmem:[#allocation37_spill] sm:$0xff]  ;;  %6532 = vpow2.f32 %v2978_v53  ;;  %v13966_v53 = vld [vmem:[#allocation135_spill] sm:$0xff]  ;;  %vm14030_vm3 = vmmov %vm14023_vm10 }
 0x352   : > { %13949 = vst [vmem:[#allocation149_spill] sm:$0xff] %v10251_v8  ;;  %v10263_v24 = vpop.eup %6526  ;;  %1834 = vrot.lane.b32.xlu1 %v9935_v54, %s6885_s29  ;;  %6534 = vpow2.f32 %v5096_v63  ;;  %v10307_v63 = vpop.permute.xlu0 %1790  ;;  %v13971_v26 = vld [vmem:[#allocation143_spill] sm:$0xff]  ;;  %v13974_v8 = vsub.f32 %v9723_v19, %v10091_v2  ;;  %v13995_v19 = vld [vmem:[#allocation124_spill] sm:$0xff]  ;;  %vm14109_vm15 = vmmov %vm14030_vm3 }
 0x353   : > { %13950 = vst [vmem:[#allocation59_spill] sm:$0xff] %v10263_v24  ;;  %6536 = vpow2.f32 %v5100_v38  ;;  %v13967_v24 = vld [vmem:[#allocation137_spill] sm:$0xff]  ;;  %13969 = vst [vmem:[#allocation28_spill] sm:$0xff] %v10307_v63  ;;  %v13972_v38 = vld [vmem:[#allocation147_spill] sm:$0xff]  ;;  %v10335_v63 = vmul.f32 1.442695, %v13977_v50 }
 0x354   : > { %v10323_v33 = vmul.f32 1.442695, %v13974_v8  ;;  %v13987_v47 = vld [vmem:[#allocation83_spill] sm:$0xff]  ;;  %v13989_v8 = vld [vmem:[#allocation30_spill] sm:$0xff]  ;;  %v10406_v50 = vmul.f32 1.442695, %v14008_v46  ;;  %6538 = vpow2.f32 %v10223_v43 }
 0x355   : > { %1804 = vrot.lane.b32.xlu0 %v13956_v57, %s6885_s29  ;;  %v10318_v57 = vmul.f32 1.442695, %v13973_v9  ;;  %13978 = vst [vmem:[#allocation39_spill] sm:$0xff] %v10335_v63  ;;  %v10340_v9 = vmul.f32 1.442695, %v13979_v18  ;;  %v13997_v63 = vld [vmem:[#allocation152_spill] sm:$0xff]  ;;  %6540 = vpow2.f32 %v10225_v55  ;;  %v14027_v55 = vsub.f32 %v13936_v12, %v10094_v37 }
 0x356   : > { %1846 = vrot.lane.b32.xlu1 %v9973_v3, %s6885_s29  ;;  %v13982_v3 = vsub.f32 %v13921_v20, %v10091_v2  ;;  %v13990_v20 = vld [vmem:[#allocation20_spill] sm:$0xff]  ;;  %v14000_v18 = vld [vmem:[#allocation102_spill] sm:$0xff]  ;;  %14009 = vst [vmem:[#allocation26_spill] sm:$0xff] %v10406_v50  ;;  %v10425_v46 = vmul.f32 1.442695, %v14014_v62  ;;  %6542 = vpow2.f32 %v10227_v48  ;;  %v14032_v12 = vsub.f32 %v13938_v31, %v10094_v37 }
 0x357   : > { %13980 = vst [vmem:[#allocation109_spill] sm:$0xff] %v10340_v9  ;;  %v10358_v9 = vpop.eup %6528  ;;  %6544 = vpow2.f32 %v10235_v27  ;;  %v14036_v31 = vsub.f32 %v13955_v1, %v10230_v5  ;;  %v14040_v1 = vsub.f32 %v13960_v39, %v10230_v5 }
 0x358   : > { %v10347_v28 = vmul.f32 1.442695, %v13982_v3  ;;  %13988 = vst [vmem:[#allocation125_spill] sm:$0xff] %v10358_v9  ;;  %v10390_v9 = vpop.permute.xlu1 %4032  ;;  %v14012_v3 = vsub.f32 %v13925_v59, %v10094_v37  ;;  %v14017_v59 = vsub.f32 %v13929_v56, %v10094_v37  ;;  %v14021_v56 = vsub.f32 %v13932_v29, %v10094_v37 }
 0x359   : > { %1816 = vrot.lane.b32.xlu0 %v10069_v16, %s6885_s29  ;;  %v13975_v16 = vsub.f32 %v13916_v32, %v10091_v2  ;;  %v13984_v32 = vsub.f32 %v13922_v13, %v10091_v2  ;;  %14003 = vst [vmem:[#allocation131_spill] sm:$0xff] %v10390_v9  ;;  %v14007_v13 = vsub.f32 %v13923_v44, %v10094_v37  ;;  %v14011_v9 = vld [vmem:[#allocation148_spill] sm:$0xff]  ;;  %6546 = vpow2.f32 %v10237_v52 }
 0x35a   : > { %13983 = vst [vmem:[#allocation114_spill] sm:$0xff] %v10347_v28  ;;  %1826 = vrot.lane.b32.xlu1 %v13997_v63, %s6885_s29  ;;  %v10388_v28 = vpop.permute.xlu0 %4034  ;;  %v10415_v63 = vmul.f32 1.442695, %v14012_v3  ;;  %v14013_v44 = vsub.f32 %v13927_v10, %v10094_v37  ;;  %v10435_v3 = vmul.f32 1.442695, %v14017_v59  ;;  %v14018_v10 = vsub.f32 %v13930_v4, %v10094_v37 }
 0x35b   : > { %v10330_v54 = vmul.f32 1.442695, %v13975_v16  ;;  %v10352_v16 = vmul.f32 1.442695, %v13984_v32  ;;  %14002 = vst [vmem:[#allocation128_spill] sm:$0xff] %v10388_v28  ;;  %v14015_v32 = vld [vmem:[#allocation110_spill] sm:$0xff]  ;;  %v14022_v4 = vsub.f32 %v13933_v45, %v10094_v37  ;;  %v14026_v29 = vsub.f32 %v13935_v11, %v10094_v37 }
 0x35c   : > { %v10455_v59 = vmul.f32 1.442695, %v14021_v56  ;;  %v10482_v56 = vmul.f32 1.442695, %v14027_v55  ;;  %v10494_v11 = vpop.permute.xlu1 %4036  ;;  %v14034_v55 = vsub.f32 %v13943_v17, %v10094_v37  ;;  %v14038_v17 = vsub.f32 %v13958_v60, %v10230_v5 }
 0x35d   : > { %13976 = vst [vmem:[#allocation36_spill] sm:$0xff] %v10330_v54  ;;  %13985 = vst [vmem:[#allocation122_spill] sm:$0xff] %v10352_v16  ;;  %1840 = vrot.lane.b32.xlu0 %v10078_v51, %s6885_s29  ;;  %v10392_v16 = vpop.eup %6530  ;;  %v14006_v54 = vld [vmem:[#allocation144_spill] sm:$0xff]  ;;  %v10401_v51 = vmul.f32 1.442695, %v14007_v13  ;;  %6548 = vpow2.f32 %v10239_v21  ;;  %v14041_v52 = vsub.f32 %v13961_v0, %v10230_v5  ;;  %v14042_v60 = vsub.f32 %v13962_v22, %v10230_v5 }
 0x35e   : > { %14004 = vst [vmem:[#allocation134_spill] sm:$0xff] %v10392_v16  ;;  %v10408_v28 = vpop.eup %6532  ;;  %v10420_v13 = vmul.f32 1.442695, %v14013_v44  ;;  %v10440_v44 = vmul.f32 1.442695, %v14018_v10  ;;  %1850 = vrot.lane.b32.xlu1 %v10040_v25, %s6885_s29  ;;  %v10492_v48 = vpop.permute.xlu0 %4038  ;;  %6550 = vpow2.f32 %v10241_v41  ;;  %v14044_v21 = vsub.f32 %v13964_v34, %v10230_v5  ;;  %v14045_v22 = vld [vmem:[#allocation132_spill] sm:$0xff] }
 0x35f   : > { %14010 = vst [vmem:[#allocation140_spill] sm:$0xff] %v10408_v28  ;;  %v10429_v50 = vpop.eup %6534  ;;  %v3169_v2 = vrot.slane %v10408_v28, 7  ;;  %v10460_v10 = vmul.f32 1.442695, %v14022_v4  ;;  %v10477_v45 = vmul.f32 1.442695, %v14026_v29  ;;  %6552 = vpow2.f32 %v10243_v14 }
 0x360   : > { %14016 = vst [vmem:[#allocation115_spill] sm:$0xff] %v10429_v50  ;;  %v10445_v58 = vpop.eup %6536  ;;  %v10503_v29 = vmul.f32 1.442695, %v14032_v12  ;;  %v10525_v12 = vmul.f32 1.442695, %v14036_v31  ;;  %v14047_v41 = vsub.f32 %v13966_v53, %v10230_v5  ;;  %v14050_v14 = vsub.f32 %v13967_v24, %v10230_v5 }
 0x361   : > { %1602 = vrot.lane.b32.xlu0 %v14015_v32, %s13501_s14  ;;  %14019 = vst [vmem:[#allocation103_spill] sm:$0xff] %v10445_v58  ;;  %v14020_v32 = vsub.f32 %v13931_v15, %v10094_v37  ;;  %v10465_v43 = vsel %vm14023_vm10, %v3169_v2, %v10392_v16  ;;  %v5284_v15 = vrot.slane %v10445_v58, 7  ;;  %v14028_v2 = vsub.f32 %v13937_v6, %v10094_v37  ;;  %vm14121_vm10 = vmmov %vm14030_vm3  ;;  %s14613_s14 = sld [smem:[#allocation165_spill]] }
 0x362   : > { %14024 = vst [vmem:[#allocation146_spill] sm:$0xff] %v10465_v43  ;;  %v14033_v6 = vsub.f32 %v13940_v35, %v10094_v37  ;;  %1830 = vrot.lane.b32.xlu1 %v10100_v36, %s6885_s29  ;;  %v14037_v35 = vsub.f32 %v13957_v42, %v10230_v5  ;;  %v10546_v31 = vmul.f32 1.442695, %v14040_v1  ;;  %v10552_v42 = vmul.f32 1.442695, %v14041_v52  ;;  %v14048_v1 = vld [vmem:[#allocation46_spill] sm:$0xff] }
 0x363   : > { %v10450_v62 = vmul.f32 1.442695, %v14020_v32  ;;  %v14025_v32 = vsub.f32 %v13934_v7, %v10094_v37  ;;  %v10487_v4 = vmul.f32 1.442695, %v14028_v2  ;;  %v14029_v7 = vld [vmem:[#allocation118_spill] sm:$0xff]  ;;  %v14051_v52 = vld [vmem:[#allocation104_spill] sm:$0xff]  ;;  %v14053_v53 = vsub.f32 %v13971_v26, %v10230_v5 }
 0x364   : > { %v10508_v27 = vmul.f32 1.442695, %v14033_v6  ;;  %v10513_v2 = vmul.f32 1.442695, %v14034_v55  ;;  %v10530_v6 = vmul.f32 1.442695, %v14037_v35  ;;  %v14055_v24 = vsub.f32 %v13972_v38, %v10230_v5 }
 0x365   : > { %v10471_v28 = vmul.f32 1.442695, %v14025_v32  ;;  %1674 = vrot.lane.b32.xlu0 %v14029_v7, %s13504_s21  ;;  %v10498_v32 = vsel %vm14030_vm3, %v5284_v15, %v10429_v50  ;;  %v14035_v15 = vsub.f32 %v13954_v30, %v10230_v5  ;;  %v10536_v55 = vmul.f32 1.442695, %v14038_v17  ;;  %s14618_s21 = sand.u32 1, %s6834_s27   ;;  %s6420_s27 = sshll.u32 (%p7016_p8), %s6985_s30, 2 }
 0x366   : > { %14031 = vst [vmem:[#allocation117_spill] sm:$0xff] %v10498_v32  ;;  %v14039_v30 = vsub.f32 %v13959_v49, %v10230_v5  ;;  %v10557_v35 = vmul.f32 1.442695, %v14042_v60  ;;  %v14043_v49 = vsub.f32 %v13963_v61, %v10230_v5  ;;  %v10571_v0 = vmul.f32 1.442695, %v14044_v21  ;;  %1854 = vrot.lane.b32.xlu1 %v14048_v1, %s6885_s29  ;;  %s6405_s13 = sshll.u32 %s14618_s21, 3  ;;  %s6133_s4 = scalar_lea.vmem (%p7016_p8), %s14620_s15, %s6420_s27 }
 0x367   : > { %v10520_v7 = vmul.f32 1.442695, %v14035_v15  ;;  %v14046_v17 = vsub.f32 %v14045_v22, %v10230_v5  ;;  %v10581_v61 = vmul.f32 1.442695, %v14047_v41  ;;  %v10589_v34 = vmul.f32 1.442695, %v14050_v14  ;;  %v10601_v22 = vpop.permute.xlu0 %1797  ;;  %v10605_v41 = vpop.eup %6538 }
 0x368   : > { %v10541_v15 = vmul.f32 1.442695, %v14039_v30  ;;  %v10563_v39 = vmul.f32 1.442695, %v14043_v49  ;;  %v14052_v60 = vsub.f32 %v14051_v52, %v10230_v5  ;;  %v10599_v21 = vmul.f32 1.442695, %v14053_v53  ;;  %v10623_v53 = vpop.eup %6540 }
 0x369   : > { %1820 = vrot.lane.b32.xlu0 %v10083_v23, %s6885_s29  ;;  %v10576_v30 = vmul.f32 1.442695, %v14046_v17  ;;  %v14049_v23 = vld [vmem:[#allocation107_spill] sm:$0xff]  ;;  %v10603_v17 = vpop.permute.xlu1 %1795  ;;  %14054 = vst [vmem:[#allocation150_spill] sm:$0xff] %v10605_v41  ;;  %v14056_v14 = vsub.f32 %v13987_v47, %v10233_v40  ;;  %v14057_v26 = vsub.f32 %v13989_v8, %v10233_v40  ;;  %14058 = vst [vmem:[#allocation16_spill] sm:$0xff] %v10623_v53  ;;  %v10643_v58 = vpop.eup %6542  ;;  %vm14126_vm3 = vcmask 285696  }
 0x36a   : > { %6554 = vpow2.f32 %v14049_v23  ;;  %v10594_v49 = vmul.f32 1.442695, %v14052_v60  ;;  %v10611_v23 = vmul.f32 1.442695, %v14055_v24  ;;  %v14060_v24 = vld [vmem:[#allocation99_spill] sm:$0xff]  ;;  %14066 = vst [vmem:[#allocation14_spill] sm:$0xff] %v10643_v58  ;;  %v10663_v5 = vpop.eup %6544 }
 0x36b   : > { %6556 = vpow2.f32 %v10318_v57  ;;  %v10616_v52 = vmul.f32 1.442695, %v14056_v14  ;;  %v10621_v60 = vmul.f32 1.442695, %v14057_v26  ;;  %v14059_v57 = vsub.f32 %v13990_v20, %v10233_v40  ;;  %v14062_v14 = vld [vmem:[#allocation100_spill] sm:$0xff]  ;;  %v14065_v26 = vld [vmem:[#allocation155_spill] sm:$0xff] }
 0x36c   : > { %6558 = vpow2.f32 %v10323_v33  ;;  %v14061_v50 = vsub.f32 %v14060_v24, %v10233_v40  ;;  %v14063_v16 = vsub.f32 %v14062_v14, %v10233_v40  ;;  %v14067_v33 = vld [vmem:[#allocation36_spill] sm:$0xff]  ;;  %v14068_v20 = vld [vmem:[#allocation113_spill] sm:$0xff]  ;;  %14077 = vst [vmem:[#allocation45_spill] sm:$0xff] %v10663_v5 }
 0x36d   : > { %v10629_v38 = vmul.f32 1.442695, %v14059_v57  ;;  %1844 = vrot.lane.b32.xlu0 %v14065_v26, %s6885_s29  ;;  %6560 = vpow2.f32 %v14067_v33  ;;  %v14069_v57 = vsub.f32 %v14068_v20, %v10233_v40  ;;  %v14071_v24 = vld [vmem:[#allocation121_spill] sm:$0xff]  ;;  %v14076_v26 = vld [vmem:[#allocation136_spill] sm:$0xff]  ;;  %v14078_v33 = vld [vmem:[#allocation39_spill] sm:$0xff] }
 0x36e   : > { %v10634_v47 = vmul.f32 1.442695, %v14061_v50  ;;  %v10639_v8 = vmul.f32 1.442695, %v14063_v16  ;;  %v14072_v50 = vsub.f32 %v14071_v24, %v10233_v40  ;;  %v14074_v16 = vsub.f32 %v13995_v19, %v10233_v40  ;;  %1858 = vrot.lane.b32.xlu1 %v14076_v26, %s6885_s29  ;;  %v14079_v20 = vld [vmem:[#allocation127_spill] sm:$0xff]  ;;  %v14082_v24 = vld [vmem:[#allocation130_spill] sm:$0xff] }
 0x36f   : > { %v10649_v32 = vmul.f32 1.442695, %v14069_v57  ;;  %6562 = vpow2.f32 %v14078_v33  ;;  %v14080_v57 = vsub.f32 %v14079_v20, %v10233_v40  ;;  %v14085_v19 = vld [vmem:[#allocation133_spill] sm:$0xff]  ;;  %v14089_v33 = vsub.f32 %v14000_v18, %v10233_v40  ;;  %v14091_v20 = vld [vmem:[#allocation138_spill] sm:$0xff] }
 0x370   : > { %14064 = vst [vmem:[#allocation33_spill] sm:$0xff] %v10639_v8  ;;  %v10654_v43 = vmul.f32 1.442695, %v14072_v50  ;;  %v10659_v14 = vmul.f32 1.442695, %v14074_v16  ;;  %v14083_v50 = vsub.f32 %v14082_v24, %v10233_v40  ;;  %v14086_v16 = vsub.f32 %v14085_v19, %v10233_v40  ;;  %v14088_v26 = vld [vmem:[#allocation109_spill] sm:$0xff]  ;;  %v10697_v19 = vpop.eup %6546 }
 0x371   : > { %14070 = vst [vmem:[#allocation37_spill] sm:$0xff] %v10649_v32  ;;  %v10669_v37 = vmul.f32 1.442695, %v14080_v57  ;;  %6564 = vpow2.f32 %v14088_v26  ;;  %v14092_v57 = vsub.f32 %v14091_v20, %v10233_v40  ;;  %v14094_v24 = vld [vmem:[#allocation141_spill] sm:$0xff]  ;;  %14097 = vst [vmem:[#allocation137_spill] sm:$0xff] %v10697_v19  ;;  %v14099_v26 = vsub.f32 %v14006_v54, %v10233_v40  ;;  %v14114_v32 = vld [vmem:[#allocation119_spill] sm:$0xff] }
 0x372   : > { %14073 = vst [vmem:[#allocation98_spill] sm:$0xff] %v10654_v43  ;;  %14075 = vst [vmem:[#allocation38_spill] sm:$0xff] %v10659_v14  ;;  %v10674_v1 = vmul.f32 1.442695, %v14083_v50  ;;  %v10679_v14 = vmul.f32 1.442695, %v14086_v16  ;;  %v14095_v50 = vsub.f32 %v14094_v24, %v10233_v40  ;;  %v10711_v24 = vpop.permute.xlu1 %4040  ;;  %v14104_v54 = vsub.f32 %v14011_v9, %v10233_v40 }
 0x373   : > { %14081 = vst [vmem:[#allocation112_spill] sm:$0xff] %v10669_v37  ;;  %v10685_v43 = vmul.f32 1.442695, %v14089_v33  ;;  %v10690_v37 = vmul.f32 1.442695, %v14092_v57  ;;  %v14098_v16 = vld [vmem:[#allocation114_spill] sm:$0xff] }
 0x374   : > { %14084 = vst [vmem:[#allocation120_spill] sm:$0xff] %v10674_v1  ;;  %14087 = vst [vmem:[#allocation123_spill] sm:$0xff] %v10679_v14  ;;  %v10695_v1 = vmul.f32 1.442695, %v14095_v50  ;;  %6566 = vpow2.f32 %v14098_v16  ;;  %v10703_v18 = vmul.f32 1.442695, %v14099_v26  ;;  %v10713_v50 = vpop.eup %6548 }
 0x375   : > { %14090 = vst [vmem:[#allocation126_spill] sm:$0xff] %v10685_v43  ;;  %14093 = vst [vmem:[#allocation129_spill] sm:$0xff] %v10690_v37  ;;  %v3127_v33 = vrot.slane %v10605_v41, 7  ;;  %v3129_v20 = vrot.slane %v10623_v53, 6  ;;  %v14101_v57 = vld [vmem:[#allocation105_spill] sm:$0xff]  ;;  %v10709_v37 = vpop.permute.xlu0 %4042  ;;  %v3131_v26 = vrot.slane %v10643_v58, 5 }
 0x376   : > { %14096 = vst [vmem:[#allocation135_spill] sm:$0xff] %v10695_v1  ;;  %14100 = vst [vmem:[#allocation143_spill] sm:$0xff] %v10703_v18  ;;  %1611 = vrot.lane.b32.xlu0 %v14101_v57, %s13506_s25  ;;  %v14103_v1 = vld [vmem:[#allocation122_spill] sm:$0xff]  ;;  %v10719_v16 = vmul.f32 1.442695, %v14104_v54  ;;  %v3133_v53 = vrot.slane %v10663_v5, 4  ;;  %v10725_v57 = vpop.eup %6550 }
 0x377   : > { %14102 = vst [vmem:[#allocation147_spill] sm:$0xff] %v10713_v50  ;;  %6568 = vpow2.f32 %v14103_v1  ;;  %v14106_v41 = vld [vmem:[#allocation108_spill] sm:$0xff]  ;;  %14107 = vst [vmem:[#allocation30_spill] sm:$0xff] %v10725_v57  ;;  %v3135_v18 = vrot.slane %v10697_v19, 3  ;;  %v14108_v43 = vld [vmem:[#allocation125_spill] sm:$0xff]  ;;  %v10734_v40 = vpop.eup %6552  ;;  %v3137_v5 = vrot.slane %v10713_v50, 2 }
 0x378   : > { %14105 = vst [vmem:[#allocation83_spill] sm:$0xff] %v10719_v16  ;;  %1862 = vrot.lane.b32.xlu1 %v14106_v41, %s6885_s29  ;;  %6570 = vpow2.f32 %v10401_v51  ;;  %v3128_v1 = vsel %vm14109_vm15, %v3127_v33, %v14108_v43  ;;  %v14110_v14 = vld [vmem:[#allocation128_spill] sm:$0xff]  ;;  %v14111_v9 = vld [vmem:[#allocation131_spill] sm:$0xff]  ;;  %14112 = vst [vmem:[#allocation20_spill] sm:$0xff] %v10734_v40  ;;  %v10740_v51 = vpop.eup %6554  ;;  %v3139_v33 = vrot.slane %v10725_v57, 1  ;;  %vm14128_vm15 = vcmask 48128  }
 0x379   : > { %v4045_v54 = vsel %vm13354_vm4, %v14111_v9, %v14110_v14  ;;  %v14113_v58 = vld [vmem:[#allocation26_spill] sm:$0xff]  ;;  %v3130_v16 = vsel %vm3054_vm8, %v3129_v20, %v3128_v1  ;;  %14115 = vst [vmem:[#allocation124_spill] sm:$0xff] %v10740_v51  ;;  %v4046_v14 = vsel %vm13354_vm4, %v10494_v11, %v10492_v48  ;;  %v10750_v9 = vpop.eup %6556  ;;  %v3155_v20 = vrot.slane %v10740_v51, 7  ;;  %v14284_v43 = vld [vmem:[#allocation19_spill] sm:$0xff]  ;;  %s762_s25 = scalar_lea.vmem [#allocation7], %s6405_s13 }
 0x37a   : > { %6572 = vpow2.f32 %v14113_v58  ;;  %v4051_v8 = vadd.f32 %v4045_v54, %v14114_v32  ;;  %v3132_v19 = vsel %vm3057_vm9, %v3131_v26, %v3130_v16  ;;  %v14116_v58 = vld [vmem:[#allocation116_spill] sm:$0xff]  ;;  %14117 = vst [vmem:[#allocation102_spill] sm:$0xff] %v10750_v9  ;;  %v10756_v57 = vpop.eup %6558  ;;  %v3157_v16 = vrot.slane %v10750_v9, 6  ;;  %v10761_v26 = vpop.permute.xlu0 %4120 }
 0x37b   : > { %6574 = vpow2.f32 %v10415_v63  ;;  %1683 = vrot.lane.b32.xlu0 %v14116_v58, %s13507_s23  ;;  %v3134_v1 = vsel %vm3060_vm6, %v3133_v53, %v3132_v19  ;;  %v14118_v63 = vld [vmem:[#allocation53_spill] sm:$0xff]  ;;  %14119 = vst [vmem:[#allocation144_spill] sm:$0xff] %v10756_v57  ;;  %v10763_v58 = vpop.permute.xlu1 %4118  ;;  %v3159_v53 = vrot.slane %v10756_v57, 5  ;;  %v3156_v19 = vsel %vm14121_vm10, %v3155_v20, %v10734_v40  ;;  %v14123_v9 = vld [vmem:[#allocation156_spill] sm:$0xff] }
 0x37c   : > { %6576 = vpow2.f32 %v10420_v13  ;;  %v6002_v50 = vadd.f32 %v14118_v63, %v4045_v54  ;;  %v3136_v48 = vsel %vm3063_vm13, %v3135_v18, %v3134_v1  ;;  %v4054_v11 = vmax.f32 %v4051_v8, 0.0  ;;  %v10765_v13 = vpop.eup %6560 }
 0x37d   : > { %6578 = vpow2.f32 %v10425_v46  ;;  %14120 = vst [vmem:[#allocation148_spill] sm:$0xff] %v10765_v13  ;;  %v3138_v46 = vsel %vm3066_vm11, %v3137_v5, %v3136_v48  ;;  %v10772_v54 = vpop.eup %6562  ;;  %v3161_v8 = vrot.slane %v10765_v13, 4  ;;  %v3158_v18 = vsel %vm3054_vm8, %v3157_v16, %v3156_v19  ;;  %v14127_v16 = vld [vmem:[#allocation28_spill] sm:$0xff] }
 0x37e   : > { %6580 = vpow2.f32 %v10435_v3  ;;  %14122 = vst [vmem:[#allocation110_spill] sm:$0xff] %v10772_v54  ;;  %v3140_v1 = vsel %vm3069_vm12, %v3139_v33, %v3138_v46  ;;  %v10780_v3 = vpop.eup %6564  ;;  %v3163_v20 = vrot.slane %v10772_v54, 3  ;;  %v3160_v5 = vsel %vm3057_vm9, %v3159_v53, %v3158_v18  ;;  %v14131_v18 = vld [vmem:[#allocation157_spill] sm:$0xff] }
 0x37f   : > { %6582 = vpow2.f32 %v10440_v44  ;;  %1824 = vrot.lane.b32.xlu0 %v14123_v9, %s6885_s29  ;;  %14124 = vst [vmem:[#allocation118_spill] sm:$0xff] %v10780_v3  ;;  %v6005_v48 = vmax.f32 %v6002_v50, 0.0  ;;  %v10785_v57 = vpop.eup %6566  ;;  %v3162_v44 = vsel %vm3060_vm6, %v3161_v8, %v3160_v5  ;;  %v10790_v33 = vsel %vm14126_vm3, %v3140_v1, 0.0  ;;  %v10814_v1 = vpop.permute.xlu1 %4122 }
 0x380   : > { %6584 = vpow2.f32 %v10450_v62  ;;  %14125 = vst [vmem:[#allocation132_spill] sm:$0xff] %v10785_v57  ;;  %v10795_v9 = vsel %vm14128_vm15, %v14106_v41, %v14127_v16  ;;  %v3165_v50 = vrot.slane %v10780_v3, 2  ;;  %v3164_v53 = vsel %vm3063_vm13, %v3163_v20, %v3162_v44 }
 0x381   : > { %6586 = vpow2.f32 %v10455_v59  ;;  %v10797_v62 = vpop.eup %6568  ;;  %v10802_v19 = vmul.f32 0.05882353, %v4054_v11  ;;  %v3167_v46 = vrot.slane %v10785_v57, 1  ;;  %v4052_v8 = vadd.f32 %v4046_v14, %v14114_v32 }
 0x382   : > { %14129 = vst [vmem:[#allocation107_spill] sm:$0xff] %v10797_v62  ;;  %6588 = vpow2.f32 %v10460_v10  ;;  %v10804_v59 = vpop.eup %6570  ;;  %v6003_v41 = vadd.f32 %v14118_v63, %v4046_v14  ;;  %v10812_v10 = vpop.permute.xlu0 %4124  ;;  %v10819_v11 = vmul.f32 0.05882353, %v6005_v48  ;;  %vm14133_vm10 = vcmask 1022976  }
 0x383   : > { %14130 = vst [vmem:[#allocation104_spill] sm:$0xff] %v10804_v59  ;;  %6590 = vpow2.f32 %v10471_v28  ;;  %1836 = vrot.lane.b32.xlu0 %v14131_v18, %s6885_s29  ;;  %v1799_v28 = vsel %vm14133_vm10, %v10603_v17, %v10601_v22  ;;  %v4047_v14 = vsel %vm13354_vm4, %v10711_v24, %v10709_v37  ;;  %v3166_v16 = vsel %vm3066_vm11, %v3165_v50, %v3164_v53  ;;  %v4207_v57 = vpop.permute.xlu1 %4206 }
 0x384   : > { %v10816_v20 = vpop.eup %6572  ;;  %6592 = vpow2.f32 %v10477_v45  ;;  %v4055_v18 = vmax.f32 %v4052_v8, 0.0  ;;  %1920 = vrot.lane.b32.xlu1 %v1799_v28, %s13507_s23  ;;  %v4053_v48 = vadd.f32 %v4047_v14, %v14114_v32  ;;  %v6004_v37 = vadd.f32 %v14118_v63, %v4047_v14  ;;  %v14138_v8 = vld [vmem:[#allocation158_spill] sm:$0xff] }
 0x385   : > { %14132 = vst [vmem:[#allocation99_spill] sm:$0xff] %v10816_v20  ;;  %v10827_v5 = vpop.eup %6574  ;;  %6594 = vpow2.f32 %v10482_v56  ;;  %v5242_v44 = vrot.slane %v10816_v20, 7  ;;  %vm14137_vm3 = vcmask 1041409   ;;  %v6006_v53 = vmax.f32 %v6003_v41, 0.0 }
 0x386   : > { %14134 = vst [vmem:[#allocation100_spill] sm:$0xff] %v10827_v5  ;;  %v10833_v45 = vpop.eup %6576  ;;  %6596 = vpow2.f32 %v10487_v4  ;;  %v5244_v17 = vrot.slane %v10827_v5, 6  ;;  %v10853_v28 = vsel %vm3069_vm12, %v3167_v46, %v3166_v16  ;;  %vm14148_vm15 = vmmov %vm14137_vm3  ;;  %vm14152_vm10 = vcmask 285696  }
 0x387   : > { %14135 = vst [vmem:[#allocation155_spill] sm:$0xff] %v10833_v45  ;;  %v10839_v24 = vpop.eup %6578  ;;  %6598 = vpow2.f32 %v10503_v29  ;;  %v5246_v56 = vrot.slane %v10833_v45, 5  ;;  %v5243_v50 = vsel %vm14137_vm3, %v5242_v44, %v10804_v59  ;;  %1848 = vrot.lane.b32.xlu0 %v14138_v8, %s6885_s29  ;;  %v4056_v44 = vmax.f32 %v4053_v48, 0.0  ;;  %v4209_v8 = vpop.permute.xlu0 %4208 }
 0x388   : > { %14136 = vst [vmem:[#allocation36_spill] sm:$0xff] %v10839_v24  ;;  %v10847_v4 = vpop.eup %6580  ;;  %6600 = vpow2.f32 %v10508_v27  ;;  %v5248_v32 = vrot.slane %v10839_v24, 4  ;;  %v5245_v63 = vsel %vm3054_vm8, %v5244_v17, %v5243_v50  ;;  %v14141_v27 = vld [vmem:[#allocation44_spill] sm:$0xff]  ;;  %v6007_v17 = vmax.f32 %v6004_v37, 0.0 }
 0x389   : > { %14139 = vst [vmem:[#allocation113_spill] sm:$0xff] %v10847_v4  ;;  %v10855_v29 = vpop.eup %6582  ;;  %6602 = vpow2.f32 %v10513_v2  ;;  %v5250_v41 = vrot.slane %v10847_v4, 3  ;;  %v5247_v14 = vsel %vm3057_vm9, %v5246_v56, %v5245_v63  ;;  %1916 = vrot.lane.b32.xlu1 %v14141_v27, %s13507_s23  ;;  %v10871_v56 = vmul.f32 0.05882353, %v4055_v18 }
 0x38a   : > { %14140 = vst [vmem:[#allocation121_spill] sm:$0xff] %v10855_v29  ;;  %v10862_v3 = vpop.eup %6584  ;;  %6604 = vpow2.f32 %v10520_v7  ;;  %v5252_v46 = vrot.slane %v10855_v29, 2  ;;  %v5249_v16 = vsel %vm3060_vm6, %v5248_v32, %v5247_v14  ;;  %v10873_v50 = vmul.f32 0.05882353, %v6006_v53 }
 0x38b   : > { %14142 = vst [vmem:[#allocation136_spill] sm:$0xff] %v10862_v3  ;;  %v10867_v2 = vpop.eup %6586  ;;  %6606 = vpow2.f32 %v10525_v12  ;;  %v5251_v48 = vsel %vm3063_vm13, %v5250_v41, %v5249_v16  ;;  %v5254_v7 = vrot.slane %v10862_v3, 1  ;;  %v4130_v37 = vsel %vm13354_vm4, %v10763_v58, %v10761_v26  ;;  %v4211_v16 = vpop.permute.xlu1 %4210 }
 0x38c   : > { %14143 = vst [vmem:[#allocation39_spill] sm:$0xff] %v10867_v2  ;;  %v10875_v63 = vpop.eup %6588  ;;  %6608 = vpow2.f32 %v10530_v6  ;;  %v5253_v27 = vsel %vm3066_vm11, %v5252_v46, %v5251_v48  ;;  %v10887_v18 = vmul.f32 0.05882353, %v4056_v44  ;;  %v10889_v53 = vmul.f32 0.05882353, %v6007_v17 }
 0x38d   : > { %14144 = vst [vmem:[#allocation127_spill] sm:$0xff] %v10875_v63  ;;  %v10883_v32 = vpop.eup %6590  ;;  %6610 = vpow2.f32 %v10536_v55  ;;  %v5270_v12 = vrot.slane %v10875_v63, 7  ;;  %v5255_v14 = vsel %vm3069_vm12, %v5254_v7, %v5253_v27  ;;  %v4136_v26 = vmul.f32 %v4130_v37, %v10802_v19 }
 0x38e   : > { %14145 = vst [vmem:[#allocation130_spill] sm:$0xff] %v10883_v32  ;;  %v10891_v41 = vpop.eup %6592  ;;  %6612 = vpow2.f32 %v10541_v15  ;;  %v5272_v6 = vrot.slane %v10883_v32, 6  ;;  %v4131_v46 = vsel %vm13354_vm4, %v10814_v1, %v10812_v10  ;;  %v4213_v15 = vpop.permute.xlu0 %4212  ;;  %v6011_v10 = vmul.f32 %v10819_v11, %v4130_v37 }
 0x38f   : > { %14146 = vst [vmem:[#allocation133_spill] sm:$0xff] %v10891_v41  ;;  %v10897_v58 = vpop.eup %6594  ;;  %6614 = vpow2.f32 %v10546_v31  ;;  %v5274_v55 = vrot.slane %v10891_v41, 5  ;;  %v5271_v44 = vsel %vm14148_vm15, %v5270_v12, %v10867_v2  ;;  %v4137_v31 = vmul.f32 %v4131_v46, %v10871_v56 }
 0x390   : > { %14147 = vst [vmem:[#allocation109_spill] sm:$0xff] %v10897_v58  ;;  %v10906_v17 = vpop.eup %6596  ;;  %6616 = vpow2.f32 %v10552_v42  ;;  %v5276_v48 = vrot.slane %v10897_v58, 4  ;;  %v5273_v7 = vsel %vm3054_vm8, %v5272_v6, %v5271_v44  ;;  %v6012_v1 = vmul.f32 %v10873_v50, %v4131_v46 }
 0x391   : > { %14149 = vst [vmem:[#allocation138_spill] sm:$0xff] %v10906_v17  ;;  %v10912_v27 = vpop.eup %6598  ;;  %6618 = vpow2.f32 %v10557_v35  ;;  %v5275_v12 = vsel %vm3057_vm9, %v5274_v55, %v5273_v7  ;;  %v10923_v6 = vsel %vm14152_vm10, %v5255_v14, 0.0  ;;  %v10925_v44 = vadd.f32 %v4137_v31, %v4136_v26  ;;  %v14155_v26 = vld [vmem:[#allocation151_spill] sm:$0xff] }
 0x392   : > { %14150 = vst [vmem:[#allocation141_spill] sm:$0xff] %v10912_v27  ;;  %v10918_v54 = vpop.eup %6600  ;;  %6620 = vpow2.f32 %v10563_v39  ;;  %v5277_v42 = vsel %vm3060_vm6, %v5276_v48, %v5275_v12  ;;  %v5278_v35 = vrot.slane %v10906_v17, 3  ;;  %v5280_v37 = vrot.slane %v10912_v27, 2  ;;  %v14156_v48 = vld [vmem:[#allocation152_spill] sm:$0xff]  ;;  %v14192_v17 = vld [vmem:[#allocation135_spill] sm:$0xff] }
 0x393   : > { %14151 = vst [vmem:[#allocation114_spill] sm:$0xff] %v10918_v54  ;;  %v10927_v3 = vpop.eup %6602  ;;  %6622 = vpow2.f32 %v10571_v0  ;;  %v10932_v55 = vadd.f32 %v6012_v1, %v6011_v10  ;;  %v4218_v14 = vsel %vm13354_vm4, %v4207_v57, %v4209_v8  ;;  %vm14157_vm3 = vcmask 408576   ;;  %v4127_v1 = vpop.permute.xlu1 %4126 }
 0x394   : > { %14153 = vst [vmem:[#allocation105_spill] sm:$0xff] %v10927_v3  ;;  %v10934_v46 = vpop.eup %6604  ;;  %6624 = vpow2.f32 %v10576_v30  ;;  %v1729_v7 = vsel %vm14157_vm3, %v14156_v48, %v14155_v26  ;;  %v5279_v0 = vsel %vm3063_vm13, %v5278_v35, %v5277_v42  ;;  %v4224_v12 = vmul.f32 %v4218_v14, %v10802_v19  ;;  %v4129_v30 = vpop.permute.xlu0 %4128  ;;  %v14160_v26 = vld [vmem:[#allocation111_spill] sm:$0xff] }
 0x395   : > { %14154 = vst [vmem:[#allocation122_spill] sm:$0xff] %v10934_v46  ;;  %v10942_v31 = vpop.eup %6606  ;;  %6626 = vpow2.f32 %v10581_v61  ;;  %v6023_v10 = vmul.f32 %v10819_v11, %v4218_v14  ;;  %1828 = vrot.lane.b32.xlu0 %v1729_v7, %s6885_s29  ;;  %v4219_v8 = vsel %vm13354_vm4, %v4211_v16, %v4213_v15  ;;  %v1771_v61 = vsel %vm13381_vm14, %v10040_v25, %v14160_v26 }
 0x396   : > { %14158 = vst [vmem:[#allocation108_spill] sm:$0xff] %v10942_v31  ;;  %v10949_v39 = vpop.eup %6608  ;;  %6628 = vpow2.f32 %v10589_v34  ;;  %v3113_v57 = vrot.slane %v10942_v31, 7  ;;  %v4225_v11 = vmul.f32 %v4219_v8, %v10871_v56  ;;  %v6024_v35 = vmul.f32 %v10873_v50, %v4219_v8 }
 0x397   : > { %14159 = vst [vmem:[#allocation128_spill] sm:$0xff] %v10949_v39  ;;  %v10957_v42 = vpop.eup %6610  ;;  %6630 = vpow2.f32 %v10594_v49  ;;  %v3115_v19 = vrot.slane %v10949_v39, 6  ;;  %v4132_v25 = vsel %vm13354_vm4, %v4127_v1, %v4129_v30  ;;  %vm3183_vm10 = vcmask 1047832  }
 0x398   : > { %14161 = vst [vmem:[#allocation131_spill] sm:$0xff] %v10957_v42  ;;  %v10963_v14 = vpop.eup %6612  ;;  %6632 = vpow2.f32 %v10599_v21  ;;  %v3117_v34 = vrot.slane %v10957_v42, 5  ;;  %v3114_v15 = vsel %vm14148_vm15, %v3113_v57, %v10934_v46  ;;  %v10975_v50 = vadd.f32 %v4225_v11, %v4224_v12  ;;  %v14169_v11 = vld [vmem:[#allocation154_spill] sm:$0xff] }
 0x399   : > { %14162 = vst [vmem:[#allocation26_spill] sm:$0xff] %v10963_v14  ;;  %v10970_v16 = vpop.eup %6614  ;;  %6634 = vpow2.f32 %v10611_v23  ;;  %v3119_v49 = vrot.slane %v10963_v14, 4  ;;  %v3116_v56 = vsel %vm3054_vm8, %v3115_v19, %v3114_v15  ;;  %1852 = vrot.lane.b32.xlu0 %v1771_v61, %s6885_s29  ;;  %v10983_v30 = vadd.f32 %v6024_v35, %v6023_v10 }
 0x39a   : > { %14163 = vst [vmem:[#allocation119_spill] sm:$0xff] %v10970_v16  ;;  %v10978_v21 = vpop.eup %6616  ;;  %6636 = vpow2.f32 %v10616_v52  ;;  %v3121_v48 = vrot.slane %v10970_v16, 3  ;;  %v3118_v7 = vsel %vm3057_vm9, %v3117_v34, %v3116_v56  ;;  %v4138_v57 = vmul.f32 %v4132_v25, %v10887_v18  ;;  %v14174_v56 = vld [vmem:[#allocation37_spill] sm:$0xff] }
 0x39b   : > { %14164 = vst [vmem:[#allocation116_spill] sm:$0xff] %v10978_v21  ;;  %v10985_v23 = vpop.eup %6618  ;;  %6638 = vpow2.f32 %v10621_v60  ;;  %v3123_v12 = vrot.slane %v10978_v21, 2  ;;  %v3120_v1 = vsel %vm3060_vm6, %v3119_v49, %v3118_v7  ;;  %v6013_v10 = vmul.f32 %v10889_v53, %v4132_v25 }
 0x39c   : > { %14165 = vst [vmem:[#allocation53_spill] sm:$0xff] %v10985_v23  ;;  %v10991_v8 = vpop.eup %6620  ;;  %6640 = vpow2.f32 %v10629_v38  ;;  %v3125_v52 = vrot.slane %v10985_v23, 1  ;;  %v3122_v26 = vsel %vm3063_vm13, %v3121_v48, %v3120_v1  ;;  %vm14168_vm3 = vcmask 1040384   ;;  %v14172_v38 = vld [vmem:[#allocation33_spill] sm:$0xff]  ;;  %v14176_v1 = vld [vmem:[#allocation98_spill] sm:$0xff] }
 0x39d   : > { %14166 = vst [vmem:[#allocation156_spill] sm:$0xff] %v10991_v8  ;;  %v10997_v61 = vpop.eup %6622  ;;  %6642 = vpow2.f32 %v10634_v47  ;;  %v3124_v60 = vsel %vm3066_vm11, %v3123_v12, %v3122_v26  ;;  %v4140_v19 = vsel %vm14168_vm3, %v4138_v57, 0.0  ;;  %vm14170_vm15 = vcmask 293888   ;;  %v14179_v26 = vld [vmem:[#allocation38_spill] sm:$0xff] }
 0x39e   : > { %14167 = vst [vmem:[#allocation28_spill] sm:$0xff] %v10997_v61  ;;  %v1736_v35 = vsel %vm14170_vm15, %v10100_v36, %v14169_v11  ;;  %v11005_v34 = vpop.eup %6624  ;;  %6644 = vpow2.f32 %v14172_v38  ;;  %v3141_v15 = vrot.slane %v10997_v61, 7  ;;  %v5281_v25 = vsel %vm3066_vm11, %v5280_v37, %v5279_v0  ;;  %v14181_v11 = vld [vmem:[#allocation112_spill] sm:$0xff] }
 0x39f   : > { %14171 = vst [vmem:[#allocation157_spill] sm:$0xff] %v11005_v34  ;;  %v4141_v49 = vadd.f32 %v4140_v19, %v10925_v44  ;;  %1832 = vrot.lane.b32.xlu0 %v1736_v35, %s6885_s29  ;;  %v11012_v47 = vpop.eup %6626  ;;  %6646 = vpow2.f32 %v14174_v56  ;;  %v3143_v48 = vrot.slane %v11005_v34, 6  ;;  %v3126_v36 = vsel %vm3069_vm12, %v3125_v52, %v3124_v60 }
 0x3a0   : > { %14173 = vst [vmem:[#allocation158_spill] sm:$0xff] %v11012_v47  ;;  %v6015_v7 = vsel %vm14168_vm3, %v6013_v10, 0.0  ;;  %v11018_v12 = vpop.eup %6628  ;;  %6648 = vpow2.f32 %v14176_v1  ;;  %v3145_v37 = vrot.slane %v11012_v47, 5  ;;  %vm14177_vm15 = vcmask 1041409   ;;  %v14183_v1 = vld [vmem:[#allocation120_spill] sm:$0xff]  ;;  %v14215_v47 = vld [vmem:[#allocation145_spill] sm:$0xff] }
 0x3a1   : > { %14175 = vst [vmem:[#allocation44_spill] sm:$0xff] %v11018_v12  ;;  %v3142_v44 = vsel %vm14177_vm15, %v3141_v15, %v10991_v8  ;;  %v4142_v0 = vrot.slane %v4141_v49, 4  ;;  %v11024_v57 = vpop.eup %6630  ;;  %6650 = vpow2.f32 %v14179_v26  ;;  %v3147_v19 = vrot.slane %v11018_v12, 4  ;;  %vm14195_vm3 = vmmov %vm14177_vm15 }
 0x3a2   : > { %14178 = vst [vmem:[#allocation151_spill] sm:$0xff] %v11024_v57  ;;  %v3144_v52 = vsel %vm3054_vm8, %v3143_v48, %v3142_v44  ;;  %v6016_v10 = vadd.f32 %v6015_v7, %v10932_v55  ;;  %v11030_v60 = vpop.eup %6632  ;;  %6652 = vpow2.f32 %v14181_v11  ;;  %v3149_v35 = vrot.slane %v11024_v57, 3  ;;  %v14185_v55 = vld [vmem:[#allocation123_spill] sm:$0xff] }
 0x3a3   : > { %14180 = vst [vmem:[#allocation152_spill] sm:$0xff] %v11030_v60  ;;  %v3146_v38 = vsel %vm3057_vm9, %v3145_v37, %v3144_v52  ;;  %v4143_v15 = vadd.f32 %v4142_v0, %v4141_v49  ;;  %v11035_v56 = vpop.eup %6634  ;;  %6654 = vpow2.f32 %v14183_v1  ;;  %v3151_v26 = vrot.slane %v11030_v60, 2  ;;  %v4217_v0 = vpop.permute.xlu0 %4216  ;;  %v14188_v60 = vld [vmem:[#allocation126_spill] sm:$0xff] }
 0x3a4   : > { %14182 = vst [vmem:[#allocation111_spill] sm:$0xff] %v11035_v56  ;;  %v3148_v27 = vsel %vm3060_vm6, %v3147_v19, %v3146_v38  ;;  %v6017_v48 = vrot.slane %v6016_v10, 4  ;;  %v11040_v44 = vpop.eup %6636  ;;  %6656 = vpow2.f32 %v14185_v55  ;;  %v14186_v11 = vrot.slane %v10918_v54, 1  ;;  %v4215_v52 = vpop.permute.xlu1 %4214 }
 0x3a5   : > { %14184 = vst [vmem:[#allocation154_spill] sm:$0xff] %v11040_v44  ;;  %v3150_v7 = vsel %vm3063_vm13, %v3149_v35, %v3148_v27  ;;  %v4144_v49 = vrot.slane %v4143_v15, 2  ;;  %v11049_v1 = vpop.eup %6638  ;;  %6658 = vpow2.f32 %v14188_v60  ;;  %v11054_v38 = vsel %vm3183_vm10, %v3126_v36, 0.0  ;;  %v14190_v27 = vld [vmem:[#allocation129_spill] sm:$0xff] }
 0x3a6   : > { %v11047_v37 = vsel %vm3069_vm12, %v14186_v11, %v5281_v25  ;;  %14187 = vst [vmem:[#allocation33_spill] sm:$0xff] %v11049_v1  ;;  %v3152_v19 = vsel %vm3066_vm11, %v3151_v26, %v3150_v7  ;;  %v6018_v55 = vadd.f32 %v6017_v48, %v6016_v10  ;;  %v11056_v57 = vpop.eup %6640  ;;  %6660 = vpow2.f32 %v14190_v27  ;;  %v14194_v10 = vld [vmem:[#allocation143_spill] sm:$0xff] }
 0x3a7   : > { %14189 = vst [vmem:[#allocation37_spill] sm:$0xff] %v11056_v57  ;;  %v3153_v25 = vrot.slane %v11035_v56, 1  ;;  %v5228_v35 = vrot.slane %v11049_v1, 7  ;;  %v4145_v11 = vadd.f32 %v4144_v49, %v4143_v15  ;;  %v11061_v54 = vpop.eup %6642  ;;  %6662 = vpow2.f32 %v14192_v17  ;;  %v14197_v56 = vld [vmem:[#allocation83_spill] sm:$0xff] }
 0x3a8   : > { %14191 = vst [vmem:[#allocation98_spill] sm:$0xff] %v11061_v54  ;;  %v5230_v60 = vrot.slane %v11056_v57, 6  ;;  %v6019_v26 = vrot.slane %v6018_v55, 2  ;;  %v4220_v36 = vsel %vm13354_vm4, %v4215_v52, %v4217_v0  ;;  %v11066_v7 = vpop.eup %6644  ;;  %6664 = vpow2.f32 %v14194_v10  ;;  %v14289_v57 = vld [vmem:[#allocation40_spill] sm:$0xff] }
 0x3a9   : > { %14193 = vst [vmem:[#allocation38_spill] sm:$0xff] %v11066_v7  ;;  %v5232_v48 = vrot.slane %v11061_v54, 5  ;;  %v5229_v27 = vsel %vm14195_vm3, %v5228_v35, %v11040_v44  ;;  %v3154_v15 = vsel %vm3069_vm12, %v3153_v25, %v3152_v19  ;;  %v11073_v49 = vpop.eup %6646  ;;  %6666 = vpow2.f32 %v14197_v56 }
 0x3aa   : > { %14196 = vst [vmem:[#allocation112_spill] sm:$0xff] %v11073_v49  ;;  %v5234_v17 = vrot.slane %v11066_v7, 4  ;;  %v5231_v23 = vsel %vm3054_vm8, %v5230_v60, %v5229_v27  ;;  %v6020_v0 = vadd.f32 %v6019_v26, %v6018_v55  ;;  %v11078_v52 = vpop.eup %6648  ;;  %v5236_v10 = vrot.slane %v11073_v49, 3  ;;  %v14203_v27 = vld [vmem:[#allocation46_spill] sm:$0xff] }
 0x3ab   : > { %14198 = vst [vmem:[#allocation120_spill] sm:$0xff] %v11078_v52  ;;  %v5233_v12 = vsel %vm3057_vm9, %v5232_v48, %v5231_v23  ;;  %v4146_v58 = vrot.slane %v4145_v11, 1  ;;  %v4226_v35 = vmul.f32 %v4220_v36, %v10887_v18  ;;  %v11083_v13 = vpop.eup %6650  ;;  %v5238_v19 = vrot.slane %v11078_v52, 2  ;;  %v14202_v48 = vld [vmem:[#allocation70_spill] sm:$0xff] }
 0x3ac   : > { %14199 = vst [vmem:[#allocation123_spill] sm:$0xff] %v11083_v13  ;;  %v5235_v56 = vsel %vm3060_vm6, %v5234_v17, %v5233_v12  ;;  %v6021_v25 = vrot.slane %v6020_v0, 1  ;;  %v6025_v21 = vmul.f32 %v10889_v53, %v4220_v36  ;;  %v11088_v60 = vpop.eup %6652  ;;  %v5240_v55 = vrot.slane %v11083_v13, 1 }
 0x3ad   : > { %14200 = vst [vmem:[#allocation126_spill] sm:$0xff] %v11088_v60  ;;  %v5237_v26 = vsel %vm3063_vm13, %v5236_v10, %v5235_v56  ;;  %vm14201_vm15 = vcmask 1040384   ;;  %vm14204_vm3 = vcmask 441344   ;;  %v11096_v29 = vpop.eup %6654  ;;  %v11100_v12 = vsel %vm3183_vm10, %v3154_v15, 0.0 }
 0x3ae   : > { %v4228_v23 = vsel %vm14201_vm15, %v4226_v35, 0.0  ;;  %v1778_v18 = vsel %vm14204_vm3, %v14203_v27, %v14202_v48  ;;  %14205 = vst [vmem:[#allocation129_spill] sm:$0xff] %v11096_v29  ;;  %v5239_v52 = vsel %vm3066_vm11, %v5238_v19, %v5237_v26  ;;  %vm14206_vm4 = vmmov %vm14201_vm15  ;;  %v11105_v17 = vpop.eup %6656  ;;  %v5256_v10 = vrot.slane %v11096_v29, 7 }
 0x3af   : > { %v4229_v53 = vadd.f32 %v4228_v23, %v10975_v50  ;;  %v6027_v36 = vsel %vm14206_vm4, %v6025_v21, 0.0  ;;  %1856 = vrot.lane.b32.xlu0 %v1778_v18, %s6885_s29  ;;  %14207 = vst [vmem:[#allocation135_spill] sm:$0xff] %v11105_v17  ;;  %v5241_v35 = vsel %vm3069_vm12, %v5240_v55, %v5239_v52  ;;  %v11109_v56 = vadd.f32 %v4146_v58, %v4145_v11  ;;  %v11112_v19 = vpop.eup %6658  ;;  %v14211_v52 = vld [vmem:[#allocation153_spill] sm:$0xff] }
 0x3b0   : > { %v6028_v48 = vadd.f32 %v6027_v36, %v10983_v30  ;;  %14208 = vst [vmem:[#allocation143_spill] sm:$0xff] %v11112_v19  ;;  %v5258_v15 = vrot.slane %v11105_v17, 6  ;;  %v11116_v50 = vsel %vm3183_vm10, %v5241_v35, 0.0  ;;  %v11118_v21 = vadd.f32 %v6021_v25, %v6020_v0  ;;  %v11120_v23 = vpop.eup %6660  ;;  %v14212_v30 = vld [vmem:[#allocation49_spill] sm:$0xff]  ;;  %v14214_v25 = vld [vmem:[#allocation84_spill] sm:$0xff] }
 0x3b1   : > { %v4230_v26 = vrot.slane %v4229_v53, 4  ;;  %14209 = vst [vmem:[#allocation83_spill] sm:$0xff] %v11120_v23  ;;  %v5260_v27 = vrot.slane %v11112_v19, 5  ;;  %vm14210_vm4 = vcmask 1041409   ;;  %v4901_v55 = vsub.f32 %v14212_v30, %v14211_v52  ;;  %v11127_v18 = vpop.eup %6662 }
 0x3b2   : > { %v5257_v58 = vsel %vm14210_vm4, %v5256_v10, %v11088_v60  ;;  %v6029_v11 = vrot.slane %v6028_v48, 4  ;;  %14213 = vst [vmem:[#allocation70_spill] sm:$0xff] %v11127_v18  ;;  %v5262_v36 = vrot.slane %v11120_v23, 4  ;;  %v4903_v13 = vsub.f32 %v14214_v25, %v14211_v52  ;;  %v11135_v19 = vpop.eup %6664  ;;  %v14217_v60 = vld [vmem:[#allocation50_spill] sm:$0xff]  ;;  %vm14235_vm3 = vmmov %vm14210_vm4 }
 0x3b3   : > { %v5259_v35 = vsel %vm3054_vm8, %v5258_v15, %v5257_v58  ;;  %v4231_v0 = vadd.f32 %v4230_v26, %v4229_v53  ;;  %1860 = vrot.lane.b32.xlu0 %v14215_v47, %s6885_s29  ;;  %14216 = vst [vmem:[#allocation46_spill] sm:$0xff] %v11135_v19  ;;  %v5264_v10 = vrot.slane %v11127_v18, 3  ;;  %v4905_v8 = vsub.f32 %v14217_v60, %v14211_v52  ;;  %v11141_v23 = vpop.eup %6666  ;;  %v14219_v58 = vld [vmem:[#allocation85_spill] sm:$0xff] }
 0x3b4   : > { %v5261_v41 = vsel %vm3057_vm9, %v5260_v27, %v5259_v35  ;;  %v6030_v30 = vadd.f32 %v6029_v11, %v6028_v48  ;;  %14218 = vst [vmem:[#allocation153_spill] sm:$0xff] %v11141_v23  ;;  %v5266_v53 = vrot.slane %v11135_v19, 2  ;;  %v4907_v47 = vsub.f32 %v14219_v58, %v14211_v52  ;;  %v14220_v48 = vld [vmem:[#allocation54_spill] sm:$0xff]  ;;  %v14221_v35 = vld [vmem:[#allocation21_spill] sm:$0xff] }
 0x3b5   : > { %v5263_v15 = vsel %vm3060_vm6, %v5262_v36, %v5261_v41  ;;  %v4232_v26 = vrot.slane %v4231_v0, 2  ;;  %v5268_v25 = vrot.slane %v11141_v23, 1  ;;  %vm3207_vm15 = vcmask 279552   ;;  %v14222_v41 = vld [vmem:[#allocation55_spill] sm:$0xff] }
 0x3b6   : > { %v5265_v18 = vsel %vm3063_vm13, %v5264_v10, %v5263_v15  ;;  %v6031_v2 = vrot.slane %v6030_v30, 2  ;;  %v4909_v27 = vsub.f32 %v14220_v48, %v14211_v52  ;;  %v4911_v19 = vsub.f32 %v14221_v35, %v14211_v52  ;;  %v14223_v15 = vld [vmem:[#allocation89_spill] sm:$0xff]  ;;  %v14224_v48 = vld [vmem:[#allocation47_spill] sm:$0xff]  ;;  %v14226_v35 = vld [vmem:[#allocation60_spill] sm:$0xff] }
 0x3b7   : > { %v5267_v60 = vsel %vm3066_vm11, %v5266_v53, %v5265_v18  ;;  %v4233_v11 = vadd.f32 %v4232_v26, %v4231_v0  ;;  %v4913_v36 = vsub.f32 %v14222_v41, %v14211_v52  ;;  %1864 = vrot.lane.b32.xlu0 %v10795_v9, %s6885_s29  ;;  %v4915_v23 = vsub.f32 %v14223_v15, %v14211_v52  ;;  %v14225_v53 = vld [vmem:[#allocation93_spill] sm:$0xff]  ;;  %v14229_v15 = vld [vmem:[#allocation87_spill] sm:$0xff] }
 0x3b8   : > { %v5269_v58 = vsel %vm3069_vm12, %v5268_v25, %v5267_v60  ;;  %v6032_v10 = vadd.f32 %v6031_v2, %v6030_v30  ;;  %v4917_v40 = vsub.f32 %v14224_v48, %v14211_v52  ;;  %v4919_v26 = vsub.f32 %v14225_v53, %v14211_v52  ;;  %v14227_v25 = vld [vmem:[#allocation86_spill] sm:$0xff]  ;;  %v14228_v30 = vld [vmem:[#allocation48_spill] sm:$0xff] }
 0x3b9   : > { %v11164_v18 = vsel %vm3183_vm10, %v5269_v58, 0.0  ;;  %v4234_v0 = vrot.slane %v4233_v11, 1  ;;  %v4921_v41 = vsub.f32 %v14226_v35, %v14211_v52  ;;  %v4923_v2 = vsub.f32 %v14227_v25, %v14211_v52  ;;  %v14230_v58 = vld [vmem:[#allocation17_spill] sm:$0xff]  ;;  %v14231_v25 = vld [vmem:[#allocation94_spill] sm:$0xff] }
 0x3ba   : > { %v6033_v9 = vrot.slane %v6032_v10, 1  ;;  %v4925_v60 = vsub.f32 %v14228_v30, %v14211_v52  ;;  %v4927_v48 = vsub.f32 %v14229_v15, %v14211_v52  ;;  %v4929_v16 = vsub.f32 %v14230_v58, %v14211_v52 }
 0x3bb   : > { %v11176_v49 = vadd.f32 %v4234_v0, %v4233_v11  ;;  %v4970_v4 = vmul.f32 1.442695, %v4901_v55  ;;  %v4974_v53 = vmul.f32 1.442695, %v4903_v13  ;;  %1922 = vrot.lane.b32.xlu0 %v10601_v22, %s13507_s23  ;;  %v4931_v17 = vsub.f32 %v14231_v25, %v14211_v52  ;;  %v14232_v22 = vld [vmem:[#allocation43_spill] sm:$0xff] }
 0x3bc   : > { %v11182_v35 = vadd.f32 %v6033_v9, %v6032_v10  ;;  %v4978_v34 = vmul.f32 1.442695, %v4905_v8  ;;  %v4982_v30 = vmul.f32 1.442695, %v4907_v47  ;;  %v4986_v32 = vmul.f32 1.442695, %v4909_v27 }
 0x3bd   : > { %6668 = vpow2.f32 %v4970_v4  ;;  %v4990_v15 = vmul.f32 1.442695, %v4911_v19  ;;  %v4994_v11 = vmul.f32 1.442695, %v4913_v36  ;;  %v4998_v0 = vmul.f32 1.442695, %v4915_v23 }
 0x3be   : > { %6670 = vpow2.f32 %v4974_v53  ;;  %v5002_v7 = vmul.f32 1.442695, %v4917_v40  ;;  %v5006_v58 = vmul.f32 1.442695, %v4919_v26  ;;  %v5010_v13 = vmul.f32 1.442695, %v4921_v41 }
 0x3bf   : > { %6672 = vpow2.f32 %v4978_v34  ;;  %v5014_v55 = vmul.f32 1.442695, %v4923_v2  ;;  %v5018_v14 = vmul.f32 1.442695, %v4925_v60  ;;  %1918 = vrot.lane.b32.xlu0 %v14232_v22, %s13507_s23  ;;  %v5022_v10 = vmul.f32 1.442695, %v4927_v48 }
 0x3c0   : > { %6674 = vpow2.f32 %v4982_v30  ;;  %v5026_v52 = vmul.f32 1.442695, %v4929_v16  ;;  %v14233_v8 = vld [vmem:[#allocation59_spill] sm:$0xff]  ;;  %v5030_v47 = vmul.f32 1.442695, %v4931_v17  ;;  %vm14236_vm4 = vcmask 285696  }
 0x3c1   : > { %v14234_v4 = vrot.slane %v14233_v8, 7  ;;  %6676 = vpow2.f32 %v4986_v32  ;;  %v11194_v40 = vsel %vm14236_vm4, %v11047_v37, 0.0  ;;  %v14237_v23 = vld [vmem:[#allocation101_spill] sm:$0xff]  ;;  %v14238_v27 = vld [vmem:[#allocation51_spill] sm:$0xff]  ;;  %v14240_v41 = vld [vmem:[#allocation52_spill] sm:$0xff]  ;;  %s841_s23 = scalar_lea.vmem [#allocation8], %s6405_s13 }
 0x3c2   : > { %6678 = vpow2.f32 %v4990_v15  ;;  %v2779_v36 = vsub.f32 %v14238_v27, %v14237_v23  ;;  %v14239_v16 = vld [vmem:[#allocation95_spill] sm:$0xff]  ;;  %v2783_v9 = vsub.f32 %v14240_v41, %v14237_v23  ;;  %v14241_v32 = vld [vmem:[#allocation25_spill] sm:$0xff]  ;;  %v14242_v37 = vld [vmem:[#allocation18_spill] sm:$0xff] }
 0x3c3   : > { %v5287_v19 = vsel %vm14235_vm3, %v14234_v4, %v10927_v3  ;;  %v2781_v26 = vsub.f32 %v14239_v16, %v14237_v23  ;;  %6680 = vpow2.f32 %v4994_v11  ;;  %v2785_v17 = vsub.f32 %v14241_v32, %v14237_v23  ;;  %v14243_v60 = vld [vmem:[#allocation15_spill] sm:$0xff]  ;;  %v14244_v53 = vld [vmem:[#allocation57_spill] sm:$0xff]  ;;  %v14245_v30 = vld [vmem:[#allocation32_spill] sm:$0xff] }
 0x3c4   : > { %v11197_v34 = vsel %vm3207_vm15, %v5287_v19, 0.0  ;;  %v2787_v2 = vsub.f32 %v14242_v37, %v14237_v23  ;;  %v2789_v48 = vsub.f32 %v14243_v60, %v14237_v23  ;;  %6682 = vpow2.f32 %v4998_v0  ;;  %v14246_v22 = vld [vmem:[#allocation58_spill] sm:$0xff]  ;;  %v14248_v27 = vld [vmem:[#allocation61_spill] sm:$0xff]  ;;  %vm14261_vm4 = vmmov %vm14235_vm3 }
 0x3c5   : > { %v2791_v25 = vsub.f32 %v14244_v53, %v14237_v23  ;;  %v2793_v15 = vsub.f32 %v14245_v30, %v14237_v23  ;;  %v2795_v4 = vsub.f32 %v14246_v22, %v14237_v23  ;;  %6684 = vpow2.f32 %v5002_v7  ;;  %v14247_v11 = vld [vmem:[#allocation34_spill] sm:$0xff]  ;;  %v14252_v30 = vld [vmem:[#allocation69_spill] sm:$0xff] }
 0x3c6   : > { %v2797_v19 = vsub.f32 %v14247_v11, %v14237_v23  ;;  %v2799_v16 = vsub.f32 %v14248_v27, %v14237_v23  ;;  %v14249_v41 = vld [vmem:[#allocation22_spill] sm:$0xff]  ;;  %6686 = vpow2.f32 %v5006_v58  ;;  %v2807_v22 = vsub.f32 %v14252_v30, %v14237_v23 }
 0x3c7   : > { %v2801_v32 = vsub.f32 %v14249_v41, %v14237_v23  ;;  %v14250_v0 = vld [vmem:[#allocation62_spill] sm:$0xff]  ;;  %v11229_v7 = vpop.eup %6668  ;;  %6688 = vpow2.f32 %v5010_v13  ;;  %v2848_v27 = vmul.f32 1.442695, %v2779_v36  ;;  %v2852_v8 = vmul.f32 1.442695, %v2781_v26 }
 0x3c8   : > { %v2803_v37 = vsub.f32 %v14250_v0, %v14237_v23  ;;  %v14251_v60 = vld [vmem:[#allocation42_spill] sm:$0xff]  ;;  %v11233_v24 = vpop.eup %6670  ;;  %6690 = vpow2.f32 %v5014_v55  ;;  %v2856_v58 = vmul.f32 1.442695, %v2783_v9  ;;  %v2860_v41 = vmul.f32 1.442695, %v2785_v17 }
 0x3c9   : > { %v2805_v53 = vsub.f32 %v14251_v60, %v14237_v23  ;;  %v14253_v11 = vld [vmem:[#allocation106_spill] sm:$0xff]  ;;  %v2864_v0 = vmul.f32 1.442695, %v2787_v2  ;;  %v11235_v29 = vpop.eup %6672  ;;  %6692 = vpow2.f32 %v5018_v14  ;;  %v5186_v60 = vrot.slane %v11233_v24, 7 }
 0x3ca   : > { %v2809_v3 = vsub.f32 %v14253_v11, %v14237_v23  ;;  %v2868_v30 = vmul.f32 1.442695, %v2789_v48  ;;  %v2872_v61 = vmul.f32 1.442695, %v2791_v25  ;;  %v11238_v63 = vpop.eup %6674  ;;  %6694 = vpow2.f32 %v5022_v10 }
 0x3cb   : > { %v5188_v13 = vrot.slane %v11235_v29, 6  ;;  %v2876_v23 = vmul.f32 1.442695, %v2793_v15  ;;  %v2880_v36 = vmul.f32 1.442695, %v2795_v4  ;;  %v11241_v26 = vpop.eup %6676  ;;  %6696 = vpow2.f32 %v5026_v52 }
 0x3cc   : > { %14254 = vst [vmem:[#allocation49_spill] sm:$0xff] %v11241_v26  ;;  %v5187_v55 = vsel %vm14235_vm3, %v5186_v60, %v11229_v7  ;;  %v5190_v9 = vrot.slane %v11238_v63, 5  ;;  %v2884_v14 = vmul.f32 1.442695, %v2797_v19  ;;  %v11246_v17 = vpop.eup %6678  ;;  %6698 = vpow2.f32 %v5030_v47 }
 0x3cd   : > { %14255 = vst [vmem:[#allocation84_spill] sm:$0xff] %v11246_v17  ;;  %v5189_v2 = vsel %vm3054_vm8, %v5188_v13, %v5187_v55  ;;  %v5192_v10 = vrot.slane %v11241_v26, 4  ;;  %v2888_v48 = vmul.f32 1.442695, %v2799_v16  ;;  %v11250_v25 = vpop.eup %6680  ;;  %v5194_v52 = vrot.slane %v11246_v17, 3 }
 0x3ce   : > { %14256 = vst [vmem:[#allocation145_spill] sm:$0xff] %v11250_v25  ;;  %v5191_v15 = vsel %vm3057_vm9, %v5190_v9, %v5189_v2  ;;  %6700 = vpow2.f32 %v2848_v27  ;;  %v2892_v4 = vmul.f32 1.442695, %v2801_v32  ;;  %v11254_v11 = vpop.eup %6682  ;;  %v5196_v60 = vrot.slane %v11250_v25, 2 }
 0x3cf   : > { %14257 = vst [vmem:[#allocation50_spill] sm:$0xff] %v11254_v11  ;;  %v5193_v19 = vsel %vm3060_vm6, %v5192_v10, %v5191_v15  ;;  %6702 = vpow2.f32 %v2852_v8  ;;  %v2896_v47 = vmul.f32 1.442695, %v2803_v37  ;;  %v11258_v13 = vpop.eup %6684  ;;  %v5198_v55 = vrot.slane %v11254_v11, 1  ;;  %v14259_v10 = vld [vmem:[#allocation149_spill] sm:$0xff] }
 0x3d0   : > { %14258 = vst [vmem:[#allocation85_spill] sm:$0xff] %v11258_v13  ;;  %v5195_v16 = vsel %vm3063_vm13, %v5194_v52, %v5193_v19  ;;  %6704 = vpow2.f32 %v2856_v58  ;;  %v2900_v9 = vmul.f32 1.442695, %v2805_v53  ;;  %v11262_v2 = vpop.eup %6686  ;;  %v2904_v27 = vmul.f32 1.442695, %v2807_v22  ;;  %v11273_v19 = vpop.permute.xlu0 %1557 }
 0x3d1   : > { %v5197_v32 = vsel %vm3066_vm11, %v5196_v60, %v5195_v16  ;;  %6706 = vpow2.f32 %v2860_v41  ;;  %v14260_v15 = vrot.slane %v14259_v10, 7  ;;  %v11269_v37 = vpop.eup %6688  ;;  %v5214_v52 = vrot.slane %v11262_v2, 7  ;;  %v1556_v16 = vpop.permute.xlu1 %1555 }
 0x3d2   : > { %v5199_v25 = vsel %vm3069_vm12, %v5198_v55, %v5197_v32  ;;  %6708 = vpow2.f32 %v2864_v0  ;;  %v2908_v53 = vmul.f32 1.442695, %v2809_v3  ;;  %v11275_v58 = vpop.eup %6690  ;;  %v5216_v41 = vrot.slane %v11269_v37, 6 }
 0x3d3   : > { %v3172_v8 = vsel %vm14261_vm4, %v14260_v15, %v10797_v62  ;;  %14262 = vst [vmem:[#allocation54_spill] sm:$0xff] %v11275_v58  ;;  %vm14263_vm3 = vcmask 285696   ;;  %6710 = vpow2.f32 %v2868_v30  ;;  %v11283_v15 = vpop.eup %6692  ;;  %v5215_v55 = vsel %vm14261_vm4, %v5214_v52, %v11258_v13 }
 0x3d4   : > { %v5313_v22 = vsel %vm14263_vm3, %v5199_v25, 0.0  ;;  %vm14264_vm14 = vmmov %vm14263_vm3  ;;  %14265 = vst [vmem:[#allocation21_spill] sm:$0xff] %v11283_v15  ;;  %v5218_v0 = vrot.slane %v11275_v58, 5  ;;  %6712 = vpow2.f32 %v2872_v61  ;;  %v11289_v3 = vsel %vm3207_vm15, %v3172_v8, 0.0  ;;  %v11291_v32 = vpop.eup %6694 }
 0x3d5   : > { %v11281_v60 = vsel %vm14264_vm14, %v10853_v28, 0.0  ;;  %14266 = vst [vmem:[#allocation55_spill] sm:$0xff] %v11291_v32  ;;  %v5217_v30 = vsel %vm3054_vm8, %v5216_v41, %v5215_v55  ;;  %v5220_v25 = vrot.slane %v11283_v15, 4  ;;  %6714 = vpow2.f32 %v2876_v23  ;;  %v11296_v62 = vpop.eup %6696  ;;  %v14270_v23 = vld [vmem:[#allocation139_spill] sm:$0xff]  ;;  %v14271_v28 = vld [vmem:[#allocation81_spill] sm:$0xff] }
 0x3d6   : > { %14267 = vst [vmem:[#allocation89_spill] sm:$0xff] %v11296_v62  ;;  %v5219_v10 = vsel %vm3057_vm9, %v5218_v0, %v5217_v30  ;;  %v5222_v52 = vrot.slane %v11291_v32, 3  ;;  %6716 = vpow2.f32 %v2880_v36  ;;  %vm14268_vm14 = vcmask 1039360   ;;  %v11304_v8 = vpop.eup %6698 }
 0x3d7   : > { %v11302_v61 = vsel %vm14268_vm14, %v1556_v16, %v11273_v19  ;;  %14269 = vst [vmem:[#allocation47_spill] sm:$0xff] %v11304_v8  ;;  %v5221_v41 = vsel %vm3060_vm6, %v5220_v25, %v5219_v10  ;;  %v5224_v55 = vrot.slane %v11296_v62, 2  ;;  %6718 = vpow2.f32 %v2884_v14  ;;  %v14272_v16 = vld [vmem:[#allocation67_spill] sm:$0xff]  ;;  %vm14291_vm14 = vmmov %vm14263_vm3 }
 0x3d8   : > { %v2778_v11 = vsub.f32 %v14271_v28, %v14270_v23  ;;  %v11310_v51 = vpop.eup %6700  ;;  %v5223_v0 = vsel %vm3063_vm13, %v5222_v52, %v5221_v41  ;;  %v5226_v36 = vrot.slane %v11304_v8, 1  ;;  %6720 = vpow2.f32 %v2888_v48  ;;  %v14273_v14 = vld [vmem:[#allocation71_spill] sm:$0xff]  ;;  %v14274_v28 = vld [vmem:[#allocation13_spill] sm:$0xff]  ;;  %v14275_v41 = vld [vmem:[#allocation72_spill] sm:$0xff] }
 0x3d9   : > { %v2780_v30 = vsub.f32 %v14272_v16, %v14270_v23  ;;  %v11316_v54 = vpop.eup %6702  ;;  %v5225_v10 = vsel %vm3066_vm11, %v5224_v55, %v5223_v0  ;;  %6722 = vpow2.f32 %v2892_v4  ;;  %v2782_v25 = vsub.f32 %v14273_v14, %v14270_v23  ;;  %v14276_v0 = vld [vmem:[#allocation27_spill] sm:$0xff]  ;;  %v14279_v16 = vld [vmem:[#allocation73_spill] sm:$0xff] }
 0x3da   : > { %v2784_v62 = vsub.f32 %v14274_v28, %v14270_v23  ;;  %v11323_v42 = vpop.eup %6704  ;;  %v5227_v52 = vsel %vm3069_vm12, %v5226_v36, %v5225_v10  ;;  %6724 = vpow2.f32 %v2896_v47  ;;  %v3071_v48 = vrot.slane %v11316_v54, 7 }
 0x3db   : > { %v11329_v8 = vpop.eup %6706  ;;  %v5314_v4 = vsel %vm14263_vm3, %v5227_v52, 0.0  ;;  %6726 = vpow2.f32 %v2900_v9  ;;  %v3073_v55 = vrot.slane %v11323_v42, 6  ;;  %v2790_v44 = vsub.f32 %v14279_v16, %v14270_v23  ;;  %vm14293_vm3 = vmmov %vm14261_vm4 }
 0x3dc   : > { %v11335_v28 = vpop.eup %6708  ;;  %v5315_v45 = vadd.f32 %v5314_v4, %v5313_v22  ;;  %6728 = vpow2.f32 %v2904_v27  ;;  %v3072_v47 = vsel %vm14261_vm4, %v3071_v48, %v11310_v51  ;;  %v3075_v36 = vrot.slane %v11329_v8, 5  ;;  %v14281_v4 = vld [vmem:[#allocation29_spill] sm:$0xff] }
 0x3dd   : > { %14277 = vst [vmem:[#allocation93_spill] sm:$0xff] %v11335_v28  ;;  %v11340_v10 = vpop.eup %6710  ;;  %6730 = vpow2.f32 %v2908_v53  ;;  %v3074_v52 = vsel %vm3054_vm8, %v3073_v55, %v3072_v47  ;;  %v3077_v9 = vrot.slane %v11335_v28, 4  ;;  %v2792_v46 = vsub.f32 %v14281_v4, %v14270_v23  ;;  %v14283_v47 = vld [vmem:[#allocation75_spill] sm:$0xff]  ;;  %v14286_v4 = vld [vmem:[#allocation76_spill] sm:$0xff] }
 0x3de   : > { %14278 = vst [vmem:[#allocation60_spill] sm:$0xff] %v11340_v10  ;;  %v11346_v14 = vpop.eup %6712  ;;  %v5317_v22 = vadd.f32 %v10923_v6, %v5315_v45  ;;  %v3076_v27 = vsel %vm3057_vm9, %v3075_v36, %v3074_v52  ;;  %v3079_v48 = vrot.slane %v11340_v10, 3  ;;  %v2794_v16 = vsub.f32 %v14283_v47, %v14270_v23  ;;  %v14287_v47 = vld [vmem:[#allocation35_spill] sm:$0xff] }
 0x3df   : > { %14280 = vst [vmem:[#allocation86_spill] sm:$0xff] %v11346_v14  ;;  %v11353_v59 = vpop.eup %6714  ;;  %v3078_v53 = vsel %vm3060_vm6, %v3077_v9, %v3076_v27  ;;  %v3081_v55 = vrot.slane %v11346_v14, 2  ;;  %v2796_v32 = vsub.f32 %v14284_v43, %v14270_v23  ;;  %v2798_v17 = vsub.f32 %v14286_v4, %v14270_v23  ;;  %v14288_v43 = vld [vmem:[#allocation63_spill] sm:$0xff] }
 0x3e0   : > { %14282 = vst [vmem:[#allocation48_spill] sm:$0xff] %v11353_v59  ;;  %v11361_v45 = vpop.eup %6716  ;;  %v5319_v6 = vadd.f32 %v11194_v40, %v5317_v22  ;;  %v3080_v36 = vsel %vm3063_vm13, %v3079_v48, %v3078_v53  ;;  %v3083_v52 = vrot.slane %v11353_v59, 1  ;;  %v2800_v14 = vsub.f32 %v14287_v47, %v14270_v23 }
 0x3e1   : > { %14285 = vst [vmem:[#allocation87_spill] sm:$0xff] %v11361_v45  ;;  %v11368_v9 = vpop.eup %6718  ;;  %v3082_v27 = vsel %vm3066_vm11, %v3081_v55, %v3080_v36  ;;  %v2802_v10 = vsub.f32 %v14288_v43, %v14270_v23  ;;  %v2804_v40 = vsub.f32 %v14289_v57, %v14270_v23  ;;  %v2846_v59 = vmul.f32 1.442695, %v2778_v11 }
 0x3e2   : > { %v11377_v22 = vpop.eup %6720  ;;  %v5321_v48 = vadd.f32 %v11197_v34, %v5319_v6  ;;  %v3084_v53 = vsel %vm3069_vm12, %v3083_v52, %v3082_v27  ;;  %v3099_v4 = vrot.slane %v11368_v9, 7  ;;  %v2850_v47 = vmul.f32 1.442695, %v2780_v30 }
 0x3e3   : > { %v11382_v39 = vpop.eup %6722  ;;  %v3101_v55 = vrot.slane %v11377_v22, 6  ;;  %v3200_v36 = vsel %vm14291_vm14, %v3084_v53, 0.0  ;;  %v2854_v43 = vmul.f32 1.442695, %v2782_v25  ;;  %vm3191_vm4 = vcmask 1041688  }
 0x3e4   : > { %14290 = vst [vmem:[#allocation17_spill] sm:$0xff] %v11382_v39  ;;  %v11386_v5 = vpop.eup %6724  ;;  %v5322_v57 = vrot.slane %v5321_v48, 4  ;;  %v3100_v15 = vsel %vm14293_vm3, %v3099_v4, %v11361_v45  ;;  %v3103_v34 = vrot.slane %v11382_v39, 5  ;;  %6732 = vpow2.f32 %v2846_v59 }
 0x3e5   : > { %14292 = vst [vmem:[#allocation94_spill] sm:$0xff] %v11386_v5  ;;  %v11391_v6 = vpop.eup %6726  ;;  %v3102_v11 = vsel %vm3054_vm8, %v3101_v55, %v3100_v15  ;;  %v3105_v52 = vrot.slane %v11386_v5, 4  ;;  %6734 = vpow2.f32 %v2850_v47  ;;  %v2858_v27 = vmul.f32 1.442695, %v2784_v62 }
 0x3e6   : > { %14294 = vst [vmem:[#allocation43_spill] sm:$0xff] %v11391_v6  ;;  %v11395_v30 = vpop.eup %6728  ;;  %v5323_v25 = vadd.f32 %v5322_v57, %v5321_v48  ;;  %v3104_v53 = vsel %vm3057_vm9, %v3103_v34, %v3102_v11  ;;  %v3107_v1 = vrot.slane %v11391_v6, 3  ;;  %6736 = vpow2.f32 %v2854_v43 }
 0x3e7   : > { %14295 = vst [vmem:[#allocation101_spill] sm:$0xff] %v11395_v30  ;;  %v11399_v4 = vpop.eup %6730  ;;  %v3106_v59 = vsel %vm3060_vm6, %v3105_v52, %v3104_v53  ;;  %v3109_v26 = vrot.slane %v11395_v30, 2  ;;  %6738 = vpow2.f32 %v2858_v27  ;;  %v14297_v15 = vsub.f32 %v14275_v41, %v14270_v23 }
 0x3e8   : > { %14296 = vst [vmem:[#allocation51_spill] sm:$0xff] %v11399_v4  ;;  %v5324_v62 = vrot.slane %v5323_v25, 2  ;;  %v3108_v47 = vsel %vm3063_vm13, %v3107_v1, %v3106_v59  ;;  %v3111_v48 = vrot.slane %v11399_v4, 1  ;;  %v14298_v57 = vsub.f32 %v14276_v0, %v14270_v23 }
 0x3e9   : > { %v2862_v55 = vmul.f32 1.442695, %v14297_v15  ;;  %v3110_v34 = vsel %vm3066_vm11, %v3109_v26, %v3108_v47  ;;  %v2870_v11 = vmul.f32 1.442695, %v2790_v44  ;;  %v2874_v52 = vmul.f32 1.442695, %v2792_v46 }
 0x3ea   : > { %v2866_v43 = vmul.f32 1.442695, %v14298_v57  ;;  %v5325_v53 = vadd.f32 %v5324_v62, %v5323_v25  ;;  %v3112_v27 = vsel %vm3069_vm12, %v3111_v48, %v3110_v34  ;;  %v2878_v41 = vmul.f32 1.442695, %v2794_v16  ;;  %v14301_v47 = vld [vmem:[#allocation41_spill] sm:$0xff]  ;;  %v14304_v48 = vld [vmem:[#allocation142_spill] sm:$0xff] }
 0x3eb   : > { %6740 = vpow2.f32 %v2862_v55  ;;  %v3201_v15 = vsel %vm14291_vm14, %v3112_v27, 0.0  ;;  %v2882_v1 = vmul.f32 1.442695, %v2796_v32  ;;  %v2886_v59 = vmul.f32 1.442695, %v2798_v17  ;;  %v14299_v55 = vld [vmem:[#allocation64_spill] sm:$0xff]  ;;  %vm14326_vm14 = vmmov %vm14293_vm3 }
 0x3ec   : > { %6742 = vpow2.f32 %v2866_v43  ;;  %v5326_v4 = vrot.slane %v5325_v53, 1  ;;  %v3202_v30 = vadd.f32 %v3201_v15, %v3200_v36  ;;  %v2890_v0 = vmul.f32 1.442695, %v2800_v14  ;;  %v14303_v14 = vld [vmem:[#allocation146_spill] sm:$0xff]  ;;  %v14308_v15 = vld [vmem:[#allocation65_spill] sm:$0xff] }
 0x3ed   : > { %6744 = vpow2.f32 %v2870_v11  ;;  %v2894_v57 = vmul.f32 1.442695, %v2802_v10  ;;  %v2898_v26 = vmul.f32 1.442695, %v2804_v40  ;;  %v14300_v46 = vsub.f32 %v14299_v55, %v14270_v23  ;;  %v14305_v43 = vld [vmem:[#allocation82_spill] sm:$0xff] }
 0x3ee   : > { %6746 = vpow2.f32 %v2874_v52  ;;  %v11417_v25 = vpop.eup %6732  ;;  %v5327_v62 = vadd.f32 %v5326_v4, %v5325_v53  ;;  %v3204_v16 = vadd.f32 %v10790_v33, %v3202_v30  ;;  %v14302_v17 = vsub.f32 %v14301_v47, %v14270_v23  ;;  %v14306_v30 = vld [vmem:[#allocation23_spill] sm:$0xff]  ;;  %v14307_v27 = vld [vmem:[#allocation74_spill] sm:$0xff] }
 0x3ef   : > { %6748 = vpow2.f32 %v2878_v41  ;;  %v2902_v44 = vmul.f32 1.442695, %v14300_v46  ;;  %v11423_v36 = vpop.eup %6734  ;;  %v11427_v10 = vsel %vm3191_vm4, %v14303_v14, 0.0  ;;  %v4900_v34 = vsub.f32 %v14305_v43, %v14304_v48  ;;  %v14311_v47 = vld [vmem:[#allocation66_spill] sm:$0xff] }
 0x3f0   : > { %6750 = vpow2.f32 %v2882_v1  ;;  %v2906_v32 = vmul.f32 1.442695, %v14302_v17  ;;  %v11432_v4 = vpop.eup %6736  ;;  %v3206_v33 = vadd.f32 %v11281_v60, %v3204_v16  ;;  %v3050_v23 = vrot.slane %v11423_v36, 7 }
 0x3f1   : > { %6752 = vpow2.f32 %v2886_v59  ;;  %v4902_v11 = vsub.f32 %v14306_v30, %v14304_v48  ;;  %v11438_v52 = vpop.eup %6738  ;;  %v3053_v53 = vrot.slane %v11432_v4, 6  ;;  %v4904_v41 = vsub.f32 %v14307_v27, %v14304_v48  ;;  %v14320_v27 = vld [vmem:[#allocation68_spill] sm:$0xff] }
 0x3f2   : > { %6754 = vrcp.f32 %v5327_v62  ;;  %v3209_v59 = vadd.f32 %v11289_v3, %v3206_v33  ;;  %v3052_v60 = vsel %vm14293_vm3, %v3050_v23, %v11417_v25  ;;  %v3056_v55 = vrot.slane %v11438_v52, 5  ;;  %v14310_v62 = vld [vmem:[#allocation77_spill] sm:$0xff]  ;;  %v14314_v23 = vld [vmem:[#allocation78_spill] sm:$0xff] }
 0x3f3   : > { %6756 = vpow2.f32 %v2890_v0  ;;  %v3055_v0 = vsel %vm3054_vm8, %v3053_v53, %v3052_v60  ;;  %v4912_v30 = vsub.f32 %v14314_v23, %v14304_v48  ;;  %v14315_v53 = vld [vmem:[#allocation88_spill] sm:$0xff]  ;;  %v14319_v23 = vld [vmem:[#allocation90_spill] sm:$0xff] }
 0x3f4   : > { %6758 = vpow2.f32 %v2894_v57  ;;  %v3210_v3 = vrot.slane %v3209_v59, 4  ;;  %v3058_v57 = vsel %vm3057_vm9, %v3056_v55, %v3055_v0  ;;  %v14317_v0 = vld [vmem:[#allocation79_spill] sm:$0xff]  ;;  %v4918_v6 = vsub.f32 %v14319_v23, %v14304_v48 }
 0x3f5   : > { %v11449_v46 = vpop.eup %6740  ;;  %6760 = vpow2.f32 %v2898_v26 }
 0x3f6   : > { %14309 = vst [vmem:[#allocation95_spill] sm:$0xff] %v11449_v46  ;;  %v11456_v14 = vpop.eup %6742  ;;  %6762 = vpow2.f32 %v2902_v44  ;;  %v3059_v43 = vrot.slane %v11449_v46, 4  ;;  %v3211_v40 = vadd.f32 %v3210_v3, %v3209_v59  ;;  %v4968_v46 = vmul.f32 1.442695, %v4900_v34 }
 0x3f7   : > { %14312 = vst [vmem:[#allocation52_spill] sm:$0xff] %v11456_v14  ;;  %v11460_v33 = vpop.eup %6744  ;;  %6764 = vpow2.f32 %v2906_v32  ;;  %v3062_v26 = vrot.slane %v11456_v14, 3 }
 0x3f8   : > { %14313 = vst [vmem:[#allocation25_spill] sm:$0xff] %v11460_v33  ;;  %v11467_v60 = vpop.eup %6746  ;;  %v3061_v44 = vsel %vm3060_vm6, %v3059_v43, %v3058_v57  ;;  %v3065_v55 = vrot.slane %v11460_v33, 2  ;;  %v3212_v3 = vrot.slane %v3211_v40, 2  ;;  %v14321_v43 = vld [vmem:[#allocation91_spill] sm:$0xff]  ;;  %6766 = vpow2.f32 %v4968_v46 }
 0x3f9   : > { %14316 = vst [vmem:[#allocation18_spill] sm:$0xff] %v11467_v60  ;;  %v11473_v16 = vpop.eup %6748  ;;  %v3064_v32 = vsel %vm3063_vm13, %v3062_v26, %v3061_v44  ;;  %v3068_v1 = vrot.slane %v11467_v60, 1  ;;  %v4922_v17 = vsub.f32 %v14321_v43, %v14304_v48  ;;  %v14322_v33 = vld [vmem:[#allocation31_spill] sm:$0xff]  ;;  %v14323_v60 = vld [vmem:[#allocation92_spill] sm:$0xff]  ;;  %v4972_v43 = vmul.f32 1.442695, %v4902_v11 }
 0x3fa   : > { %14318 = vst [vmem:[#allocation15_spill] sm:$0xff] %v11473_v16  ;;  %v11481_v59 = vpop.eup %6750  ;;  %v3067_v57 = vsel %vm3066_vm11, %v3065_v55, %v3064_v32  ;;  %v4924_v5 = vsub.f32 %v14322_v33, %v14304_v48  ;;  %v4926_v14 = vsub.f32 %v14323_v60, %v14304_v48  ;;  %v3213_v31 = vadd.f32 %v3212_v3, %v3211_v40  ;;  %v14325_v33 = vld [vmem:[#allocation56_spill] sm:$0xff] }
 0x3fb   : > { %v11488_v26 = vpop.eup %6752  ;;  %v3070_v44 = vsel %vm3069_vm12, %v3068_v1, %v3067_v57  ;;  %v3085_v23 = vrot.slane %v11481_v59, 7  ;;  %v4976_v57 = vmul.f32 1.442695, %v4904_v41  ;;  %6768 = vpow2.f32 %v4972_v43 }
 0x3fc   : > { %v6755_v28 = vpop.eup %6754  ;;  %v3087_v55 = vrot.slane %v11488_v26, 6  ;;  %v3184_v32 = vsel %vm3183_vm10, %v3070_v44, 0.0  ;;  %v3214_v34 = vrot.slane %v3213_v31, 1  ;;  %v14330_v43 = vsub.f32 %v14308_v15, %v14304_v48 }
 0x3fd   : > { %v11496_v20 = vpop.eup %6756  ;;  %v11499_v58 = vrot.slane %v6755_v28, %v14325_v33  ;;  %v3086_v1 = vsel %vm14326_vm14, %v3085_v23, %v11473_v16  ;;  %6770 = vpow2.f32 %v4976_v57  ;;  %vm14337_vm14 = vmmov %vm14293_vm3 }
 0x3fe   : > { %14324 = vst [vmem:[#allocation57_spill] sm:$0xff] %v11496_v20  ;;  %v11503_v39 = vpop.eup %6758  ;;  %v3088_v40 = vsel %vm3054_vm8, %v3087_v55, %v3086_v1  ;;  %v3089_v60 = vrot.slane %v11496_v20, 5  ;;  %v3215_v46 = vadd.f32 %v3214_v34, %v3213_v31  ;;  %v4980_v1 = vmul.f32 1.442695, %v14330_v43 }
 0x3ff   : > { %14327 = vst [vmem:[#allocation32_spill] sm:$0xff] %v11503_v39  ;;  %v11507_v3 = vpop.eup %6760  ;;  %v5339_v11 = vmul.f32 %v11229_v7, %v11499_v58  ;;  %v5341_v28 = vmul.f32 %v11233_v24, %v11499_v58  ;;  %v3091_v44 = vrot.slane %v11503_v39, 4  ;;  %v14332_v7 = vld [vmem:[#allocation96_spill] sm:$0xff]  ;;  %v14334_v39 = vrot.slane %v11273_v19, 1 }
 0x400   : > { %14328 = vst [vmem:[#allocation58_spill] sm:$0xff] %v11507_v3  ;;  %v11514_v41 = vpop.eup %6762  ;;  %v3090_v23 = vsel %vm3057_vm9, %v3089_v60, %v3088_v40  ;;  %v3093_v55 = vrot.slane %v11507_v3, 3  ;;  %v14333_v24 = vrot.slane %v14332_v7, 1  ;;  %6772 = vrcp.f32 %v3215_v46 }
 0x401   : > { %14329 = vst [vmem:[#allocation34_spill] sm:$0xff] %v11514_v41  ;;  %v11521_v20 = vpop.eup %6764  ;;  %v5407_v16 = vmul.f32 %v5339_v11, %v14332_v7  ;;  %v5409_v57 = vmul.f32 %v5341_v28, %v11273_v19  ;;  %v5701_v31 = vmul.f32 %v5341_v28, %v14334_v39  ;;  %v3092_v34 = vsel %vm3060_vm6, %v3091_v44, %v3090_v23 }
 0x402   : > { %14331 = vst [vmem:[#allocation61_spill] sm:$0xff] %v11521_v20  ;;  %v5699_v45 = vmul.f32 %v5339_v11, %v14333_v24  ;;  %v3095_v40 = vrot.slane %v11514_v41, 2  ;;  %v3097_v15 = vrot.slane %v11521_v20, 1  ;;  %v3094_v3 = vsel %vm3063_vm13, %v3093_v55, %v3092_v34 }
 0x403   : > { %v5556_v60 = vrot.slane %v5409_v57, 7  ;;  %v5848_v43 = vrot.slane %v5701_v31, 7  ;;  %6774 = vpow2.f32 %v4980_v1  ;;  %v14335_v11 = vsub.f32 %v14310_v62, %v14304_v48  ;;  %v11554_v31 = vpop.eup %6766 }
 0x404   : > { %v3096_v13 = vsel %vm3066_vm11, %v3095_v40, %v3094_v3  ;;  %v14336_v39 = vsub.f32 %v14311_v47, %v14304_v48  ;;  %v4992_v44 = vmul.f32 1.442695, %v4912_v30  ;;  %v14338_v3 = vsub.f32 %v14315_v53, %v14304_v48 }
 0x405   : > { %v4984_v24 = vmul.f32 1.442695, %v14335_v11  ;;  %v11541_v46 = vsel %vm14293_vm3, %v5556_v60, %v5407_v16  ;;  %v11544_v23 = vsel %vm14337_vm14, %v5848_v43, %v5699_v45  ;;  %v3098_v55 = vsel %vm3069_vm12, %v3097_v15, %v3096_v13  ;;  %v11559_v40 = vpop.eup %6768  ;;  %v14341_v60 = vld [vmem:[#allocation80_spill] sm:$0xff]  ;;  %v1630_v11 = vpop.permute.xlu0 %1629 }
 0x406   : > { %v4988_v28 = vmul.f32 1.442695, %v14336_v39  ;;  %v4996_v1 = vmul.f32 1.442695, %v14338_v3  ;;  %v3185_v62 = vsel %vm3183_vm10, %v3098_v55, 0.0  ;;  %v14339_v47 = vsub.f32 %v14317_v0, %v14304_v48 }
 0x407   : > { %6776 = vpow2.f32 %v4984_v24  ;;  %v5004_v30 = vmul.f32 1.442695, %v4918_v6  ;;  %v3186_v16 = vadd.f32 %v3185_v62, %v3184_v32  ;;  %v14340_v45 = vsub.f32 %v14320_v27, %v14304_v48  ;;  %v11564_v6 = vpop.permute.xlu1 %1627  ;;  %v11566_v24 = vpop.eup %6770  ;;  %v14343_v27 = vld [vmem:[#allocation97_spill] sm:$0xff] }
 0x408   : > { %v5000_v57 = vmul.f32 1.442695, %v14339_v47  ;;  %6778 = vpow2.f32 %v4988_v28  ;;  %v5012_v34 = vmul.f32 1.442695, %v4922_v17  ;;  %v5016_v53 = vmul.f32 1.442695, %v4924_v5 }
 0x409   : > { %v5008_v13 = vmul.f32 1.442695, %v14340_v45  ;;  %6780 = vpow2.f32 %v4992_v44  ;;  %v5020_v15 = vmul.f32 1.442695, %v4926_v14  ;;  %v14342_v43 = vsub.f32 %v14341_v60, %v14304_v48  ;;  %v14345_v14 = vld [vmem:[#allocation117_spill] sm:$0xff] }
 0x40a   : > { %v3188_v32 = vadd.f32 %v11054_v38, %v3186_v16  ;;  %6782 = vpow2.f32 %v4996_v1  ;;  %v14344_v17 = vsub.f32 %v14343_v27, %v14304_v48  ;;  %v5172_v28 = vrot.slane %v11559_v40, 7  ;;  %v6773_v1 = vpop.eup %6772 }
 0x40b   : > { %v5024_v0 = vmul.f32 1.442695, %v14342_v43  ;;  %6784 = vpow2.f32 %v5000_v57  ;;  %v5174_v5 = vrot.slane %v11566_v24, 6  ;;  %v11576_v44 = vsel %vm3191_vm4, %v14345_v14, 0.0 }
 0x40c   : > { %v5028_v39 = vmul.f32 1.442695, %v14344_v17  ;;  %v5357_v55 = vmul.f32 %v11262_v2, %v11499_v58  ;;  %v3190_v3 = vadd.f32 %v11100_v12, %v3188_v32  ;;  %6786 = vpow2.f32 %v5004_v30 }
 0x40d   : > { %v5173_v38 = vsel %vm14293_vm3, %v5172_v28, %v11554_v31  ;;  %v1631_v48 = vsel %vm1233_vm0, %v11564_v6, %v1630_v11  ;;  %6788 = vpow2.f32 %v5008_v13  ;;  %v11587_v16 = vpop.eup %6774  ;;  %v11590_v2 = vrot.slane %v6773_v1, %v14325_v33  ;;  %vm14352_vm0 = vmmov %vm14293_vm3 }
 0x40e   : > { %v5175_v62 = vsel %vm3054_vm8, %v5174_v5, %v5173_v38  ;;  %v3607_v57 = vrot.slane %v1631_v48, 1  ;;  %v3193_v12 = vadd.f32 %v11427_v10, %v3190_v3  ;;  %6790 = vpow2.f32 %v5012_v34  ;;  %vm14353_vm14 = vmmov %vm14352_vm0 }
 0x40f   : > { %v11593_v30 = vmul.f32 %v5357_v55, %v1631_v48  ;;  %6792 = vpow2.f32 %v5016_v53  ;;  %v5176_v45 = vrot.slane %v11587_v16, 5  ;;  %v11600_v13 = vmul.f32 %v11235_v29, %v11499_v58  ;;  %vm14356_vm3 = vmmov %vm14352_vm0 }
 0x410   : > { %v11596_v60 = vmul.f32 %v5357_v55, %v3607_v57  ;;  %v3227_v43 = vmul.f32 %v11310_v51, %v11590_v2  ;;  %v3229_v11 = vmul.f32 %v11316_v54, %v11590_v2  ;;  %v3194_v32 = vrot.slane %v3193_v12, 4 }
 0x411   : > { %6794 = vpow2.f32 %v5020_v15  ;;  %v11606_v10 = vpop.eup %6776  ;;  %v5177_v34 = vsel %vm3057_vm9, %v5176_v45, %v5175_v62  ;;  %v3245_v53 = vmul.f32 %v11368_v9, %v11590_v2  ;;  %v14348_v54 = vrot.slane %v14332_v7, 1 }
 0x412   : > { %14346 = vst [vmem:[#allocation22_spill] sm:$0xff] %v11606_v10  ;;  %6796 = vpow2.f32 %v5024_v0  ;;  %v11612_v29 = vpop.eup %6778  ;;  %v3295_v17 = vmul.f32 %v3227_v43, %v14332_v7  ;;  %v3297_v51 = vmul.f32 %v3229_v11, %v11273_v19  ;;  %v14349_v15 = vrot.slane %v11273_v19, 1  ;;  %v1567_v7 = vpop.permute.xlu0 %1566 }
 0x413   : > { %14347 = vst [vmem:[#allocation62_spill] sm:$0xff] %v11612_v29  ;;  %v3725_v28 = vmul.f32 %v14348_v54, %v3227_v43  ;;  %v11620_v0 = vpop.eup %6780  ;;  %v3195_v14 = vadd.f32 %v3194_v32, %v3193_v12  ;;  %6798 = vpow2.f32 %v5028_v39  ;;  %v5178_v9 = vrot.slane %v11606_v10, 4  ;;  %v1565_v43 = vpop.permute.xlu1 %1564 }
 0x414   : > { %v3727_v5 = vmul.f32 %v14349_v15, %v3229_v11  ;;  %14350 = vst [vmem:[#allocation42_spill] sm:$0xff] %v11620_v0  ;;  %v5180_v55 = vrot.slane %v11612_v29, 3  ;;  %v11624_v3 = vpop.eup %6782  ;;  %v3444_v38 = vrot.slane %v3297_v51, 7  ;;  %v5182_v62 = vrot.slane %v11620_v0, 2 }
 0x415   : > { %14351 = vst [vmem:[#allocation69_spill] sm:$0xff] %v11624_v3  ;;  %v11627_v45 = vmul.f32 %v3245_v53, %v1631_v48  ;;  %v11629_v19 = vpop.eup %6784  ;;  %v3196_v11 = vrot.slane %v3195_v14, 2  ;;  %v5179_v12 = vsel %vm3060_vm6, %v5178_v9, %v5177_v34  ;;  %v5184_v39 = vrot.slane %v11624_v3, 1 }
 0x416   : > { %v3874_v1 = vrot.slane %v3727_v5, 7  ;;  %v11633_v32 = vmul.f32 %v3607_v57, %v3245_v53  ;;  %v11635_v54 = vpop.eup %6786  ;;  %v3445_v51 = vsel %vm14352_vm0, %v3444_v38, %v3295_v17  ;;  %v5181_v48 = vsel %vm3063_vm13, %v5180_v55, %v5179_v12  ;;  %v1639_v57 = vpop.permute.xlu0 %1638 }
 0x417   : > { %v11641_v27 = vpop.eup %6788  ;;  %v3197_v47 = vadd.f32 %v3196_v11, %v3195_v14  ;;  %v5183_v20 = vsel %vm3066_vm11, %v5182_v62, %v5181_v48  ;;  %v5200_v34 = vrot.slane %v11635_v54, 7  ;;  %v3231_v55 = vmul.f32 %v11323_v42, %v11590_v2  ;;  %v11663_v42 = vpop.permute.xlu1 %1636 }
 0x418   : > { %v3875_v15 = vsel %vm14353_vm14, %v3874_v1, %v3725_v28  ;;  %v11646_v53 = vpop.eup %6790  ;;  %v5185_v9 = vsel %vm3069_vm12, %v5184_v39, %v5183_v20  ;;  %v5202_v17 = vrot.slane %v11641_v27, 6  ;;  %v3593_v28 = vrot.slane %v1567_v7, 1 }
 0x419   : > { %14354 = vst [vmem:[#allocation106_spill] sm:$0xff] %v11646_v53  ;;  %v11653_v38 = vpop.eup %6792  ;;  %v3198_v14 = vrot.slane %v3197_v47, 1  ;;  %v5201_v1 = vsel %vm14356_vm3, %v5200_v34, %v11629_v19  ;;  %v5204_v62 = vrot.slane %v11646_v53, 5  ;;  %v5298_v11 = vsel %vm3183_vm10, %v5185_v9, 0.0 }
 0x41a   : > { %14355 = vst [vmem:[#allocation139_spill] sm:$0xff] %v11653_v38  ;;  %v5203_v20 = vsel %vm3054_vm8, %v5202_v17, %v5201_v1  ;;  %v5206_v39 = vrot.slane %v11653_v38, 4  ;;  %v3299_v48 = vmul.f32 %v3231_v55, %v1567_v7  ;;  %v5411_v9 = vmul.f32 %v11600_v13, %v1567_v7 }
 0x41b   : > { %v11659_v12 = vpop.eup %6794  ;;  %v3199_v3 = vadd.f32 %v3198_v14, %v3197_v47  ;;  %v5205_v34 = vsel %vm3057_vm9, %v5204_v62, %v5203_v20  ;;  %v3729_v29 = vmul.f32 %v3593_v28, %v3231_v55  ;;  %v5703_v47 = vmul.f32 %v11600_v13, %v3593_v28 }
 0x41c   : > { %14357 = vst [vmem:[#allocation81_spill] sm:$0xff] %v11659_v12  ;;  %v11665_v5 = vpop.eup %6796  ;;  %v5208_v41 = vrot.slane %v11659_v12, 3  ;;  %v5207_v0 = vsel %vm3060_vm6, %v5206_v39, %v5205_v34  ;;  %v3446_v1 = vrot.slane %v3299_v48, 6  ;;  %v5558_v53 = vrot.slane %v5411_v9, 6 }
 0x41d   : > { %v5210_v17 = vrot.slane %v11665_v5, 2  ;;  %v11672_v38 = vpop.eup %6798  ;;  %6800 = vrcp.f32 %v3199_v3  ;;  %v3876_v12 = vrot.slane %v3729_v29, 6  ;;  %v5850_v48 = vrot.slane %v5703_v47, 6  ;;  %v1576_v29 = vpop.permute.xlu0 %1575 }
 0x41e   : > { %v5209_v10 = vsel %vm3063_vm13, %v5208_v41, %v5207_v0  ;;  %v5212_v62 = vrot.slane %v11672_v38, 1  ;;  %v3447_v20 = vsel %vm3054_vm8, %v3446_v1, %v3445_v51  ;;  %v5559_v39 = vsel %vm3054_vm8, %v5558_v53, %v11541_v46  ;;  %v1574_v51 = vpop.permute.xlu1 %1573 }
 0x41f   : > { %v5211_v14 = vsel %vm3066_vm11, %v5210_v17, %v5209_v10  ;;  %v11682_v55 = vsel %vm1163_vm1, %v1565_v43, %v1567_v7  ;;  %v3247_v41 = vmul.f32 %v11377_v22, %v11590_v2  ;;  %v3877_v13 = vsel %vm3054_vm8, %v3876_v12, %v3875_v15  ;;  %vm14363_vm1 = vmmov %vm14352_vm0 }
 0x420   : > { %v5213_v0 = vsel %vm3069_vm12, %v5212_v62, %v5211_v14  ;;  %v13432_v10 = vrot.slane %v11682_v55, 1  ;;  %v5359_v3 = vmul.f32 %v11269_v37, %v11499_v58  ;;  %v5851_v7 = vsel %vm3054_vm8, %v5850_v48, %v11544_v23  ;;  %vm14370_vm14 = vmmov %vm14363_vm1 }
 0x421   : > { %v5299_v46 = vsel %vm3183_vm10, %v5213_v0, 0.0  ;;  %v1640_v43 = vsel %vm1243_vm2, %v11663_v42, %v1639_v57  ;;  %v3608_v22 = vrot.slane %v11663_v42, 1  ;;  %v5345_v37 = vmul.f32 %v11238_v63, %v11499_v58  ;;  %vm14364_vm2 = vmmov %vm14352_vm0 }
 0x422   : > { %v5300_v53 = vadd.f32 %v5299_v46, %v5298_v11  ;;  %v11697_v28 = vmul.f32 %v3247_v41, %v1640_v43  ;;  %v3609_v15 = vrot.slane %v1640_v43, 1  ;;  %v11699_v12 = vmul.f32 %v5359_v3, %v1640_v43  ;;  %vm14374_vm3 = vmmov %vm14363_vm1 }
 0x423   : > { %v3233_v34 = vmul.f32 %v11329_v8, %v11590_v2  ;;  %v3595_v9 = vrot.slane %v1576_v29, 1  ;;  %v11706_v23 = vsel %vm1173_vm7, %v1574_v51, %v1576_v29  ;;  %v5413_v63 = vmul.f32 %v5345_v37, %v1576_v29 }
 0x424   : > { %v5302_v57 = vadd.f32 %v11116_v50, %v5300_v53  ;;  %v11710_v11 = vmul.f32 %v3609_v15, %v3247_v41  ;;  %v5586_v1 = vrot.slane %v11699_v12, 6  ;;  %v11713_v47 = vmul.f32 %v5359_v3, %v3609_v15  ;;  %v14375_v12 = vld [vmem:[#allocation17_spill] sm:$0xff] }
 0x425   : > { %v3301_v14 = vmul.f32 %v3233_v34, %v1576_v29  ;;  %v3731_v62 = vmul.f32 %v3595_v9, %v3233_v34  ;;  %v5705_v0 = vmul.f32 %v5345_v37, %v3595_v9  ;;  %v3594_v51 = vrot.slane %v11706_v23, 1 }
 0x426   : > { %v5304_v48 = vadd.f32 %v11164_v18, %v5302_v57  ;;  %v3904_v8 = vrot.slane %v11710_v11, 6  ;;  %v5878_v50 = vrot.slane %v11713_v47, 6  ;;  %v5560_v53 = vrot.slane %v5413_v63, 5  ;;  %v14379_v11 = vld [vmem:[#allocation54_spill] sm:$0xff] }
 0x427   : > { %v6801_v46 = vpop.eup %6800  ;;  %v3448_v43 = vrot.slane %v3301_v14, 5  ;;  %v3878_v41 = vrot.slane %v3731_v62, 5  ;;  %v5852_v15 = vrot.slane %v5705_v0, 5  ;;  %vm14358_vm7 = vcmask 1040384   ;;  %v14382_v47 = vld [vmem:[#allocation150_spill] sm:$0xff] }
 0x428   : > { %v11720_v17 = vrot.slane %v6801_v46, %v14325_v33  ;;  %v5306_v3 = vadd.f32 %v11576_v44, %v5304_v48  ;;  %v6035_v18 = vsel %vm14358_vm7, %v11118_v21, %v11182_v35  ;;  %v11733_v34 = vsel %vm3057_vm9, %v5560_v53, %v5559_v39  ;;  %vm14365_vm0 = vmmov %vm14358_vm7 }
 0x429   : > { %v11727_v29 = vsel %vm3057_vm9, %v3448_v43, %v3447_v20  ;;  %v11730_v37 = vsel %vm3057_vm9, %v3878_v41, %v3877_v13  ;;  %v6037_v9 = vrot.slane %v6035_v18, 6  ;;  %v11746_v39 = vsel %vm3057_vm9, %v5852_v15, %v5851_v7  ;;  %vm14378_vm7 = vmmov %vm14363_vm1 }
 0x42a   : > { %v3226_v57 = vmul.f32 %v11417_v25, %v11720_v17  ;;  %v3228_v44 = vmul.f32 %v11423_v36, %v11720_v17  ;;  %v5307_v14 = vrot.slane %v5306_v3, 4  ;;  %v3244_v21 = vmul.f32 %v11481_v59, %v11720_v17  ;;  %v14359_v25 = vld [vmem:[#allocation24_spill] sm:$0xff] }
 0x42b   : > { %v3230_v35 = vmul.f32 %v11432_v4, %v11720_v17  ;;  %v3246_v20 = vmul.f32 %v11488_v26, %v11720_v17  ;;  %v3232_v13 = vmul.f32 %v11438_v52, %v11720_v17  ;;  %6038 = vrot.lane.b32.xlu0 %v6037_v9, %s13521_s17  ;;  %v14360_v59 = vrot.slane %v14359_v25, 1 }
 0x42c   : > { %v3294_v36 = vmul.f32 %v3226_v57, %v14359_v25  ;;  %v3296_v62 = vmul.f32 %v3228_v44, %v11302_v61  ;;  %v14361_v4 = vrot.slane %v11302_v61, 1  ;;  %v5308_v0 = vadd.f32 %v5307_v14, %v5306_v3 }
 0x42d   : > { %v3724_v63 = vmul.f32 %v14360_v59, %v3226_v57  ;;  %v3312_v26 = vmul.f32 %v3244_v21, %v11564_v6  ;;  %v14362_v7 = vrot.slane %v11564_v6, 1  ;;  %v3298_v52 = vmul.f32 %v3230_v35, %v11682_v55 }
 0x42e   : > { %v3726_v48 = vmul.f32 %v14361_v4, %v3228_v44  ;;  %v3430_v43 = vrot.slane %v3296_v62, 7  ;;  %v3728_v53 = vmul.f32 %v13432_v10, %v3230_v35  ;;  %v3314_v15 = vmul.f32 %v3246_v20, %v11663_v42  ;;  %v1621_v4 = vpop.permute.xlu0 %1620  ;;  %v1619_v10 = vpop.permute.xlu1 %1618 }
 0x42f   : > { %v11760_v46 = vmul.f32 %v14362_v7, %v3244_v21  ;;  %v5309_v18 = vrot.slane %v5308_v0, 2  ;;  %v3458_v9 = vrot.slane %v3312_v26, 7  ;;  %v3432_v3 = vrot.slane %v3298_v52, 6 }
 0x430   : > { %v3860_v41 = vrot.slane %v3726_v48, 7  ;;  %v3431_v44 = vsel %vm14363_vm1, %v3430_v43, %v3294_v36  ;;  %v3862_v21 = vrot.slane %v3728_v53, 6  ;;  %v3460_v59 = vrot.slane %v3314_v15, 6  ;;  %v14367_v15 = vld [vmem:[#allocation87_spill] sm:$0xff] }
 0x431   : > { %v3888_v57 = vrot.slane %v11760_v46, 7  ;;  %v5310_v7 = vadd.f32 %v5309_v18, %v5308_v0  ;;  %v3433_v62 = vsel %vm3054_vm8, %v3432_v3, %v3431_v44  ;;  %v3744_v35 = vmul.f32 %v3608_v22, %v3246_v20 }
 0x432   : > { %v3861_v14 = vsel %vm14364_vm2, %v3860_v41, %v3724_v63  ;;  %v3300_v48 = vmul.f32 %v3232_v13, %v11706_v23  ;;  %v3730_v46 = vmul.f32 %v3594_v51, %v3232_v13  ;;  %v4236_v36 = vsel %vm14365_vm0, %v11109_v56, %v11176_v49  ;;  %v14366_v63 = vld [vmem:[#allocation85_spill] sm:$0xff]  ;;  %v14368_v56 = vld [vmem:[#allocation15_spill] sm:$0xff]  ;;  %vm14383_vm0 = vmmov %vm14363_vm1 }
 0x433   : > { %v3863_v26 = vsel %vm3054_vm8, %v3862_v21, %v3861_v14  ;;  %v5355_v0 = vmul.f32 %v14366_v63, %v11499_v58  ;;  %v5311_v52 = vrot.slane %v5310_v7, 1  ;;  %v3890_v43 = vrot.slane %v3744_v35, 6  ;;  %v1648_v63 = vpop.permute.xlu0 %1647 }
 0x434   : > { %v3434_v41 = vrot.slane %v3300_v48, 5  ;;  %v4238_v53 = vrot.slane %v4236_v36, 6  ;;  %v3864_v20 = vrot.slane %v3730_v46, 5  ;;  %v3243_v18 = vmul.f32 %v14367_v15, %v11590_v2 }
 0x435   : > { %v3605_v3 = vrot.slane %v1621_v4, 1  ;;  %v5423_v44 = vmul.f32 %v5355_v0, %v1621_v4  ;;  %v5312_v14 = vadd.f32 %v5311_v52, %v5310_v7  ;;  %v11788_v49 = vsel %vm1223_vm5, %v1619_v10, %v1621_v4  ;;  %vm14372_vm5 = vmmov %vm14363_vm1 }
 0x436   : > { %v11784_v13 = vsel %vm3057_vm9, %v3434_v41, %v3433_v62  ;;  %4239 = vrot.lane.b32.xlu1 %v4238_v53, %s13521_s17  ;;  %v3242_v21 = vmul.f32 %v14368_v56, %v11720_v17  ;;  %v11793_v35 = vsel %vm3057_vm9, %v3864_v20, %v3863_v26  ;;  %v3311_v48 = vmul.f32 %v3243_v18, %v1621_v4  ;;  %v11804_v41 = vpop.permute.xlu1 %1645  ;;  %v14381_v56 = vld [vmem:[#allocation57_spill] sm:$0xff] }
 0x437   : > { %v3741_v46 = vmul.f32 %v3605_v3, %v3243_v18  ;;  %v14369_v36 = vrot.slane %v11593_v30, 7  ;;  %6802 = vrcp.f32 %v5312_v14  ;;  %v5715_v10 = vmul.f32 %v5355_v0, %v3605_v3 }
 0x438   : > { %v3310_v52 = vmul.f32 %v3242_v21, %v11788_v49  ;;  %v14371_v26 = vrot.slane %v11627_v45, 7  ;;  %v14373_v30 = vrot.slane %v11633_v32, 7  ;;  %v3604_v20 = vrot.slane %v11788_v49, 1 }
 0x439   : > { %v5585_v7 = vsel %vm14370_vm14, %v14369_v36, %v5423_v44  ;;  %v3249_v15 = vmul.f32 %v14375_v12, %v11590_v2  ;;  %v14377_v18 = vrot.slane %v11596_v60, 7  ;;  %vm14380_vm2 = vcmask 228352  }
 0x43a   : > { %v11801_v62 = vsel %vm3054_vm8, %v5586_v1, %v5585_v7  ;;  %v3473_v4 = vsel %vm14372_vm5, %v14371_v26, %v3311_v48  ;;  %v3903_v53 = vsel %vm14374_vm3, %v14373_v30, %v3741_v46  ;;  %v14376_v1 = vrot.slane %v11697_v28, 6  ;;  %v1809_v7 = vpop.permute.xlu0 %1808  ;;  %v14384_v26 = vld [vmem:[#allocation99_spill] sm:$0xff]  ;;  %v1807_v30 = vpop.permute.xlu1 %1806  ;;  %vm14394_vm5 = vmmov %vm14383_vm0 }
 0x43b   : > { %v11823_v45 = vsel %vm3054_vm8, %v3904_v8, %v3903_v53  ;;  %v5877_v32 = vsel %vm14378_vm7, %v14377_v18, %v5715_v10  ;;  %v3459_v3 = vsel %vm14363_vm1, %v3458_v9, %v3310_v52  ;;  %v3740_v14 = vmul.f32 %v3604_v20, %v3242_v21  ;;  %vm14395_vm3 = vmmov %vm14383_vm0 }
 0x43c   : > { %v11818_v0 = vsel %vm3054_vm8, %v14376_v1, %v3473_v4  ;;  %v11832_v44 = vsel %vm3054_vm8, %v5878_v50, %v5877_v32  ;;  %v3461_v28 = vsel %vm3054_vm8, %v3460_v59, %v3459_v3  ;;  %v5361_v8 = vmul.f32 %v14379_v11, %v11499_v58  ;;  %vm14397_vm7 = vmmov %vm14383_vm0 }
 0x43d   : > { %v1649_v60 = vsel %vm14380_vm2, %v11804_v41, %v1648_v63  ;;  %v3248_v48 = vmul.f32 %v14381_v56, %v11720_v17  ;;  %v13433_v9 = vrot.slane %v11804_v41, 1  ;;  %v3261_v50 = vmul.f32 %v14382_v47, %v11590_v2  ;;  %vm14398_vm1 = vmmov %vm14383_vm0 }
 0x43e   : > { %v3889_v46 = vsel %vm14383_vm0, %v3888_v57, %v3740_v14  ;;  %v11847_v59 = vmul.f32 %v3249_v15, %v1649_v60  ;;  %v3611_v36 = vrot.slane %v1649_v60, 1  ;;  %v11849_v21 = vmul.f32 %v5361_v8, %v1649_v60 }
 0x43f   : > { %v3891_v10 = vsel %vm3054_vm8, %v3890_v43, %v3889_v46  ;;  %v3316_v63 = vmul.f32 %v3248_v48, %v11804_v41  ;;  %v3746_v52 = vmul.f32 %v13433_v9, %v3248_v48  ;;  %v5373_v4 = vmul.f32 %v14384_v26, %v11499_v58 }
 0x440   : > { %v11858_v57 = vmul.f32 %v3611_v36, %v3249_v15  ;;  %v11861_v1 = vmul.f32 %v5361_v8, %v3611_v36  ;;  %v11863_v43 = vmul.f32 %v3261_v50, %v1809_v7  ;;  %v3623_v3 = vrot.slane %v1809_v7, 1 }
 0x441   : > { %v3462_v18 = vrot.slane %v3316_v63, 5  ;;  %v3892_v32 = vrot.slane %v3746_v52, 5  ;;  %v11867_v60 = vmul.f32 %v5373_v4, %v1809_v7  ;;  %vm14385_vm14 = vcmask 490496   ;;  %v6803_v15 = vpop.eup %6802 }
 0x442   : > { %v11870_v56 = vsel %vm14385_vm14, %v1807_v30, %v1809_v7  ;;  %v11879_v46 = vmul.f32 %v3623_v3, %v3261_v50  ;;  %v11882_v36 = vrot.slane %v6803_v15, %v14325_v33  ;;  %v11885_v52 = vmul.f32 %v5373_v4, %v3623_v3  ;;  %v14386_v7 = vld [vmem:[#allocation108_spill] sm:$0xff]  ;;  %v14388_v50 = vld [vmem:[#allocation49_spill] sm:$0xff] }
 0x443   : > { %v11873_v48 = vsel %vm3057_vm9, %v3462_v18, %v3461_v28  ;;  %v11876_v8 = vsel %vm3057_vm9, %v3892_v32, %v3891_v10  ;;  %v3260_v26 = vmul.f32 %v14386_v7, %v11720_v17  ;;  %v14387_v10 = vld [vmem:[#allocation93_spill] sm:$0xff]  ;;  %v11897_v32 = vmul.f32 %v14388_v50, %v11499_v58 }
 0x444   : > { %v11893_v18 = vmul.f32 %v14387_v10, %v11590_v2  ;;  %v5338_v33 = vmul.f32 %v11554_v31, %v11882_v36  ;;  %v5340_v4 = vmul.f32 %v11559_v40, %v11882_v36  ;;  %v5356_v3 = vmul.f32 %v11635_v54, %v11882_v36  ;;  %v14389_v31 = vld [vmem:[#allocation106_spill] sm:$0xff] }
 0x445   : > { %v5342_v15 = vmul.f32 %v11566_v24, %v11882_v36  ;;  %v5358_v7 = vmul.f32 %v11641_v27, %v11882_v36  ;;  %v5344_v10 = vmul.f32 %v11587_v16, %v11882_v36  ;;  %v5354_v50 = vmul.f32 %v11629_v19, %v11882_v36 }
 0x446   : > { %v5360_v28 = vmul.f32 %v14389_v31, %v11882_v36  ;;  %v5406_v40 = vmul.f32 %v5338_v33, %v14359_v25  ;;  %v5408_v63 = vmul.f32 %v5340_v4, %v11302_v61  ;;  %v14390_v54 = vrot.slane %v14359_v25, 1 }
 0x447   : > { %v14391_v24 = vrot.slane %v11302_v61, 1  ;;  %v5424_v27 = vmul.f32 %v5356_v3, %v11564_v6  ;;  %v14392_v16 = vrot.slane %v11564_v6, 1  ;;  %v5410_v19 = vmul.f32 %v5342_v15, %v11682_v55 }
 0x448   : > { %v5698_v47 = vmul.f32 %v5338_v33, %v14390_v54  ;;  %v14393_v14 = vrot.slane %v11682_v55, 1  ;;  %v5542_v53 = vrot.slane %v5408_v63, 7  ;;  %v5426_v9 = vmul.f32 %v5358_v7, %v11663_v42 }
 0x449   : > { %v5700_v11 = vmul.f32 %v5340_v4, %v14391_v24  ;;  %v5716_v12 = vmul.f32 %v5356_v3, %v14392_v16  ;;  %v5718_v25 = vmul.f32 %v5358_v7, %v3608_v22  ;;  %v5570_v33 = vrot.slane %v5424_v27, 7  ;;  %v1583_v27 = vpop.permute.xlu1 %1582 }
 0x44a   : > { %v5702_v31 = vmul.f32 %v5342_v15, %v14393_v14  ;;  %v5544_v4 = vrot.slane %v5410_v19, 6  ;;  %v5543_v24 = vsel %vm14394_vm5, %v5542_v53, %v5406_v40  ;;  %v5572_v3 = vrot.slane %v5426_v9, 6 }
 0x44b   : > { %v5834_v30 = vrot.slane %v5700_v11, 7  ;;  %v5862_v61 = vrot.slane %v5716_v12, 7  ;;  %v5864_v16 = vrot.slane %v5718_v25, 6  ;;  %v5412_v11 = vmul.f32 %v5344_v10, %v11706_v23 }
 0x44c   : > { %v5836_v54 = vrot.slane %v5702_v31, 6  ;;  %v5545_v55 = vsel %vm3054_vm8, %v5544_v4, %v5543_v24  ;;  %v5704_v42 = vmul.f32 %v5344_v10, %v3594_v51  ;;  %v5422_v22 = vmul.f32 %v5354_v50, %v11788_v49  ;;  %v1585_v49 = vpop.permute.xlu0 %1584  ;;  %v14400_v4 = vld [vmem:[#allocation33_spill] sm:$0xff] }
 0x44d   : > { %v5835_v6 = vsel %vm14395_vm3, %v5834_v30, %v5698_v47  ;;  %v5714_v12 = vmul.f32 %v5354_v50, %v3604_v20  ;;  %v5428_v53 = vmul.f32 %v5360_v28, %v11804_v41  ;;  %v14396_v47 = vrot.slane %v11804_v41, 1 }
 0x44e   : > { %v5837_v14 = vsel %vm3054_vm8, %v5836_v54, %v5835_v6  ;;  %v5546_v63 = vrot.slane %v5412_v11, 5  ;;  %v5838_v30 = vrot.slane %v5704_v42, 5  ;;  %v11945_v7 = vmul.f32 %v3260_v26, %v11870_v56  ;;  %v14403_v42 = vld [vmem:[#allocation22_spill] sm:$0xff] }
 0x44f   : > { %v5720_v9 = vmul.f32 %v5360_v28, %v14396_v47  ;;  %v5571_v23 = vsel %vm14397_vm7, %v5570_v33, %v5422_v22  ;;  %v5863_v51 = vsel %vm14398_vm1, %v5862_v61, %v5714_v12  ;;  %v5574_v10 = vrot.slane %v5428_v53, 5  ;;  %vm14430_vm7 = vmmov %vm14385_vm14 }
 0x450   : > { %v5547_v20 = vsel %vm3057_vm9, %v5546_v63, %v5545_v55  ;;  %v5839_v50 = vsel %vm3057_vm9, %v5838_v30, %v5837_v14  ;;  %v5573_v41 = vsel %vm3054_vm8, %v5572_v3, %v5571_v23  ;;  %v5865_v28 = vsel %vm3054_vm8, %v5864_v16, %v5863_v51  ;;  %v14402_v14 = vld [vmem:[#allocation95_spill] sm:$0xff] }
 0x451   : > { %v5866_v40 = vrot.slane %v5720_v9, 5  ;;  %v11954_v19 = vsel %vm3057_vm9, %v5574_v10, %v5573_v41  ;;  %v14399_v33 = vrot.slane %v11870_v56, 1  ;;  %v5372_v54 = vmul.f32 %v14400_v4, %v11882_v36 }
 0x452   : > { %v3303_v24 = vmul.f32 %v11893_v18, %v1585_v49  ;;  %v3597_v6 = vrot.slane %v1585_v49, 1  ;;  %v5415_v3 = vmul.f32 %v11897_v32, %v1585_v49  ;;  %vm14401_vm2 = vcmask 908288  }
 0x453   : > { %v11957_v31 = vsel %vm3057_vm9, %v5866_v40, %v5865_v28  ;;  %v11962_v61 = vmul.f32 %v14399_v33, %v3260_v26  ;;  %v1586_v55 = vsel %vm14401_vm2, %v1583_v27, %v1585_v49  ;;  %v3234_v11 = vmul.f32 %v14402_v14, %v11720_v17  ;;  %v14406_v14 = vld [vmem:[#allocation21_spill] sm:$0xff]  ;;  %vm14433_vm2 = vmmov %vm14398_vm1 }
 0x454   : > { %v5346_v22 = vmul.f32 %v14403_v42, %v11882_v36  ;;  %v11975_v26 = vmul.f32 %v5372_v54, %v11870_v56  ;;  %v14404_v12 = vmov %v14399_v33  ;;  %v3450_v47 = vrot.slane %v3303_v24, 4  ;;  %v1657_v33 = vpop.permute.xlu0 %1656  ;;  %v14405_v24 = vld [vmem:[#allocation94_spill] sm:$0xff] }
 0x455   : > { %v11979_v53 = vmul.f32 %v5372_v54, %v14404_v12  ;;  %v3733_v9 = vmul.f32 %v3597_v6, %v11893_v18  ;;  %v5562_v63 = vrot.slane %v5415_v3, 4  ;;  %v5707_v30 = vmul.f32 %v11897_v32, %v3597_v6 }
 0x456   : > { %v3302_v23 = vmul.f32 %v3234_v11, %v1586_v55  ;;  %v3596_v51 = vrot.slane %v1586_v55, 1  ;;  %v11987_v49 = vsel %vm3060_vm6, %v3450_v47, %v11727_v29  ;;  %v5414_v4 = vmul.f32 %v5346_v22, %v1586_v55  ;;  %v1655_v47 = vpop.permute.xlu1 %1654 }
 0x457   : > { %v3880_v41 = vrot.slane %v3733_v9, 4  ;;  %v11991_v56 = vsel %vm3060_vm6, %v5562_v63, %v11733_v34  ;;  %v5854_v28 = vrot.slane %v5707_v30, 4  ;;  %v3251_v6 = vmul.f32 %v14405_v24, %v11590_v2 }
 0x458   : > { %v3436_v18 = vrot.slane %v3302_v23, 4  ;;  %v3732_v27 = vmul.f32 %v3596_v51, %v3234_v11  ;;  %v5706_v54 = vmul.f32 %v5346_v22, %v3596_v51  ;;  %v5363_v11 = vmul.f32 %v14406_v14, %v11499_v58 }
 0x459   : > { %v11995_v32 = vsel %vm3060_vm6, %v3880_v41, %v11730_v37  ;;  %v12001_v29 = vsel %vm3060_vm6, %v5854_v28, %v11746_v39  ;;  %v5548_v42 = vrot.slane %v5414_v4, 4  ;;  %v3319_v12 = vmul.f32 %v3251_v6, %v1657_v33 }
 0x45a   : > { %v12005_v34 = vsel %vm3060_vm6, %v3436_v18, %v11784_v13  ;;  %v3866_v3 = vrot.slane %v3732_v27, 4  ;;  %v5840_v37 = vrot.slane %v5706_v54, 4  ;;  %v14407_v55 = vrot.slane %v11847_v59, 5  ;;  %v14412_v27 = vld [vmem:[#allocation32_spill] sm:$0xff] }
 0x45b   : > { %v3613_v9 = vrot.slane %v1657_v33, 1  ;;  %v14408_v13 = vrot.slane %v11858_v57, 5  ;;  %v5431_v30 = vmul.f32 %v5363_v11, %v1657_v33  ;;  %v12022_v23 = vsel %vm3060_vm6, %v5548_v42, %v5547_v20 }
 0x45c   : > { %v3477_v22 = vsel %vm3057_vm9, %v14407_v55, %v11818_v0  ;;  %v12015_v39 = vsel %vm3060_vm6, %v3866_v3, %v11793_v35  ;;  %v12025_v51 = vsel %vm3060_vm6, %v5840_v37, %v5839_v50  ;;  %v3478_v59 = vrot.slane %v3319_v12, 4  ;;  %v1811_v12 = vpop.permute.xlu1 %1810 }
 0x45d   : > { %v3907_v63 = vsel %vm3057_vm9, %v14408_v13, %v11823_v45  ;;  %v14409_v0 = vrot.slane %v11849_v21, 5  ;;  %v3749_v41 = vmul.f32 %v3613_v9, %v3251_v6  ;;  %v5590_v28 = vrot.slane %v5431_v30, 4  ;;  %v14413_v21 = vld [vmem:[#allocation139_spill] sm:$0xff] }
 0x45e   : > { %v5723_v18 = vmul.f32 %v5363_v11, %v3613_v9  ;;  %v14410_v57 = vrot.slane %v11861_v1, 5  ;;  %v12036_v20 = vsel %vm3060_vm6, %v3478_v59, %v3477_v22  ;;  %vm14411_vm0 = vcmask 932864   ;;  %v14414_v11 = vld [vmem:[#allocation16_spill] sm:$0xff] }
 0x45f   : > { %v5589_v35 = vsel %vm3057_vm9, %v14409_v0, %v11801_v62  ;;  %v1658_v50 = vsel %vm14411_vm0, %v1655_v47, %v1657_v33  ;;  %v3250_v4 = vmul.f32 %v14412_v27, %v11720_v17  ;;  %v5362_v54 = vmul.f32 %v14413_v21, %v11882_v36  ;;  %v1813_v62 = vpop.permute.xlu0 %1812  ;;  %v14415_v33 = vld [vmem:[#allocation100_spill] sm:$0xff]  ;;  %vm14436_vm0 = vmmov %vm14398_vm1 }
 0x460   : > { %v5881_v45 = vsel %vm3057_vm9, %v14410_v57, %v11832_v44  ;;  %v3908_v24 = vrot.slane %v3749_v41, 4  ;;  %v12044_v6 = vsel %vm3060_vm6, %v5590_v28, %v5589_v35  ;;  %v5882_v3 = vrot.slane %v5723_v18, 4 }
 0x461   : > { %v3612_v1 = vrot.slane %v1658_v50, 1  ;;  %v3318_v14 = vmul.f32 %v3250_v4, %v1658_v50  ;;  %v5430_v44 = vmul.f32 %v5362_v54, %v1658_v50  ;;  %v3263_v42 = vmul.f32 %v14414_v11, %v11590_v2  ;;  %v14418_v11 = vld [vmem:[#allocation60_spill] sm:$0xff] }
 0x462   : > { %v5375_v37 = vmul.f32 %v14415_v33, %v11499_v58  ;;  %v12051_v55 = vsel %vm3060_vm6, %v3908_v24, %v3907_v63  ;;  %v12054_v22 = vsel %vm3060_vm6, %v5882_v3, %v5881_v45  ;;  %v3625_v0 = vrot.slane %v1813_v62, 1 }
 0x463   : > { %v3748_v47 = vmul.f32 %v3612_v1, %v3250_v4  ;;  %v5722_v9 = vmul.f32 %v5362_v54, %v3612_v1  ;;  %v3464_v13 = vrot.slane %v3318_v14, 4  ;;  %v5576_v30 = vrot.slane %v5430_v44, 4  ;;  %v1594_v27 = vpop.permute.xlu0 %1593  ;;  %v14417_v1 = vld [vmem:[#allocation37_spill] sm:$0xff]  ;;  %v1592_v44 = vpop.permute.xlu1 %1591 }
 0x464   : > { %v12056_v59 = vmul.f32 %v3263_v42, %v1813_v62  ;;  %v12058_v28 = vmul.f32 %v5375_v37, %v1813_v62  ;;  %v1868_v18 = vsel %vm14385_vm14, %v1811_v12, %v1813_v62  ;;  %v12070_v50 = vmul.f32 %v3625_v0, %v3263_v42  ;;  %v14416_v62 = vld [vmem:[#allocation128_spill] sm:$0xff]  ;;  %vm14440_vm14 = vmmov %vm14436_vm0 }
 0x465   : > { %v3894_v35 = vrot.slane %v3748_v47, 4  ;;  %v5868_v41 = vrot.slane %v5722_v9, 4  ;;  %v12063_v63 = vsel %vm3060_vm6, %v3464_v13, %v11873_v48  ;;  %v12067_v57 = vsel %vm3060_vm6, %v5576_v30, %v11954_v19  ;;  %v14419_v42 = vld [vmem:[#allocation84_spill] sm:$0xff] }
 0x466   : > { %v3502_v45 = vrot.slane %v12056_v59, 6  ;;  %v12081_v54 = vmul.f32 %v5375_v37, %v3625_v0  ;;  %v3262_v24 = vmul.f32 %v14416_v62, %v11720_v17  ;;  %v3624_v3 = vrot.slane %v1868_v18, 1 }
 0x467   : > { %v12074_v4 = vsel %vm3060_vm6, %v3894_v35, %v11876_v8  ;;  %v12078_v21 = vsel %vm3060_vm6, %v5868_v41, %v11957_v31  ;;  %v5374_v14 = vmul.f32 %v14417_v1, %v11882_v36  ;;  %v3237_v31 = vmul.f32 %v14418_v11, %v11590_v2  ;;  %v1666_v1 = vpop.permute.xlu0 %1665  ;;  %v1664_v25 = vpop.permute.xlu1 %1663 }
 0x468   : > { %v5349_v33 = vmul.f32 %v14419_v42, %v11499_v58  ;;  %v3599_v37 = vrot.slane %v1594_v27, 1  ;;  %v12093_v12 = vmul.f32 %v3262_v24, %v1868_v18  ;;  %v12095_v47 = vmul.f32 %v3624_v3, %v3262_v24 }
 0x469   : > { %v12097_v9 = vmul.f32 %v5374_v14, %v1868_v18  ;;  %v12099_v13 = vmul.f32 %v5374_v14, %v3624_v3  ;;  %v3305_v30 = vmul.f32 %v3237_v31, %v1594_v27  ;;  %vm14420_vm5 = vcmask 900096   ;;  %v14421_v3 = vld [vmem:[#allocation52_spill] sm:$0xff] }
 0x46a   : > { %v3735_v0 = vmul.f32 %v3599_v37, %v3237_v31  ;;  %v5417_v35 = vmul.f32 %v5349_v33, %v1594_v27  ;;  %v5709_v41 = vmul.f32 %v5349_v33, %v3599_v37  ;;  %v1595_v18 = vsel %vm14420_vm5, %v1592_v44, %v1594_v27  ;;  %v14422_v31 = vld [vmem:[#allocation62_spill] sm:$0xff]  ;;  %v14423_v37 = vld [vmem:[#allocation43_spill] sm:$0xff]  ;;  %vm14445_vm5 = vmmov %vm14436_vm0 }
 0x46b   : > { %v3452_v40 = vrot.slane %v3305_v30, 3  ;;  %v3236_v14 = vmul.f32 %v14421_v3, %v11720_v17  ;;  %v5348_v33 = vmul.f32 %v14422_v31, %v11882_v36  ;;  %v3253_v62 = vmul.f32 %v14423_v37, %v11590_v2  ;;  %v14424_v3 = vld [vmem:[#allocation55_spill] sm:$0xff] }
 0x46c   : > { %v3882_v10 = vrot.slane %v3735_v0, 3  ;;  %v5564_v24 = vrot.slane %v5417_v35, 3  ;;  %v5856_v16 = vrot.slane %v5709_v41, 3  ;;  %v3598_v35 = vrot.slane %v1595_v18, 1 }
 0x46d   : > { %v12114_v42 = vsel %vm3063_vm13, %v3452_v40, %v11987_v49  ;;  %v3304_v0 = vmul.f32 %v3236_v14, %v1595_v18  ;;  %v5416_v41 = vmul.f32 %v5348_v33, %v1595_v18  ;;  %v5365_v31 = vmul.f32 %v14424_v3, %v11499_v58 }
 0x46e   : > { %v12118_v30 = vsel %vm3063_vm13, %v3882_v10, %v11995_v32  ;;  %v12122_v27 = vsel %vm3063_vm13, %v5564_v24, %v11991_v56  ;;  %v12126_v44 = vsel %vm3063_vm13, %v5856_v16, %v12001_v29  ;;  %v3321_v40 = vmul.f32 %v3253_v62, %v1666_v1  ;;  %v14426_v10 = vld [vmem:[#allocation58_spill] sm:$0xff] }
 0x46f   : > { %v3615_v49 = vrot.slane %v1666_v1, 1  ;;  %vm14425_vm3 = vcmask 883712   ;;  %v3252_v32 = vmul.f32 %v14426_v10, %v11720_v17  ;;  %v3438_v11 = vrot.slane %v3304_v0, 3  ;;  %v14429_v10 = vld [vmem:[#allocation104_spill] sm:$0xff] }
 0x470   : > { %v1667_v37 = vsel %vm14425_vm3, %v1664_v25, %v1666_v1  ;;  %v3734_v56 = vmul.f32 %v3598_v35, %v3236_v14  ;;  %v5550_v24 = vrot.slane %v5416_v41, 3  ;;  %v5708_v8 = vmul.f32 %v5348_v33, %v3598_v35  ;;  %v1803_v41 = vpop.permute.xlu1 %1802  ;;  %vm14447_vm3 = vmmov %vm14430_vm7 }
 0x471   : > { %v3480_v15 = vrot.slane %v3321_v40, 3  ;;  %v3751_v16 = vmul.f32 %v3615_v49, %v3253_v62  ;;  %v5433_v29 = vmul.f32 %v5365_v31, %v1666_v1  ;;  %v5725_v48 = vmul.f32 %v5365_v31, %v3615_v49  ;;  %v14428_v40 = vld [vmem:[#allocation125_spill] sm:$0xff] }
 0x472   : > { %v12135_v18 = vsel %vm3063_vm13, %v3438_v11, %v12005_v34  ;;  %v3868_v3 = vrot.slane %v3734_v56, 3  ;;  %v12139_v19 = vsel %vm3063_vm13, %v5550_v24, %v12022_v23  ;;  %v5842_v25 = vrot.slane %v5708_v8, 3  ;;  %v1805_v23 = vpop.permute.xlu0 %1804 }
 0x473   : > { %v12143_v0 = vsel %vm3063_vm13, %v3480_v15, %v12036_v20  ;;  %v3910_v14 = vrot.slane %v3751_v16, 3  ;;  %v5592_v33 = vrot.slane %v5433_v29, 3  ;;  %v5884_v35 = vrot.slane %v5725_v48, 3  ;;  %v14427_v20 = vld [vmem:[#allocation81_spill] sm:$0xff] }
 0x474   : > { %v12147_v62 = vsel %vm3063_vm13, %v3868_v3, %v12015_v39  ;;  %v12151_v34 = vsel %vm3063_vm13, %v5842_v25, %v12025_v51  ;;  %v3320_v1 = vmul.f32 %v3252_v32, %v1667_v37  ;;  %v3614_v11 = vrot.slane %v1667_v37, 1 }
 0x475   : > { %v12155_v8 = vsel %vm3063_vm13, %v3910_v14, %v12051_v55  ;;  %v12159_v15 = vsel %vm3063_vm13, %v5592_v33, %v12044_v6  ;;  %v12163_v39 = vsel %vm3063_vm13, %v5884_v35, %v12054_v22  ;;  %v5364_v51 = vmul.f32 %v14427_v20, %v11882_v36  ;;  %v14434_v20 = vld [vmem:[#allocation122_spill] sm:$0xff] }
 0x476   : > { %v3466_v48 = vrot.slane %v3320_v1, 3  ;;  %v3750_v31 = vmul.f32 %v3614_v11, %v3252_v32  ;;  %v3259_v49 = vmul.f32 %v14428_v40, %v11590_v2  ;;  %v5371_v55 = vmul.f32 %v14429_v10, %v11499_v58  ;;  %v1815_v40 = vpop.permute.xlu1 %1814 }
 0x477   : > { %v5432_v56 = vmul.f32 %v5364_v51, %v1667_v37  ;;  %v5724_v24 = vmul.f32 %v5364_v51, %v3614_v11  ;;  %v3621_v16 = vrot.slane %v1805_v23, 1  ;;  %v1866_v6 = vsel %vm14430_vm7, %v1803_v41, %v1805_v23  ;;  %vm14450_vm7 = vmmov %vm14436_vm0 }
 0x478   : > { %v12174_v22 = vsel %vm3063_vm13, %v3466_v48, %v12063_v63  ;;  %v3896_v29 = vrot.slane %v3750_v31, 3  ;;  %v3327_v3 = vmul.f32 %v3259_v49, %v1805_v23  ;;  %v5439_v25 = vmul.f32 %v5371_v55, %v1805_v23  ;;  %v1817_v31 = vpop.permute.xlu0 %1816 }
 0x479   : > { %v5578_v14 = vrot.slane %v5432_v56, 3  ;;  %v5870_v32 = vrot.slane %v5724_v24, 3  ;;  %v3757_v33 = vmul.f32 %v3621_v16, %v3259_v49  ;;  %v5731_v35 = vmul.f32 %v5371_v55, %v3621_v16  ;;  %v14442_v16 = vld [vmem:[#allocation154_spill] sm:$0xff] }
 0x47a   : > { %v12178_v1 = vsel %vm3063_vm13, %v3896_v29, %v12074_v4  ;;  %v14431_v37 = vrot.slane %v11863_v43, 7  ;;  %v14432_v41 = vrot.slane %v11867_v60, 7  ;;  %v3258_v51 = vmul.f32 %v14434_v20, %v11720_v17 }
 0x47b   : > { %v12190_v23 = vsel %vm3063_vm13, %v5578_v14, %v12067_v57  ;;  %v12194_v48 = vsel %vm3063_vm13, %v5870_v32, %v12078_v21  ;;  %v14435_v4 = vrot.slane %v11879_v46, 7  ;;  %v14437_v49 = vrot.slane %v12070_v50, 6  ;;  %v14443_v50 = vld [vmem:[#allocation14_spill] sm:$0xff] }
 0x47c   : > { %v3501_v11 = vsel %vm14398_vm1, %v14431_v37, %v3327_v3  ;;  %v5613_v63 = vsel %vm14433_vm2, %v14432_v41, %v5439_v25  ;;  %v14438_v57 = vrot.slane %v12058_v28, 6  ;;  %v14439_v21 = vrot.slane %v11885_v52, 7  ;;  %v14446_v52 = vld [vmem:[#allocation155_spill] sm:$0xff]  ;;  %vm14452_vm1 = vmmov %vm14436_vm0 }
 0x47d   : > { %v3503_v43 = vsel %vm3054_vm8, %v3502_v45, %v3501_v11  ;;  %v3931_v60 = vsel %vm14436_vm0, %v14435_v4, %v3757_v33  ;;  %v3326_v56 = vmul.f32 %v3258_v51, %v1866_v6  ;;  %v14441_v45 = vrot.slane %v12081_v54, 6  ;;  %vm14454_vm2 = vmmov %vm14436_vm0 }
 0x47e   : > { %v3933_v10 = vsel %vm3054_vm8, %v14437_v49, %v3931_v60  ;;  %v5615_v55 = vsel %vm3054_vm8, %v14438_v57, %v5613_v63  ;;  %v5905_v59 = vsel %vm14440_vm14, %v14439_v21, %v5731_v35  ;;  %v3620_v24 = vrot.slane %v1866_v6, 1  ;;  %vm14462_vm0 = vmmov %vm14447_vm3 }
 0x47f   : > { %v5907_v46 = vsel %vm3054_vm8, %v14441_v45, %v5905_v59  ;;  %v5370_v29 = vmul.f32 %v14442_v16, %v11882_v36  ;;  %v3265_v3 = vmul.f32 %v14443_v50, %v11590_v2  ;;  %v14444_v28 = vrot.slane %v11945_v7, 7 }
 0x480   : > { %v5377_v14 = vmul.f32 %v14446_v52, %v11499_v58  ;;  %v3627_v32 = vrot.slane %v1817_v31, 1  ;;  %v1869_v33 = vsel %vm14447_vm3, %v1815_v40, %v1817_v31  ;;  %v14448_v54 = vrot.slane %v12093_v12, 6  ;;  %vm14478_vm3 = vmmov %vm14462_vm0 }
 0x481   : > { %v3487_v25 = vsel %vm14445_vm5, %v14444_v28, %v3326_v56  ;;  %v3756_v37 = vmul.f32 %v3620_v24, %v3258_v51  ;;  %v5438_v11 = vmul.f32 %v5370_v29, %v1866_v6  ;;  %v5730_v41 = vmul.f32 %v5370_v29, %v3620_v24  ;;  %v14455_v51 = vld [vmem:[#allocation131_spill] sm:$0xff] }
 0x482   : > { %v3489_v35 = vsel %vm3054_vm8, %v14448_v54, %v3487_v25  ;;  %v3333_v63 = vmul.f32 %v3265_v3, %v1817_v31  ;;  %v3763_v20 = vmul.f32 %v3627_v32, %v3265_v3  ;;  %v5445_v4 = vmul.f32 %v5377_v14, %v1817_v31  ;;  %v1841_v3 = vpop.permute.xlu0 %1840  ;;  %v14459_v25 = vld [vmem:[#allocation98_spill] sm:$0xff] }
 0x483   : > { %v5737_v60 = vmul.f32 %v5377_v14, %v3627_v32  ;;  %v14449_v7 = vrot.slane %v11962_v61, 7  ;;  %v14451_v57 = vrot.slane %v11975_v26, 7  ;;  %v14453_v40 = vrot.slane %v11979_v53, 7  ;;  %v1839_v32 = vpop.permute.xlu1 %1838 }
 0x484   : > { %v3264_v6 = vmul.f32 %v14455_v51, %v11720_v17  ;;  %v14456_v59 = vrot.slane %v12095_v47, 6  ;;  %v14457_v56 = vrot.slane %v12097_v9, 6  ;;  %v14458_v45 = vrot.slane %v12099_v13, 6  ;;  %v14460_v9 = vld [vmem:[#allocation124_spill] sm:$0xff] }
 0x485   : > { %v3917_v49 = vsel %vm14450_vm7, %v14449_v7, %v3756_v37  ;;  %v5599_v21 = vsel %vm14452_vm1, %v14451_v57, %v5438_v11  ;;  %v5891_v12 = vsel %vm14454_vm2, %v14453_v40, %v5730_v41  ;;  %v3504_v24 = vrot.slane %v3333_v63, 5  ;;  %v14463_v51 = vld [vmem:[#allocation28_spill] sm:$0xff]  ;;  %vm14483_vm7 = vmmov %vm14462_vm0 }
 0x486   : > { %v3919_v31 = vsel %vm3054_vm8, %v14456_v59, %v3917_v49  ;;  %v5601_v61 = vsel %vm3054_vm8, %v14457_v56, %v5599_v21  ;;  %v5893_v26 = vsel %vm3054_vm8, %v14458_v45, %v5891_v12  ;;  %v3934_v16 = vrot.slane %v3763_v20, 5  ;;  %v14461_v20 = vld [vmem:[#allocation127_spill] sm:$0xff] }
 0x487   : > { %v5616_v53 = vrot.slane %v5445_v4, 5  ;;  %v5908_v29 = vrot.slane %v5737_v60, 5  ;;  %v3332_v50 = vmul.f32 %v3264_v6, %v1869_v33  ;;  %v12248_v28 = vsel %vm3057_vm9, %v3504_v24, %v3503_v43 }
 0x488   : > { %v3626_v47 = vrot.slane %v1869_v33, 1  ;;  %v5376_v52 = vmul.f32 %v14459_v25, %v11882_v36  ;;  %v3277_v14 = vmul.f32 %v14460_v9, %v11590_v2  ;;  %v12255_v13 = vsel %vm3057_vm9, %v3934_v16, %v3933_v10  ;;  %v1601_v16 = vpop.permute.xlu1 %1600  ;;  %v14465_v25 = vld [vmem:[#allocation86_spill] sm:$0xff] }
 0x489   : > { %v12258_v54 = vsel %vm3057_vm9, %v5616_v53, %v5615_v55  ;;  %v12261_v37 = vsel %vm3057_vm9, %v5908_v29, %v5907_v46  ;;  %v3490_v11 = vrot.slane %v3332_v50, 5  ;;  %v5389_v4 = vmul.f32 %v14461_v20, %v11499_v58 }
 0x48a   : > { %v3762_v43 = vmul.f32 %v3626_v47, %v3264_v6  ;;  %v5444_v41 = vmul.f32 %v5376_v52, %v1869_v33  ;;  %v5736_v63 = vmul.f32 %v5376_v52, %v3626_v47  ;;  %v12268_v7 = vmul.f32 %v3277_v14, %v1841_v3  ;;  %v1603_v6 = vpop.permute.xlu0 %1602  ;;  %v14464_v47 = vld [vmem:[#allocation129_spill] sm:$0xff] }
 0x48b   : > { %v12266_v60 = vsel %vm3057_vm9, %v3490_v11, %v3489_v35  ;;  %v3639_v10 = vrot.slane %v1841_v3, 1  ;;  %v1875_v49 = vsel %vm14462_vm0, %v1839_v32, %v1841_v3  ;;  %v12271_v46 = vmul.f32 %v5389_v4, %v1841_v3  ;;  %v14466_v52 = vld [vmem:[#allocation145_spill] sm:$0xff] }
 0x48c   : > { %v3920_v55 = vrot.slane %v3762_v43, 5  ;;  %v5602_v57 = vrot.slane %v5444_v41, 5  ;;  %v5894_v21 = vrot.slane %v5736_v63, 5  ;;  %v3276_v35 = vmul.f32 %v14463_v51, %v11720_v17  ;;  %v14468_v43 = vld [vmem:[#allocation25_spill] sm:$0xff] }
 0x48d   : > { %v12274_v33 = vmul.f32 %v3639_v10, %v3277_v14  ;;  %v12276_v12 = vmul.f32 %v5389_v4, %v3639_v10  ;;  %v3638_v3 = vrot.slane %v1875_v49, 1  ;;  %v3601_v9 = vrot.slane %v1603_v6, 1 }
 0x48e   : > { %v12281_v59 = vsel %vm3057_vm9, %v3920_v55, %v3919_v31  ;;  %v12284_v56 = vsel %vm3057_vm9, %v5602_v57, %v5601_v61  ;;  %v12287_v45 = vsel %vm3057_vm9, %v5894_v21, %v5893_v26  ;;  %v12292_v50 = vmul.f32 %v3276_v35, %v1875_v49  ;;  %v1675_v29 = vpop.permute.xlu0 %1674 }
 0x48f   : > { %v5388_v31 = vmul.f32 %v14464_v47, %v11882_v36  ;;  %v3239_v61 = vmul.f32 %v14465_v25, %v11590_v2  ;;  %v5351_v26 = vmul.f32 %v14466_v52, %v11499_v58  ;;  %v12301_v32 = vmul.f32 %v3638_v3, %v3276_v35 }
 0x490   : > { %vm14467_vm14 = vcmask 785408   ;;  %v3238_v41 = vmul.f32 %v14468_v43, %v11720_v17  ;;  %v3617_v35 = vrot.slane %v1675_v29, 1  ;;  %vm14474_vm5 = vcmask 539648  }
 0x491   : > { %v1604_v11 = vsel %vm14467_vm14, %v1601_v16, %v1603_v6  ;;  %v12306_v63 = vmul.f32 %v5388_v31, %v1875_v49  ;;  %v12308_v20 = vmul.f32 %v5388_v31, %v3638_v3  ;;  %v3307_v4 = vmul.f32 %v3239_v61, %v1603_v6  ;;  %v14471_v31 = vld [vmem:[#allocation42_spill] sm:$0xff] }
 0x492   : > { %v3737_v10 = vmul.f32 %v3601_v9, %v3239_v61  ;;  %v5419_v57 = vmul.f32 %v5351_v26, %v1603_v6  ;;  %v5711_v21 = vmul.f32 %v5351_v26, %v3601_v9  ;;  %v3306_v51 = vmul.f32 %v3238_v41, %v1604_v11  ;;  %v14472_v26 = vld [vmem:[#allocation101_spill] sm:$0xff] }
 0x493   : > { %14469 = vst [vmem:[#allocation67_spill] sm:$0xff] %v12306_v63  ;;  %14470 = vst [vmem:[#allocation71_spill] sm:$0xff] %v12308_v20  ;;  %v3454_v25 = vrot.slane %v3307_v4, 2  ;;  %v3600_v49 = vrot.slane %v1604_v11, 1  ;;  %v5350_v61 = vmul.f32 %v14471_v31, %v11882_v36  ;;  %v3255_v9 = vmul.f32 %v14472_v26, %v11590_v2  ;;  %v1673_v4 = vpop.permute.xlu1 %1672 }
 0x494   : > { %v3884_v16 = vrot.slane %v3737_v10, 2  ;;  %v5566_v52 = vrot.slane %v5419_v57, 2  ;;  %v5858_v14 = vrot.slane %v5711_v21, 2  ;;  %v3440_v43 = vrot.slane %v3306_v51, 2 }
 0x495   : > { %v12315_v3 = vsel %vm3066_vm11, %v3454_v25, %v12114_v42  ;;  %v5418_v21 = vmul.f32 %v5350_v61, %v1604_v11  ;;  %v5710_v51 = vmul.f32 %v5350_v61, %v3600_v49  ;;  %v14473_v25 = vld [vmem:[#allocation89_spill] sm:$0xff]  ;;  %v3323_v31 = vmul.f32 %v3255_v9, %v1675_v29 }
 0x496   : > { %v12319_v6 = vsel %vm3066_vm11, %v3884_v16, %v12118_v30  ;;  %v12327_v10 = vsel %vm3066_vm11, %v5566_v52, %v12122_v27  ;;  %v12331_v57 = vsel %vm3066_vm11, %v5858_v14, %v12126_v44  ;;  %v12335_v42 = vsel %vm3066_vm11, %v3440_v43, %v12135_v18  ;;  %v14475_v52 = vld [vmem:[#allocation34_spill] sm:$0xff] }
 0x497   : > { %v3736_v30 = vmul.f32 %v3600_v49, %v3238_v41  ;;  %v5367_v16 = vmul.f32 %v14473_v25, %v11499_v58  ;;  %v1676_v27 = vsel %vm14474_vm5, %v1673_v4, %v1675_v29  ;;  %v3254_v47 = vmul.f32 %v14475_v52, %v11720_v17 }
 0x498   : > { %v5552_v44 = vrot.slane %v5418_v21, 2  ;;  %v5844_v14 = vrot.slane %v5710_v51, 2  ;;  %v3482_v55 = vrot.slane %v3323_v31, 2  ;;  %v3753_v11 = vmul.f32 %v3617_v35, %v3255_v9  ;;  %v1821_v9 = vpop.permute.xlu0 %1820 }
 0x499   : > { %v3870_v26 = vrot.slane %v3736_v30, 2  ;;  %v5435_v24 = vmul.f32 %v5367_v16, %v1675_v29  ;;  %v5727_v41 = vmul.f32 %v5367_v16, %v3617_v35  ;;  %v3322_v43 = vmul.f32 %v3254_v47, %v1676_v27  ;;  %v14477_v16 = vld [vmem:[#allocation36_spill] sm:$0xff] }
 0x49a   : > { %v12348_v49 = vsel %vm3066_vm11, %v5552_v44, %v12139_v19  ;;  %v12352_v61 = vsel %vm3066_vm11, %v5844_v14, %v12151_v34  ;;  %v12356_v4 = vsel %vm3066_vm11, %v3482_v55, %v12143_v0  ;;  %v3912_v30 = vrot.slane %v3753_v11, 2  ;;  %v14476_v34 = vld [vmem:[#allocation45_spill] sm:$0xff]  ;;  %v1819_v55 = vpop.permute.xlu1 %1818 }
 0x49b   : > { %v12344_v18 = vsel %vm3066_vm11, %v3870_v26, %v12147_v62  ;;  %v5594_v29 = vrot.slane %v5435_v24, 2  ;;  %v5886_v21 = vrot.slane %v5727_v41, 2  ;;  %v3468_v62 = vrot.slane %v3322_v43, 2 }
 0x49c   : > { %v3616_v51 = vrot.slane %v1676_v27, 1  ;;  %v5366_v19 = vmul.f32 %v11665_v5, %v11882_v36  ;;  %v3267_v25 = vmul.f32 %v14476_v34, %v11590_v2  ;;  %v5379_v0 = vmul.f32 %v14477_v16, %v11499_v58  ;;  %v1845_v16 = vpop.permute.xlu0 %1844 }
 0x49d   : > { %v12360_v35 = vsel %vm3066_vm11, %v5594_v29, %v12159_v15  ;;  %v12370_v24 = vsel %vm3066_vm11, %v3912_v30, %v12155_v8  ;;  %v12374_v31 = vsel %vm3066_vm11, %v5886_v21, %v12163_v39  ;;  %v12378_v15 = vsel %vm3066_vm11, %v3468_v62, %v12174_v22  ;;  %v14479_v8 = vld [vmem:[#allocation26_spill] sm:$0xff] }
 0x49e   : > { %v3752_v5 = vmul.f32 %v3616_v51, %v3254_v47  ;;  %v5434_v26 = vmul.f32 %v5366_v19, %v1676_v27  ;;  %v5726_v52 = vmul.f32 %v5366_v19, %v3616_v51  ;;  %v3335_v44 = vmul.f32 %v3267_v25, %v1821_v9 }
 0x49f   : > { %v3629_v14 = vrot.slane %v1821_v9, 1  ;;  %v5447_v41 = vmul.f32 %v5379_v0, %v1821_v9  ;;  %v1870_v43 = vsel %vm14478_vm3, %v1819_v55, %v1821_v9  ;;  %v3266_v29 = vmul.f32 %v14479_v8, %v11720_v17 }
 0x4a0   : > { %v3898_v11 = vrot.slane %v3752_v5, 2  ;;  %v5580_v30 = vrot.slane %v5434_v26, 2  ;;  %v5872_v34 = vrot.slane %v5726_v52, 2  ;;  %v3506_v39 = vrot.slane %v3335_v44, 4  ;;  %v1843_v26 = vpop.permute.xlu1 %1842 }
 0x4a1   : > { %v3765_v21 = vmul.f32 %v3629_v14, %v3267_v25  ;;  %v5618_v47 = vrot.slane %v5447_v41, 4  ;;  %v5739_v27 = vmul.f32 %v5379_v0, %v3629_v14  ;;  %v3334_v62 = vmul.f32 %v3266_v29, %v1870_v43  ;;  %v14482_v14 = vld [vmem:[#allocation130_spill] sm:$0xff] }
 0x4a2   : > { %v12385_v22 = vsel %vm3066_vm11, %v3898_v11, %v12178_v1  ;;  %v12389_v51 = vsel %vm3066_vm11, %v5580_v30, %v12190_v23  ;;  %v12393_v9 = vsel %vm3066_vm11, %v5872_v34, %v12194_v48  ;;  %v12397_v19 = vsel %vm3060_vm6, %v3506_v39, %v12248_v28  ;;  %v14480_v48 = vld [vmem:[#allocation38_spill] sm:$0xff] }
 0x4a3   : > { %v3936_v25 = vrot.slane %v3765_v21, 4  ;;  %v12401_v1 = vsel %vm3060_vm6, %v5618_v47, %v12258_v54  ;;  %v5910_v0 = vrot.slane %v5739_v27, 4  ;;  %v3492_v55 = vrot.slane %v3334_v62, 4  ;;  %v14481_v28 = vld [vmem:[#allocation102_spill] sm:$0xff] }
 0x4a4   : > { %v3628_v5 = vrot.slane %v1870_v43, 1  ;;  %v5378_v52 = vmul.f32 %v14480_v48, %v11882_v36  ;;  %v3279_v44 = vmul.f32 %v14481_v28, %v11590_v2  ;;  %v5391_v11 = vmul.f32 %v14482_v14, %v11499_v58 }
 0x4a5   : > { %v12405_v23 = vsel %vm3060_vm6, %v3936_v25, %v12255_v13  ;;  %v12415_v54 = vsel %vm3060_vm6, %v5910_v0, %v12261_v37  ;;  %v12419_v41 = vsel %vm3060_vm6, %v3492_v55, %v12266_v60  ;;  %v3641_v13 = vrot.slane %v1845_v16, 1  ;;  %v1612_v55 = vpop.permute.xlu0 %1611 }
 0x4a6   : > { %v3764_v8 = vmul.f32 %v3628_v5, %v3266_v29  ;;  %v5446_v30 = vmul.f32 %v5378_v52, %v1870_v43  ;;  %v5738_v34 = vmul.f32 %v5378_v52, %v3628_v5  ;;  %v12421_v39 = vmul.f32 %v3279_v44, %v1845_v16  ;;  %v14484_v52 = vld [vmem:[#allocation157_spill] sm:$0xff] }
 0x4a7   : > { %v12423_v21 = vmul.f32 %v5391_v11, %v1845_v16  ;;  %v12425_v27 = vmul.f32 %v3641_v13, %v3279_v44  ;;  %v12427_v62 = vmul.f32 %v5391_v11, %v3641_v13  ;;  %v1876_v37 = vsel %vm14483_vm7, %v1843_v26, %v1845_v16  ;;  %v1610_v44 = vpop.permute.xlu1 %1609  ;;  %v14486_v13 = vld [vmem:[#allocation48_spill] sm:$0xff] }
 0x4a8   : > { %v3922_v47 = vrot.slane %v3764_v8, 4  ;;  %v5604_v25 = vrot.slane %v5446_v30, 4  ;;  %v5896_v0 = vrot.slane %v5738_v34, 4  ;;  %v3278_v28 = vmul.f32 %v14484_v52, %v11720_v17  ;;  %v14487_v34 = vld [vmem:[#allocation50_spill] sm:$0xff] }
 0x4a9   : > { %v3640_v14 = vrot.slane %v1876_v37, 1  ;;  %v3241_v30 = vmul.f32 %v14486_v13, %v11590_v2  ;;  %v3603_v52 = vrot.slane %v1612_v55, 1  ;;  %vm14490_vm1 = vcmask 777216  }
 0x4aa   : > { %v12434_v43 = vsel %vm3060_vm6, %v3922_v47, %v12281_v59  ;;  %v12442_v16 = vsel %vm3060_vm6, %v5604_v25, %v12284_v56  ;;  %v12446_v26 = vsel %vm3060_vm6, %v5896_v0, %v12287_v45  ;;  %v14485_v59 = vld [vmem:[#allocation135_spill] sm:$0xff]  ;;  %v12450_v8 = vmul.f32 %v3278_v28, %v1876_v37  ;;  %v14492_v0 = vld [vmem:[#allocation69_spill] sm:$0xff] }
 0x4ab   : > { %v5390_v11 = vmul.f32 %v14485_v59, %v11882_v36  ;;  %v5353_v47 = vmul.f32 %v14487_v34, %v11499_v58  ;;  %v12456_v48 = vmul.f32 %v3640_v14, %v3278_v28  ;;  %v1613_v45 = vsel %vm14490_vm1, %v1610_v44, %v1612_v55 }
 0x4ac   : > { %v3309_v59 = vmul.f32 %v3241_v30, %v1612_v55  ;;  %v3739_v29 = vmul.f32 %v3603_v52, %v3241_v30  ;;  %v3602_v44 = vrot.slane %v1613_v45, 1  ;;  %v5352_v63 = vmul.f32 %v14492_v0, %v11882_v36 }
 0x4ad   : > { %v12458_v56 = vmul.f32 %v5390_v11, %v1876_v37  ;;  %v12460_v25 = vmul.f32 %v5390_v11, %v3640_v14  ;;  %v5421_v5 = vmul.f32 %v5353_v47, %v1612_v55  ;;  %v5713_v60 = vmul.f32 %v5353_v47, %v3603_v52  ;;  %v14491_v14 = vld [vmem:[#allocation18_spill] sm:$0xff]  ;;  %v14493_v55 = vld [vmem:[#allocation51_spill] sm:$0xff]  ;;  %v1684_v52 = vpop.permute.xlu0 %1683 }
 0x4ae   : > { %v3456_v28 = vrot.slane %v3309_v59, 1  ;;  %v3886_v40 = vrot.slane %v3739_v29, 1  ;;  %v3240_v11 = vmul.f32 %v14491_v14, %v11720_v17  ;;  %v3257_v30 = vmul.f32 %v14493_v55, %v11590_v2  ;;  %v1682_v55 = vpop.permute.xlu1 %1681 }
 0x4af   : > { %14488 = vst [vmem:[#allocation13_spill] sm:$0xff] %v12458_v56  ;;  %14489 = vst [vmem:[#allocation72_spill] sm:$0xff] %v12460_v25  ;;  %v5568_v37 = vrot.slane %v5421_v5, 1  ;;  %v5860_v20 = vrot.slane %v5713_v60, 1  ;;  %vm14494_vm2 = vcmask 285696   ;;  %v3619_v25 = vrot.slane %v1684_v52, 1 }
 0x4b0   : > { %v3457_v13 = vsel %vm3069_vm12, %v3456_v28, %v12315_v3  ;;  %v3887_v47 = vsel %vm3069_vm12, %v3886_v40, %v12319_v6  ;;  %v3308_v5 = vmul.f32 %v3240_v11, %v1613_v45  ;;  %vm14495_vm0 = vmmov %vm14494_vm2  ;;  %v3738_v34 = vmul.f32 %v3602_v44, %v3240_v11 }
 0x4b1   : > { %v5569_v29 = vsel %vm3069_vm12, %v5568_v37, %v12327_v10  ;;  %v3571_v60 = vsel %vm14494_vm2, %v3457_v13, 0.0  ;;  %v4001_v59 = vsel %vm14495_vm0, %v3887_v47, 0.0  ;;  %vm14496_vm14 = vmmov %vm14495_vm0  ;;  %v5861_v14 = vsel %vm3069_vm12, %v5860_v20, %v12331_v57  ;;  %v14498_v10 = vld [vmem:[#allocation47_spill] sm:$0xff] }
 0x4b2   : > { %v5683_v0 = vsel %vm14496_vm14, %v5569_v29, 0.0  ;;  %vm14497_vm5 = vmmov %vm14495_vm0  ;;  %v3442_v28 = vrot.slane %v3308_v5, 1  ;;  %v5420_v40 = vmul.f32 %v5352_v63, %v1613_v45  ;;  %v5712_v6 = vmul.f32 %v5352_v63, %v3602_v44 }
 0x4b3   : > { %v5975_v3 = vsel %vm14497_vm5, %v5861_v14, 0.0  ;;  %v5369_v37 = vmul.f32 %v14498_v10, %v11499_v58  ;;  %v3325_v53 = vmul.f32 %v3257_v30, %v1684_v52  ;;  %v3872_v47 = vrot.slane %v3738_v34, 1  ;;  %vm14500_vm7 = vmmov %vm14495_vm0 }
 0x4b4   : > { %v3443_v13 = vsel %vm3069_vm12, %v3442_v28, %v12335_v42  ;;  %v5554_v29 = vrot.slane %v5420_v40, 1  ;;  %vm14499_vm3 = vcmask 515072   ;;  %v5846_v57 = vrot.slane %v5712_v6, 1  ;;  %vm14503_vm1 = vmmov %vm14495_vm0 }
 0x4b5   : > { %v1685_v56 = vsel %vm14499_vm3, %v1682_v55, %v1684_v52  ;;  %v3556_v20 = vsel %vm3183_vm10, %v3443_v13, 0.0  ;;  %v3484_v14 = vrot.slane %v3325_v53, 1  ;;  %v3755_v5 = vmul.f32 %v3619_v25, %v3257_v30  ;;  %v14502_v13 = vld [vmem:[#allocation137_spill] sm:$0xff]  ;;  %vm14504_vm2 = vmmov %vm14495_vm0 }
 0x4b6   : > { %v3873_v63 = vsel %vm3069_vm12, %v3872_v47, %v12344_v18  ;;  %v5555_v45 = vsel %vm3069_vm12, %v5554_v29, %v12348_v49  ;;  %v5437_v11 = vmul.f32 %v5369_v37, %v1684_v52  ;;  %v5729_v44 = vmul.f32 %v5369_v37, %v3619_v25  ;;  %v14501_v25 = vld [vmem:[#allocation61_spill] sm:$0xff] }
 0x4b7   : > { %v3986_v10 = vsel %vm3183_vm10, %v3873_v63, 0.0  ;;  %v5668_v42 = vsel %vm3183_vm10, %v5555_v45, 0.0  ;;  %v5847_v34 = vsel %vm3069_vm12, %v5846_v57, %v12352_v61  ;;  %v3485_v55 = vsel %vm3069_vm12, %v3484_v14, %v12356_v4 }
 0x4b8   : > { %v5960_v53 = vsel %vm3183_vm10, %v5847_v34, 0.0  ;;  %v3572_v30 = vsel %vm14500_vm7, %v3485_v55, 0.0  ;;  %v3914_v18 = vrot.slane %v3755_v5, 1  ;;  %v5596_v28 = vrot.slane %v5437_v11, 1  ;;  %v1825_v5 = vpop.permute.xlu0 %1824 }
 0x4b9   : > { %v12503_v40 = vadd.f32 %v3572_v30, %v3571_v60  ;;  %v5888_v49 = vrot.slane %v5729_v44, 1  ;;  %v3256_v52 = vmul.f32 %v14501_v25, %v11720_v17  ;;  %v3618_v6 = vrot.slane %v1685_v56, 1 }
 0x4ba   : > { %v3915_v37 = vsel %vm3069_vm12, %v3914_v18, %v12370_v24  ;;  %v5597_v61 = vsel %vm3069_vm12, %v5596_v28, %v12360_v35  ;;  %v5368_v4 = vmul.f32 %v11672_v38, %v11882_v36  ;;  %v3269_v47 = vmul.f32 %v14502_v13, %v11590_v2  ;;  %v1823_v38 = vpop.permute.xlu1 %1822  ;;  %v14505_v18 = vld [vmem:[#allocation113_spill] sm:$0xff] }
 0x4bb   : > { %v4002_v60 = vsel %vm14503_vm1, %v3915_v37, 0.0  ;;  %v5684_v29 = vsel %vm14504_vm2, %v5597_v61, 0.0  ;;  %v5889_v57 = vsel %vm3069_vm12, %v5888_v49, %v12374_v31  ;;  %v3324_v14 = vmul.f32 %v3256_v52, %v1685_v56 }
 0x4bc   : > { %v12519_v63 = vadd.f32 %v4002_v60, %v4001_v59  ;;  %v12521_v24 = vadd.f32 %v5684_v29, %v5683_v0  ;;  %v5976_v35 = vsel %vm14495_vm0, %v5889_v57, 0.0  ;;  %v3754_v45 = vmul.f32 %v3618_v6, %v3256_v52 }
 0x4bd   : > { %v12524_v11 = vadd.f32 %v5976_v35, %v5975_v3  ;;  %v3470_v44 = vrot.slane %v3324_v14, 1  ;;  %v5436_v34 = vmul.f32 %v5368_v4, %v1685_v56  ;;  %v5728_v55 = vmul.f32 %v5368_v4, %v3618_v6 }
 0x4be   : > { %v3900_v30 = vrot.slane %v3754_v45, 1  ;;  %v5381_v28 = vmul.f32 %v14505_v18, %v11499_v58  ;;  %v3337_v31 = vmul.f32 %v3269_v47, %v1825_v5  ;;  %v3631_v49 = vrot.slane %v1825_v5, 1  ;;  %v14507_v45 = vld [vmem:[#allocation119_spill] sm:$0xff] }
 0x4bf   : > { %v3471_v59 = vsel %vm3069_vm12, %v3470_v44, %v12378_v15  ;;  %v5582_v0 = vrot.slane %v5436_v34, 1  ;;  %v5874_v25 = vrot.slane %v5728_v55, 1  ;;  %vm14506_vm14 = vcmask 490496   ;;  %v1837_v34 = vpop.permute.xlu0 %1836 }
 0x4c0   : > { %v1871_v37 = vsel %vm14506_vm14, %v1823_v38, %v1825_v5  ;;  %v3557_v52 = vsel %vm3183_vm10, %v3471_v59, 0.0  ;;  %v3901_v3 = vsel %vm3069_vm12, %v3900_v30, %v12385_v22  ;;  %v3508_v56 = vrot.slane %v3337_v31, 3  ;;  %v14508_v38 = vld [vmem:[#allocation112_spill] sm:$0xff]  ;;  %v14510_v30 = vld [vmem:[#allocation39_spill] sm:$0xff]  ;;  %vm14520_vm1 = vmmov %vm14506_vm14 }
 0x4c1   : > { %v3767_v6 = vmul.f32 %v3631_v49, %v3269_v47  ;;  %v12534_v61 = vadd.f32 %v3557_v52, %v3556_v20  ;;  %v3987_v4 = vsel %vm3183_vm10, %v3901_v3, 0.0  ;;  %v5583_v13 = vsel %vm3069_vm12, %v5582_v0, %v12389_v51 }
 0x4c2   : > { %v5875_v15 = vsel %vm3069_vm12, %v5874_v25, %v12393_v9  ;;  %v12541_v60 = vadd.f32 %v3987_v4, %v3986_v10  ;;  %v5669_v29 = vsel %vm3183_vm10, %v5583_v13, 0.0  ;;  %v12547_v22 = vsel %vm3063_vm13, %v3508_v56, %v12397_v19  ;;  %v1835_v4 = vpop.permute.xlu1 %1834 }
 0x4c3   : > { %v5961_v57 = vsel %vm3183_vm10, %v5875_v15, 0.0  ;;  %v12549_v20 = vadd.f32 %v5669_v29, %v5668_v42  ;;  %v3938_v14 = vrot.slane %v3767_v6, 3  ;;  %v5449_v35 = vmul.f32 %v5381_v28, %v1825_v5  ;;  %v14509_v42 = vld [vmem:[#allocation20_spill] sm:$0xff] }
 0x4c4   : > { %v12551_v47 = vadd.f32 %v5961_v57, %v5960_v53  ;;  %v5741_v51 = vmul.f32 %v5381_v28, %v3631_v49  ;;  %v3268_v9 = vmul.f32 %v14507_v45, %v11720_v17  ;;  %v3630_v10 = vrot.slane %v1871_v37, 1 }
 0x4c5   : > { %v5380_v44 = vmul.f32 %v14508_v38, %v11882_v36  ;;  %v12559_v55 = vsel %vm3063_vm13, %v3938_v14, %v12405_v23  ;;  %v5620_v19 = vrot.slane %v5449_v35, 3  ;;  %v3275_v53 = vmul.f32 %v14509_v42, %v11590_v2  ;;  %v1849_v38 = vpop.permute.xlu0 %1848 }
 0x4c6   : > { %v5387_v5 = vmul.f32 %v14510_v30, %v11499_v58  ;;  %v5912_v18 = vrot.slane %v5741_v51, 3  ;;  %v3336_v28 = vmul.f32 %v3268_v9, %v1871_v37  ;;  %v3766_v31 = vmul.f32 %v3630_v10, %v3268_v9 }
 0x4c7   : > { %v5448_v49 = vmul.f32 %v5380_v44, %v1871_v37  ;;  %v12567_v59 = vsel %vm3063_vm13, %v5620_v19, %v12401_v1  ;;  %v5740_v0 = vmul.f32 %v5380_v44, %v3630_v10  ;;  %v3343_v25 = vmul.f32 %v3275_v53, %v1837_v34 }
 0x4c8   : > { %v3637_v52 = vrot.slane %v1837_v34, 1  ;;  %v12571_v23 = vsel %vm3063_vm13, %v5912_v18, %v12415_v54  ;;  %v3494_v3 = vrot.slane %v3336_v28, 3  ;;  %v3924_v56 = vrot.slane %v3766_v31, 3 }
 0x4c9   : > { %v5606_v6 = vrot.slane %v5448_v49, 3  ;;  %v5898_v13 = vrot.slane %v5740_v0, 3  ;;  %v14511_v15 = vrot.slane %v12268_v7, 7  ;;  %vm14512_vm5 = vcmask 1041409  }
 0x4ca   : > { %v3773_v29 = vmul.f32 %v3637_v52, %v3275_v53  ;;  %v5455_v57 = vmul.f32 %v5387_v5, %v1837_v34  ;;  %v12578_v1 = vsel %vm3063_vm13, %v3494_v3, %v12419_v41  ;;  %v12582_v14 = vsel %vm3063_vm13, %v3924_v56, %v12434_v43  ;;  %vm14515_vm3 = vmmov %vm14512_vm5 }
 0x4cb   : > { %v3529_v37 = vsel %vm14512_vm5, %v14511_v15, %v3343_v25  ;;  %v12586_v54 = vsel %vm3063_vm13, %v5606_v6, %v12442_v16  ;;  %v14513_v35 = vrot.slane %v12421_v39, 6  ;;  %v12593_v51 = vsel %vm3063_vm13, %v5898_v13, %v12446_v26  ;;  %vm14517_vm7 = vmmov %vm14515_vm3 }
 0x4cc   : > { %v14514_v45 = vrot.slane %v12274_v33, 7  ;;  %v14516_v9 = vrot.slane %v12271_v46, 7  ;;  %v5747_v10 = vmul.f32 %v5387_v5, %v3637_v52  ;;  %v14518_v16 = vrot.slane %v12425_v27, 6  ;;  %v14521_v33 = vld [vmem:[#allocation156_spill] sm:$0xff]  ;;  %vm14523_vm2 = vmmov %vm14515_vm3  ;;  %v14524_v5 = vld [vmem:[#allocation126_spill] sm:$0xff]  ;;  %v1847_v52 = vpop.permute.xlu1 %1846 }
 0x4cd   : > { %v3531_v7 = vsel %vm3054_vm8, %v14513_v35, %v3529_v37  ;;  %v14519_v44 = vrot.slane %v12423_v21, 6  ;;  %v1874_v26 = vsel %vm14520_vm1, %v1835_v4, %v1837_v34  ;;  %v3274_v42 = vmul.f32 %v14521_v33, %v11720_v17  ;;  %v14525_v27 = vld [vmem:[#allocation144_spill] sm:$0xff]  ;;  %v14527_v34 = vld [vmem:[#allocation133_spill] sm:$0xff]  ;;  %vm14529_vm0 = vmmov %vm14523_vm2 }
 0x4ce   : > { %v3959_v41 = vsel %vm14515_vm3, %v14514_v45, %v3773_v29  ;;  %v5641_v43 = vsel %vm14517_vm7, %v14516_v9, %v5455_v57  ;;  %v14522_v53 = vrot.slane %v12276_v12, 7  ;;  %v3636_v30 = vrot.slane %v1874_v26, 1  ;;  %vm14532_vm14 = vmmov %vm14529_vm0  ;;  %v14540_v33 = vld [vmem:[#allocation13_spill] sm:$0xff] }
 0x4cf   : > { %v3961_v39 = vsel %vm3054_vm8, %v14518_v16, %v3959_v41  ;;  %v5643_v19 = vsel %vm3054_vm8, %v14519_v44, %v5641_v43  ;;  %v5386_v18 = vmul.f32 %v14524_v5, %v11882_v36  ;;  %v3281_v28 = vmul.f32 %v14525_v27, %v11590_v2  ;;  %v14533_v41 = vld [vmem:[#allocation67_spill] sm:$0xff]  ;;  %vm14535_vm5 = vmmov %vm14529_vm0 }
 0x4d0   : > { %v5933_v46 = vsel %vm14523_vm2, %v14522_v53, %v5747_v10  ;;  %v14526_v21 = vrot.slane %v12427_v62, 6  ;;  %v3342_v49 = vmul.f32 %v3274_v42, %v1874_v26  ;;  %v5393_v0 = vmul.f32 %v14527_v34, %v11499_v58  ;;  %v14536_v10 = vld [vmem:[#allocation71_spill] sm:$0xff]  ;;  %vm14538_vm3 = vmmov %vm14529_vm0  ;;  %v14542_v53 = vld [vmem:[#allocation72_spill] sm:$0xff] }
 0x4d1   : > { %v3643_v25 = vrot.slane %v1849_v38, 1  ;;  %v3772_v12 = vmul.f32 %v3636_v30, %v3274_v42  ;;  %v5454_v3 = vmul.f32 %v5386_v18, %v1874_v26  ;;  %v5746_v56 = vmul.f32 %v5386_v18, %v3636_v30  ;;  %vm14544_vm7 = vmmov %vm14520_vm1 }
 0x4d2   : > { %v5935_v31 = vsel %vm3054_vm8, %v14526_v21, %v5933_v46  ;;  %v3349_v6 = vmul.f32 %v3281_v28, %v1849_v38  ;;  %v14528_v4 = vrot.slane %v12292_v50, 7  ;;  %v5461_v37 = vmul.f32 %v5393_v0, %v1849_v38 }
 0x4d3   : > { %v3779_v15 = vmul.f32 %v3643_v25, %v3281_v28  ;;  %v5753_v29 = vmul.f32 %v5393_v0, %v3643_v25  ;;  %v14530_v62 = vrot.slane %v12450_v8, 6  ;;  %v14531_v35 = vrot.slane %v12301_v32, 7  ;;  %v14546_v0 = vld [vmem:[#allocation143_spill] sm:$0xff] }
 0x4d4   : > { %v3515_v13 = vsel %vm14529_vm0, %v14528_v4, %v3342_v49  ;;  %v14534_v9 = vrot.slane %v14533_v41, 7  ;;  %v14537_v16 = vrot.slane %v14536_v10, 7  ;;  %v14539_v44 = vrot.slane %v12456_v48, 6  ;;  %v14545_v48 = vld [vmem:[#allocation158_spill] sm:$0xff] }
 0x4d5   : > { %v3517_v57 = vsel %vm3054_vm8, %v14530_v62, %v3515_v13  ;;  %v3945_v45 = vsel %vm14532_vm14, %v14531_v35, %v3772_v12  ;;  %v14541_v8 = vrot.slane %v14540_v33, 6  ;;  %v14543_v32 = vrot.slane %v14542_v53, 6  ;;  %v1829_v12 = vpop.permute.xlu0 %1828 }
 0x4d6   : > { %v5627_v43 = vsel %vm14535_vm5, %v14534_v9, %v5454_v3  ;;  %v5919_v50 = vsel %vm14538_vm3, %v14537_v16, %v5746_v56  ;;  %v3947_v26 = vsel %vm3054_vm8, %v14539_v44, %v3945_v45  ;;  %v3532_v30 = vrot.slane %v3349_v6, 5  ;;  %v1827_v3 = vpop.permute.xlu1 %1826 }
 0x4d7   : > { %v5629_v42 = vsel %vm3054_vm8, %v14541_v8, %v5627_v43  ;;  %v5921_v46 = vsel %vm3054_vm8, %v14543_v32, %v5919_v50  ;;  %v3962_v5 = vrot.slane %v3779_v15, 5  ;;  %v5644_v18 = vrot.slane %v5461_v37, 5  ;;  %vm14549_vm8 = vmmov %vm14520_vm1 }
 0x4d8   : > { %v5936_v27 = vrot.slane %v5753_v29, 5  ;;  %v1877_v28 = vsel %vm14544_vm7, %v1847_v52, %v1849_v38  ;;  %v12648_v21 = vsel %vm3057_vm9, %v3532_v30, %v3531_v7  ;;  %v3280_v49 = vmul.f32 %v14545_v48, %v11720_v17  ;;  %v14547_v7 = vld [vmem:[#allocation147_spill] sm:$0xff]  ;;  %v14548_v29 = vld [vmem:[#allocation121_spill] sm:$0xff] }
 0x4d9   : > { %v3642_v34 = vrot.slane %v1877_v28, 1  ;;  %v5392_v25 = vmul.f32 %v14546_v0, %v11882_v36  ;;  %v12655_v56 = vsel %vm3057_vm9, %v3962_v5, %v3961_v39  ;;  %v5645_v6 = vsel %vm3057_vm9, %v5644_v18, %v5643_v19 }
 0x4da   : > { %v12659_v4 = vsel %vm3057_vm9, %v5936_v27, %v5935_v31  ;;  %v3271_v38 = vmul.f32 %v14547_v7, %v11590_v2  ;;  %v3348_v52 = vmul.f32 %v3280_v49, %v1877_v28  ;;  %v5383_v62 = vmul.f32 %v14548_v29, %v11499_v58  ;;  %v14550_v27 = vld [vmem:[#allocation116_spill] sm:$0xff] }
 0x4db   : > { %v3778_v13 = vmul.f32 %v3642_v34, %v3280_v49  ;;  %v5460_v15 = vmul.f32 %v5392_v25, %v1877_v28  ;;  %v5752_v37 = vmul.f32 %v5392_v25, %v3642_v34  ;;  %v3633_v45 = vrot.slane %v1829_v12, 1  ;;  %v1853_v34 = vpop.permute.xlu0 %1852 }
 0x4dc   : > { %v3339_v35 = vmul.f32 %v3271_v38, %v1829_v12  ;;  %v1872_v39 = vsel %vm14549_vm8, %v1827_v3, %v1829_v12  ;;  %v3518_v41 = vrot.slane %v3348_v52, 5  ;;  %v5451_v16 = vmul.f32 %v5383_v62, %v1829_v12  ;;  %v14553_v12 = vld [vmem:[#allocation109_spill] sm:$0xff] }
 0x4dd   : > { %v3948_v9 = vrot.slane %v3778_v13, 5  ;;  %v5630_v19 = vrot.slane %v5460_v15, 5  ;;  %v5922_v43 = vrot.slane %v5752_v37, 5  ;;  %v3769_v10 = vmul.f32 %v3633_v45, %v3271_v38 }
 0x4de   : > { %v3510_v31 = vrot.slane %v3339_v35, 2  ;;  %v5743_v50 = vmul.f32 %v5383_v62, %v3633_v45  ;;  %v12667_v44 = vsel %vm3057_vm9, %v3518_v41, %v3517_v57  ;;  %v5622_v5 = vrot.slane %v5451_v16, 2 }
 0x4df   : > { %v12670_v33 = vsel %vm3057_vm9, %v3948_v9, %v3947_v26  ;;  %v12673_v8 = vsel %vm3057_vm9, %v5630_v19, %v5629_v42  ;;  %v12676_v53 = vsel %vm3057_vm9, %v5922_v43, %v5921_v46  ;;  %v3940_v30 = vrot.slane %v3769_v10, 2  ;;  %v14551_v26 = vld [vmem:[#allocation120_spill] sm:$0xff]  ;;  %v1851_v46 = vpop.permute.xlu1 %1850  ;;  %vm14554_vm9 = vmmov %vm14520_vm1  ;;  %v1833_v16 = vpop.permute.xlu0 %1832 }
 0x4e0   : > { %v12680_v32 = vsel %vm3066_vm11, %v3510_v31, %v12547_v22  ;;  %v5914_v18 = vrot.slane %v5743_v50, 2  ;;  %v3270_v57 = vmul.f32 %v14550_v27, %v11720_v17  ;;  %v3632_v28 = vrot.slane %v1872_v39, 1  ;;  %v14552_v42 = vld [vmem:[#allocation148_spill] sm:$0xff] }
 0x4e1   : > { %v5382_v48 = vmul.f32 %v14551_v26, %v11882_v36  ;;  %v3283_v49 = vmul.f32 %v14552_v42, %v11590_v2  ;;  %v3941_v0 = vsel %vm3066_vm11, %v3940_v30, %v12559_v55  ;;  %v5623_v22 = vsel %vm3066_vm11, %v5622_v5, %v12567_v59 }
 0x4e2   : > { %v5915_v25 = vsel %vm3066_vm11, %v5914_v18, %v12571_v23  ;;  %v5395_v3 = vmul.f32 %v14553_v12, %v11499_v58  ;;  %v3338_v7 = vmul.f32 %v3270_v57, %v1872_v39  ;;  %v3768_v38 = vmul.f32 %v3632_v28, %v3270_v57 }
 0x4e3   : > { %v5450_v52 = vmul.f32 %v5382_v48, %v1872_v39  ;;  %v5742_v13 = vmul.f32 %v5382_v48, %v3632_v28  ;;  %v3351_v15 = vmul.f32 %v3283_v49, %v1853_v34  ;;  %v3645_v37 = vrot.slane %v1853_v34, 1 }
 0x4e4   : > { %v5463_v29 = vmul.f32 %v5395_v3, %v1853_v34  ;;  %v1878_v62 = vsel %vm14554_vm9, %v1851_v46, %v1853_v34  ;;  %v3496_v35 = vrot.slane %v3338_v7, 2  ;;  %v3926_v55 = vrot.slane %v3768_v38, 2 }
 0x4e5   : > { %v5608_v45 = vrot.slane %v5450_v52, 2  ;;  %v5900_v41 = vrot.slane %v5742_v13, 2  ;;  %v3534_v59 = vrot.slane %v3351_v15, 4  ;;  %v3781_v9 = vmul.f32 %v3645_v37, %v3283_v49 }
 0x4e6   : > { %v5646_v19 = vrot.slane %v5463_v29, 4  ;;  %v5755_v23 = vmul.f32 %v5395_v3, %v3645_v37  ;;  %v12699_v43 = vsel %vm3066_vm11, %v3496_v35, %v12578_v1  ;;  %v12703_v39 = vsel %vm3066_vm11, %v3926_v55, %v12582_v14  ;;  %v14555_v14 = vld [vmem:[#allocation44_spill] sm:$0xff]  ;;  %v1831_v3 = vpop.permute.xlu1 %1830 }
 0x4e7   : > { %v12707_v31 = vsel %vm3066_vm11, %v5608_v45, %v12586_v54  ;;  %v12711_v10 = vsel %vm3066_vm11, %v5900_v41, %v12593_v51  ;;  %v12715_v50 = vsel %vm3060_vm6, %v3534_v59, %v12648_v21  ;;  %v3964_v30 = vrot.slane %v3781_v9, 4  ;;  %v14556_v54 = vld [vmem:[#allocation83_spill] sm:$0xff]  ;;  %v14557_v51 = vld [vmem:[#allocation30_spill] sm:$0xff] }
 0x4e8   : > { %v12718_v1 = vsel %vm3060_vm6, %v5646_v19, %v5645_v6  ;;  %v5938_v5 = vrot.slane %v5755_v23, 4  ;;  %v3282_v18 = vmul.f32 %v14555_v14, %v11720_v17  ;;  %v3644_v27 = vrot.slane %v1878_v62, 1  ;;  %v14558_v6 = vld [vmem:[#allocation136_spill] sm:$0xff] }
 0x4e9   : > { %v5394_v57 = vmul.f32 %v14556_v54, %v11882_v36  ;;  %v3273_v28 = vmul.f32 %v14557_v51, %v11590_v2  ;;  %v12728_v26 = vsel %vm3060_vm6, %v3964_v30, %v12655_v56  ;;  %v5385_v48 = vmul.f32 %v14558_v6, %v11499_v58  ;;  %v14564_v54 = vld [vmem:[#allocation53_spill] sm:$0xff]  ;;  %v14565_v51 = vld [vmem:[#allocation123_spill] sm:$0xff] }
 0x4ea   : > { %v12732_v21 = vsel %vm3060_vm6, %v5938_v5, %v12659_v4  ;;  %v3635_v42 = vrot.slane %v1833_v16, 1  ;;  %v3350_v49 = vmul.f32 %v3282_v18, %v1878_v62  ;;  %v3780_v34 = vmul.f32 %v3644_v27, %v3282_v18  ;;  %v1857_v18 = vpop.permute.xlu0 %1856 }
 0x4eb   : > { %v5462_v46 = vmul.f32 %v5394_v57, %v1878_v62  ;;  %v5754_v12 = vmul.f32 %v5394_v57, %v3644_v27  ;;  %v3341_v7 = vmul.f32 %v3273_v28, %v1833_v16  ;;  %v5453_v52 = vmul.f32 %v5385_v48, %v1833_v16 }
 0x4ec   : > { %v3771_v38 = vmul.f32 %v3635_v42, %v3273_v28  ;;  %v5745_v13 = vmul.f32 %v5385_v48, %v3635_v42  ;;  %v3520_v15 = vrot.slane %v3350_v49, 4  ;;  %v3950_v56 = vrot.slane %v3780_v34, 4 }
 0x4ed   : > { %v5632_v37 = vrot.slane %v5462_v46, 4  ;;  %v5924_v29 = vrot.slane %v5754_v12, 4  ;;  %v3512_v35 = vrot.slane %v3341_v7, 1  ;;  %v5624_v55 = vrot.slane %v5453_v52, 1 }
 0x4ee   : > { %v3942_v4 = vrot.slane %v3771_v38, 1  ;;  %v5916_v45 = vrot.slane %v5745_v13, 1  ;;  %v12738_v41 = vsel %vm3060_vm6, %v3520_v15, %v12667_v44  ;;  %v12742_v62 = vsel %vm3060_vm6, %v3950_v56, %v12670_v33 }
 0x4ef   : > { %v12746_v59 = vsel %vm3060_vm6, %v5632_v37, %v12673_v8  ;;  %v12750_v9 = vsel %vm3060_vm6, %v5924_v29, %v12676_v53  ;;  %v3513_v19 = vsel %vm3069_vm12, %v3512_v35, %v12680_v32  ;;  %v5625_v44 = vsel %vm3069_vm12, %v5624_v55, %v5623_v22  ;;  %v1855_v53 = vpop.permute.xlu1 %1854  ;;  %vm14563_vm6 = vmmov %vm14544_vm7 }
 0x4f0   : > { %v3943_v23 = vsel %vm3069_vm12, %v3942_v4, %v3941_v0  ;;  %v5917_v30 = vsel %vm3069_vm12, %v5916_v45, %v5915_v25  ;;  %vm14559_vm1 = vcmask 285696   ;;  %v1873_v25 = vsel %vm14563_vm6, %v1831_v3, %v1833_v16  ;;  %vm14568_vm5 = vmmov %vm14563_vm6  ;;  %v14569_v16 = vld [vmem:[#allocation151_spill] sm:$0xff] }
 0x4f1   : > { %v3574_v33 = vsel %vm14559_vm1, %v3513_v19, 0.0  ;;  %vm14560_vm2 = vmmov %vm14559_vm1  ;;  %v3272_v57 = vmul.f32 %v14564_v54, %v11720_v17  ;;  %v5384_v28 = vmul.f32 %v14565_v51, %v11882_v36  ;;  %v3634_v48 = vrot.slane %v1873_v25, 1  ;;  %v14570_v51 = vld [vmem:[#allocation70_spill] sm:$0xff] }
 0x4f2   : > { %v4004_v5 = vsel %vm14560_vm2, %v3943_v23, 0.0  ;;  %vm14561_vm0 = vmmov %vm14559_vm1  ;;  %v12762_v27 = vadd.f32 %v3574_v33, %v12503_v40  ;;  %v14566_v40 = vld [vmem:[#allocation110_spill] sm:$0xff]  ;;  %v1879_v49 = vsel %vm14568_vm5, %v1855_v53, %v1857_v18  ;;  %v3284_v12 = vmul.f32 %v14569_v16, %v11720_v17 }
 0x4f3   : > { %v5686_v8 = vsel %vm14561_vm0, %v5625_v44, 0.0  ;;  %vm14562_vm14 = vmmov %vm14561_vm0  ;;  %v12765_v32 = vadd.f32 %v4004_v5, %v12519_v63  ;;  %v3285_v6 = vmul.f32 %v14566_v40, %v11590_v2  ;;  %v14567_v63 = vld [vmem:[#allocation138_spill] sm:$0xff]  ;;  %v5452_v34 = vmul.f32 %v5384_v28, %v1873_v25  ;;  %v1859_v53 = vpop.permute.xlu1 %1858 }
 0x4f4   : > { %v5978_v14 = vsel %vm14562_vm14, %v5917_v30, 0.0  ;;  %v12768_v0 = vadd.f32 %v5686_v8, %v12521_v24  ;;  %v5397_v42 = vmul.f32 %v14567_v63, %v11499_v58  ;;  %v3647_v24 = vrot.slane %v1857_v18, 1  ;;  %vm14573_vm3 = vmmov %vm14568_vm5 }
 0x4f5   : > { %v12771_v22 = vadd.f32 %v5978_v14, %v12524_v11  ;;  %v3340_v11 = vmul.f32 %v3272_v57, %v1873_v25  ;;  %v3353_v46 = vmul.f32 %v3285_v6, %v1857_v18  ;;  %v3770_v3 = vmul.f32 %v3634_v48, %v3272_v57  ;;  %vm14580_vm7 = vmmov %vm14561_vm0 }
 0x4f6   : > { %v5744_v7 = vmul.f32 %v5384_v28, %v3634_v48  ;;  %v3783_v38 = vmul.f32 %v3647_v24, %v3285_v6  ;;  %v5465_v52 = vmul.f32 %v5397_v42, %v1857_v18  ;;  %v5610_v15 = vrot.slane %v5452_v34, 1  ;;  %v1861_v18 = vpop.permute.xlu0 %1860  ;;  %vm14581_vm8 = vmmov %vm14561_vm0 }
 0x4f7   : > { %v3498_v13 = vrot.slane %v3340_v11, 1  ;;  %v3536_v56 = vrot.slane %v3353_v46, 3  ;;  %v5757_v37 = vmul.f32 %v5397_v42, %v3647_v24  ;;  %v3928_v29 = vrot.slane %v3770_v3, 1  ;;  %vm14582_vm9 = vmmov %vm14561_vm0 }
 0x4f8   : > { %v5902_v35 = vrot.slane %v5744_v7, 1  ;;  %v3966_v4 = vrot.slane %v3783_v38, 3  ;;  %v5648_v55 = vrot.slane %v5465_v52, 3  ;;  %v5611_v19 = vsel %vm3069_vm12, %v5610_v15, %v12707_v31  ;;  %vm14583_vm1 = vmmov %vm14561_vm0 }
 0x4f9   : > { %v3499_v45 = vsel %vm3069_vm12, %v3498_v13, %v12699_v43  ;;  %v3537_v23 = vsel %vm3063_vm13, %v3536_v56, %v12715_v50  ;;  %v5940_v44 = vrot.slane %v5757_v37, 3  ;;  %v3929_v33 = vsel %vm3069_vm12, %v3928_v29, %v12703_v39  ;;  %v14574_v29 = vld [vmem:[#allocation152_spill] sm:$0xff] }
 0x4fa   : > { %v3559_v30 = vsel %vm3183_vm10, %v3499_v45, 0.0  ;;  %v5671_v5 = vsel %vm3183_vm10, %v5611_v19, 0.0  ;;  %v5903_v8 = vsel %vm3069_vm12, %v5902_v35, %v12711_v10  ;;  %v3989_v43 = vsel %vm3183_vm10, %v3929_v33, 0.0 }
 0x4fb   : > { %v12798_v14 = vadd.f32 %v3559_v30, %v12534_v61  ;;  %v12802_v31 = vadd.f32 %v5671_v5, %v12549_v20  ;;  %v5963_v50 = vsel %vm3183_vm10, %v5903_v8, 0.0  ;;  %v12806_v25 = vadd.f32 %v3989_v43, %v12541_v60  ;;  %v14571_v60 = vld [vmem:[#allocation118_spill] sm:$0xff] }
 0x4fc   : > { %v12809_v39 = vadd.f32 %v5963_v50, %v12551_v47  ;;  %v3967_v10 = vsel %vm3063_vm13, %v3966_v4, %v12728_v26  ;;  %v5649_v61 = vsel %vm3063_vm13, %v5648_v55, %v12718_v1  ;;  %v5941_v20 = vsel %vm3063_vm13, %v5940_v44, %v12732_v21  ;;  %v14572_v47 = vld [vmem:[#allocation141_spill] sm:$0xff]  ;;  %v1863_v4 = vpop.permute.xlu1 %1862  ;;  %v14577_v8 = vld [vmem:[#allocation114_spill] sm:$0xff] }
 0x4fd   : > { %v3352_v54 = vmul.f32 %v3284_v12, %v1879_v49  ;;  %v3646_v57 = vrot.slane %v1879_v49, 1  ;;  %v5396_v28 = vmul.f32 %v14570_v51, %v11882_v36  ;;  %v3287_v40 = vmul.f32 %v14571_v60, %v11590_v2 }
 0x4fe   : > { %v5399_v6 = vmul.f32 %v14572_v47, %v11499_v58  ;;  %v3649_v48 = vrot.slane %v1861_v18, 1  ;;  %v1880_v26 = vsel %vm14573_vm3, %v1859_v53, %v1861_v18  ;;  %v3286_v35 = vmul.f32 %v14574_v29, %v11720_v17 }
 0x4ff   : > { %v3522_v63 = vrot.slane %v3352_v54, 3  ;;  %v3782_v42 = vmul.f32 %v3646_v57, %v3284_v12  ;;  %v5464_v1 = vmul.f32 %v5396_v28, %v1879_v49  ;;  %v5756_v24 = vmul.f32 %v5396_v28, %v3646_v57 }
 0x500   : > { %v3355_v11 = vmul.f32 %v3287_v40, %v1861_v18  ;;  %v3785_v21 = vmul.f32 %v3649_v48, %v3287_v40  ;;  %v5467_v34 = vmul.f32 %v5399_v6, %v1861_v18  ;;  %v5759_v46 = vmul.f32 %v5399_v6, %v3649_v48  ;;  %v14579_v18 = vld [vmem:[#allocation111_spill] sm:$0xff] }
 0x501   : > { %v3523_v16 = vsel %vm3063_vm13, %v3522_v63, %v12738_v41  ;;  %v3952_v3 = vrot.slane %v3782_v42, 3  ;;  %v5634_v7 = vrot.slane %v5464_v1, 3  ;;  %v5926_v38 = vrot.slane %v5756_v24, 3  ;;  %v1865_v41 = vpop.permute.xlu0 %1864 }
 0x502   : > { %v3538_v52 = vrot.slane %v3355_v11, 2  ;;  %v3968_v13 = vrot.slane %v3785_v21, 2  ;;  %v5650_v15 = vrot.slane %v5467_v34, 2  ;;  %v5942_v56 = vrot.slane %v5759_v46, 2 }
 0x503   : > { %v3953_v37 = vsel %vm3063_vm13, %v3952_v3, %v12742_v62  ;;  %v5635_v49 = vsel %vm3063_vm13, %v5634_v7, %v12746_v59  ;;  %v5927_v12 = vsel %vm3063_vm13, %v5926_v38, %v12750_v9  ;;  %v3354_v62 = vmul.f32 %v3286_v35, %v1880_v26  ;;  %v14575_v59 = vld [vmem:[#allocation46_spill] sm:$0xff]  ;;  %v14576_v9 = vld [vmem:[#allocation132_spill] sm:$0xff]  ;;  %vm14578_vm13 = vmmov %vm14573_vm3 }
 0x504   : > { %v3539_v55 = vsel %vm3066_vm11, %v3538_v52, %v3537_v23  ;;  %v3969_v45 = vsel %vm3066_vm11, %v3968_v13, %v3967_v10  ;;  %v5651_v19 = vsel %vm3066_vm11, %v5650_v15, %v5649_v61  ;;  %v5943_v44 = vsel %vm3066_vm11, %v5942_v56, %v5941_v20 }
 0x505   : > { %v3648_v30 = vrot.slane %v1880_v26, 1  ;;  %v5398_v33 = vmul.f32 %v14575_v59, %v11882_v36  ;;  %v3289_v5 = vmul.f32 %v14576_v9, %v11590_v2  ;;  %v5401_v43 = vmul.f32 %v14577_v8, %v11499_v58  ;;  %v1923_v56 = vpop.permute.xlu0 %1922 }
 0x506   : > { %v3651_v50 = vrot.slane %v1865_v41, 1  ;;  %v1881_v23 = vsel %vm14578_vm13, %v1863_v4, %v1865_v41  ;;  %v3288_v53 = vmul.f32 %v14579_v18, %v11720_v17  ;;  %v3524_v10 = vrot.slane %v3354_v62, 2 }
 0x507   : > { %v3784_v61 = vmul.f32 %v3648_v30, %v3286_v35  ;;  %v5466_v20 = vmul.f32 %v5398_v33, %v1880_v26  ;;  %v5758_v54 = vmul.f32 %v5398_v33, %v3648_v30  ;;  %v3357_v57 = vmul.f32 %v3289_v5, %v1865_v41 }
 0x508   : > { %v3787_v51 = vmul.f32 %v3651_v50, %v3289_v5  ;;  %v5469_v28 = vmul.f32 %v5401_v43, %v1865_v41  ;;  %v5761_v60 = vmul.f32 %v5401_v43, %v3651_v50  ;;  %v3525_v40 = vsel %vm3066_vm11, %v3524_v10, %v3523_v16 }
 0x509   : > { %v3954_v47 = vrot.slane %v3784_v61, 2  ;;  %v5636_v6 = vrot.slane %v5466_v20, 2  ;;  %v5928_v48 = vrot.slane %v5758_v54, 2  ;;  %v3540_v63 = vrot.slane %v3357_v57, 1 }
 0x50a   : > { %v3970_v42 = vrot.slane %v3787_v51, 1  ;;  %v5652_v1 = vrot.slane %v5469_v28, 1  ;;  %v5944_v24 = vrot.slane %v5761_v60, 1  ;;  %v3356_v34 = vmul.f32 %v3288_v53, %v1881_v23 }
 0x50b   : > { %v3955_v11 = vsel %vm3066_vm11, %v3954_v47, %v3953_v37  ;;  %v5637_v21 = vsel %vm3066_vm11, %v5636_v6, %v5635_v49  ;;  %v5929_v26 = vsel %vm3066_vm11, %v5928_v48, %v5927_v12  ;;  %v3541_v46 = vsel %vm3069_vm12, %v3540_v63, %v3539_v55  ;;  %v1921_v37 = vpop.permute.xlu1 %1920  ;;  %v14584_v55 = vld [vmem:[#allocation153_spill] sm:$0xff] }
 0x50c   : > { %v3971_v3 = vsel %vm3069_vm12, %v3970_v42, %v3969_v45  ;;  %v5653_v16 = vsel %vm3069_vm12, %v5652_v1, %v5651_v19  ;;  %v5945_v7 = vsel %vm3069_vm12, %v5944_v24, %v5943_v44  ;;  %v3576_v38 = vsel %vm14580_vm7, %v3541_v46, 0.0  ;;  %v14585_v19 = vld [vmem:[#allocation149_spill] sm:$0xff]  ;;  %v1919_v42 = vpop.permute.xlu0 %1918 }
 0x50d   : > { %v4006_v52 = vsel %vm14581_vm8, %v3971_v3, 0.0  ;;  %v5688_v13 = vsel %vm14582_vm9, %v5653_v16, 0.0  ;;  %v5980_v15 = vsel %vm14583_vm1, %v5945_v7, 0.0  ;;  %v12860_v49 = vadd.f32 %v3576_v38, %v12762_v27  ;;  %v14586_v27 = vld [vmem:[#allocation59_spill] sm:$0xff]  ;;  %v14591_v38 = vld [vmem:[#allocation105_spill] sm:$0xff] }
 0x50e   : > { %v12863_v12 = vadd.f32 %v4006_v52, %v12765_v32  ;;  %v12866_v29 = vadd.f32 %v5688_v13, %v12768_v0  ;;  %v12869_v35 = vadd.f32 %v5980_v15, %v12771_v22  ;;  %v3526_v41 = vrot.slane %v3356_v34, 1  ;;  %v14588_v0 = vld [vmem:[#allocation140_spill] sm:$0xff]  ;;  %v14590_v16 = vld [vmem:[#allocation107_spill] sm:$0xff] }
 0x50f   : > { %v3650_v4 = vrot.slane %v1881_v23, 1  ;;  %v5400_v45 = vmul.f32 %v14584_v55, %v11882_v36  ;;  %v3293_v44 = vmul.f32 %v14585_v19, %v11590_v2  ;;  %v5405_v62 = vmul.f32 %v14586_v27, %v11499_v58  ;;  %v1917_v1 = vpop.permute.xlu1 %1916 }
 0x510   : > { %v3655_v30 = vrot.slane %v1923_v56, 1  ;;  %vm14587_vm11 = vcmask 515072   ;;  %v3292_v59 = vmul.f32 %v14588_v0, %v11720_v17  ;;  %v3527_v22 = vsel %vm3069_vm12, %v3526_v41, %v3525_v40 }
 0x511   : > { %v1925_v32 = vsel %vm14587_vm11, %v1921_v37, %v1923_v56  ;;  %v3786_v33 = vmul.f32 %v3650_v4, %v3288_v53  ;;  %v5468_v9 = vmul.f32 %v5400_v45, %v1881_v23  ;;  %v5760_v5 = vmul.f32 %v5400_v45, %v3650_v4 }
 0x512   : > { %v3561_v8 = vsel %vm3183_vm10, %v3527_v22, 0.0  ;;  %v3361_v43 = vmul.f32 %v3293_v44, %v1923_v56  ;;  %v3791_v50 = vmul.f32 %v3655_v30, %v3293_v44  ;;  %v5473_v18 = vmul.f32 %v5405_v62, %v1923_v56 }
 0x513   : > { %v3562_v10 = vadd.f32 %v3561_v8, %v12798_v14  ;;  %v3956_v61 = vrot.slane %v3786_v33, 1  ;;  %v5638_v20 = vrot.slane %v5468_v9, 1  ;;  %v5930_v54 = vrot.slane %v5760_v5, 1 }
 0x514   : > { %v3544_v57 = vrot.slane %v3361_v43, 7  ;;  %v3974_v51 = vrot.slane %v3791_v50, 7  ;;  %v5656_v28 = vrot.slane %v5473_v18, 7  ;;  %v5765_v60 = vmul.f32 %v5405_v62, %v3655_v30 }
 0x515   : > { %v3957_v47 = vsel %vm3069_vm12, %v3956_v61, %v3955_v11  ;;  %v5639_v53 = vsel %vm3069_vm12, %v5638_v20, %v5637_v21  ;;  %v5931_v23 = vsel %vm3069_vm12, %v5930_v54, %v5929_v26  ;;  %v3360_v40 = vmul.f32 %v3292_v59, %v1925_v32  ;;  %v14589_v26 = vld [vmem:[#allocation103_spill] sm:$0xff]  ;;  %vm14592_vm12 = vmmov %vm14587_vm11 }
 0x516   : > { %v3991_v6 = vsel %vm3183_vm10, %v3957_v47, 0.0  ;;  %v5673_v48 = vsel %vm3183_vm10, %v5639_v53, 0.0  ;;  %v5965_v14 = vsel %vm3183_vm10, %v5931_v23, 0.0  ;;  %v5948_v63 = vrot.slane %v5765_v60, 7 }
 0x517   : > { %v3992_v24 = vadd.f32 %v3991_v6, %v12806_v25  ;;  %v5674_v34 = vadd.f32 %v5673_v48, %v12802_v31  ;;  %v5966_v11 = vadd.f32 %v5965_v14, %v12809_v39  ;;  %v3542_v46 = vrot.slane %v3360_v40, 7  ;;  %v14593_v25 = vld [vmem:[#allocation134_spill] sm:$0xff]  ;;  %v14594_v31 = vld [vmem:[#allocation115_spill] sm:$0xff] }
 0x518   : > { %v3654_v21 = vrot.slane %v1925_v32, 1  ;;  %v5404_v3 = vmul.f32 %v14589_v26, %v11882_v36  ;;  %v3291_v7 = vmul.f32 %v14590_v16, %v11590_v2  ;;  %v5403_v52 = vmul.f32 %v14591_v38, %v11499_v58 }
 0x519   : > { %v3653_v13 = vrot.slane %v1919_v42, 1  ;;  %v1924_v15 = vsel %vm14592_vm12, %v1917_v1, %v1919_v42  ;;  %v3290_v56 = vmul.f32 %v14593_v25, %v11720_v17  ;;  %v5402_v39 = vmul.f32 %v14594_v31, %v11882_v36 }
 0x51a   : > { %v3790_v37 = vmul.f32 %v3654_v21, %v3292_v59  ;;  %v5472_v41 = vmul.f32 %v5404_v3, %v1925_v32  ;;  %v5764_v4 = vmul.f32 %v5404_v3, %v3654_v21  ;;  %v3359_v55 = vmul.f32 %v3291_v7, %v1919_v42 }
 0x51b   : > { %v3789_v45 = vmul.f32 %v3653_v13, %v3291_v7  ;;  %v5471_v19 = vmul.f32 %v5403_v52, %v1919_v42  ;;  %v5763_v44 = vmul.f32 %v5403_v52, %v3653_v13  ;;  %v3358_v2 = vmul.f32 %v3290_v56, %v1924_v15 }
 0x51c   : > { %v3972_v27 = vrot.slane %v3790_v37, 7  ;;  %v5654_v62 = vrot.slane %v5472_v41, 7  ;;  %v5946_v58 = vrot.slane %v5764_v4, 7  ;;  %vm14595_vm10 = vcmask 1041409  }
 0x51d   : > { %v3545_v30 = vsel %vm14595_vm10, %v3544_v57, %v3359_v55  ;;  %vm14596_vm2 = vmmov %vm14595_vm10  ;;  %v3652_v20 = vrot.slane %v1924_v15, 1  ;;  %v5470_v54 = vmul.f32 %v5402_v39, %v1924_v15  ;;  %vm6887_vm13 = vmmov 0  }
 0x51e   : > { %v3578_v0 = vsel %vm3207_vm15, %v3545_v30, 0.0  ;;  %v3975_v17 = vsel %vm14596_vm2, %v3974_v51, %v3789_v45  ;;  %vm14597_vm0 = vmmov %vm14596_vm2  ;;  %vm14606_vm8 = vcmask 1041408   ;;  %vm4256_vm2 = vcmask 31744  }
 0x51f   : > { %v5657_v22 = vsel %vm14597_vm0, %v5656_v28, %v5471_v19  ;;  %vm14598_vm14 = vmmov %vm14597_vm0  ;;  %v3579_v32 = vadd.f32 %v3578_v0, %v12860_v49  ;;  %v4008_v59 = vsel %vm3207_vm15, %v3975_v17, 0.0  ;;  %v3788_v60 = vmul.f32 %v3652_v20, %v3290_v56 }
 0x520   : > { %v5949_v36 = vsel %vm14598_vm14, %v5948_v63, %v5763_v44  ;;  %v5690_v33 = vsel %vm3207_vm15, %v5657_v22, 0.0  ;;  %v4009_v5 = vadd.f32 %v4008_v59, %v12863_v12  ;;  %vm14599_vm6 = vmmov %vm14597_vm0  ;;  %v5762_v53 = vmul.f32 %v5402_v39, %v3652_v20 }
 0x521   : > { %v5982_v9 = vsel %vm3207_vm15, %v5949_v36, 0.0  ;;  %v5691_v8 = vadd.f32 %v5690_v33, %v12866_v29  ;;  %v3543_v50 = vsel %vm14599_vm6, %v3542_v46, %v3358_v2  ;;  %v3580_v18 = vrot.slane %v3579_v32, 4  ;;  %vm14600_vm5 = vmmov %vm14597_vm0 }
 0x522   : > { %v5983_v43 = vadd.f32 %v5982_v9, %v12869_v35  ;;  %v3563_v61 = vsel %vm3191_vm4, %v3543_v50, 0.0  ;;  %v4010_v28 = vrot.slane %v4009_v5, 4  ;;  %v5655_v47 = vsel %vm14600_vm5, %v5654_v62, %v5470_v54  ;;  %vm14601_vm15 = vmmov %vm14597_vm0  ;;  %v4240_v54 = vpop.permute.xlu1 %4239 }
 0x523   : > { %v5692_v49 = vrot.slane %v5691_v8, 4  ;;  %v3564_v57 = vadd.f32 %v3563_v61, %v3562_v10  ;;  %v3581_v12 = vadd.f32 %v3580_v18, %v3579_v32  ;;  %v5675_v29 = vsel %vm3191_vm4, %v5655_v47, 0.0  ;;  %vm14602_vm3 = vmmov %vm14597_vm0 }
 0x524   : > { %v5984_v51 = vrot.slane %v5983_v43, 4  ;;  %v3973_v6 = vsel %vm14601_vm15, %v3972_v27, %v3788_v60  ;;  %v5676_v48 = vadd.f32 %v5675_v29, %v5674_v34  ;;  %v5947_v14 = vsel %vm14602_vm3, %v5946_v58, %v5762_v53  ;;  %vm14609_vm11 = vmmov %vm14606_vm8 }
 0x525   : > { %v3565_v23 = vrot.slane %v3564_v57, 4  ;;  %v5693_v35 = vadd.f32 %v5692_v49, %v5691_v8  ;;  %v3582_v63 = vrot.slane %v3581_v12, 2  ;;  %v3993_v10 = vsel %vm3191_vm4, %v3973_v6, 0.0  ;;  %vm14610_vm12 = vmmov %vm14606_vm8 }
 0x526   : > { %v5985_v40 = vadd.f32 %v5984_v51, %v5983_v43  ;;  %v5967_v42 = vsel %vm3191_vm4, %v5947_v14, 0.0  ;;  %v3994_v21 = vadd.f32 %v3993_v10, %v3992_v24  ;;  %v5677_v26 = vrot.slane %v5676_v48, 4  ;;  %vm14611_vm10 = vmmov %vm14606_vm8  ;;  %v2208_v14 = vld [vmem:[%s14613_s14] sm:$0xf] }
 0x527   : > { %v5694_v1 = vrot.slane %v5693_v35, 2  ;;  %v5968_v3 = vadd.f32 %v5967_v42, %v5966_v11  ;;  %v4011_v38 = vadd.f32 %v4010_v28, %v4009_v5  ;;  %v3566_v52 = vadd.f32 %v3565_v23, %v3564_v57 }
 0x528   : > { %v5986_v46 = vrot.slane %v5985_v40, 2  ;;  %v3995_v13 = vrot.slane %v3994_v21, 4  ;;  %v5678_v25 = vadd.f32 %v5677_v26, %v5676_v48  ;;  %v3583_v34 = vadd.f32 %v3582_v63, %v3581_v12  ;;  %v6039_v12 = vpop.permute.xlu0 %6038  ;;  %v2206_v26 = vld [vmem:[%s762_s25] sm:$0xf] }
 0x529   : > { %v5695_v16 = vadd.f32 %v5694_v1, %v5693_v35  ;;  %v5969_v15 = vrot.slane %v5968_v3, 4  ;;  %v4012_v39 = vrot.slane %v4011_v38, 2  ;;  %v3567_v37 = vrot.slane %v3566_v52, 2 }
 0x52a   : > { %v5987_v7 = vadd.f32 %v5986_v46, %v5985_v40  ;;  %v5679_v41 = vrot.slane %v5678_v25, 2  ;;  %v3996_v55 = vadd.f32 %v3995_v13, %v3994_v21  ;;  %v3584_v58 = vrot.slane %v3583_v34, 1  ;;  %v2209_v40 = vld [vmem:[%s14612_s11] sm:$0xf] }
 0x52b   : > { %v5696_v56 = vrot.slane %v5695_v16, 1  ;;  %v5970_v4 = vadd.f32 %v5969_v15, %v5968_v3  ;;  %v4013_v19 = vadd.f32 %v4012_v39, %v4011_v38  ;;  %v3568_v24 = vadd.f32 %v3567_v37, %v3566_v52  ;;  %v2207_v52 = vld [vmem:[%s762_s25 + $0x4] sm:$0xf] }
 0x52c   : > { %v5988_v31 = vrot.slane %v5987_v7, 1  ;;  %v5680_v44 = vadd.f32 %v5679_v41, %v5678_v25  ;;  %v3997_v2 = vrot.slane %v3996_v55, 2  ;;  %vm14603_vm4 = vcmask 1040384  }
 0x52d   : > { %v5971_v11 = vrot.slane %v5970_v4, 2  ;;  %v5697_v27 = vadd.f32 %v5696_v56, %v5695_v16  ;;  %v4014_v30 = vrot.slane %v4013_v19, 1  ;;  %v3569_v32 = vrot.slane %v3568_v24, 1  ;;  %vm14605_vm7 = vmmov %vm14603_vm4 }
 0x52e   : > { %v5989_v45 = vadd.f32 %v5988_v31, %v5987_v7  ;;  %v3998_v17 = vadd.f32 %v3997_v2, %v3996_v55  ;;  %v14604_v59 = vmov 0.0   ;;  %v5681_v33 = vrot.slane %v5680_v44, 1  ;;  %vm14607_vm9 = vmmov %vm14603_vm4 }
 0x52f   : > { %v5972_v0 = vadd.f32 %v5971_v11, %v5970_v4  ;;  %v4015_v36 = vadd.f32 %v4014_v30, %v4013_v19  ;;  %6429 = vmatprep.mubr.msk.f32.mxu0 %vm6887_vm13, %v14604_v59  ;;  %6434 = vmatprep.mubr.msk.f32.mxu1 %vm6887_vm13, %v14604_v59  ;;  %v3585_v8 = vadd.f32 %v3584_v58, %v3583_v34  ;;  %v6888_v61 = vmov 0   ;;  %vm14608_vm1 = vmmov %vm14603_vm4 }
 0x530   : > { %v5993_v62 = vrot.slane %v5989_v45, 7  ;;  %v3999_v5 = vrot.slane %v3998_v17, 1  ;;  %6522 = vset.pattern.permute.xlu1 %v6888_v61  ;;  %6523 = vset.pattern.permute.xlu0 %v6888_v61  ;;  %v3570_v49 = vadd.f32 %v3569_v32, %v3568_v24  ;;  %v5682_v57 = vadd.f32 %v5681_v33, %v5680_v44 }
 0x531   : > { %v5973_v9 = vrot.slane %v5972_v0, 1  ;;  %v4019_v43 = vrot.slane %v4015_v36, 7  ;;  %vm14614_vm0 = vcmask 760832   ;;  %vm14615_vm14 = vcmask 1043456  }
 0x532   : > { %v5997_v22 = vsel %vm14603_vm4, %v5697_v27, %v5993_v62  ;;  %v4000_v18 = vadd.f32 %v3999_v5, %v3998_v17  ;;  %vm14616_vm6 = vmmov %vm14614_vm0 }
 0x533   : > { %v5974_v50 = vadd.f32 %v5973_v9, %v5972_v0  ;;  %v4023_v20 = vsel %vm14605_vm7, %v3585_v8, %v4019_v43  ;;  %v6042_v29 = vsel %vm14610_vm12, %v5997_v22, %v6039_v12  ;;  %vm14617_vm5 = vmmov %vm14615_vm14 }
 0x534   : > { %v4018_v28 = vrot.slane %v4000_v18, 7  ;;  %v4243_v60 = vsel %vm14606_vm8, %v4023_v20, %v4240_v54 }
 0x535   : > { %v5992_v51 = vrot.slane %v5974_v50, 7  ;;  %4253 = vrot.lane.b32.xlu0 %v4243_v60, %s6886_s5 }
 0x536   : > { %v4022_v53 = vsel %vm14608_vm1, %v3570_v49, %v4018_v28 }
 0x537   : > { %v5996_v47 = vsel %vm14607_vm9, %v5682_v57, %v5992_v51  ;;  %v4242_v23 = vsel %vm14609_vm11, %v4022_v53, %v4240_v54 }
 0x538   : > { %4251 = vrot.lane.b32.xlu1 %v4242_v23, %s6886_s5  ;;  %v6041_v35 = vsel %vm14611_vm10, %v5996_v47, %v6039_v12 }
 0x539   : > { %6047 = vrot.lane.b32.xlu0 %v6042_v29, %s6886_s5 }
 0x53c   : > { %6045 = vrot.lane.b32.xlu1 %v6041_v35, %s6886_s5 }
 0x540   : > { %4246 = vperm.xlu1 %6522, %v2209_v40  }
 0x5a7   : > { %v4254_v6 = vpop.permute.xlu0 %4253 }
 0x5aa   : > { %v4252_v48 = vpop.permute.xlu1 %4251 }
 0x5ab   : > { %v4255_v63 = vsel %vm14614_vm0, %v4252_v48, %v4254_v6  ;;  %v6048_v10 = vpop.permute.xlu0 %6047 }
 0x5ac   : > { %6428 = vmatpush3.msk.msra.mxu0 %vm14615_vm14, %v4255_v63 }
 0x5ad   : > { %6430 = vmatmul.mubr.msk.f32.vlgmr.msra.gmra.mrb[0].mxu0 %vm4256_vm2, %v2208_v14 }
 0x5ae   : > { %v6046_v42 = vpop.permute.xlu1 %6045 }
 0x5af   : > { %v6049_v1 = vsel %vm14616_vm6, %v6046_v42, %v6048_v10 }
 0x5b0   : > { %6433 = vmatpush3.msk.msra.mxu1 %vm14617_vm5, %v6049_v1 }
 0x5b1   : > { %6435 = vmatmul.mubr.msk.f32.vlgmr.msra.gmra.mrb[0].mxu1 %vm4256_vm2, %v2208_v14 }
 0x5bf   : > { %v4247_v46 = vpop.permute.xlu1 %4246 }
 0x680   : > { %v4328_v21 = vpop.f32.mrb[0].mxu0 }
 0x681   : > { %v6431_v3 = vpop.f32.mrb[1].mxu0  ;;  %v4329_v16 = vadd.f32 %v4328_v21, %v4247_v46 }
 0x683   : > { %v4332_v7 = vadd.f32 %v4329_v16, %v2206_v26  ;;  %6131 = sbr.rel (!%p7016_p8) target bundleno = 1682 (0x692), region = 287 }
 0x684   : > { %v6118_v38 = vpop.f32.mrb[0].mxu1 }
 0x685   : > { %4333 = vst [vmem:[%s841_s23] sm:$0xf] %v4332_v7  ;;  %v6119_v13 = vadd.f32 %v6118_v38, %v4247_v46  ;;  %v6436_v15 = vpop.f32.mrb[1].mxu1 }
 0x687   : > { %v6122_v25 = vadd.f32 %v6119_v13, %v2207_v52 }
 0x689   : > { %6418 = vst [vmem:[%s841_s23 + $0x4] sm:$0xf] %v6122_v25 }
 0x68c   : > { %v6149_v34 = vld [vmem:[%s841_s23] sm:$0xf] }
 0x68d   : > { %6150 = vst [vmem:[%s6133_s4] sm:$0xf] %v6149_v34 }
 0x690   : > { %v6151_v56 = vld [vmem:[%s841_s23 + $0x4] sm:$0xf] }
 0x691   : > { %6152 = vst [vmem:[%s6133_s4 + $0x8] sm:$0xf] %v6151_v56 }
 0x692 PF: > { %s14621_s29 = sld [smem:[#allocation9_spill]]  ;;  %s14622_s5 = sld [smem:[#allocation11_spill]] }
 0x693   : > { %s14623_s19 = sld [smem:[#allocation10_spill]]  ;;  %s14624_s25 = smov %s6830_s26 }
 0x694   : > { %s14626_s27 = smov %s6838_s28 }
 0x698   : > { %p20_p2 = scmp.ge.s32.totalorder %s14621_s29, 4   ;;  %s14625_s26 = smov %s14622_s5 }
 0x699   : > { %s14627_s28 = smov %s14623_s19 }
 0x69a   :  { %22 = sbr.rel (!%p20_p2) target bundleno = 13 (0xd), region = 415 }

</bundles_post_ra>
